<compile_context>
chip_gen: v7x
topology: tpu7x:2x2x1
jax: 0.10.0
libtpu: 0.0.40
codegen_flags: <defaults>
</compile_context>

<pallas_src>
import jax
import jax.numpy as jnp
from jax import lax
from jax.experimental import pallas as pl
from jax.experimental.pallas import tpu as pltpu

VOCAB = 255          # nn.Embedding(255, E)
VOCAB_PAD = 256      # vocab padded so the one-hot / matmul K dim is lane-aligned
PACK = 4             # tokens packed per output row  -> lane-dense output (PACK*E = 128 for E=32)
CHUNK_ROWS = 256     # packed rows per inner chunk    -> 1024 tokens, one-hot <= 512 KiB bf16
CHUNK_TOK = PACK * CHUNK_ROWS


def _round_up(x, m):
    return ((x + m - 1) // m) * m


def _embed_chunk(tok_ref, tab_refs, out_ref, c):
    """One CHUNK_ROWS sub-tile: block-diagonal one-hot -> 1-2 MXU passes -> store."""
    cr = CHUNK_ROWS
    r0 = pl.multiple_of(c * cr, cr)
    ids = tok_ref[pl.ds(r0, cr), :]                                  # (cr, PACK) int32
    cols = lax.broadcasted_iota(jnp.int32, (cr, VOCAB_PAD), 1)       # (cr, 256)
    # Slot k of the packed row occupies one-hot columns [k*256, (k+1)*256),
    # matching the k-th diagonal block of the (1024, 4E) table.
    oh = jnp.concatenate(
        [(ids[:, k:k + 1] == cols).astype(jnp.bfloat16) for k in range(PACK)],
        axis=-1)                                                     # (cr, 1024) bf16
    acc = jnp.dot(oh, tab_refs[0][...], preferred_element_type=jnp.float32)
    if len(tab_refs) == 2:                                           # hi/lo split
        acc = acc + jnp.dot(oh, tab_refs[1][...], preferred_element_type=jnp.float32)
    out_ref[pl.ds(r0, cr), :] = acc.astype(out_ref.dtype)


def _embed_kernel_hilo(tok_ref, hi_ref, lo_ref, out_ref):
    n_chunks = tok_ref.shape[0] // CHUNK_ROWS

    def body(c, carry):
        _embed_chunk(tok_ref, (hi_ref, lo_ref), out_ref, c)
        return carry

    lax.fori_loop(0, n_chunks, body, 0, unroll=True)


def _embed_kernel_bf16(tok_ref, hi_ref, out_ref):
    n_chunks = tok_ref.shape[0] // CHUNK_ROWS

    def body(c, carry):
        _embed_chunk(tok_ref, (hi_ref,), out_ref, c)
        return carry

    lax.fori_loop(0, n_chunks, body, 0, unroll=True)


def aa_embedder_forward(x_ns, table, *, max_tile=8192, mode="hilo",
                        min_pallas_tokens=1024):
    """Pallas equivalent of AAEmbedder.forward: (N, S) int -> (N, S, E).

    mode="hilo": two bf16 MXU passes vs. a hi/lo split of the table
                 (error <~ 4e-6 * |w| relative to the exact f32 gather).
    mode="bf16": single bf16 MXU pass (one bf16 rounding of the selected weight).
    """
    n, s = x_ns.shape
    v, e = table.shape
    t = n * s

    # Small-T fast path: below the pallas_call overhead crossover a plain XLA
    # gather is strictly cheaper (and bit-exact).
    if t < min_pallas_tokens:
        return jnp.take(table, x_ns.astype(jnp.int32), axis=0)

    # ---- table prep: pad vocab to 256, pack-4 block-diagonal, hi/lo bf16 ----
    table_p = table.astype(jnp.float32)
    if v < VOCAB_PAD:
        table_p = jnp.pad(table_p, ((0, VOCAB_PAD - v), (0, 0)))
    bd = jnp.kron(jnp.eye(PACK, dtype=jnp.float32), table_p)        # (1024, 4e)
    hi = bd.astype(jnp.bfloat16)
    if mode == "hilo":
        lo = (bd - hi.astype(jnp.float32)).astype(jnp.bfloat16)
        tables = (hi, lo)
    elif mode == "bf16":
        tables = (hi,)
    else:
        raise ValueError(f"unknown mode: {mode!r}")
    n_passes = len(tables)

    # ---- tile selection (in tokens; multiple of CHUNK_TOK) ----
    max_tile = max(CHUNK_TOK, (max_tile // CHUNK_TOK) * CHUNK_TOK)
    tile = min(_round_up(t, CHUNK_TOK), max_tile)
    t_pad = _round_up(t, tile)
    grid = t_pad // tile
    tile_rows = tile // PACK

    tok = x_ns.reshape(t).astype(jnp.int32)
    tok = jnp.pad(tok, (0, t_pad - t))            # pad ids -> table row 0; sliced off below
    tok = tok.reshape(t_pad // PACK, PACK)

    out_dtype = table.dtype
    cost = pl.CostEstimate(
        flops=2 * n_passes * (t_pad // PACK) * (PACK * VOCAB_PAD) * (PACK * e),
        transcendentals=0,
        bytes_accessed=(t_pad * 4
                        + sum(tb.size * tb.dtype.itemsize for tb in tables)
                        + t_pad * e * jnp.dtype(out_dtype).itemsize),
    )

    kernel = _embed_kernel_hilo if n_passes == 2 else _embed_kernel_bf16
    # Constant index_map keeps the (1024, 4e) bf16 table(s) VMEM-resident.
    table_spec = pl.BlockSpec((PACK * VOCAB_PAD, PACK * e), lambda i: (0, 0))

    out = pl.pallas_call(
        kernel,
        out_shape=jax.ShapeDtypeStruct((t_pad // PACK, PACK * e), out_dtype),
        grid_spec=pltpu.PrefetchScalarGridSpec(
            num_scalar_prefetch=0,
            grid=(grid,),
            in_specs=[pl.BlockSpec((tile_rows, PACK), lambda i: (i, 0))]
                     + [table_spec] * n_passes,
            out_specs=pl.BlockSpec((tile_rows, PACK * e), lambda i: (i, 0)),
        ),
        compiler_params=pltpu.CompilerParams(
            dimension_semantics=("parallel",),
            vmem_limit_bytes=32 * 1024 * 1024,
        ),
        cost_estimate=cost,
    )(tok, *tables)

    # (t_pad/4, 4e) -> (t_pad, e): packed row r, lane block k == token 4r+k.
    return out.reshape(t_pad, e)[:t].reshape(n, s, e)


if __name__ == "__main__":
    key = jax.random.PRNGKey(0)
    k_tab, k_small, k_big = jax.random.split(key, 3)

    embedding_dim = 32
    # nn.Embedding default init ~ N(0, 1)
    table = jax.random.normal(k_tab, (VOCAB, embedding_dim), dtype=jnp.float32)

    # (1) Small input (N=2, S=8) as the module documents -> jnp.take fast path.
    x_small = jax.random.randint(k_small, (2, 8), minval=0, maxval=VOCAB, dtype=jnp.int32)
    ref_small = jnp.take(table, x_small, axis=0)
    out_small = jax.block_until_ready(aa_embedder_forward(x_small, table))
    assert out_small.shape == (2, 8, embedding_dim), out_small.shape
    assert jnp.allclose(out_small, ref_small, atol=1e-6, rtol=1e-6), "fast path mismatch"

    # (2) Larger input (N=4, S=512 -> 2048 tokens) -> Pallas kernel, hi/lo default.
    x_big = jax.random.randint(k_big, (4, 512), minval=0, maxval=VOCAB, dtype=jnp.int32)
    ref_big = jnp.take(table, x_big, axis=0)
    out_big = jax.block_until_ready(aa_embedder_forward(x_big, table))
    assert out_big.shape == (4, 512, embedding_dim), out_big.shape
    assert jnp.allclose(out_big, ref_big, atol=1e-4, rtol=1e-5), "hilo Pallas path mismatch"

    # (3) Single-pass bf16 mode: differs by one bf16 rounding of each weight.
    out_bf16 = jax.block_until_ready(aa_embedder_forward(x_big, table, mode="bf16"))
    assert out_bf16.shape == (4, 512, embedding_dim), out_bf16.shape
    assert jnp.allclose(out_bf16, ref_big, atol=2e-2, rtol=2e-2), "bf16 Pallas path mismatch"

    print("KERNEL_OK")
</pallas_src>

<mosaic_0001>
module attributes {stable_mosaic.version = 11 : i64} {
  func.func @_embed_kernel_hilo(%arg0: i32, %arg1: memref<512x4xi32, #tpu.memory_space<vmem>>, %arg2: memref<1024x128xbf16, #tpu.memory_space<vmem>>, %arg3: memref<1024x128xbf16, #tpu.memory_space<vmem>>, %arg4: memref<512x128xf32, #tpu.memory_space<vmem>>) attributes {dimension_semantics = [#tpu.dimension_semantics<parallel>], iteration_bounds = array<i64: 1>, scalar_prefetch = 0 : i64, scratch_operands = 0 : i64, tpu.core_type = #tpu.core_type<tc>, window_params = [{transform_indices = @transform_0, window_bounds = array<i64: 512, 4>}, {pipeline_mode = #tpu.pipeline_mode<synchronous>, transform_indices = @transform_1, window_bounds = array<i64: 1024, 128>}, {pipeline_mode = #tpu.pipeline_mode<synchronous>, transform_indices = @transform_2, window_bounds = array<i64: 1024, 128>}, {transform_indices = @transform_3, window_bounds = array<i64: 512, 128>}]} {
    %c0_i32 = arith.constant 0 : i32
    %c256_i32 = arith.constant 256 : i32
    %0 = arith.muli %c0_i32, %c256_i32 : i32
    %1 = tpu.assume_multiple %0, 256 : i32
    %2 = arith.index_cast %1 : i32 to index
    %c0 = arith.constant 0 : index
    %3 = vector.load %arg1[%2, %c0] : memref<512x4xi32, #tpu.memory_space<vmem>>, vector<256x4xi32>
    %4 = tpu.iota {dimensions = array<i32: 1>} : vector<256x256xi32>
    %5 = vector.extract_strided_slice %3 {offsets = [0, 0], sizes = [256, 1], strides = [1, 1]} : vector<256x4xi32> to vector<256x1xi32>
    %6 = vector.broadcast %5 : vector<256x1xi32> to vector<256x256xi32>
    %7 = arith.cmpi eq, %6, %4 : vector<256x256xi32>
    %8 = arith.extui %7 : vector<256x256xi1> to vector<256x256xi32>
    %9 = arith.sitofp %8 : vector<256x256xi32> to vector<256x256xf32>
    %10 = arith.truncf %9 : vector<256x256xf32> to vector<256x256xbf16>
    %11 = vector.extract_strided_slice %3 {offsets = [0, 1], sizes = [256, 1], strides = [1, 1]} : vector<256x4xi32> to vector<256x1xi32>
    %12 = vector.broadcast %11 : vector<256x1xi32> to vector<256x256xi32>
    %13 = arith.cmpi eq, %12, %4 : vector<256x256xi32>
    %14 = arith.extui %13 : vector<256x256xi1> to vector<256x256xi32>
    %15 = arith.sitofp %14 : vector<256x256xi32> to vector<256x256xf32>
    %16 = arith.truncf %15 : vector<256x256xf32> to vector<256x256xbf16>
    %17 = vector.extract_strided_slice %3 {offsets = [0, 2], sizes = [256, 1], strides = [1, 1]} : vector<256x4xi32> to vector<256x1xi32>
    %18 = vector.broadcast %17 : vector<256x1xi32> to vector<256x256xi32>
    %19 = arith.cmpi eq, %18, %4 : vector<256x256xi32>
    %20 = arith.extui %19 : vector<256x256xi1> to vector<256x256xi32>
    %21 = arith.sitofp %20 : vector<256x256xi32> to vector<256x256xf32>
    %22 = arith.truncf %21 : vector<256x256xf32> to vector<256x256xbf16>
    %23 = vector.extract_strided_slice %3 {offsets = [0, 3], sizes = [256, 1], strides = [1, 1]} : vector<256x4xi32> to vector<256x1xi32>
    %24 = vector.broadcast %23 : vector<256x1xi32> to vector<256x256xi32>
    %25 = arith.cmpi eq, %24, %4 : vector<256x256xi32>
    %26 = arith.extui %25 : vector<256x256xi1> to vector<256x256xi32>
    %27 = arith.sitofp %26 : vector<256x256xi32> to vector<256x256xf32>
    %28 = arith.truncf %27 : vector<256x256xf32> to vector<256x256xbf16>
    %29 = tpu.concatenate %10, %16, %22, %28 in 1 : vector<256x256xbf16>, vector<256x256xbf16>, vector<256x256xbf16>, vector<256x256xbf16> -> vector<256x1024xbf16>
    %c0_0 = arith.constant 0 : index
    %c0_1 = arith.constant 0 : index
    %30 = vector.load %arg2[%c0_0, %c0_1] : memref<1024x128xbf16, #tpu.memory_space<vmem>>, vector<1024x128xbf16>
    %cst = arith.constant dense<0.000000e+00> : vector<256x128xf32>
    %31 = tpu.matmul %29, %30, %cst {dimension_numbers = #tpu.dot_dimension_numbers<[1], [0], [0], [1], [0, 0, 1, 1], [], []>} : vector<256x1024xbf16>, vector<1024x128xbf16>, vector<256x128xf32> -> vector<256x128xf32>
    %c0_2 = arith.constant 0 : index
    %c0_3 = arith.constant 0 : index
    %32 = vector.load %arg3[%c0_2, %c0_3] : memref<1024x128xbf16, #tpu.memory_space<vmem>>, vector<1024x128xbf16>
    %cst_4 = arith.constant dense<0.000000e+00> : vector<256x128xf32>
    %33 = tpu.matmul %29, %32, %cst_4 {dimension_numbers = #tpu.dot_dimension_numbers<[1], [0], [0], [1], [0, 0, 1, 1], [], []>} : vector<256x1024xbf16>, vector<1024x128xbf16>, vector<256x128xf32> -> vector<256x128xf32>
    %34 = arith.addf %31, %33 : vector<256x128xf32>
    %35 = arith.index_cast %1 : i32 to index
    %c0_5 = arith.constant 0 : index
    %36 = vector.load %arg4[%35, %c0_5] : memref<512x128xf32, #tpu.memory_space<vmem>>, vector<256x128xf32>
    tpu.vector_store %arg4[%35, %c0_5], %34 {strides = array<i32>} : memref<512x128xf32, #tpu.memory_space<vmem>>, vector<256x128xf32>,
    %c1_i32 = arith.constant 1 : i32
    %c256_i32_6 = arith.constant 256 : i32
    %37 = arith.muli %c1_i32, %c256_i32_6 : i32
    %38 = tpu.assume_multiple %37, 256 : i32
    %39 = arith.index_cast %38 : i32 to index
    %c0_7 = arith.constant 0 : index
    %40 = vector.load %arg1[%39, %c0_7] : memref<512x4xi32, #tpu.memory_space<vmem>>, vector<256x4xi32>
    %41 = tpu.iota {dimensions = array<i32: 1>} : vector<256x256xi32>
    %42 = vector.extract_strided_slice %40 {offsets = [0, 0], sizes = [256, 1], strides = [1, 1]} : vector<256x4xi32> to vector<256x1xi32>
    %43 = vector.broadcast %42 : vector<256x1xi32> to vector<256x256xi32>
    %44 = arith.cmpi eq, %43, %41 : vector<256x256xi32>
    %45 = arith.extui %44 : vector<256x256xi1> to vector<256x256xi32>
    %46 = arith.sitofp %45 : vector<256x256xi32> to vector<256x256xf32>
    %47 = arith.truncf %46 : vector<256x256xf32> to vector<256x256xbf16>
    %48 = vector.extract_strided_slice %40 {offsets = [0, 1], sizes = [256, 1], strides = [1, 1]} : vector<256x4xi32> to vector<256x1xi32>
    %49 = vector.broadcast %48 : vector<256x1xi32> to vector<256x256xi32>
    %50 = arith.cmpi eq, %49, %41 : vector<256x256xi32>
    %51 = arith.extui %50 : vector<256x256xi1> to vector<256x256xi32>
    %52 = arith.sitofp %51 : vector<256x256xi32> to vector<256x256xf32>
    %53 = arith.truncf %52 : vector<256x256xf32> to vector<256x256xbf16>
    %54 = vector.extract_strided_slice %40 {offsets = [0, 2], sizes = [256, 1], strides = [1, 1]} : vector<256x4xi32> to vector<256x1xi32>
    %55 = vector.broadcast %54 : vector<256x1xi32> to vector<256x256xi32>
    %56 = arith.cmpi eq, %55, %41 : vector<256x256xi32>
    %57 = arith.extui %56 : vector<256x256xi1> to vector<256x256xi32>
    %58 = arith.sitofp %57 : vector<256x256xi32> to vector<256x256xf32>
    %59 = arith.truncf %58 : vector<256x256xf32> to vector<256x256xbf16>
    %60 = vector.extract_strided_slice %40 {offsets = [0, 3], sizes = [256, 1], strides = [1, 1]} : vector<256x4xi32> to vector<256x1xi32>
    %61 = vector.broadcast %60 : vector<256x1xi32> to vector<256x256xi32>
    %62 = arith.cmpi eq, %61, %41 : vector<256x256xi32>
    %63 = arith.extui %62 : vector<256x256xi1> to vector<256x256xi32>
    %64 = arith.sitofp %63 : vector<256x256xi32> to vector<256x256xf32>
    %65 = arith.truncf %64 : vector<256x256xf32> to vector<256x256xbf16>
    %66 = tpu.concatenate %47, %53, %59, %65 in 1 : vector<256x256xbf16>, vector<256x256xbf16>, vector<256x256xbf16>, vector<256x256xbf16> -> vector<256x1024xbf16>
    %c0_8 = arith.constant 0 : index
    %c0_9 = arith.constant 0 : index
    %67 = vector.load %arg2[%c0_8, %c0_9] : memref<1024x128xbf16, #tpu.memory_space<vmem>>, vector<1024x128xbf16>
    %cst_10 = arith.constant dense<0.000000e+00> : vector<256x128xf32>
    %68 = tpu.matmul %66, %67, %cst_10 {dimension_numbers = #tpu.dot_dimension_numbers<[1], [0], [0], [1], [0, 0, 1, 1], [], []>} : vector<256x1024xbf16>, vector<1024x128xbf16>, vector<256x128xf32> -> vector<256x128xf32>
    %c0_11 = arith.constant 0 : index
    %c0_12 = arith.constant 0 : index
    %69 = vector.load %arg3[%c0_11, %c0_12] : memref<1024x128xbf16, #tpu.memory_space<vmem>>, vector<1024x128xbf16>
    %cst_13 = arith.constant dense<0.000000e+00> : vector<256x128xf32>
    %70 = tpu.matmul %66, %69, %cst_13 {dimension_numbers = #tpu.dot_dimension_numbers<[1], [0], [0], [1], [0, 0, 1, 1], [], []>} : vector<256x1024xbf16>, vector<1024x128xbf16>, vector<256x128xf32> -> vector<256x128xf32>
    %71 = arith.addf %68, %70 : vector<256x128xf32>
    %72 = arith.index_cast %38 : i32 to index
    %c0_14 = arith.constant 0 : index
    %73 = vector.load %arg4[%72, %c0_14] : memref<512x128xf32, #tpu.memory_space<vmem>>, vector<256x128xf32>
    tpu.vector_store %arg4[%72, %c0_14], %71 {strides = array<i32>} : memref<512x128xf32, #tpu.memory_space<vmem>>, vector<256x128xf32>,
    %c2_i32 = arith.constant 2 : i32
    return
  }
  func.func @transform_0(%arg0: i32) -> (i32, i32) {
    %c0_i32 = arith.constant 0 : i32
    %c0_i32_0 = arith.constant 0 : i32
    return %arg0, %c0_i32 : i32, i32
  }
  func.func @transform_1(%arg0: i32) -> (i32, i32) {
    %c0_i32 = arith.constant 0 : i32
    %c0_i32_0 = arith.constant 0 : i32
    %c0_i32_1 = arith.constant 0 : i32
    return %c0_i32, %c0_i32_0 : i32, i32
  }
  func.func @transform_2(%arg0: i32) -> (i32, i32) {
    %c0_i32 = arith.constant 0 : i32
    %c0_i32_0 = arith.constant 0 : i32
    %c0_i32_1 = arith.constant 0 : i32
    return %c0_i32, %c0_i32_0 : i32, i32
  }
  func.func @transform_3(%arg0: i32) -> (i32, i32) {
    %c0_i32 = arith.constant 0 : i32
    %c0_i32_0 = arith.constant 0 : i32
    return %arg0, %c0_i32 : i32, i32
  }
}

</mosaic_0001>

<bundles_post_ra>
// kernel: tpu_custom_call.1
= control target key start
LH: loop header
LB: loop body
LE: loop exit
PB: predicated region body
PF: predicated region fallthrough
CT: control target
= control target key end

     0   :  { %8 = vsyncpa [#allocation3], 0  ;;  %s17183_s0 = inlined_call_operand.vmem [shape: s32[512,4], index: 0, kind: input, shape index: {}]   ;;  %s17184_s1 = inlined_call_operand.vmem [shape: bf16[1024,128], index: 1, kind: input, shape index: {}]   ;;  %s17185_s2 = inlined_call_operand.hbm [shape: bf16[1024,128], index: 2, kind: input, shape index: {}]   ;;  %s17186_s3 = inlined_call_operand.hbm [shape: f32[512,128], index: 3, kind: output, shape index: {}]  }
   0x1   :  { %9 = vsyncpa [#allocation4], 0  ;;  %s11522_s12 = smov [#allocation2]   ;;  %s11474_s16 = scalar_lea.hbm %s17185_s2, 8192 }
   0x2   :  { %s19_s13 = sshll.u32 %s11522_s12, 4  ;;  %p11475_p0 = scmp.ne.s32.totalorder %s17185_s2, %s11474_s16  ;;  %s20_s13 = int_to_ptr.vmem [resolvable:$true] %s19_s13 }
   0x3   :  { %p11478_p1 = scmp.lt.u32.totalorder %s11474_s16, %s17185_s2 }
   0x5   :  { %p11480_p2 = pnand %p11478_p1, %p11475_p0 }
   0x7   :  { %11483 = shalt.err (!%p11480_p2)
}
   0x8   :  { %s11484_s21 = scalar_lea.vmem %s20_s13, 8192  ;;  %p11489_p4 = scmp.lt.s32.totalorder %s20_s13, %s20_s13 }
   0x9   :  { %p11485_p3 = scmp.ne.s32.totalorder %s20_s13, %s11484_s21  ;;  %p11490_p5 = scmp.lt.s32.totalorder %s11484_s21, %s11484_s21 }
   0xb   :  { %p11491_p6 = por %p11490_p5, %p11489_p4 }
   0xd   :  { %p11492_p7 = pnand %p11491_p6, %p11485_p3 }
   0xf   :  { %11495 = shalt.err (!%p11492_p7)
}
  0x10   :  { %s11523_s22 = smov 64   ;;  %s11524_s23 = smov 4  }
  0x11   :  { %25 = dma.hbm_to_vmem [thread:$0]  %s17185_s2, 8192, %s20_s13, [#allocation3], %s11523_s22, %s11523_s22, %s11524_s23  }
  0x12   :  { %11518 = dma.done.wait [#allocation3], 8192  }
  0x13   :  { %11519 = vsyncadd [#allocation3], 4294959104  ;;  %v17226_v0 = vmov 1   ;;  %v17229_v1 = vmov 0   ;;  %v30_v2 = vld [vmem:[%s17183_s0] sm:$0xff]  ;;  %v11573_v3 = vld [vmem:[%s17183_s0 + $0x8] sm:$0xff]  ;;  %v62_v49 = vlaneseq }
  0x14   :  { %10992 = vset.pattern.permute.xlu1 %v17226_v0  ;;  %10991 = vset.pattern.permute.xlu0 %v17229_v1  ;;  %v11578_v4 = vld [vmem:[%s17183_s0 + $0x10] sm:$0xff]  ;;  %v33_v5 = vld [vmem:[%s17183_s0 + $0x18] sm:$0xff]  ;;  %v11157_v6 = vld [vmem:[#allocation2 + $0xc0] sm:$0xff]   ;;  %v17235_v62 = vmov 2  }
  0x15   :  { %386 = vperm.xlu1 %10992, %v30_v2   ;;  %66 = vperm.xlu0 %10991, %v30_v2   ;;  %v11158_v7 = vld [vmem:[#allocation2 + $0x80] sm:$0xff]   ;;  %v11159_v8 = vld [vmem:[#allocation2 + $0xc8] sm:$0xff]   ;;  %v11163_v12 = vld [vmem:[#allocation2 + $0xd0] sm:$0xff]   ;;  %v11662_v51 = vand.u32 127, %v62_v49  ;;  %v17241_v2 = vmov 3  }
  0x16   :  { %9300 = vmatprep.subr.bf16.mxu1 %v11157_v6  ;;  %v11160_v9 = vld [vmem:[#allocation2 + $0x88] sm:$0xff]   ;;  %v11161_v10 = vld [vmem:[#allocation2 + $0x40] sm:$0xff]   ;;  %v11164_v14 = vld [vmem:[#allocation2 + $0x90] sm:$0xff]  }
  0x17   :  { %9301 = vmatpush3.bf16.msra.mxu1 %v11158_v7  ;;  %v11162_v11 = vld [vmem:[#allocation2] sm:$0xff]   ;;  %9188 = vmatprep.subr.bf16.mxu0 %v11161_v10  ;;  %v11593_v13 = vld [vmem:[%s17183_s0 + $0x28] sm:$0xff]  ;;  %v11167_v18 = vld [vmem:[#allocation2 + $0xd8] sm:$0xff]   ;;  %17645 = vst [vmem:[#allocation8_spill] sm:$0xff] %v11662_v51 }
  0x18   :  { %9302 = vmatprep.subr.bf16.mxu1 %v11159_v8  ;;  %9189 = vmatpush3.bf16.msra.mxu0 %v11162_v11  ;;  %v11165_v15 = vld [vmem:[#allocation2 + $0x48] sm:$0xff]   ;;  %v34_v17 = vld [vmem:[%s17183_s0 + $0x20] sm:$0xff]  ;;  %v11602_v19 = vld [vmem:[%s17183_s0 + $0x30] sm:$0xff]  ;;  %v11735_v8 = vadd.s32 128, %v11662_v51 }
  0x19   :  { %389 = vperm.xlu1 %10992, %v11573_v3   ;;  %10994 = vset.pattern.permute.xlu0 %v17226_v0  ;;  %v11166_v16 = vld [vmem:[#allocation2 + $0x8] sm:$0xff]   ;;  %v11168_v20 = vld [vmem:[#allocation2 + $0x98] sm:$0xff]   ;;  %v11169_v21 = vld [vmem:[#allocation2 + $0x50] sm:$0xff]  }
  0x1a   :  { %392 = vperm.xlu0 %10994, %v11578_v4   ;;  %9190 = vmatprep.subr.bf16.mxu0 %v11165_v15  ;;  %v11170_v22 = vld [vmem:[#allocation2 + $0x10] sm:$0xff]   ;;  %v11171_v23 = vld [vmem:[#allocation2 + $0xe0] sm:$0xff]   ;;  %v11173_v25 = vld [vmem:[#allocation2 + $0x58] sm:$0xff]  }
  0x1b   :  { %9303 = vmatpush3.bf16.msra.mxu1 %v11160_v9  ;;  %v11172_v24 = vld [vmem:[#allocation2 + $0xa0] sm:$0xff]   ;;  %v11174_v26 = vld [vmem:[#allocation2 + $0x18] sm:$0xff]   ;;  %v11175_v27 = vld [vmem:[#allocation2 + $0xe8] sm:$0xff]  }
  0x1c   :  { %9304 = vmatprep.subr.bf16.mxu1 %v11163_v12  ;;  %9191 = vmatpush3.bf16.msra.mxu0 %v11166_v16  ;;  %v11612_v28 = vld [vmem:[%s17183_s0 + $0x50] sm:$0xff]  ;;  %v11176_v29 = vld [vmem:[#allocation2 + $0xa8] sm:$0xff]   ;;  %v11177_v30 = vld [vmem:[#allocation2 + $0x60] sm:$0xff]  }
  0x1d   :  { %10993 = vset.pattern.permute.xlu1 %v17229_v1  ;;  %9192 = vmatprep.subr.bf16.mxu0 %v11169_v21  ;;  %v11178_v31 = vld [vmem:[#allocation2 + $0x20] sm:$0xff]   ;;  %v11179_v32 = vld [vmem:[#allocation2 + $0xf0] sm:$0xff]   ;;  %v37_v33 = vld [vmem:[%s17183_s0 + $0x38] sm:$0xff] }
  0x1e   :  { %75 = vperm.xlu1 %10993, %v33_v5   ;;  %10995 = vset.pattern.permute.xlu0 %v17229_v1  ;;  %v11623_v34 = vld [vmem:[%s17183_s0 + $0x48] sm:$0xff]  ;;  %v11180_v35 = vld [vmem:[#allocation2 + $0xb0] sm:$0xff]   ;;  %v11183_v38 = vld [vmem:[#allocation2 + $0xf8] sm:$0xff]  }
  0x1f   :  { %69 = vperm.xlu0 %10995, %v11573_v3   ;;  %9305 = vmatpush3.bf16.msra.mxu1 %v11164_v14  ;;  %v11181_v36 = vld [vmem:[#allocation2 + $0x68] sm:$0xff]   ;;  %v11184_v39 = vld [vmem:[#allocation2 + $0xb8] sm:$0xff]   ;;  %v11185_v40 = vld [vmem:[#allocation2 + $0x70] sm:$0xff]  }
  0x20   :  { %9306 = vmatprep.subr.bf16.mxu1 %v11167_v18  ;;  %9193 = vmatpush3.bf16.msra.mxu0 %v11170_v22  ;;  %v11182_v37 = vld [vmem:[#allocation2 + $0x28] sm:$0xff]   ;;  %v11186_v41 = vld [vmem:[#allocation2 + $0x30] sm:$0xff]   ;;  %v11187_v42 = vld [vmem:[#allocation2 + $0x78] sm:$0xff]  }
  0x21   :  { %9194 = vmatprep.subr.bf16.mxu0 %v11173_v25  ;;  %v11188_v43 = vld [vmem:[#allocation2 + $0x38] sm:$0xff]   ;;  %v38_v44 = vld [vmem:[%s17183_s0 + $0x40] sm:$0xff]  ;;  %v11636_v45 = vld [vmem:[%s17183_s0 + $0x68] sm:$0xff] }
  0x22   :  { %10996 = vset.pattern.permute.xlu1 %v17226_v0  ;;  %v11642_v46 = vld [vmem:[%s17183_s0 + $0x70] sm:$0xff]  ;;  %v41_v47 = vld [vmem:[%s17183_s0 + $0x58] sm:$0xff]  ;;  %v11660_v50 = vld [vmem:[%s17183_s0 + $0x88] sm:$0xff] }
  0x23   :  { %395 = vperm.xlu1 %10996, %v33_v5   ;;  %72 = vperm.xlu0 %10995, %v11578_v4   ;;  %v48_v48 = vld [vmem:[%s17183_s0 + $0x90] sm:$0xff]  ;;  %v42_v52 = vld [vmem:[%s17183_s0 + $0x60] sm:$0xff]  ;;  %v11673_v53 = vld [vmem:[%s17183_s0 + $0xa8] sm:$0xff] }
  0x24   :  { %9307 = vmatpush3.bf16.msra.mxu1 %v11168_v20  ;;  %9195 = vmatpush3.bf16.msra.mxu0 %v11174_v26  ;;  %v52_v54 = vld [vmem:[%s17183_s0 + $0xb0] sm:$0xff]  ;;  %v45_v55 = vld [vmem:[%s17183_s0 + $0x78] sm:$0xff]  ;;  %v11693_v57 = vld [vmem:[%s17183_s0 + $0xc8] sm:$0xff] }
  0x25   :  { %9308 = vmatprep.subr.bf16.mxu1 %v11171_v23  ;;  %9196 = vmatprep.subr.bf16.mxu0 %v11177_v30  ;;  %v56_v56 = vld [vmem:[%s17183_s0 + $0xd0] sm:$0xff]  ;;  %v46_v58 = vld [vmem:[%s17183_s0 + $0x80] sm:$0xff]  ;;  %v11705_v59 = vld [vmem:[%s17183_s0 + $0xe8] sm:$0xff] }
  0x26   :  { %v60_v60 = vld [vmem:[%s17183_s0 + $0xf0] sm:$0xff]  ;;  %v49_v61 = vld [vmem:[%s17183_s0 + $0x98] sm:$0xff]  ;;  %v50_v63 = vld [vmem:[%s17183_s0 + $0xa0] sm:$0xff] }
  0x27   :  { %10997 = vset.pattern.permute.xlu1 %v17229_v1  ;;  %81 = vperm.xlu0 %10995, %v11593_v13   ;;  %v11189_v5 = vld [vmem:[#allocation2 + $0x140] sm:$0xff]   ;;  %v11193_v23 = vld [vmem:[#allocation2 + $0x148] sm:$0xff]   ;;  %v11414_v49 = vld [vmem:[%s17183_s0 + $0x70] sm:$0xff] }
  0x28   :  { %78 = vperm.xlu1 %10997, %v34_v17   ;;  %9309 = vmatpush3.bf16.msra.mxu1 %v11172_v24  ;;  %v11191_v9 = vld [vmem:[#allocation2 + $0x1c0] sm:$0xff]   ;;  %v11194_v26 = vld [vmem:[#allocation2 + $0x108] sm:$0xff]   ;;  %v8282_v20 = vld [vmem:[%s17183_s0 + $0x1b0] sm:$0xff] }
  0x29   :  { %9310 = vmatprep.subr.bf16.mxu1 %v11175_v27  ;;  %9197 = vmatpush3.bf16.msra.mxu0 %v11178_v31  ;;  %v54_v15 = vld [vmem:[%s17183_s0 + $0xc0] sm:$0xff]  ;;  %v11195_v27 = vld [vmem:[#allocation2 + $0x1c8] sm:$0xff]   ;;  %v11261_v24 = vld [vmem:[%s17184_s1 + $0x150] sm:$0xff]  }
  0x2a   :  { %9198 = vmatprep.subr.bf16.mxu0 %v11181_v36  ;;  %v11196_v30 = vld [vmem:[#allocation2 + $0x188] sm:$0xff]  }
  0x2b   :  { %84 = vperm.xlu0 %10995, %v11602_v19   ;;  %v11258_v12 = vld [vmem:[%s17184_s1 + $0x108] sm:$0xff]  }
  0x2c   :  { %10998 = vset.pattern.permute.xlu1 %v17226_v0  ;;  %9311 = vmatpush3.bf16.msra.mxu1 %v11176_v29  ;;  %v11260_v14 = vld [vmem:[%s17184_s1 + $0x188] sm:$0xff]  }
  0x2d   :  { %398 = vperm.xlu1 %10998, %v34_v17   ;;  %9312 = vmatprep.subr.bf16.mxu1 %v11179_v32  ;;  %v11190_v17 = vld [vmem:[#allocation2 + $0x100] sm:$0xff]   ;;  %v11264_v32 = vld [vmem:[%s17184_s1 + $0x190] sm:$0xff]  }
  0x2e   :  { %9199 = vmatpush3.bf16.msra.mxu0 %v11182_v37  ;;  %v11413_v37 = vld [vmem:[%s17183_s0 + $0x50] sm:$0xff] }
  0x2f   :  { %11000 = vset.pattern.permute.xlu0 %v17226_v0  ;;  %9200 = vmatprep.subr.bf16.mxu0 %v11185_v40 }
  0x30   :  { %404 = vperm.xlu0 %11000, %v11602_v19   ;;  %9313 = vmatpush3.bf16.msra.mxu1 %v11180_v35  ;;  %v17664_v35 = vmov 0 }
  0x31   :  { %401 = vperm.xlu1 %10998, %v11593_v13   ;;  %9314 = vmatprep.subr.bf16.mxu1 %v11183_v38 }
  0x32   :  { %9201 = vmatpush3.bf16.msra.mxu0 %v11186_v41  ;;  %v17666_v41 = vmov 0 }
  0x33   :  { %9202 = vmatprep.subr.bf16.mxu0 %v11187_v42  ;;  %v17668_v42 = vmov 0 }
  0x34   :  { %416 = vperm.xlu0 %11000, %v11612_v28   ;;  %9315 = vmatpush3.bf16.msra.mxu1 %v11184_v39 }
  0x35   :  { %10999 = vset.pattern.permute.xlu1 %v17229_v1  ;;  %9524 = vmatprep.subr.bf16.mxu1 %v11191_v9 }
  0x36   :  { %87 = vperm.xlu1 %10999, %v37_v33   ;;  %9203 = vmatpush3.bf16.msra.mxu0 %v11188_v43  ;;  %v58_v43 = vld [vmem:[%s17183_s0 + $0xe0] sm:$0xff] }
  0x37   :  { %9412 = vmatprep.subr.bf16.mxu0 %v11189_v5  ;;  %v61_v5 = vld [vmem:[%s17183_s0 + $0xf8] sm:$0xff] }
  0x38   :  { %11005 = vset.pattern.permute.xlu0 %v17229_v1 }
  0x39   :  { %93 = vperm.xlu0 %11005, %v11623_v34  }
  0x3a   :  { %11001 = vset.pattern.permute.xlu1 %v17226_v0 }
  0x3b   :  { %407 = vperm.xlu1 %11001, %v37_v33   ;;  %v17662_v33 = vmov 0 }
  0x3d   :  { %96 = vperm.xlu0 %11005, %v11612_v28  }
  0x3f   :  { %11002 = vset.pattern.permute.xlu1 %v17229_v1 }
  0x40   :  { %90 = vperm.xlu1 %11002, %v38_v44  }
  0x41   :  { %105 = vperm.xlu0 %11005, %v11636_v45  }
  0x44   :  { %11003 = vset.pattern.permute.xlu1 %v17226_v0 }
  0x45   :  { %410 = vperm.xlu1 %11003, %v38_v44   ;;  %108 = vperm.xlu0 %11005, %v11642_v46   ;;  %v11197_v44 = vld [vmem:[#allocation2 + $0x150] sm:$0xff]  }
  0x49   :  { %413 = vperm.xlu1 %11003, %v11623_v34   ;;  %11010 = vset.pattern.permute.xlu0 %v17226_v0 }
  0x4a   :  { %428 = vperm.xlu0 %11010, %v11642_v46  }
  0x4d   :  { %11004 = vset.pattern.permute.xlu1 %v17229_v1 }
  0x4e   :  { %99 = vperm.xlu1 %11004, %v41_v47   ;;  %440 = vperm.xlu0 %11010, %v48_v48  }
  0x52   :  { %11006 = vset.pattern.permute.xlu1 %v17226_v0  ;;  %11015 = vset.pattern.permute.xlu0 %v17229_v1 }
  0x53   :  { %419 = vperm.xlu1 %11006, %v41_v47   ;;  %117 = vperm.xlu0 %11015, %v11660_v50  }
  0x57   :  { %11007 = vset.pattern.permute.xlu1 %v17229_v1  ;;  %120 = vperm.xlu0 %11015, %v48_v48  }
  0x58   :  { %102 = vperm.xlu1 %11007, %v42_v52  }
  0x5b   :  { %129 = vperm.xlu0 %11015, %v11673_v53  }
  0x5c   :  { %11008 = vset.pattern.permute.xlu1 %v17226_v0 }
  0x5d   :  { %422 = vperm.xlu1 %11008, %v42_v52   ;;  %v11200_v52 = vld [vmem:[#allocation2 + $0x190] sm:$0xff]  }
  0x5f   :  { %132 = vperm.xlu0 %11015, %v52_v54  }
  0x61   :  { %425 = vperm.xlu1 %11008, %v11636_v45  }
  0x63   :  { %11020 = vset.pattern.permute.xlu0 %v17226_v0 }
  0x64   :  { %452 = vperm.xlu0 %11020, %v52_v54   ;;  %v17670_v54 = vmov 0 }
  0x65   :  { %11009 = vset.pattern.permute.xlu1 %v17229_v1 }
  0x66   :  { %111 = vperm.xlu1 %11009, %v45_v55  }
  0x68   :  { %464 = vperm.xlu0 %11020, %v56_v56  }
  0x6a   :  { %11011 = vset.pattern.permute.xlu1 %v17226_v0 }
  0x6b   :  { %431 = vperm.xlu1 %11011, %v45_v55   ;;  %v17672_v55 = vmov 0 }
  0x6c   :  { %11025 = vset.pattern.permute.xlu0 %v17229_v1 }
  0x6d   :  { %141 = vperm.xlu0 %11025, %v11693_v57  }
  0x6f   :  { %11012 = vset.pattern.permute.xlu1 %v17229_v1 }
  0x70   :  { %114 = vperm.xlu1 %11012, %v46_v58  }
  0x71   :  { %144 = vperm.xlu0 %11025, %v56_v56  }
  0x74   :  { %11013 = vset.pattern.permute.xlu1 %v17226_v0 }
  0x75   :  { %434 = vperm.xlu1 %11013, %v46_v58   ;;  %153 = vperm.xlu0 %11025, %v11705_v59   ;;  %v17674_v58 = vmov 0 }
  0x79   :  { %437 = vperm.xlu1 %11013, %v11660_v50   ;;  %156 = vperm.xlu0 %11025, %v60_v60  }
  0x7d   :  { %11014 = vset.pattern.permute.xlu1 %v17229_v1  ;;  %11030 = vset.pattern.permute.xlu0 %v17226_v0 }
  0x7e   :  { %123 = vperm.xlu1 %11014, %v49_v61   ;;  %476 = vperm.xlu0 %11030, %v60_v60   ;;  %v11415_v60 = vld [vmem:[%s17183_s0 + $0x90] sm:$0xff] }
  0x82   :  { %11016 = vset.pattern.permute.xlu1 %v17226_v0  ;;  %11033 = vset.pattern.permute.xlu0 %v17235_v62 }
  0x83   :  { %443 = vperm.xlu1 %11016, %v49_v61   ;;  %709 = vperm.xlu0 %11033, %v11573_v3   ;;  %v53_v3 = vld [vmem:[%s17183_s0 + $0xb8] sm:$0xff] }
  0x84   :  { %v11201_v61 = vld [vmem:[#allocation2 + $0x158] sm:$0xff]  }
  0x87   :  { %11017 = vset.pattern.permute.xlu1 %v17229_v1  ;;  %712 = vperm.xlu0 %11033, %v11578_v4  }
  0x88   :  { %126 = vperm.xlu1 %11017, %v50_v63  }
  0x8b   :  { %721 = vperm.xlu0 %11033, %v11593_v13   ;;  %v17247_v13 = vmov 1.0|1.0  }
  0x8c   :  { %11018 = vset.pattern.permute.xlu1 %v17226_v0 }
  0x8d   :  { %446 = vperm.xlu1 %11018, %v50_v63  }
  0x8f   :  { %11038 = vset.pattern.permute.xlu0 %v17241_v2 }
  0x90   :  { %1032 = vperm.xlu0 %11038, %v11578_v4   ;;  %v11192_v4 = vld [vmem:[#allocation2 + $0x180] sm:$0xff]  }
  0x91   :  { %449 = vperm.xlu1 %11018, %v11673_v53  }
  0x94   :  { %v387_v6 = vpop.permute.xlu1 %386  ;;  %v67_v7 = vpop.permute.xlu0 %66  ;;  %1044 = vperm.xlu0 %11038, %v11602_v19  }
  0x95   :  { %11019 = vset.pattern.permute.xlu1 %v17229_v1  ;;  %vm482_vm1 = vcmp.eq.s32.totalorder %v387_v6, %v11735_v8  ;;  %vm481_vm3 = vcmp.eq.s32.totalorder %v387_v6, %v11662_v51  ;;  %vm162_vm6 = vcmp.eq.s32.totalorder %v67_v7, %v11735_v8  ;;  %vm161_vm7 = vcmp.eq.s32.totalorder %v67_v7, %v11662_v51  ;;  %v11202_v6 = vld [vmem:[#allocation2 + $0x118] sm:$0xff]  }
  0x96   :  { %135 = vperm.xlu1 %11019, %v53_v3   ;;  %v17680_v7 = vmov 0 }
  0x98   :  { %v390_v10 = vpop.permute.xlu1 %389  ;;  %11041 = vset.pattern.permute.xlu0 %v17235_v62 }
  0x99   :  { %vm483_vm0 = vcmp.eq.s32.totalorder %v390_v10, %v11662_v51  ;;  %v393_v11 = vpop.permute.xlu0 %392  ;;  %vm484_vm2 = vcmp.eq.s32.totalorder %v390_v10, %v11735_v8  ;;  %724 = vperm.xlu0 %11041, %v11602_v19   ;;  %v11205_v10 = vld [vmem:[#allocation2 + $0x1d8] sm:$0xff]  }
  0x9a   :  { %11021 = vset.pattern.permute.xlu1 %v17226_v0  ;;  %vm11746_vm4 = vmpackc.low %vm484_vm2, %vm482_vm1  ;;  %vm485_vm12 = vcmp.eq.s32.totalorder %v393_v11, %v11662_v51  ;;  %vm486_vm13 = vcmp.eq.s32.totalorder %v393_v11, %v11735_v8  ;;  %v11206_v11 = vld [vmem:[#allocation2 + $0x198] sm:$0xff]  }
  0x9b   :  { %455 = vperm.xlu1 %11021, %v53_v3   ;;  %7749 = vmatprep.mubr.msk.bf16.mxu1 %vm11746_vm4, %v17247_v13  ;;  %vm11753_vm5 = vmpackc.low %vm483_vm0, %vm481_vm3  ;;  %v17678_v3 = vmov 0 }
  0x9c   :  { %7751 = vmatmul.mubr.msk.bf16.vlgmr.msra.gmra.mrb[0].mxu1 %vm11753_vm5, %v17247_v13 }
  0x9d   :  { %v76_v16 = vpop.permute.xlu1 %75  ;;  %733 = vperm.xlu0 %11041, %v11623_v34   ;;  %9525 = vmatpush3.bf16.msra.mxu1 %v11192_v4  ;;  %v57_v34 = vld [vmem:[%s17183_s0 + $0xd8] sm:$0xff]  ;;  %v11204_v4 = vld [vmem:[#allocation2 + $0x120] sm:$0xff]  }
  0x9e   :  { %v70_v18 = vpop.permute.xlu0 %69  ;;  %vm168_vm14 = vcmp.eq.s32.totalorder %v76_v16, %v11735_v8  ;;  %9526 = vmatprep.subr.bf16.mxu1 %v11195_v27  ;;  %v11212_v27 = vld [vmem:[#allocation2 + $0x1a0] sm:$0xff]  }
  0x9f   :  { %vm163_vm8 = vcmp.eq.s32.totalorder %v70_v18, %v11662_v51  ;;  %11022 = vset.pattern.permute.xlu1 %v17229_v1  ;;  %vm164_vm9 = vcmp.eq.s32.totalorder %v70_v18, %v11735_v8  ;;  %v17682_v18 = vmov 0 }
  0xa0   :  { %138 = vperm.xlu1 %11022, %v54_v15   ;;  %vm11769_vm10 = vmpackc.low %vm164_vm9, %vm162_vm6 }
  0xa1   :  { %7685 = vmatprep.mubr.msk.bf16.mxu0 %vm11769_vm10, %v17247_v13  ;;  %vm11776_vm11 = vmpackc.low %vm163_vm8, %vm161_vm7  ;;  %736 = vperm.xlu0 %11041, %v11612_v28   ;;  %vm167_vm7 = vcmp.eq.s32.totalorder %v76_v16, %v11662_v51  ;;  %v17658_v28 = vmov 0 }
  0xa2   :  { %v396_v21 = vpop.permute.xlu1 %395  ;;  %7687 = vmatmul.mubr.msk.bf16.vlgmr.msra.gmra.mrb[0].mxu0 %vm11776_vm11, %v17247_v13  ;;  %v73_v22 = vpop.permute.xlu0 %72  ;;  %9527 = vmatpush3.bf16.msra.mxu1 %v11196_v30  ;;  %v17686_v30 = vmov 0 }
  0xa3   :  { %vm487_vm15 = vcmp.eq.s32.totalorder %v396_v21, %v11662_v51  ;;  %vm488_vm0 = vcmp.eq.s32.totalorder %v396_v21, %v11735_v8  ;;  %vm166_vm1 = vcmp.eq.s32.totalorder %v73_v22, %v11735_v8  ;;  %9413 = vmatpush3.bf16.msra.mxu0 %v11190_v17  ;;  %vm165_vm2 = vcmp.eq.s32.totalorder %v73_v22, %v11662_v51  ;;  %v11209_v22 = vld [vmem:[#allocation2 + $0x170] sm:$0xff]  }
  0xa4   :  { %11023 = vset.pattern.permute.xlu1 %v17226_v0  ;;  %vm11792_vm3 = vmpackc.low %vm168_vm14, %vm166_vm1  ;;  %9414 = vmatprep.subr.bf16.mxu0 %v11193_v23  ;;  %v17684_v21 = vmov 0  ;;  %v11210_v23 = vld [vmem:[#allocation2 + $0x1e0] sm:$0xff]  }
  0xa5   :  { %458 = vperm.xlu1 %11023, %v54_v15   ;;  %7689 = vmatprep.mubr.msk.bf16.mxu0 %vm11792_vm3, %v17247_v13  ;;  %vm11801_vm6 = vmpackc.low %vm488_vm0, %vm486_vm13  ;;  %v11207_v15 = vld [vmem:[#allocation2 + $0x168] sm:$0xff]  }
  0xa6   :  { %7753 = vmatprep.mubr.msk.bf16.mxu1 %vm11801_vm6, %v17247_v13  ;;  %vm11813_vm8 = vmpackc.low %vm487_vm15, %vm485_vm12  ;;  %v82_v29 = vpop.permute.xlu0 %81  ;;  %745 = vperm.xlu0 %11041, %v11636_v45   ;;  %v11198_v45 = vld [vmem:[#allocation2 + $0x110] sm:$0xff]  }
  0xa7   :  { %v17659_v28 = vsel %vm11813_vm8, 4294967295, %v17658_v28  ;;  %7755 = vmatmul.mubr.msk.bf16.gmra.mrb[4].mxu1 %vm11813_vm8, %v17247_v13  ;;  %v79_v31 = vpop.permute.xlu1 %78  ;;  %vm171_vm9 = vcmp.eq.s32.totalorder %v82_v29, %v11662_v51  ;;  %vm172_vm13 = vcmp.eq.s32.totalorder %v82_v29, %v11735_v8  ;;  %vm11825_vm14 = vmpackc.low %vm167_vm7, %vm165_vm2  ;;  %9415 = vmatpush3.bf16.msra.mxu0 %v11194_v26  ;;  %v11211_v26 = vld [vmem:[#allocation2 + $0x130] sm:$0xff]  }
  0xa8   :  { %vm169_vm12 = vcmp.eq.s32.totalorder %v79_v31, %v11662_v51  ;;  %vm170_vm15 = vcmp.eq.s32.totalorder %v79_v31, %v11735_v8  ;;  %9416 = vmatprep.subr.bf16.mxu0 %v11197_v44  ;;  %v11416_v31 = vld [vmem:[%s17183_s0 + $0xb0] sm:$0xff] }
  0xa9   :  { %461 = vperm.xlu1 %11023, %v11693_v57   ;;  %vm11832_vm0 = vmpackc.low %vm172_vm13, %vm170_vm15 }
  0xaa   :  { %v17663_v33 = vsel %vm11832_vm0, 4294967295, %v17662_v33  ;;  %7691 = vmatmul.mubr.msk.bf16.gmra.mrb[4].mxu0 %vm11825_vm14, %v17247_v13  ;;  %vm11842_vm1 = vmpackc.low %vm171_vm9, %vm169_vm12  ;;  %v85_v36 = vpop.permute.xlu0 %84  ;;  %11048 = vset.pattern.permute.xlu0 %v17241_v2 }
  0xab   :  { %v17665_v35 = vsel %vm11842_vm1, 4294967295, %v17664_v35  ;;  %7693 = vmatprep.mubr.msk.bf16.mxu0 %vm11832_vm0, %v17247_v13  ;;  %1056 = vperm.xlu0 %11048, %v11413_v37   ;;  %v11213_v37 = vld [vmem:[#allocation2 + $0x178] sm:$0xff]  }
  0xac   :  { %v399_v38 = vpop.permute.xlu1 %398  ;;  %9417 = vmatpush3.bf16.msra.mxu0 %v11198_v45  ;;  %v17690_v45 = vmov 0 }
  0xad   :  { %11024 = vset.pattern.permute.xlu1 %v17229_v1  ;;  %vm490_vm2 = vcmp.eq.s32.totalorder %v399_v38, %v11735_v8  ;;  %vm489_vm13 = vcmp.eq.s32.totalorder %v399_v38, %v11662_v51  ;;  %9418 = vmatprep.subr.bf16.mxu0 %v11201_v61  ;;  %v11214_v38 = vld [vmem:[#allocation2 + $0x138] sm:$0xff]   ;;  %v17696_v61 = vmov 0 }
  0xae   :  { %147 = vperm.xlu1 %11024, %v57_v34  }
  0xaf   :  { %v405_v39 = vpop.permute.xlu0 %404  ;;  %1068 = vperm.xlu0 %11048, %v11642_v46   ;;  %v11199_v46 = vld [vmem:[#allocation2 + $0x1d0] sm:$0xff]  }
  0xb0   :  { %v402_v40 = vpop.permute.xlu1 %401  ;;  %9528 = vmatprep.subr.bf16.mxu1 %v11199_v46  ;;  %9419 = vmatpush3.bf16.msra.mxu0 %v11202_v6  ;;  %v11217_v46 = vld [vmem:[#allocation2 + $0x1f0] sm:$0xff]   ;;  %v12047_v6 = vld [vmem:[%s17183_s0 + $0xc8] sm:$0xff] }
  0xb1   :  { %vm491_vm7 = vcmp.eq.s32.totalorder %v402_v40, %v11662_v51  ;;  %vm492_vm9 = vcmp.eq.s32.totalorder %v402_v40, %v11735_v8  ;;  %9529 = vmatpush3.bf16.msra.mxu1 %v11200_v52  ;;  %v11216_v40 = vld [vmem:[#allocation2 + $0x1a8] sm:$0xff]  }
  0xb2   :  { %11026 = vset.pattern.permute.xlu1 %v17226_v0  ;;  %7695 = vmatmul.mubr.msk.bf16.gmra.mrb[8].mxu0 %vm11842_vm1, %v17247_v13  ;;  %vm11863_vm12 = vmpackc.low %vm492_vm9, %vm490_vm2  ;;  %vm174_vm1 = vcmp.eq.s32.totalorder %v85_v36, %v11735_v8  ;;  %vm173_vm2 = vcmp.eq.s32.totalorder %v85_v36, %v11662_v51  ;;  %v17688_v36 = vmov 0 }
  0xb3   :  { %v17667_v41 = vsel %vm11863_vm12, 4294967295, %v17666_v41  ;;  %467 = vperm.xlu1 %11026, %v57_v34   ;;  %7757 = vmatprep.mubr.msk.bf16.mxu1 %vm11863_vm12, %v17247_v13  ;;  %vm11870_vm15 = vmpackc.low %vm491_vm7, %vm489_vm13  ;;  %v11883_v48 = vpop.permute.xlu0 %416  ;;  %vm494_vm12 = vcmp.eq.s32.totalorder %v405_v39, %v11735_v8  ;;  %v11417_v34 = vld [vmem:[%s17183_s0] sm:$0xff] }
  0xb4   :  { %v17669_v42 = vsel %vm11870_vm15, 4294967295, %v17668_v42  ;;  %7759 = vmatmul.mubr.msk.bf16.gmra.mrb[8].mxu1 %vm11870_vm15, %v17247_v13  ;;  %11051 = vset.pattern.permute.xlu0 %v17235_v62 }
  0xb5   :  { %v88_v47 = vpop.permute.xlu1 %87  ;;  %748 = vperm.xlu0 %11051, %v11414_v49   ;;  %9530 = vmatprep.subr.bf16.mxu1 %v11205_v10  ;;  %v11219_v49 = vld [vmem:[#allocation2 + $0x1f8] sm:$0xff]   ;;  %v11421_v10 = vld [vmem:[%s17183_s0 + $0xd0] sm:$0xff] }
  0xb6   :  { %vm175_vm7 = vcmp.eq.s32.totalorder %v88_v47, %v11662_v51  ;;  %vm176_vm9 = vcmp.eq.s32.totalorder %v88_v47, %v11735_v8  ;;  %9531 = vmatpush3.bf16.msra.mxu1 %v11206_v11  ;;  %v17692_v47 = vmov 0  ;;  %v17698_v11 = vmov 0 }
  0xb7   :  { %11027 = vset.pattern.permute.xlu1 %v17229_v1  ;;  %vm11893_vm13 = vmpackc.low %vm176_vm9, %vm174_vm1  ;;  %vm493_vm1 = vcmp.eq.s32.totalorder %v405_v39, %v11662_v51  ;;  %9532 = vmatprep.subr.bf16.mxu1 %v11210_v23  ;;  %v11215_v39 = vld [vmem:[#allocation2 + $0x1e8] sm:$0xff]   ;;  %v17704_v23 = vmov 0 }
  0xb8   :  { %v17671_v54 = vsel %vm11893_vm13, 4294967295, %v17670_v54  ;;  %150 = vperm.xlu1 %11027, %v58_v43   ;;  %7697 = vmatprep.mubr.msk.bf16.mxu0 %vm11893_vm13, %v17247_v13  ;;  %vm11902_vm15 = vmpackc.low %vm175_vm7, %vm173_vm2  ;;  %v94_v57 = vpop.permute.xlu0 %93 }
  0xb9   :  { %v17673_v55 = vsel %vm11902_vm15, 4294967295, %v17672_v55  ;;  %757 = vperm.xlu0 %11051, %v11660_v50   ;;  %v17676_v50 = vmov 0 }
  0xba   :  { %v408_v56 = vpop.permute.xlu1 %407  ;;  %7699 = vmatmul.mubr.msk.bf16.gmra.mrb[12].mxu0 %vm11902_vm15, %v17247_v13  ;;  %vm180_vm15 = vcmp.eq.s32.totalorder %v94_v57, %v11735_v8  ;;  %9533 = vmatpush3.bf16.msra.mxu1 %v11212_v27  ;;  %v12107_v27 = vld [vmem:[%s17183_s0 + $0xe8] sm:$0xff] }
  0xbb   :  { %vm495_vm9 = vcmp.eq.s32.totalorder %v408_v56, %v11662_v51  ;;  %vm496_vm13 = vcmp.eq.s32.totalorder %v408_v56, %v11735_v8  ;;  %9534 = vmatprep.subr.bf16.mxu1 %v11215_v39  ;;  %v11418_v56 = vld [vmem:[%s17183_s0 + $0x8] sm:$0xff] }
  0xbc   :  { %11028 = vset.pattern.permute.xlu1 %v17226_v0  ;;  %vm11915_vm2 = vmpackc.low %vm496_vm13, %vm494_vm12  ;;  %vm179_vm12 = vcmp.eq.s32.totalorder %v94_v57, %v11662_v51  ;;  %v97_v17 = vpop.permute.xlu0 %96  ;;  %v17694_v57 = vmov 0  ;;  %v11425_v39 = vld [vmem:[%s17183_s0 + $0x28] sm:$0xff] }
  0xbd   :  { %v17675_v58 = vsel %vm11915_vm2, 4294967295, %v17674_v58  ;;  %470 = vperm.xlu1 %11028, %v58_v43   ;;  %7761 = vmatprep.mubr.msk.bf16.mxu1 %vm11915_vm2, %v17247_v13  ;;  %vm11922_vm7 = vmpackc.low %vm495_vm9, %vm493_vm1 }
  0xbe   :  { %v17677_v50 = vsel %vm11922_vm7, 4294967295, %v17676_v50  ;;  %7763 = vmatmul.mubr.msk.bf16.gmra.mrb[12].mxu1 %vm11922_vm7, %v17247_v13  ;;  %760 = vperm.xlu0 %11051, %v11415_v60  }
  0xbf   :  { %v91_v63 = vpop.permute.xlu1 %90  ;;  %9535 = vmatpush3.bf16.msra.mxu1 %v11216_v40  ;;  %v17710_v40 = vmov 0 }
  0xc0   :  { %vm177_vm13 = vcmp.eq.s32.totalorder %v91_v63, %v11662_v51  ;;  %vm178_vm1 = vcmp.eq.s32.totalorder %v91_v63, %v11735_v8  ;;  %v106_v44 = vpop.permute.xlu0 %105  ;;  %9536 = vmatprep.subr.bf16.mxu1 %v11217_v46  ;;  %v11220_v63 = vld [vmem:[#allocation2 + $0x1b8] sm:$0xff]  }
  0xc1   :  { %473 = vperm.xlu1 %11028, %v11705_v59   ;;  %vm11937_vm9 = vmpackc.low %vm180_vm15, %vm178_vm1  ;;  %v11203_v59 = vld [vmem:[#allocation2 + $0x160] sm:$0xff]   ;;  %v11426_v46 = vld [vmem:[%s17183_s0 + $0x38] sm:$0xff] }
  0xc2   :  { %v17679_v3 = vsel %vm11937_vm9, 4294967295, %v17678_v3  ;;  %7701 = vmatprep.mubr.msk.bf16.mxu0 %vm11937_vm9, %v17247_v13  ;;  %vm11947_vm7 = vmpackc.low %vm179_vm12, %vm177_vm13  ;;  %769 = vperm.xlu0 %11051, %v11673_v53   ;;  %v11208_v53 = vld [vmem:[#allocation2 + $0x128] sm:$0xff]  }
  0xc3   :  { %v17681_v7 = vsel %vm11947_vm7, 4294967295, %v17680_v7  ;;  %7703 = vmatmul.mubr.msk.bf16.gmra.mrb[16].mxu0 %vm11947_vm7, %v17247_v13  ;;  %9420 = vmatprep.subr.bf16.mxu0 %v11203_v59  ;;  %v11420_v59 = vld [vmem:[%s17183_s0 + $0x18] sm:$0xff] }
  0xc4   :  { %v411_v9 = vpop.permute.xlu1 %410  ;;  %9421 = vmatpush3.bf16.msra.mxu0 %v11204_v4 }
  0xc5   :  { %11029 = vset.pattern.permute.xlu1 %v17229_v1  ;;  %vm498_vm15 = vcmp.eq.s32.totalorder %v411_v9, %v11735_v8  ;;  %9422 = vmatprep.subr.bf16.mxu0 %v11207_v15  ;;  %vm497_vm1 = vcmp.eq.s32.totalorder %v411_v9, %v11662_v51  ;;  %v17700_v15 = vmov 0  ;;  %v17764_v1 = vmov 0 }
  0xc6   :  { %159 = vperm.xlu1 %11029, %v61_v5   ;;  %11058 = vset.pattern.permute.xlu0 %v17241_v2 }
  0xc7   :  { %1080 = vperm.xlu0 %11058, %v11415_v60   ;;  %v109_v60 = vpop.permute.xlu0 %108 }
  0xc8   :  { %v414_v16 = vpop.permute.xlu1 %413  ;;  %9423 = vmatpush3.bf16.msra.mxu0 %v11208_v53  ;;  %vm190_vm2 = vcmp.eq.s32.totalorder %v109_v60, %v11735_v8 }
  0xc9   :  { %vm499_vm12 = vcmp.eq.s32.totalorder %v414_v16, %v11662_v51  ;;  %vm500_vm13 = vcmp.eq.s32.totalorder %v414_v16, %v11735_v8  ;;  %9424 = vmatprep.subr.bf16.mxu0 %v11209_v22  ;;  %v11422_v22 = vld [vmem:[%s17183_s0 + $0x20] sm:$0xff] }
  0xca   :  { %11031 = vset.pattern.permute.xlu1 %v17226_v0  ;;  %vm11962_vm7 = vmpackc.low %vm500_vm13, %vm498_vm15  ;;  %vm182_vm15 = vcmp.eq.s32.totalorder %v97_v17, %v11735_v8  ;;  %vm181_vm13 = vcmp.eq.s32.totalorder %v97_v17, %v11662_v51  ;;  %v17702_v17 = vmov 0 }
  0xcb   :  { %v17683_v18 = vsel %vm11962_vm7, 4294967295, %v17682_v18  ;;  %479 = vperm.xlu1 %11031, %v61_v5   ;;  %7765 = vmatprep.mubr.msk.bf16.mxu1 %vm11962_vm7, %v17247_v13  ;;  %vm11969_vm9 = vmpackc.low %vm499_vm12, %vm497_vm1  ;;  %v429_v9 = vpop.permute.xlu0 %428 }
  0xcc   :  { %v17685_v21 = vsel %vm11969_vm9, 4294967295, %v17684_v21  ;;  %7767 = vmatmul.mubr.msk.bf16.gmra.mrb[16].mxu1 %vm11969_vm9, %v17247_v13  ;;  %1092 = vperm.xlu0 %11058, %v11416_v31  }
  0xcd   :  { %v100_v29 = vpop.permute.xlu1 %99  ;;  %9425 = vmatpush3.bf16.msra.mxu0 %v11211_v26 }
  0xce   :  { %vm183_vm12 = vcmp.eq.s32.totalorder %v100_v29, %v11662_v51  ;;  %vm184_vm1 = vcmp.eq.s32.totalorder %v100_v29, %v11735_v8  ;;  %9426 = vmatprep.subr.bf16.mxu0 %v11213_v37  ;;  %v11424_v37 = vld [vmem:[%s17183_s0 + $0xf0] sm:$0xff] }
  0xcf   :  { %11032 = vset.pattern.permute.xlu1 %v17235_v62  ;;  %vm11981_vm7 = vmpackc.low %vm184_vm1, %vm182_vm15  ;;  %vm502_vm15 = vcmp.eq.s32.totalorder %v11883_v48, %v11735_v8  ;;  %vm501_vm1 = vcmp.eq.s32.totalorder %v11883_v48, %v11662_v51  ;;  %v11218_v48 = vld [vmem:[#allocation2 + $0x1b0] sm:$0xff]   ;;  %v12079_v53 = vpop.permute.xlu0 %440 }
  0xd0   :  { %v17687_v30 = vsel %vm11981_vm7, 4294967295, %v17686_v30  ;;  %706 = vperm.xlu1 %11032, %v11417_v34   ;;  %7705 = vmatprep.mubr.msk.bf16.mxu0 %vm11981_vm7, %v17247_v13  ;;  %vm11994_vm9 = vmpackc.low %vm183_vm12, %vm181_vm13 }
  0xd1   :  { %v17689_v36 = vsel %vm11994_vm9, 4294967295, %v17688_v36  ;;  %7707 = vmatmul.mubr.msk.bf16.gmra.mrb[20].mxu0 %vm11994_vm9, %v17247_v13  ;;  %11061 = vset.pattern.permute.xlu0 %v17235_v62 }
  0xd2   :  { %v420_v43 = vpop.permute.xlu1 %419  ;;  %9427 = vmatpush3.bf16.msra.mxu0 %v11214_v38  ;;  %772 = vperm.xlu0 %11061, %v11416_v31   ;;  %v17706_v31 = vmov 0 }
  0xd3   :  { %vm503_vm13 = vcmp.eq.s32.totalorder %v420_v43, %v11662_v51  ;;  %vm504_vm12 = vcmp.eq.s32.totalorder %v420_v43, %v11735_v8  ;;  %9537 = vmatpush3.bf16.msra.mxu1 %v11218_v48  ;;  %v118_v29 = vpop.permute.xlu0 %117  ;;  %v17712_v43 = vmov 0 }
  0xd4   :  { %11034 = vset.pattern.permute.xlu1 %v17241_v2  ;;  %vm12008_vm7 = vmpackc.low %vm504_vm12, %vm502_vm15  ;;  %vm188_vm15 = vcmp.eq.s32.totalorder %v106_v44, %v11735_v8  ;;  %vm187_vm12 = vcmp.eq.s32.totalorder %v106_v44, %v11662_v51  ;;  %9538 = vmatprep.subr.bf16.mxu1 %v11219_v49 }
  0xd5   :  { %v17691_v45 = vsel %vm12008_vm7, 4294967295, %v17690_v45  ;;  %1026 = vperm.xlu1 %11034, %v11417_v34   ;;  %7769 = vmatprep.mubr.msk.bf16.mxu1 %vm12008_vm7, %v17247_v13  ;;  %vm12015_vm9 = vmpackc.low %vm503_vm13, %vm501_vm1  ;;  %v17708_v34 = vmov 0 }
  0xd6   :  { %v17693_v47 = vsel %vm12015_vm9, 4294967295, %v17692_v47  ;;  %7771 = vmatmul.mubr.msk.bf16.gmra.mrb[20].mxu1 %vm12015_vm9, %v17247_v13  ;;  %781 = vperm.xlu0 %11061, %v12047_v6  }
  0xd7   :  { %v103_v52 = vpop.permute.xlu1 %102  ;;  %9539 = vmatpush3.bf16.msra.mxu1 %v11220_v63  ;;  %v121_v49 = vpop.permute.xlu0 %120  ;;  %v17719_v63 = vmov 0 }
  0xd8   :  { %vm185_vm1 = vcmp.eq.s32.totalorder %v103_v52, %v11662_v51  ;;  %vm186_vm13 = vcmp.eq.s32.totalorder %v103_v52, %v11735_v8  ;;  %v17714_v52 = vmov 0 }
  0xd9   :  { %1029 = vperm.xlu1 %11034, %v11418_v56   ;;  %vm12030_vm9 = vmpackc.low %vm188_vm15, %vm186_vm13  ;;  %v17716_v56 = vmov 0 }
  0xda   :  { %v17695_v57 = vsel %vm12030_vm9, 4294967295, %v17694_v57  ;;  %7709 = vmatprep.mubr.msk.bf16.mxu0 %vm12030_vm9, %v17247_v13  ;;  %vm12037_vm7 = vmpackc.low %vm187_vm12, %vm185_vm1  ;;  %784 = vperm.xlu0 %11061, %v11421_v10  }
  0xdb   :  { %v17697_v61 = vsel %vm12037_vm7, 4294967295, %v17696_v61  ;;  %7711 = vmatmul.mubr.msk.bf16.gmra.mrb[24].mxu0 %vm12037_vm7, %v17247_v13 }
  0xdc   :  { %v423_v5 = vpop.permute.xlu1 %422 }
  0xdd   :  { %11035 = vset.pattern.permute.xlu1 %v17235_v62  ;;  %vm506_vm15 = vcmp.eq.s32.totalorder %v423_v5, %v11735_v8  ;;  %vm505_vm13 = vcmp.eq.s32.totalorder %v423_v5, %v11662_v51  ;;  %v11427_v5 = vld [vmem:[%s17183_s0 + $0x40] sm:$0xff] }
  0xde   :  { %715 = vperm.xlu1 %11035, %v11420_v59   ;;  %11066 = vset.pattern.permute.xlu0 %v17241_v2 }
  0xdf   :  { %1104 = vperm.xlu0 %11066, %v11421_v10   ;;  %v17725_v10 = vmov 0 }
  0xe0   :  { %v426_v4 = vpop.permute.xlu1 %425 }
  0xe1   :  { %vm507_vm12 = vcmp.eq.s32.totalorder %v426_v4, %v11662_v51  ;;  %vm508_vm1 = vcmp.eq.s32.totalorder %v426_v4, %v11735_v8  ;;  %v130_v4 = vpop.permute.xlu0 %129 }
  0xe2   :  { %11036 = vset.pattern.permute.xlu1 %v17241_v2  ;;  %vm12062_vm7 = vmpackc.low %vm508_vm1, %vm506_vm15  ;;  %vm189_vm15 = vcmp.eq.s32.totalorder %v109_v60, %v11662_v51 }
  0xe3   :  { %v17699_v11 = vsel %vm12062_vm7, 4294967295, %v17698_v11  ;;  %1035 = vperm.xlu1 %11036, %v11420_v59   ;;  %7773 = vmatprep.mubr.msk.bf16.mxu1 %vm12062_vm7, %v17247_v13  ;;  %vm12069_vm9 = vmpackc.low %vm507_vm12, %vm505_vm13  ;;  %vm510_vm7 = vcmp.eq.s32.totalorder %v429_v9, %v11735_v8  ;;  %v17722_v59 = vmov 0 }
  0xe4   :  { %v17701_v15 = vsel %vm12069_vm9, 4294967295, %v17700_v15  ;;  %7775 = vmatmul.mubr.msk.bf16.gmra.mrb[24].mxu1 %vm12069_vm9, %v17247_v13  ;;  %11069 = vset.pattern.permute.xlu0 %v17235_v62 }
  0xe5   :  { %v112_v16 = vpop.permute.xlu1 %111  ;;  %793 = vperm.xlu0 %11069, %v12107_v27  }
  0xe6   :  { %vm191_vm1 = vcmp.eq.s32.totalorder %v112_v16, %v11662_v51  ;;  %vm192_vm12 = vcmp.eq.s32.totalorder %v112_v16, %v11735_v8  ;;  %v17728_v16 = vmov 0 }
  0xe7   :  { %11037 = vset.pattern.permute.xlu1 %v17235_v62  ;;  %vm12084_vm13 = vmpackc.low %vm192_vm12, %vm190_vm2  ;;  %vm509_vm2 = vcmp.eq.s32.totalorder %v429_v9, %v11662_v51 }
  0xe8   :  { %v17703_v17 = vsel %vm12084_vm13, 4294967295, %v17702_v17  ;;  %718 = vperm.xlu1 %11037, %v11422_v22   ;;  %7713 = vmatprep.mubr.msk.bf16.mxu0 %vm12084_vm13, %v17247_v13  ;;  %vm12094_vm9 = vmpackc.low %vm191_vm1, %vm189_vm15  ;;  %vm196_vm13 = vcmp.eq.s32.totalorder %v118_v29, %v11735_v8 }
  0xe9   :  { %v17705_v23 = vsel %vm12094_vm9, 4294967295, %v17704_v23  ;;  %7715 = vmatmul.mubr.msk.bf16.gmra.mrb[28].mxu0 %vm12094_vm9, %v17247_v13  ;;  %796 = vperm.xlu0 %11069, %v11424_v37  }
  0xea   :  { %v432_v26 = vpop.permute.xlu1 %431 }
  0xeb   :  { %vm511_vm15 = vcmp.eq.s32.totalorder %v432_v26, %v11662_v51  ;;  %vm512_vm1 = vcmp.eq.s32.totalorder %v432_v26, %v11735_v8  ;;  %v17731_v26 = vmov 0 }
  0xec   :  { %11039 = vset.pattern.permute.xlu1 %v17241_v2  ;;  %vm12113_vm12 = vmpackc.low %vm512_vm1, %vm510_vm7  ;;  %vm195_vm7 = vcmp.eq.s32.totalorder %v118_v29, %v11662_v51  ;;  %v133_v29 = vpop.permute.xlu0 %132 }
  0xed   :  { %v17707_v31 = vsel %vm12113_vm12, 4294967295, %v17706_v31  ;;  %1038 = vperm.xlu1 %11039, %v11422_v22   ;;  %7777 = vmatprep.mubr.msk.bf16.mxu1 %vm12113_vm12, %v17247_v13  ;;  %vm12120_vm9 = vmpackc.low %vm511_vm15, %vm509_vm2  ;;  %vm198_vm12 = vcmp.eq.s32.totalorder %v121_v49, %v11735_v8  ;;  %v11428_v22 = vld [vmem:[%s17183_s0 + $0x48] sm:$0xff] }
  0xee   :  { %v17709_v34 = vsel %vm12120_vm9, 4294967295, %v17708_v34  ;;  %7779 = vmatmul.mubr.msk.bf16.gmra.mrb[28].mxu1 %vm12120_vm9, %v17247_v13  ;;  %11072 = vset.pattern.permute.xlu0 %v17241_v2 }
  0xef   :  { %v115_v38 = vpop.permute.xlu1 %114  ;;  %1116 = vperm.xlu0 %11072, %v11424_v37   ;;  %v17734_v37 = vmov 0 }
  0xf0   :  { %vm193_vm1 = vcmp.eq.s32.totalorder %v115_v38, %v11662_v51  ;;  %vm194_vm2 = vcmp.eq.s32.totalorder %v115_v38, %v11735_v8 }
  0xf1   :  { %1041 = vperm.xlu1 %11039, %v11425_v39   ;;  %vm12137_vm15 = vmpackc.low %vm196_vm13, %vm194_vm2  ;;  %v11429_v39 = vld [vmem:[%s17183_s0 + $0x58] sm:$0xff] }
  0xf2   :  { %v17711_v40 = vsel %vm12137_vm15, 4294967295, %v17710_v40  ;;  %7717 = vmatprep.mubr.msk.bf16.mxu0 %vm12137_vm15, %v17247_v13  ;;  %vm12144_vm9 = vmpackc.low %vm195_vm7, %vm193_vm1 }
  0xf3   :  { %v17713_v43 = vsel %vm12144_vm9, 4294967295, %v17712_v43  ;;  %7719 = vmatmul.mubr.msk.bf16.gmra.mrb[32].mxu0 %vm12144_vm9, %v17247_v13  ;;  %11077 = vset.pattern.permute.xlu0 %v17226_v0  ;;  %v17761_v0 = vmov 0 }
  0xf4   :  { %v435_v44 = vpop.permute.xlu1 %434 }
  0xf5   :  { %11040 = vset.pattern.permute.xlu1 %v17235_v62  ;;  %vm514_vm13 = vcmp.eq.s32.totalorder %v435_v44, %v11735_v8  ;;  %vm513_vm2 = vcmp.eq.s32.totalorder %v435_v44, %v11662_v51  ;;  %v453_v44 = vpop.permute.xlu0 %452 }
  0xf6   :  { %727 = vperm.xlu1 %11040, %v11426_v46  }
  0xf8   :  { %v438_v48 = vpop.permute.xlu1 %437 }
  0xf9   :  { %vm515_vm7 = vcmp.eq.s32.totalorder %v438_v48, %v11662_v51  ;;  %vm516_vm1 = vcmp.eq.s32.totalorder %v438_v48, %v11735_v8  ;;  %v17737_v48 = vmov 0 }
  0xfa   :  { %11042 = vset.pattern.permute.xlu1 %v17241_v2  ;;  %vm12162_vm9 = vmpackc.low %vm516_vm1, %vm514_vm13  ;;  %vm197_vm13 = vcmp.eq.s32.totalorder %v121_v49, %v11662_v51  ;;  %v17740_v49 = vmov 0 }
  0xfb   :  { %v17715_v52 = vsel %vm12162_vm9, 4294967295, %v17714_v52  ;;  %1047 = vperm.xlu1 %11042, %v11426_v46   ;;  %7781 = vmatprep.mubr.msk.bf16.mxu1 %vm12162_vm9, %v17247_v13  ;;  %vm12169_vm15 = vmpackc.low %vm515_vm7, %vm513_vm2  ;;  %vm518_vm2 = vcmp.eq.s32.totalorder %v12079_v53, %v11735_v8 }
  0xfc   :  { %v17717_v56 = vsel %vm12169_vm15, 4294967295, %v17716_v56  ;;  %7783 = vmatmul.mubr.msk.bf16.gmra.mrb[32].mxu1 %vm12169_vm15, %v17247_v13 }
  0xfd   :  { %17718 = vst [vmem:[#allocation9_spill] sm:$0xff] %v17717_v56  ;;  %v124_v60 = vpop.permute.xlu1 %123  ;;  %v17880_v56 = vmov 1  }
  0xfe   :  { %vm199_vm1 = vcmp.eq.s32.totalorder %v124_v60, %v11662_v51  ;;  %vm200_vm8 = vcmp.eq.s32.totalorder %v124_v60, %v11735_v8 }
  0xff   :  { %11043 = vset.pattern.permute.xlu1 %v17235_v62  ;;  %vm12181_vm9 = vmpackc.low %vm200_vm8, %vm198_vm12  ;;  %vm517_vm8 = vcmp.eq.s32.totalorder %v12079_v53, %v11662_v51 }
 0x100   :  { %v17720_v63 = vsel %vm12181_vm9, 4294967295, %v17719_v63  ;;  %730 = vperm.xlu1 %11043, %v11427_v5   ;;  %7721 = vmatprep.mubr.msk.bf16.mxu0 %vm12181_vm9, %v17247_v13  ;;  %vm12191_vm7 = vmpackc.low %vm199_vm1, %vm197_vm13 }
 0x101   :  { %17721 = vst [vmem:[#allocation10_spill] sm:$0xff] %v17720_v63  ;;  %v17723_v59 = vsel %vm12191_vm7, 4294967295, %v17722_v59  ;;  %7723 = vmatmul.mubr.msk.bf16.gmra.mrb[36].mxu0 %vm12191_vm7, %v17247_v13  ;;  %vm204_vm7 = vcmp.eq.s32.totalorder %v130_v4, %v11735_v8 }
 0x102   :  { %17724 = vst [vmem:[#allocation11_spill] sm:$0xff] %v17723_v59  ;;  %v444_v9 = vpop.permute.xlu1 %443 }
 0x103   :  { %vm519_vm12 = vcmp.eq.s32.totalorder %v444_v9, %v11662_v51  ;;  %vm520_vm15 = vcmp.eq.s32.totalorder %v444_v9, %v11735_v8  ;;  %v11221_v9 = vld [vmem:[%s17184_s1 + $0x40] sm:$0xff]  }
 0x104   :  { %11044 = vset.pattern.permute.xlu1 %v17241_v2  ;;  %vm12205_vm13 = vmpackc.low %vm520_vm15, %vm518_vm2  ;;  %vm203_vm15 = vcmp.eq.s32.totalorder %v130_v4, %v11662_v51  ;;  %v17743_v4 = vmov 0  ;;  %9636 = vmatprep.subr.bf16.mxu0 %v11221_v9  ;;  %v11431_v9 = vld [vmem:[%s17183_s0 + $0x68] sm:$0xff] }
 0x105   :  { %v17726_v10 = vsel %vm12205_vm13, 4294967295, %v17725_v10  ;;  %1050 = vperm.xlu1 %11044, %v11427_v5   ;;  %7785 = vmatprep.mubr.msk.bf16.mxu1 %vm12205_vm13, %v17247_v13  ;;  %vm12212_vm1 = vmpackc.low %vm519_vm12, %vm517_vm8  ;;  %v12265_v5 = vpop.permute.xlu0 %464 }
 0x106   :  { %17727 = vst [vmem:[#allocation12_spill] sm:$0xff] %v17726_v10  ;;  %v17729_v16 = vsel %vm12212_vm1, 4294967295, %v17728_v16  ;;  %7787 = vmatmul.mubr.msk.bf16.gmra.mrb[36].mxu1 %vm12212_vm1, %v17247_v13 }
 0x107   :  { %17730 = vst [vmem:[#allocation13_spill] sm:$0xff] %v17729_v16  ;;  %v127_v53 = vpop.permute.xlu1 %126 }
 0x108   :  { %vm201_vm2 = vcmp.eq.s32.totalorder %v127_v53, %v11662_v51  ;;  %vm202_vm9 = vcmp.eq.s32.totalorder %v127_v53, %v11735_v8  ;;  %v11223_v53 = vld [vmem:[%s17184_s1 + $0xc0] sm:$0xff]  }
 0x109   :  { %1053 = vperm.xlu1 %11044, %v11428_v22   ;;  %vm12226_vm8 = vmpackc.low %vm204_vm7, %vm202_vm9  ;;  %v11430_v22 = vld [vmem:[%s17183_s0 + $0x60] sm:$0xff]  ;;  %9748 = vmatprep.subr.bf16.mxu1 %v11223_v53  ;;  %v17755_v53 = vmov 0 }
 0x10a   :  { %v17732_v26 = vsel %vm12226_vm8, 4294967295, %v17731_v26  ;;  %7725 = vmatprep.mubr.msk.bf16.mxu0 %vm12226_vm8, %v17247_v13  ;;  %vm12233_vm12 = vmpackc.low %vm203_vm15, %vm201_vm2  ;;  %vm206_vm8 = vcmp.eq.s32.totalorder %v133_v29, %v11735_v8 }
 0x10b   :  { %17733 = vst [vmem:[#allocation14_spill] sm:$0xff] %v17732_v26  ;;  %v17735_v37 = vsel %vm12233_vm12, 4294967295, %v17734_v37  ;;  %7727 = vmatmul.mubr.msk.bf16.gmra.mrb[40].mxu0 %vm12233_vm12, %v17247_v13 }
 0x10c   :  { %17736 = vst [vmem:[#allocation15_spill] sm:$0xff] %v17735_v37  ;;  %v447_v38 = vpop.permute.xlu1 %446 }
 0x10d   :  { %11045 = vset.pattern.permute.xlu1 %v17235_v62  ;;  %vm522_vm9 = vcmp.eq.s32.totalorder %v447_v38, %v11735_v8  ;;  %vm521_vm2 = vcmp.eq.s32.totalorder %v447_v38, %v11662_v51 }
 0x10e   :  { %739 = vperm.xlu1 %11045, %v11429_v39  }
 0x110   :  { %v450_v46 = vpop.permute.xlu1 %449 }
 0x111   :  { %vm523_vm7 = vcmp.eq.s32.totalorder %v450_v46, %v11662_v51  ;;  %vm524_vm15 = vcmp.eq.s32.totalorder %v450_v46, %v11735_v8  ;;  %v17749_v46 = vmov 0 }
 0x112   :  { %11046 = vset.pattern.permute.xlu1 %v17241_v2  ;;  %vm12249_vm12 = vmpackc.low %vm524_vm15, %vm522_vm9  ;;  %vm205_vm9 = vcmp.eq.s32.totalorder %v133_v29, %v11662_v51  ;;  %v17746_v29 = vmov 0 }
 0x113   :  { %v17738_v48 = vsel %vm12249_vm12, 4294967295, %v17737_v48  ;;  %1059 = vperm.xlu1 %11046, %v11429_v39   ;;  %7789 = vmatprep.mubr.msk.bf16.mxu1 %vm12249_vm12, %v17247_v13  ;;  %vm12256_vm1 = vmpackc.low %vm523_vm7, %vm521_vm2  ;;  %v142_v39 = vpop.permute.xlu0 %141 }
 0x114   :  { %17739 = vst [vmem:[#allocation16_spill] sm:$0xff] %v17738_v48  ;;  %v17741_v49 = vsel %vm12256_vm1, 4294967295, %v17740_v49  ;;  %7791 = vmatmul.mubr.msk.bf16.gmra.mrb[40].mxu1 %vm12256_vm1, %v17247_v13 }
 0x115   :  { %17742 = vst [vmem:[#allocation17_spill] sm:$0xff] %v17741_v49  ;;  %v136_v60 = vpop.permute.xlu1 %135 }
 0x116   :  { %vm207_vm7 = vcmp.eq.s32.totalorder %v136_v60, %v11662_v51  ;;  %vm208_vm15 = vcmp.eq.s32.totalorder %v136_v60, %v11735_v8  ;;  %v17752_v60 = vmov 0 }
 0x117   :  { %11047 = vset.pattern.permute.xlu1 %v17235_v62  ;;  %vm12273_vm2 = vmpackc.low %vm208_vm15, %vm206_vm8  ;;  %vm526_vm8 = vcmp.eq.s32.totalorder %v453_v44, %v11735_v8  ;;  %vm525_vm15 = vcmp.eq.s32.totalorder %v453_v44, %v11662_v51 }
 0x118   :  { %v17744_v4 = vsel %vm12273_vm2, 4294967295, %v17743_v4  ;;  %742 = vperm.xlu1 %11047, %v11430_v22   ;;  %7729 = vmatprep.mubr.msk.bf16.mxu0 %vm12273_vm2, %v17247_v13  ;;  %vm12286_vm1 = vmpackc.low %vm207_vm7, %vm205_vm9 }
 0x119   :  { %17745 = vst [vmem:[#allocation18_spill] sm:$0xff] %v17744_v4  ;;  %v17747_v29 = vsel %vm12286_vm1, 4294967295, %v17746_v29  ;;  %7731 = vmatmul.mubr.msk.bf16.gmra.mrb[44].mxu0 %vm12286_vm1, %v17247_v13  ;;  %vm212_vm1 = vcmp.eq.s32.totalorder %v142_v39, %v11735_v8 }
 0x11a   :  { %17748 = vst [vmem:[#allocation19_spill] sm:$0xff] %v17747_v29  ;;  %v456_v38 = vpop.permute.xlu1 %455  ;;  %v11228_v29 = vld [vmem:[%s17184_s1 + $0x88] sm:$0xff]  }
 0x11b   :  { %vm527_vm12 = vcmp.eq.s32.totalorder %v456_v38, %v11662_v51  ;;  %vm528_vm13 = vcmp.eq.s32.totalorder %v456_v38, %v11735_v8 }
 0x11c   :  { %11049 = vset.pattern.permute.xlu1 %v17241_v2  ;;  %vm12298_vm9 = vmpackc.low %vm528_vm13, %vm526_vm8  ;;  %vm211_vm13 = vcmp.eq.s32.totalorder %v142_v39, %v11662_v51  ;;  %v11432_v39 = vld [vmem:[%s17183_s0 + $0x78] sm:$0xff] }
 0x11d   :  { %v17750_v46 = vsel %vm12298_vm9, 4294967295, %v17749_v46  ;;  %1062 = vperm.xlu1 %11049, %v11430_v22   ;;  %7793 = vmatprep.mubr.msk.bf16.mxu1 %vm12298_vm9, %v17247_v13  ;;  %vm12305_vm7 = vmpackc.low %vm527_vm12, %vm525_vm15  ;;  %v17758_v22 = vmov 0 }
 0x11e   :  { %17751 = vst [vmem:[#allocation20_spill] sm:$0xff] %v17750_v46  ;;  %v17753_v60 = vsel %vm12305_vm7, 4294967295, %v17752_v60  ;;  %7795 = vmatmul.mubr.msk.bf16.gmra.mrb[44].mxu1 %vm12305_vm7, %v17247_v13 }
 0x11f   :  { %17754 = vst [vmem:[#allocation21_spill] sm:$0xff] %v17753_v60  ;;  %v139_v44 = vpop.permute.xlu1 %138 }
 0x120   :  { %vm209_vm8 = vcmp.eq.s32.totalorder %v139_v44, %v11662_v51  ;;  %vm210_vm2 = vcmp.eq.s32.totalorder %v139_v44, %v11735_v8 }
 0x121   :  { %1065 = vperm.xlu1 %11049, %v11431_v9   ;;  %vm12319_vm12 = vmpackc.low %vm212_vm1, %vm210_vm2  ;;  %v145_v9 = vpop.permute.xlu0 %144 }
 0x122   :  { %v17756_v53 = vsel %vm12319_vm12, 4294967295, %v17755_v53  ;;  %7733 = vmatprep.mubr.msk.bf16.mxu0 %vm12319_vm12, %v17247_v13  ;;  %vm12326_vm15 = vmpackc.low %vm211_vm13, %vm209_vm8  ;;  %vm214_vm12 = vcmp.eq.s32.totalorder %v145_v9, %v11735_v8 }
 0x123   :  { %17757 = vst [vmem:[#allocation22_spill] sm:$0xff] %v17756_v53  ;;  %v17759_v22 = vsel %vm12326_vm15, 4294967295, %v17758_v22  ;;  %7735 = vmatmul.mubr.msk.bf16.gmra.mrb[48].mxu0 %vm12326_vm15, %v17247_v13  ;;  %v11224_v53 = vld [vmem:[%s17184_s1 + $0x80] sm:$0xff]  }
 0x124   :  { %17760 = vst [vmem:[#allocation23_spill] sm:$0xff] %v17759_v22  ;;  %v459_v38 = vpop.permute.xlu1 %458  ;;  %v11226_v22 = vld [vmem:[%s17184_s1 + $0x8] sm:$0xff]  }
 0x125   :  { %11050 = vset.pattern.permute.xlu1 %v17235_v62  ;;  %vm530_vm1 = vcmp.eq.s32.totalorder %v459_v38, %v11735_v8  ;;  %vm529_vm8 = vcmp.eq.s32.totalorder %v459_v38, %v11662_v51 }
 0x126   :  { %751 = vperm.xlu1 %11050, %v11432_v39  }
 0x128   :  { %v462_v44 = vpop.permute.xlu1 %461 }
 0x129   :  { %vm531_vm2 = vcmp.eq.s32.totalorder %v462_v44, %v11662_v51  ;;  %vm532_vm13 = vcmp.eq.s32.totalorder %v462_v44, %v11735_v8  ;;  %v11433_v44 = vld [vmem:[%s17183_s0 + $0x80] sm:$0xff] }
 0x12a   :  { %11052 = vset.pattern.permute.xlu1 %v17241_v2  ;;  %vm12342_vm15 = vmpackc.low %vm532_vm13, %vm530_vm1  ;;  %vm213_vm1 = vcmp.eq.s32.totalorder %v145_v9, %v11662_v51  ;;  %v17770_v9 = vmov 0 }
 0x12b   :  { %v17762_v0 = vsel %vm12342_vm15, 4294967295, %v17761_v0  ;;  %1071 = vperm.xlu1 %11052, %v11432_v39   ;;  %7797 = vmatprep.mubr.msk.bf16.mxu1 %vm12342_vm15, %v17247_v13  ;;  %vm12349_vm7 = vmpackc.low %vm531_vm2, %vm529_vm8  ;;  %v17767_v39 = vmov 0  ;;  %vm534_vm8 = vcmp.eq.s32.totalorder %v12265_v5, %v11735_v8 }
 0x12c   :  { %17763 = vst [vmem:[#allocation24_spill] sm:$0xff] %v17762_v0  ;;  %v17765_v1 = vsel %vm12349_vm7, 4294967295, %v17764_v1  ;;  %7799 = vmatmul.mubr.msk.bf16.gmra.mrb[48].mxu1 %vm12349_vm7, %v17247_v13  ;;  %v11438_v0 = vld [vmem:[%s17183_s0 + $0xb8] sm:$0xff] }
 0x12d   :  { %17766 = vst [vmem:[#allocation25_spill] sm:$0xff] %v17765_v1  ;;  %v148_v38 = vpop.permute.xlu1 %147  ;;  %v17773_v1 = vmov 0 }
 0x12e   :  { %vm215_vm13 = vcmp.eq.s32.totalorder %v148_v38, %v11662_v51  ;;  %vm216_vm9 = vcmp.eq.s32.totalorder %v148_v38, %v11735_v8 }
 0x12f   :  { %11053 = vset.pattern.permute.xlu1 %v17235_v62  ;;  %vm12361_vm15 = vmpackc.low %vm216_vm9, %vm214_vm12  ;;  %vm533_vm9 = vcmp.eq.s32.totalorder %v12265_v5, %v11662_v51  ;;  %v154_v62 = vpop.permute.xlu0 %153 }
 0x130   :  { %v17768_v39 = vsel %vm12361_vm15, 4294967295, %v17767_v39  ;;  %754 = vperm.xlu1 %11053, %v11433_v44   ;;  %7737 = vmatprep.mubr.msk.bf16.mxu0 %vm12361_vm15, %v17247_v13  ;;  %vm12371_vm2 = vmpackc.low %vm215_vm13, %vm213_vm1 }
 0x131   :  { %17769 = vst [vmem:[#allocation26_spill] sm:$0xff] %v17768_v39  ;;  %v17771_v9 = vsel %vm12371_vm2, 4294967295, %v17770_v9  ;;  %7739 = vmatmul.mubr.msk.bf16.gmra.mrb[52].mxu0 %vm12371_vm2, %v17247_v13  ;;  %vm220_vm2 = vcmp.eq.s32.totalorder %v154_v62, %v11735_v8  ;;  %v17791_v39 = vmov 0 }
 0x132   :  { %17772 = vst [vmem:[#allocation27_spill] sm:$0xff] %v17771_v9  ;;  %v468_v38 = vpop.permute.xlu1 %467  ;;  %v17776_v9 = vmov 0 }
 0x133   :  { %vm535_vm12 = vcmp.eq.s32.totalorder %v468_v38, %v11662_v51  ;;  %vm536_vm7 = vcmp.eq.s32.totalorder %v468_v38, %v11735_v8  ;;  %v17779_v38 = vmov 0 }
 0x134   :  { %11054 = vset.pattern.permute.xlu1 %v17241_v2  ;;  %vm12385_vm1 = vmpackc.low %vm536_vm7, %vm534_vm8  ;;  %vm219_vm7 = vcmp.eq.s32.totalorder %v154_v62, %v11662_v51  ;;  %v17782_v2 = vmov 0 }
 0x135   :  { %v17774_v1 = vsel %vm12385_vm1, 4294967295, %v17773_v1  ;;  %1074 = vperm.xlu1 %11054, %v11433_v44   ;;  %7801 = vmatprep.mubr.msk.bf16.mxu1 %vm12385_vm1, %v17247_v13  ;;  %vm12392_vm13 = vmpackc.low %vm535_vm12, %vm533_vm9  ;;  %v11434_v44 = vld [vmem:[%s17183_s0 + $0x88] sm:$0xff] }
 0x136   :  { %17775 = vst [vmem:[#allocation28_spill] sm:$0xff] %v17774_v1  ;;  %v17777_v9 = vsel %vm12392_vm13, 4294967295, %v17776_v9  ;;  %7803 = vmatmul.mubr.msk.bf16.gmra.mrb[52].mxu1 %vm12392_vm13, %v17247_v13 }
 0x137   :  { %17778 = vst [vmem:[#allocation29_spill] sm:$0xff] %v17777_v9  ;;  %v151_v5 = vpop.permute.xlu1 %150  ;;  %v157_v9 = vpop.permute.xlu0 %156 }
 0x138   :  { %vm217_vm8 = vcmp.eq.s32.totalorder %v151_v5, %v11662_v51  ;;  %vm218_vm15 = vcmp.eq.s32.totalorder %v151_v5, %v11735_v8  ;;  %v17785_v5 = vmov 2  }
 0x139   :  { %1077 = vperm.xlu1 %11054, %v11434_v44   ;;  %vm12406_vm9 = vmpackc.low %vm220_vm2, %vm218_vm15  ;;  %v11435_v44 = vld [vmem:[%s17183_s0 + $0x98] sm:$0xff] }
 0x13a   :  { %v17780_v38 = vsel %vm12406_vm9, 4294967295, %v17779_v38  ;;  %7741 = vmatprep.mubr.msk.bf16.mxu0 %vm12406_vm9, %v17247_v13  ;;  %vm12413_vm12 = vmpackc.low %vm219_vm7, %vm217_vm8  ;;  %vm222_vm9 = vcmp.eq.s32.totalorder %v157_v9, %v11735_v8 }
 0x13b   :  { %17781 = vst [vmem:[#allocation30_spill] sm:$0xff] %v17780_v38  ;;  %v17783_v2 = vsel %vm12413_vm12, 4294967295, %v17782_v2  ;;  %7743 = vmatmul.mubr.msk.bf16.gmra.mrb[56].mxu0 %vm12413_vm12, %v17247_v13  ;;  %v17787_v13 = vmov 0  ;;  %v17790_v38 = vmov 1.0|1.0  }
 0x13c   :  { %17784 = vst [vmem:[#allocation31_spill] sm:$0xff] %v17783_v2  ;;  %v471_v62 = vpop.permute.xlu1 %470  ;;  %v17786_v2 = vmov 3  }
 0x13d   :  { %11055 = vset.pattern.permute.xlu1 %v17785_v5  ;;  %vm538_vm15 = vcmp.eq.s32.totalorder %v471_v62, %v11735_v8  ;;  %vm537_vm8 = vcmp.eq.s32.totalorder %v471_v62, %v11662_v51  ;;  %v477_v62 = vpop.permute.xlu0 %476 }
 0x13e   :  { %763 = vperm.xlu1 %11055, %v11435_v44  }
 0x140   :  { %v474_v1 = vpop.permute.xlu1 %473 }
 0x141   :  { %vm539_vm2 = vcmp.eq.s32.totalorder %v474_v1, %v11662_v51  ;;  %vm540_vm7 = vcmp.eq.s32.totalorder %v474_v1, %v11735_v8 }
 0x142   :  { %11056 = vset.pattern.permute.xlu1 %v17786_v2  ;;  %vm12429_vm12 = vmpackc.low %vm540_vm7, %vm538_vm15  ;;  %vm221_vm15 = vcmp.eq.s32.totalorder %v157_v9, %v11662_v51  ;;  %v17797_v9 = vmov 0 }
 0x143   :  { %v17788_v13 = vsel %vm12429_vm12, 4294967295, %v17787_v13  ;;  %1083 = vperm.xlu1 %11056, %v11435_v44   ;;  %7805 = vmatprep.mubr.msk.bf16.mxu1 %vm12429_vm12, %v17790_v38  ;;  %vm12436_vm13 = vmpackc.low %vm539_vm2, %vm537_vm8  ;;  %v17794_v44 = vmov 0 }
 0x144   :  { %17789 = vst [vmem:[#allocation32_spill] sm:$0xff] %v17788_v13  ;;  %v17792_v39 = vsel %vm12436_vm13, 4294967295, %v17791_v39  ;;  %7807 = vmatmul.mubr.msk.bf16.gmra.mrb[56].mxu1 %vm12436_vm13, %v17790_v38  ;;  %v710_v13 = vpop.permute.xlu0 %709 }
 0x145   :  { %17793 = vst [vmem:[#allocation33_spill] sm:$0xff] %v17792_v39  ;;  %v160_v1 = vpop.permute.xlu1 %159  ;;  %v11436_v39 = vld [vmem:[%s17183_s0 + $0xa0] sm:$0xff] }
 0x146   :  { %vm223_vm7 = vcmp.eq.s32.totalorder %v160_v1, %v11662_v51  ;;  %vm224_vm1 = vcmp.eq.s32.totalorder %v160_v1, %v11735_v8 }
 0x147   :  { %11057 = vset.pattern.permute.xlu1 %v17785_v5  ;;  %vm12448_vm2 = vmpackc.low %vm224_vm1, %vm222_vm9  ;;  %vm542_vm1 = vcmp.eq.s32.totalorder %v477_v62, %v11735_v8  ;;  %vm541_vm9 = vcmp.eq.s32.totalorder %v477_v62, %v11662_v51 }
 0x148   :  { %v17795_v44 = vsel %vm12448_vm2, 4294967295, %v17794_v44  ;;  %766 = vperm.xlu1 %11057, %v11436_v39   ;;  %7745 = vmatprep.mubr.msk.bf16.mxu0 %vm12448_vm2, %v17790_v38  ;;  %vm12458_vm8 = vmpackc.low %vm223_vm7, %vm221_vm15 }
 0x149   :  { %17796 = vst [vmem:[#allocation34_spill] sm:$0xff] %v17795_v44  ;;  %v17798_v9 = vsel %vm12458_vm8, 4294967295, %v17797_v9  ;;  %7747 = vmatmul.mubr.msk.bf16.gmra.mrb[60].mxu0 %vm12458_vm8, %v17790_v38  ;;  %v17800_v44 = vmov 0  ;;  %vm803_vm8 = vcmp.eq.s32.totalorder %v710_v13, %v11662_v51 }
 0x14a   :  { %17799 = vst [vmem:[#allocation35_spill] sm:$0xff] %v17798_v9  ;;  %v480_v1 = vpop.permute.xlu1 %479  ;;  %v17803_v9 = vmov 0 }
 0x14b   :  { %vm543_vm13 = vcmp.eq.s32.totalorder %v480_v1, %v11662_v51  ;;  %vm544_vm12 = vcmp.eq.s32.totalorder %v480_v1, %v11735_v8  ;;  %v11437_v1 = vld [vmem:[%s17183_s0 + $0xa8] sm:$0xff] }
 0x14c   :  { %11059 = vset.pattern.permute.xlu1 %v17786_v2  ;;  %vm12470_vm15 = vmpackc.low %vm544_vm12, %vm542_vm1  ;;  %vm804_vm12 = vcmp.eq.s32.totalorder %v710_v13, %v11735_v8  ;;  %v713_v13 = vpop.permute.xlu0 %712 }
 0x14d   :  { %v17801_v44 = vsel %vm12470_vm15, 4294967295, %v17800_v44  ;;  %1086 = vperm.xlu1 %11059, %v11436_v39   ;;  %7809 = vmatprep.mubr.msk.bf16.mxu1 %vm12470_vm15, %v17790_v38  ;;  %vm12477_vm7 = vmpackc.low %vm543_vm13, %vm541_vm9  ;;  %v17806_v39 = vmov 0 }
 0x14e   :  { %17802 = vst [vmem:[#allocation36_spill] sm:$0xff] %v17801_v44  ;;  %v17804_v9 = vsel %vm12477_vm7, 4294967295, %v17803_v9  ;;  %7811 = vmatmul.mubr.msk.bf16.gmra.mrb[60].mxu1 %vm12477_vm7, %v17790_v38  ;;  %v17809_v44 = vmov 0 }
 0x14f   :  { %17805 = vst [vmem:[#allocation37_spill] sm:$0xff] %v17804_v9  ;;  %v707_v62 = vpop.permute.xlu1 %706  ;;  %v11222_v9 = vld [vmem:[%s17184_s1] sm:$0xff]  }
 0x150   :  { %vm801_vm1 = vcmp.eq.s32.totalorder %v707_v62, %v11662_v51  ;;  %vm802_vm2 = vcmp.eq.s32.totalorder %v707_v62, %v11735_v8  ;;  %v11225_v62 = vld [vmem:[%s17184_s1 + $0x48] sm:$0xff]   ;;  %v12521_v60 = vpop.permute.xlu0 %721 }
 0x151   :  { %vm12488_vm0 = vmpackc.low %vm803_vm8, %vm801_vm1  ;;  %1089 = vperm.xlu1 %11059, %v11437_v1  }
 0x152   :  { %v17807_v39 = vsel %vm12488_vm0, 4294967295, %v17806_v39  ;;  %vm12498_vm13 = vmpackc.low %vm804_vm12, %vm802_vm2 }
 0x153   :  { %17808 = vst [vmem:[#allocation38_spill] sm:$0xff] %v17807_v39  ;;  %v17810_v44 = vsel %vm12498_vm13, 4294967295, %v17809_v44  ;;  %7813 = vmatprep.mubr.msk.bf16.mxu0 %vm12498_vm13, %v17790_v38 }
 0x154   :  { %17811 = vst [vmem:[#allocation39_spill] sm:$0xff] %v17810_v44  ;;  %7815 = vmatmul.mubr.msk.bf16.vlgmr.msra.gmra.mrb[64].mxu0 %vm12488_vm0, %v17790_v38  ;;  %v1027_v1 = vpop.permute.xlu1 %1026  ;;  %v11229_v44 = vld [vmem:[%s17184_s1 + $0x50] sm:$0xff]  }
 0x155   :  { %11060 = vset.pattern.permute.xlu1 %v17785_v5  ;;  %9637 = vmatpush3.bf16.msra.mxu0 %v11222_v9  ;;  %vm1121_vm2 = vcmp.eq.s32.totalorder %v1027_v1, %v11662_v51  ;;  %v11230_v9 = vld [vmem:[%s17184_s1 + $0x10] sm:$0xff]   ;;  %vm1122_vm12 = vcmp.eq.s32.totalorder %v1027_v1, %v11735_v8  ;;  %v11227_v1 = vld [vmem:[%s17184_s1 + $0xc8] sm:$0xff]  }
 0x156   :  { %775 = vperm.xlu1 %11060, %v11438_v0   ;;  %9638 = vmatprep.subr.bf16.mxu0 %v11225_v62  ;;  %v17812_v62 = vmov 0 }
 0x158   :  { %v1030_v39 = vpop.permute.xlu1 %1029 }
 0x159   :  { %vm1123_vm8 = vcmp.eq.s32.totalorder %v1030_v39, %v11662_v51  ;;  %vm1124_vm9 = vcmp.eq.s32.totalorder %v1030_v39, %v11735_v8  ;;  %9639 = vmatpush3.bf16.msra.mxu0 %v11226_v22  ;;  %v11233_v22 = vld [vmem:[%s17184_s1 + $0x58] sm:$0xff]   ;;  %v17815_v39 = vmov 0 }
 0x15a   :  { %vm12530_vm1 = vmpackc.low %vm1123_vm8, %vm1121_vm2  ;;  %11062 = vset.pattern.permute.xlu1 %v17786_v2  ;;  %9640 = vmatprep.subr.bf16.mxu0 %v11229_v44  ;;  %vm806_vm2 = vcmp.eq.s32.totalorder %v713_v13, %v11735_v8  ;;  %v1033_v44 = vpop.permute.xlu0 %1032 }
 0x15b   :  { %v17813_v62 = vsel %vm12530_vm1, 4294967295, %v17812_v62  ;;  %1095 = vperm.xlu1 %11062, %v11438_v0   ;;  %vm12541_vm0 = vmpackc.low %vm1124_vm9, %vm1122_vm12 }
 0x15c   :  { %17814 = vst [vmem:[#allocation40_spill] sm:$0xff] %v17813_v62  ;;  %v17816_v39 = vsel %vm12541_vm0, 4294967295, %v17815_v39  ;;  %7877 = vmatprep.mubr.msk.bf16.mxu1 %vm12541_vm0, %v17790_v38  ;;  %v17818_v62 = vmov 0 }
 0x15d   :  { %17817 = vst [vmem:[#allocation41_spill] sm:$0xff] %v17816_v39  ;;  %7879 = vmatmul.mubr.msk.bf16.vlgmr.msra.gmra.mrb[64].mxu1 %vm12530_vm1, %v17790_v38  ;;  %v716_v0 = vpop.permute.xlu1 %715  ;;  %9641 = vmatpush3.bf16.msra.mxu0 %v11230_v9  ;;  %v11234_v39 = vld [vmem:[%s17184_s1 + $0x18] sm:$0xff]   ;;  %v11237_v9 = vld [vmem:[%s17184_s1 + $0x60] sm:$0xff]   ;;  %vm1126_vm1 = vcmp.eq.s32.totalorder %v1033_v44, %v11735_v8 }
 0x15e   :  { %vm807_vm9 = vcmp.eq.s32.totalorder %v716_v0, %v11662_v51  ;;  %vm808_vm12 = vcmp.eq.s32.totalorder %v716_v0, %v11735_v8  ;;  %9749 = vmatpush3.bf16.msra.mxu1 %v11224_v53  ;;  %9642 = vmatprep.subr.bf16.mxu0 %v11233_v22  ;;  %v11231_v53 = vld [vmem:[%s17184_s1 + $0xd0] sm:$0xff]   ;;  %v11439_v22 = vld [vmem:[%s17183_s0 + $0xc0] sm:$0xff] }
 0x15f   :  { %11063 = vset.pattern.permute.xlu1 %v17785_v5  ;;  %vm12565_vm8 = vmpackc.low %vm808_vm12, %vm806_vm2  ;;  %9750 = vmatprep.subr.bf16.mxu1 %v11227_v1  ;;  %vm17821_vm2 = vcmp.eq.s32.totalorder %v713_v13, %v11662_v51  ;;  %v17822_v1 = vmov 0  ;;  %v11238_v13 = vld [vmem:[%s17184_s1 + $0x20] sm:$0xff]   ;;  %v11232_v0 = vld [vmem:[%s17184_s1 + $0x90] sm:$0xff]  }
 0x160   :  { %v17819_v62 = vsel %vm12565_vm8, 4294967295, %v17818_v62  ;;  %778 = vperm.xlu1 %11063, %v11439_v22   ;;  %7817 = vmatprep.mubr.msk.bf16.mxu0 %vm12565_vm8, %v17790_v38  ;;  %vm12585_vm12 = vmpackc.low %vm807_vm9, %vm17821_vm2 }
 0x161   :  { %17820 = vst [vmem:[#allocation42_spill] sm:$0xff] %v17819_v62  ;;  %v17823_v1 = vsel %vm12585_vm12, 4294967295, %v17822_v1  ;;  %7819 = vmatmul.mubr.msk.bf16.gmra.mrb[68].mxu0 %vm12585_vm12, %v17790_v38  ;;  %vm17828_vm12 = vcmp.eq.s32.totalorder %v1033_v44, %v11662_v51 }
 0x162   :  { %17824 = vst [vmem:[#allocation43_spill] sm:$0xff] %v17823_v1  ;;  %v1036_v46 = vpop.permute.xlu1 %1035  ;;  %9751 = vmatpush3.bf16.msra.mxu1 %v11228_v29  ;;  %9643 = vmatpush3.bf16.msra.mxu0 %v11234_v39  ;;  %v11241_v1 = vld [vmem:[%s17184_s1 + $0x68] sm:$0xff]   ;;  %v17825_v29 = vmov 0  ;;  %v17829_v39 = vmov 0 }
 0x163   :  { %vm1127_vm9 = vcmp.eq.s32.totalorder %v1036_v46, %v11662_v51  ;;  %vm1128_vm2 = vcmp.eq.s32.totalorder %v1036_v46, %v11735_v8  ;;  %9752 = vmatprep.subr.bf16.mxu1 %v11231_v53  ;;  %9644 = vmatprep.subr.bf16.mxu0 %v11237_v9  ;;  %v11235_v46 = vld [vmem:[%s17184_s1 + $0xd8] sm:$0xff]   ;;  %v11242_v53 = vld [vmem:[%s17184_s1 + $0x28] sm:$0xff]  }
 0x164   :  { %11064 = vset.pattern.permute.xlu1 %v17786_v2  ;;  %vm12606_vm0 = vmpackc.low %vm1128_vm2, %vm1126_vm1  ;;  %vm812_vm1 = vcmp.eq.s32.totalorder %v12521_v60, %v11735_v8  ;;  %vm811_vm2 = vcmp.eq.s32.totalorder %v12521_v60, %v11662_v51  ;;  %v11236_v9 = vld [vmem:[%s17184_s1 + $0x98] sm:$0xff]   ;;  %v17832_v60 = vmov 0 }
 0x165   :  { %v17826_v29 = vsel %vm12606_vm0, 4294967295, %v17825_v29  ;;  %1098 = vperm.xlu1 %11064, %v11439_v22   ;;  %7881 = vmatprep.mubr.msk.bf16.mxu1 %vm12606_vm0, %v17790_v38  ;;  %vm12618_vm8 = vmpackc.low %vm1127_vm9, %vm17828_vm12  ;;  %v11239_v22 = vld [vmem:[%s17184_s1 + $0xe0] sm:$0xff]  }
 0x166   :  { %17827 = vst [vmem:[#allocation44_spill] sm:$0xff] %v17826_v29  ;;  %v17830_v39 = vsel %vm12618_vm8, 4294967295, %v17829_v39  ;;  %7883 = vmatmul.mubr.msk.bf16.gmra.mrb[68].mxu1 %vm12618_vm8, %v17790_v38  ;;  %9645 = vmatpush3.bf16.msra.mxu0 %v11238_v13  ;;  %v12655_v13 = vpop.permute.xlu0 %1044  ;;  %v11244_v29 = vld [vmem:[%s17184_s1 + $0xa8] sm:$0xff]  }
 0x167   :  { %17831 = vst [vmem:[#allocation45_spill] sm:$0xff] %v17830_v39  ;;  %v719_v44 = vpop.permute.xlu1 %718  ;;  %9753 = vmatpush3.bf16.msra.mxu1 %v11232_v0  ;;  %9646 = vmatprep.subr.bf16.mxu0 %v11241_v1  ;;  %v17835_v1 = vmov 0 }
 0x168   :  { %vm809_vm12 = vcmp.eq.s32.totalorder %v719_v44, %v11662_v51  ;;  %vm810_vm9 = vcmp.eq.s32.totalorder %v719_v44, %v11735_v8  ;;  %9754 = vmatprep.subr.bf16.mxu1 %v11235_v46  ;;  %v11243_v46 = vld [vmem:[%s17184_s1 + $0xe8] sm:$0xff]  }
 0x169   :  { %1101 = vperm.xlu1 %11064, %v12047_v6   ;;  %vm12641_vm8 = vmpackc.low %vm812_vm1, %vm810_vm9  ;;  %v11240_v6 = vld [vmem:[%s17184_s1 + $0xa0] sm:$0xff]  }
 0x16a   :  { %v17833_v60 = vsel %vm12641_vm8, 4294967295, %v17832_v60  ;;  %7821 = vmatprep.mubr.msk.bf16.mxu0 %vm12641_vm8, %v17790_v38  ;;  %vm12648_vm0 = vmpackc.low %vm811_vm2, %vm809_vm12  ;;  %9647 = vmatpush3.bf16.msra.mxu0 %v11242_v53  ;;  %v11440_v53 = vld [vmem:[%s17183_s0 + $0xd8] sm:$0xff] }
 0x16b   :  { %17834 = vst [vmem:[#allocation46_spill] sm:$0xff] %v17833_v60  ;;  %v17836_v1 = vsel %vm12648_vm0, 4294967295, %v17835_v1  ;;  %7823 = vmatmul.mubr.msk.bf16.gmra.mrb[72].mxu0 %vm12648_vm0, %v17790_v38  ;;  %9755 = vmatpush3.bf16.msra.mxu1 %v11236_v9  ;;  %v725_v60 = vpop.permute.xlu0 %724 }
 0x16c   :  { %17837 = vst [vmem:[#allocation47_spill] sm:$0xff] %v17836_v1  ;;  %v1039_v0 = vpop.permute.xlu1 %1038  ;;  %9756 = vmatprep.subr.bf16.mxu1 %v11239_v22  ;;  %vm814_vm7 = vcmp.eq.s32.totalorder %v725_v60, %v11735_v8 }
 0x16d   :  { %11065 = vset.pattern.permute.xlu1 %v17785_v5  ;;  %vm1130_vm1 = vcmp.eq.s32.totalorder %v1039_v0, %v11735_v8  ;;  %vm1129_vm9 = vcmp.eq.s32.totalorder %v1039_v0, %v11662_v51 }
 0x16e   :  { %787 = vperm.xlu1 %11065, %v11440_v53  }
 0x16f   :  { %v9316_v44 = vpop.f32.mrb[0].mxu1  ;;  %9757 = vmatpush3.bf16.msra.mxu1 %v11240_v6  ;;  %v17838_v6 = vmov 0 }
 0x170   :  { %v9317_v9 = vpop.f32.mrb[1].mxu1  ;;  %v1042_v1 = vpop.permute.xlu1 %1041  ;;  %9758 = vmatprep.subr.bf16.mxu1 %v11243_v46 }
 0x171   :  { %v9318_v39 = vadd.f32 %v9317_v9, %v9316_v44  ;;  %vm1131_vm2 = vcmp.eq.s32.totalorder %v1042_v1, %v11662_v51  ;;  %vm1132_vm12 = vcmp.eq.s32.totalorder %v1042_v1, %v11735_v8  ;;  %v9319_v22 = vpop.f32.mrb[2].mxu1  ;;  %v17841_v1 = vmov 0 }
 0x172   :  { %v9320_v62 = vpop.f32.mrb[3].mxu1  ;;  %11067 = vset.pattern.permute.xlu1 %v17786_v2  ;;  %vm12675_vm0 = vmpackc.low %vm1132_vm12, %vm1130_vm1  ;;  %vm813_vm1 = vcmp.eq.s32.totalorder %v725_v60, %v11662_v51 }
 0x173   :  { %v17839_v6 = vsel %vm12675_vm0, 4294967295, %v17838_v6  ;;  %v9321_v46 = vadd.f32 %v9320_v62, %v9319_v22  ;;  %1107 = vperm.xlu1 %11067, %v11440_v53   ;;  %7885 = vmatprep.mubr.msk.bf16.mxu1 %vm12675_vm0, %v17790_v38  ;;  %vm12682_vm8 = vmpackc.low %vm1131_vm2, %vm1129_vm9  ;;  %v11245_v62 = vld [vmem:[%s17184_s1 + $0x70] sm:$0xff]  }
 0x174   :  { %17840 = vst [vmem:[#allocation48_spill] sm:$0xff] %v17839_v6  ;;  %v17842_v1 = vsel %vm12682_vm8, 4294967295, %v17841_v1  ;;  %7887 = vmatmul.mubr.msk.bf16.gmra.mrb[72].mxu1 %vm12682_vm8, %v17790_v38  ;;  %9648 = vmatprep.subr.bf16.mxu0 %v11245_v62  ;;  %v11247_v6 = vld [vmem:[%s17184_s1 + $0xf0] sm:$0xff]   ;;  %v17847_v62 = vmov 0  ;;  %vm17854_vm8 = vcmp.eq.s32.totalorder %v12655_v13, %v11662_v51 }
 0x175   :  { %17843 = vst [vmem:[#allocation49_spill] sm:$0xff] %v17842_v1  ;;  %v728_v0 = vpop.permute.xlu1 %727  ;;  %v9204_v44 = vpop.f32.mrb[0].mxu0  ;;  %9759 = vmatpush3.bf16.msra.mxu1 %v11244_v29  ;;  %v17844_v1 = vmov 0  ;;  %v11246_v29 = vld [vmem:[%s17184_s1 + $0x30] sm:$0xff]  }
 0x176   :  { %vm815_vm2 = vcmp.eq.s32.totalorder %v728_v0, %v11662_v51  ;;  %vm816_vm12 = vcmp.eq.s32.totalorder %v728_v0, %v11735_v8  ;;  %v9205_v53 = vpop.f32.mrb[1].mxu0  ;;  %v11441_v0 = vld [vmem:[%s17183_s0 + $0xe0] sm:$0xff]  ;;  %9760 = vmatprep.subr.bf16.mxu1 %v11247_v6  ;;  %9649 = vmatpush3.bf16.msra.mxu0 %v11246_v29  ;;  %v17851_v6 = vmov 0 }
 0x177   :  { %v9206_v9 = vadd.f32 %v9205_v53, %v9204_v44  ;;  %11068 = vset.pattern.permute.xlu1 %v17785_v5  ;;  %v9207_v22 = vpop.f32.mrb[2].mxu0  ;;  %vm12697_vm9 = vmpackc.low %vm816_vm12, %vm814_vm7  ;;  %v11248_v53 = vld [vmem:[%s17184_s1 + $0xb0] sm:$0xff]  }
 0x178   :  { %v17845_v1 = vsel %vm12697_vm9, 4294967295, %v17844_v1  ;;  %790 = vperm.xlu1 %11068, %v11441_v0   ;;  %v9208_v44 = vpop.f32.mrb[3].mxu0  ;;  %7825 = vmatprep.mubr.msk.bf16.mxu0 %vm12697_vm9, %v17790_v38  ;;  %vm12715_vm7 = vmpackc.low %vm815_vm2, %vm813_vm1 }
 0x179   :  { %17846 = vst [vmem:[#allocation50_spill] sm:$0xff] %v17845_v1  ;;  %v17848_v62 = vsel %vm12715_vm7, 4294967295, %v17847_v62  ;;  %v12724_v49 = vadd.f32 %v9318_v39, %v9206_v9  ;;  %v9209_v4 = vadd.f32 %v9208_v44, %v9207_v22  ;;  %7827 = vmatmul.mubr.msk.bf16.gmra.mrb[76].mxu0 %vm12715_vm7, %v17790_v38  ;;  %9761 = vmatpush3.bf16.msra.mxu1 %v11248_v53  ;;  %v734_v9 = vpop.permute.xlu0 %733 }
 0x17a   :  { %17849 = vst [vmem:[#allocation51_spill] sm:$0xff] %v17848_v62  ;;  %v9322_v60 = vpop.f32.mrb[4].mxu1  ;;  %v1048_v1 = vpop.permute.xlu1 %1047  ;;  %vm17850_vm7 = vcmp.eq.s32.totalorder %v12655_v13, %v11735_v8 }
 0x17b   :  { %v12731_v37 = vadd.f32 %v9321_v46, %v9209_v4  ;;  %vm1135_vm2 = vcmp.eq.s32.totalorder %v1048_v1, %v11662_v51  ;;  %vm1136_vm12 = vcmp.eq.s32.totalorder %v1048_v1, %v11735_v8  ;;  %v9323_v39 = vpop.f32.mrb[5].mxu1  ;;  %v17855_v46 = vmov 0 }
 0x17c   :  { %v9324_v22 = vadd.f32 %v9323_v39, %v9322_v60  ;;  %v9325_v44 = vpop.f32.mrb[6].mxu1  ;;  %11070 = vset.pattern.permute.xlu1 %v17786_v2  ;;  %vm12739_vm1 = vmpackc.low %vm1136_vm12, %vm17850_vm7  ;;  %vm820_vm7 = vcmp.eq.s32.totalorder %v734_v9, %v11735_v8  ;;  %vm819_vm12 = vcmp.eq.s32.totalorder %v734_v9, %v11662_v51  ;;  %v17861_v9 = vmov 0 }
 0x17d   :  { %v17852_v6 = vsel %vm12739_vm1, 4294967295, %v17851_v6  ;;  %v9326_v29 = vpop.f32.mrb[7].mxu1  ;;  %1110 = vperm.xlu1 %11070, %v11441_v0   ;;  %v9210_v4 = vpop.f32.mrb[4].mxu0  ;;  %7889 = vmatprep.mubr.msk.bf16.mxu1 %vm12739_vm1, %v17790_v38  ;;  %vm12749_vm9 = vmpackc.low %vm1135_vm2, %vm17854_vm8 }
 0x17e   :  { %17853 = vst [vmem:[#allocation52_spill] sm:$0xff] %v17852_v6  ;;  %v17856_v46 = vsel %vm12749_vm9, 4294967295, %v17855_v46  ;;  %v9327_v1 = vadd.f32 %v9326_v29, %v9325_v44  ;;  %v9211_v53 = vpop.f32.mrb[5].mxu0  ;;  %7891 = vmatmul.mubr.msk.bf16.gmra.mrb[76].mxu1 %vm12749_vm9, %v17790_v38  ;;  %v12760_v62 = vpop.permute.xlu0 %736 }
 0x17f   :  { %17857 = vst [vmem:[#allocation53_spill] sm:$0xff] %v17856_v46  ;;  %v9212_v0 = vadd.f32 %v9211_v53, %v9210_v4  ;;  %v731_v60 = vpop.permute.xlu1 %730  ;;  %v9213_v39 = vpop.f32.mrb[6].mxu0  ;;  %v17858_v46 = vmov 0  ;;  %v11249_v53 = vld [vmem:[%s17184_s1 + $0x78] sm:$0xff]   ;;  %vm822_vm0 = vcmp.eq.s32.totalorder %v12760_v62, %v11735_v8 }
 0x180   :  { %vm817_vm1 = vcmp.eq.s32.totalorder %v731_v60, %v11662_v51  ;;  %vm818_vm8 = vcmp.eq.s32.totalorder %v731_v60, %v11735_v8  ;;  %v9214_v13 = vpop.f32.mrb[7].mxu0  ;;  %9650 = vmatprep.subr.bf16.mxu0 %v11249_v53  ;;  %v17864_v53 = vmov 0 }
 0x181   :  { %v12762_v44 = vadd.f32 %v9324_v22, %v9212_v0  ;;  %v9215_v29 = vadd.f32 %v9214_v13, %v9213_v39  ;;  %1113 = vperm.xlu1 %11070, %v12107_v27   ;;  %vm12765_vm2 = vmpackc.low %vm820_vm7, %vm818_vm8  ;;  %v11250_v0 = vld [vmem:[%s17184_s1 + $0x38] sm:$0xff]  }
 0x182   :  { %v17859_v46 = vsel %vm12765_vm2, 4294967295, %v17858_v46  ;;  %7829 = vmatprep.mubr.msk.bf16.mxu0 %vm12765_vm2, %v17790_v38  ;;  %vm12772_vm9 = vmpackc.low %vm819_vm12, %vm817_vm1  ;;  %v12791_v39 = vpop.permute.xlu0 %745  ;;  %v11251_v13 = vld [vmem:[%s17184_s1 + $0xf8] sm:$0xff]   ;;  %9651 = vmatpush3.bf16.msra.mxu0 %v11250_v0 }
 0x183   :  { %17860 = vst [vmem:[#allocation54_spill] sm:$0xff] %v17859_v46  ;;  %v17862_v9 = vsel %vm12772_vm9, 4294967295, %v17861_v9  ;;  %v12776_v4 = vadd.f32 %v9327_v1, %v9215_v29  ;;  %7831 = vmatmul.mubr.msk.bf16.gmra.mrb[80].mxu0 %vm12772_vm9, %v17790_v38  ;;  %v11442_v1 = vld [vmem:[%s17183_s0 + $0xf8] sm:$0xff]  ;;  %9762 = vmatprep.subr.bf16.mxu1 %v11251_v13 }
 0x184   :  { %17863 = vst [vmem:[#allocation55_spill] sm:$0xff] %v17862_v9  ;;  %v1051_v22 = vpop.permute.xlu1 %1050  ;;  %v11252_v29 = vld [vmem:[%s17184_s1 + $0xb8] sm:$0xff]  }
 0x185   :  { %11071 = vset.pattern.permute.xlu1 %v17785_v5  ;;  %v9216_v27 = vpop.f32.mrb[8].mxu0  ;;  %vm1138_vm1 = vcmp.eq.s32.totalorder %v1051_v22, %v11735_v8  ;;  %9763 = vmatpush3.bf16.msra.mxu1 %v11252_v29  ;;  %vm1137_vm8 = vcmp.eq.s32.totalorder %v1051_v22, %v11662_v51  ;;  %v8260_v22 = vld [vmem:[%s17183_s0 + $0x100] sm:$0xff] }
 0x186   :  { %799 = vperm.xlu1 %11071, %v11442_v1   ;;  %v9217_v60 = vpop.f32.mrb[9].mxu0 }
 0x187   :  { %v9218_v9 = vadd.f32 %v9217_v60, %v9216_v27  ;;  %v9219_v46 = vpop.f32.mrb[10].mxu0  ;;  %v9328_v6 = vpop.f32.mrb[8].mxu1 }
 0x188   :  { %v1054_v48 = vpop.permute.xlu1 %1053  ;;  %v9220_v16 = vpop.f32.mrb[11].mxu0 }
 0x189   :  { %vm1139_vm7 = vcmp.eq.s32.totalorder %v1054_v48, %v11662_v51  ;;  %vm1140_vm12 = vcmp.eq.s32.totalorder %v1054_v48, %v11735_v8  ;;  %v9221_v26 = vadd.f32 %v9220_v16, %v9219_v46  ;;  %v9329_v59 = vpop.f32.mrb[9].mxu1  ;;  %v17867_v16 = vmov 0  ;;  %v1057_v60 = vpop.permute.xlu0 %1056 }
 0x18a   :  { %v9330_v10 = vadd.f32 %v9329_v59, %v9328_v6  ;;  %v9331_v27 = vpop.f32.mrb[10].mxu1  ;;  %11073 = vset.pattern.permute.xlu1 %v17786_v2  ;;  %vm12804_vm9 = vmpackc.low %vm1140_vm12, %vm1138_vm1  ;;  %vm821_vm1 = vcmp.eq.s32.totalorder %v12760_v62, %v11662_v51  ;;  %v11253_v62 = vld [vmem:[%s17184_s1 + $0x140] sm:$0xff]   ;;  %v17877_v2 = vmov 0 }
 0x18b   :  { %v17865_v53 = vsel %vm12804_vm9, 4294967295, %v17864_v53  ;;  %v9332_v0 = vpop.f32.mrb[11].mxu1  ;;  %1119 = vperm.xlu1 %11073, %v11442_v1   ;;  %7893 = vmatprep.mubr.msk.bf16.mxu1 %vm12804_vm9, %v17790_v38  ;;  %vm12811_vm2 = vmpackc.low %vm1139_vm7, %vm1137_vm8 }
 0x18c   :  { %17866 = vst [vmem:[#allocation56_spill] sm:$0xff] %v17865_v53  ;;  %v17868_v16 = vsel %vm12811_vm2, 4294967295, %v17867_v16  ;;  %v12815_v48 = vadd.f32 %v9330_v10, %v9218_v9  ;;  %v9333_v59 = vadd.f32 %v9332_v0, %v9331_v27  ;;  %7895 = vmatmul.mubr.msk.bf16.gmra.mrb[80].mxu1 %vm12811_vm2, %v17790_v38  ;;  %v8262_v10 = vld [vmem:[%s17183_s0 + $0x110] sm:$0xff]  ;;  %v17870_v27 = vmov 0  ;;  %9860 = vmatprep.subr.bf16.mxu0 %v11253_v62 }
 0x18d   :  { %17869 = vst [vmem:[#allocation57_spill] sm:$0xff] %v17868_v16  ;;  %v740_v6 = vpop.permute.xlu1 %739  ;;  %v9222_v46 = vpop.f32.mrb[12].mxu0  ;;  %4049 = vperm.xlu0 %11077, %v8262_v10   ;;  %v17873_v0 = vmov 0   ;;  %v17884_v62 = vmov 0 }
 0x18e   :  { %v12830_v9 = vadd.f32 %v9333_v59, %v9221_v26  ;;  %vm823_vm7 = vcmp.eq.s32.totalorder %v740_v6, %v11662_v51  ;;  %vm824_vm12 = vcmp.eq.s32.totalorder %v740_v6, %v11735_v8  ;;  %v9223_v1 = vpop.f32.mrb[13].mxu0  ;;  %v17874_v59 = vmov 0  ;;  %v8261_v6 = vld [vmem:[%s17183_s0 + $0x108] sm:$0xff] }
 0x18f   :  { %v9224_v13 = vadd.f32 %v9223_v1, %v9222_v46  ;;  %v9225_v29 = vpop.f32.mrb[14].mxu0  ;;  %vm12837_vm8 = vmpackc.low %vm824_vm12, %vm822_vm0  ;;  %11074 = vset.pattern.permute.xlu1 %v17873_v0  ;;  %vm1142_vm0 = vcmp.eq.s32.totalorder %v1057_v60, %v11735_v8 }
 0x190   :  { %v17871_v27 = vsel %vm12837_vm8, 4294967295, %v17870_v27  ;;  %v9226_v26 = vpop.f32.mrb[15].mxu0  ;;  %7833 = vmatprep.mubr.msk.bf16.mxu0 %vm12837_vm8, %v17790_v38  ;;  %vm12848_vm2 = vmpackc.low %vm823_vm7, %vm821_vm1  ;;  %3723 = vperm.xlu1 %11074, %v8260_v22   ;;  %vm1141_vm1 = vcmp.eq.s32.totalorder %v1057_v60, %v11662_v51 }
 0x191   :  { %17872 = vst [vmem:[#allocation58_spill] sm:$0xff] %v17871_v27  ;;  %v17875_v59 = vsel %vm12848_vm2, 4294967295, %v17874_v59  ;;  %v9227_v46 = vadd.f32 %v9226_v26, %v9225_v29  ;;  %v9334_v1 = vpop.f32.mrb[12].mxu1  ;;  %7835 = vmatmul.mubr.msk.bf16.gmra.mrb[84].mxu0 %vm12848_vm2, %v17790_v38  ;;  %11078 = vset.pattern.permute.xlu0 %v17873_v0  ;;  %v11255_v29 = vld [vmem:[%s17184_s1 + $0x1c0] sm:$0xff]  }
 0x192   :  { %17876 = vst [vmem:[#allocation59_spill] sm:$0xff] %v17875_v59  ;;  %v1060_v16 = vpop.permute.xlu1 %1059  ;;  %v9335_v27 = vpop.f32.mrb[13].mxu1  ;;  %3726 = vperm.xlu0 %11078, %v8261_v6   ;;  %9972 = vmatprep.subr.bf16.mxu1 %v11255_v29 }
 0x193   :  { %vm1143_vm7 = vcmp.eq.s32.totalorder %v1060_v16, %v11662_v51  ;;  %vm1144_vm12 = vcmp.eq.s32.totalorder %v1060_v16, %v11735_v8  ;;  %v9336_v26 = vadd.f32 %v9335_v27, %v9334_v1  ;;  %v9337_v59 = vpop.f32.mrb[14].mxu1  ;;  %v17881_v16 = vmov 0 }
 0x194   :  { %v9338_v53 = vpop.f32.mrb[15].mxu1  ;;  %vm12869_vm2 = vmpackc.low %vm1144_vm12, %vm1142_vm0  ;;  %11075 = vset.pattern.permute.xlu1 %v17880_v56  ;;  %vm828_vm0 = vcmp.eq.s32.totalorder %v12791_v39, %v11735_v8  ;;  %vm827_vm12 = vcmp.eq.s32.totalorder %v12791_v39, %v11662_v51  ;;  %v1069_v39 = vpop.permute.xlu0 %1068 }
 0x195   :  { %v17878_v2 = vsel %vm12869_vm2, 4294967295, %v17877_v2  ;;  %v12874_v5 = vadd.f32 %v9336_v26, %v9224_v13  ;;  %v9339_v63 = vadd.f32 %v9338_v53, %v9337_v59  ;;  %7897 = vmatprep.mubr.msk.bf16.mxu1 %vm12869_vm2, %v17790_v38  ;;  %vm12881_vm8 = vmpackc.low %vm1143_vm7, %vm1141_vm1  ;;  %4043 = vperm.xlu1 %11075, %v8260_v22   ;;  %vm1150_vm9 = vcmp.eq.s32.totalorder %v1069_v39, %v11735_v8 }
 0x196   :  { %17879 = vst [vmem:[#allocation60_spill] sm:$0xff] %v17878_v2  ;;  %v17882_v16 = vsel %vm12881_vm8, 4294967295, %v17881_v16  ;;  %v9228_v27 = vpop.f32.mrb[16].mxu0  ;;  %7899 = vmatmul.mubr.msk.bf16.gmra.mrb[84].mxu1 %vm12881_vm8, %v17790_v38  ;;  %3729 = vperm.xlu0 %11078, %v8262_v10   ;;  %v8263_v10 = vld [vmem:[%s17183_s0 + $0x118] sm:$0xff] }
 0x197   :  { %17883 = vst [vmem:[#allocation61_spill] sm:$0xff] %v17882_v16  ;;  %v12892_v53 = vadd.f32 %v9339_v63, %v9227_v46  ;;  %v743_v60 = vpop.permute.xlu1 %742  ;;  %v9229_v13 = vpop.f32.mrb[17].mxu0  ;;  %v17887_v63 = vmov 0 }
 0x198   :  { %vm825_vm1 = vcmp.eq.s32.totalorder %v743_v60, %v11662_v51  ;;  %vm826_vm7 = vcmp.eq.s32.totalorder %v743_v60, %v11735_v8  ;;  %v9230_v22 = vadd.f32 %v9229_v13, %v9228_v27  ;;  %v9231_v59 = vpop.f32.mrb[18].mxu0 }
 0x199   :  { %v9232_v1 = vpop.f32.mrb[19].mxu0  ;;  %vm12896_vm2 = vmpackc.low %vm828_vm0, %vm826_vm7  ;;  %4046 = vperm.xlu1 %11075, %v8261_v6  }
 0x19a   :  { %v17885_v62 = vsel %vm12896_vm2, 4294967295, %v17884_v62  ;;  %v9233_v29 = vadd.f32 %v9232_v1, %v9231_v59  ;;  %7837 = vmatprep.mubr.msk.bf16.mxu0 %vm12896_vm2, %v17790_v38  ;;  %vm12903_vm8 = vmpackc.low %vm827_vm12, %vm825_vm1  ;;  %v749_v59 = vpop.permute.xlu0 %748 }
 0x19b   :  { %17886 = vst [vmem:[#allocation62_spill] sm:$0xff] %v17885_v62  ;;  %v17888_v63 = vsel %vm12903_vm8, 4294967295, %v17887_v63  ;;  %7839 = vmatmul.mubr.msk.bf16.gmra.mrb[88].mxu0 %vm12903_vm8, %v17790_v38 }
 0x19c   :  { %17889 = vst [vmem:[#allocation63_spill] sm:$0xff] %v17888_v63  ;;  %v1063_v46 = vpop.permute.xlu1 %1062  ;;  %v17890_v63 = vmov 0 }
 0x19d   :  { %11076 = vset.pattern.permute.xlu1 %v17873_v0  ;;  %vm1146_vm0 = vcmp.eq.s32.totalorder %v1063_v46, %v11735_v8  ;;  %vm1145_vm7 = vcmp.eq.s32.totalorder %v1063_v46, %v11662_v51 }
 0x19e   :  { %3732 = vperm.xlu1 %11076, %v8263_v10  }
 0x19f   :  { %v9340_v6 = vpop.f32.mrb[16].mxu1 }
 0x1a0   :  { %v1066_v26 = vpop.permute.xlu1 %1065  ;;  %v9341_v27 = vpop.f32.mrb[17].mxu1 }
 0x1a1   :  { %vm1147_vm12 = vcmp.eq.s32.totalorder %v1066_v26, %v11662_v51  ;;  %vm1148_vm1 = vcmp.eq.s32.totalorder %v1066_v26, %v11735_v8  ;;  %v9342_v60 = vadd.f32 %v9341_v27, %v9340_v6  ;;  %v9343_v13 = vpop.f32.mrb[18].mxu1  ;;  %v17894_v6 = vmov 0 }
 0x1a2   :  { %v9344_v1 = vpop.f32.mrb[19].mxu1  ;;  %vm12918_vm8 = vmpackc.low %vm1148_vm1, %vm1146_vm0  ;;  %11079 = vset.pattern.permute.xlu1 %v17880_v56  ;;  %vm830_vm0 = vcmp.eq.s32.totalorder %v749_v59, %v11735_v8  ;;  %vm829_vm1 = vcmp.eq.s32.totalorder %v749_v59, %v11662_v51 }
 0x1a3   :  { %v17891_v63 = vsel %vm12918_vm8, 4294967295, %v17890_v63  ;;  %v12923_v16 = vadd.f32 %v9342_v60, %v9230_v22  ;;  %v9345_v62 = vadd.f32 %v9344_v1, %v9343_v13  ;;  %7901 = vmatprep.mubr.msk.bf16.mxu1 %vm12918_vm8, %v17790_v38  ;;  %vm12928_vm2 = vmpackc.low %vm1147_vm12, %vm1145_vm7  ;;  %4052 = vperm.xlu1 %11079, %v8263_v10   ;;  %v8264_v60 = vld [vmem:[%s17183_s0 + $0x120] sm:$0xff] }
 0x1a4   :  { %17892 = vst [vmem:[#allocation64_spill] sm:$0xff] %v17891_v63  ;;  %v17895_v6 = vsel %vm12928_vm2, 4294967295, %v17894_v6  ;;  %v9234_v46 = vpop.f32.mrb[20].mxu0  ;;  %7903 = vmatmul.mubr.msk.bf16.gmra.mrb[88].mxu1 %vm12928_vm2, %v17790_v38 }
 0x1a5   :  { %17893 = vst [vmem:[#allocation65_spill] sm:$0xff] %v12923_v16  ;;  %17896 = vst [vmem:[#allocation66_spill] sm:$0xff] %v17895_v6  ;;  %v12936_v26 = vadd.f32 %v9345_v62, %v9233_v29  ;;  %v752_v22 = vpop.permute.xlu1 %751  ;;  %v9235_v27 = vpop.f32.mrb[21].mxu0  ;;  %v17898_v6 = vmov 0  ;;  %v17901_v29 = vmov 0 }
 0x1a6   :  { %vm831_vm12 = vcmp.eq.s32.totalorder %v752_v22, %v11662_v51  ;;  %vm832_vm7 = vcmp.eq.s32.totalorder %v752_v22, %v11735_v8  ;;  %v9236_v10 = vadd.f32 %v9235_v27, %v9234_v46  ;;  %v9237_v13 = vpop.f32.mrb[22].mxu0  ;;  %v8265_v27 = vld [vmem:[%s17183_s0 + $0x128] sm:$0xff] }
 0x1a7   :  { %17897 = vst [vmem:[#allocation67_spill] sm:$0xff] %v12936_v26  ;;  %v9238_v1 = vpop.f32.mrb[23].mxu0  ;;  %vm12944_vm2 = vmpackc.low %vm832_vm7, %vm830_vm0  ;;  %11080 = vset.pattern.permute.xlu1 %v17873_v0  ;;  %vm1149_vm0 = vcmp.eq.s32.totalorder %v1069_v39, %v11662_v51  ;;  %3738 = vperm.xlu0 %11078, %v8265_v27  }
 0x1a8   :  { %v17899_v6 = vsel %vm12944_vm2, 4294967295, %v17898_v6  ;;  %v9239_v62 = vadd.f32 %v9238_v1, %v9237_v13  ;;  %7841 = vmatprep.mubr.msk.bf16.mxu0 %vm12944_vm2, %v17790_v38  ;;  %vm12952_vm8 = vmpackc.low %vm831_vm12, %vm829_vm1  ;;  %3735 = vperm.xlu1 %11080, %v8264_v60  }
 0x1a9   :  { %17900 = vst [vmem:[#allocation68_spill] sm:$0xff] %v17899_v6  ;;  %v17902_v29 = vsel %vm12952_vm8, 4294967295, %v17901_v29  ;;  %v9346_v59 = vpop.f32.mrb[20].mxu1  ;;  %7843 = vmatmul.mubr.msk.bf16.gmra.mrb[92].mxu0 %vm12952_vm8, %v17790_v38  ;;  %v758_v6 = vpop.permute.xlu0 %757 }
 0x1aa   :  { %17903 = vst [vmem:[#allocation69_spill] sm:$0xff] %v17902_v29  ;;  %v1072_v46 = vpop.permute.xlu1 %1071  ;;  %v9347_v22 = vpop.f32.mrb[21].mxu1  ;;  %v17904_v29 = vmov 0 }
 0x1ab   :  { %vm1151_vm1 = vcmp.eq.s32.totalorder %v1072_v46, %v11662_v51  ;;  %vm1152_vm12 = vcmp.eq.s32.totalorder %v1072_v46, %v11735_v8  ;;  %v9348_v13 = vadd.f32 %v9347_v22, %v9346_v59  ;;  %v9349_v1 = vpop.f32.mrb[22].mxu1  ;;  %v17908_v59 = vmov 0 }
 0x1ac   :  { %v9350_v63 = vpop.f32.mrb[23].mxu1  ;;  %vm12966_vm7 = vmpackc.low %vm1152_vm12, %vm1150_vm9  ;;  %11081 = vset.pattern.permute.xlu1 %v17880_v56  ;;  %vm836_vm9 = vcmp.eq.s32.totalorder %v758_v6, %v11735_v8  ;;  %vm835_vm12 = vcmp.eq.s32.totalorder %v758_v6, %v11662_v51  ;;  %v17915_v6 = vmov 0 }
 0x1ad   :  { %v17905_v29 = vsel %vm12966_vm7, 4294967295, %v17904_v29  ;;  %v12971_v2 = vadd.f32 %v9348_v13, %v9236_v10  ;;  %v9351_v26 = vadd.f32 %v9350_v63, %v9349_v1  ;;  %7905 = vmatprep.mubr.msk.bf16.mxu1 %vm12966_vm7, %v17790_v38  ;;  %vm12978_vm8 = vmpackc.low %vm1151_vm1, %vm1149_vm0  ;;  %4055 = vperm.xlu1 %11081, %v8264_v60   ;;  %v17912_v1 = vmov 0 }
 0x1ae   :  { %17906 = vst [vmem:[#allocation70_spill] sm:$0xff] %v17905_v29  ;;  %v17909_v59 = vsel %vm12978_vm8, 4294967295, %v17908_v59  ;;  %v9240_v46 = vpop.f32.mrb[24].mxu0  ;;  %7907 = vmatmul.mubr.msk.bf16.gmra.mrb[92].mxu1 %vm12978_vm8, %v17790_v38 }
 0x1af   :  { %17907 = vst [vmem:[#allocation71_spill] sm:$0xff] %v12971_v2  ;;  %17910 = vst [vmem:[#allocation72_spill] sm:$0xff] %v17909_v59  ;;  %v12986_v10 = vadd.f32 %v9351_v26, %v9239_v62  ;;  %v755_v63 = vpop.permute.xlu1 %754  ;;  %v9241_v22 = vpop.f32.mrb[25].mxu0  ;;  %v8267_v26 = vld [vmem:[%s17183_s0 + $0x138] sm:$0xff] }
 0x1b0   :  { %vm833_vm7 = vcmp.eq.s32.totalorder %v755_v63, %v11662_v51  ;;  %vm834_vm0 = vcmp.eq.s32.totalorder %v755_v63, %v11735_v8  ;;  %v9242_v39 = vadd.f32 %v9241_v22, %v9240_v46  ;;  %v9243_v13 = vpop.f32.mrb[26].mxu0  ;;  %v761_v59 = vpop.permute.xlu0 %760 }
 0x1b1   :  { %17911 = vst [vmem:[#allocation73_spill] sm:$0xff] %v12986_v10  ;;  %v9244_v60 = vpop.f32.mrb[27].mxu0  ;;  %vm12991_vm1 = vmpackc.low %vm836_vm9, %vm834_vm0  ;;  %4058 = vperm.xlu1 %11081, %v8265_v27   ;;  %v8266_v27 = vld [vmem:[%s17183_s0 + $0x130] sm:$0xff]  ;;  %v17918_v10 = vmov 0 }
 0x1b2   :  { %v17913_v1 = vsel %vm12991_vm1, 4294967295, %v17912_v1  ;;  %v9245_v29 = vadd.f32 %v9244_v60, %v9243_v13  ;;  %7845 = vmatprep.mubr.msk.bf16.mxu0 %vm12991_vm1, %v17790_v38  ;;  %vm12998_vm8 = vmpackc.low %vm835_vm12, %vm833_vm7  ;;  %3741 = vperm.xlu0 %11078, %v8266_v27  }
 0x1b3   :  { %17914 = vst [vmem:[#allocation74_spill] sm:$0xff] %v17913_v1  ;;  %v17916_v6 = vsel %vm12998_vm8, 4294967295, %v17915_v6  ;;  %7847 = vmatmul.mubr.msk.bf16.gmra.mrb[96].mxu0 %vm12998_vm8, %v17790_v38 }
 0x1b4   :  { %17917 = vst [vmem:[#allocation75_spill] sm:$0xff] %v17916_v6  ;;  %v1075_v62 = vpop.permute.xlu1 %1074  ;;  %v13012_v63 = vpop.permute.xlu0 %769 }
 0x1b5   :  { %11082 = vset.pattern.permute.xlu1 %v17873_v0  ;;  %vm1154_vm7 = vcmp.eq.s32.totalorder %v1075_v62, %v11735_v8  ;;  %vm1153_vm0 = vcmp.eq.s32.totalorder %v1075_v62, %v11662_v51 }
 0x1b6   :  { %3744 = vperm.xlu1 %11082, %v8267_v26   ;;  %11083 = vset.pattern.permute.xlu0 %v17880_v56 }
 0x1b7   :  { %v9352_v46 = vpop.f32.mrb[24].mxu1  ;;  %4061 = vperm.xlu0 %11083, %v8266_v27  }
 0x1b8   :  { %v1078_v22 = vpop.permute.xlu1 %1077  ;;  %v9353_v13 = vpop.f32.mrb[25].mxu1 }
 0x1b9   :  { %vm1155_vm9 = vcmp.eq.s32.totalorder %v1078_v22, %v11662_v51  ;;  %vm1156_vm12 = vcmp.eq.s32.totalorder %v1078_v22, %v11735_v8  ;;  %v9354_v60 = vadd.f32 %v9353_v13, %v9352_v46  ;;  %v9355_v6 = vpop.f32.mrb[26].mxu1  ;;  %v17922_v46 = vmov 0 }
 0x1ba   :  { %v9356_v1 = vpop.f32.mrb[27].mxu1  ;;  %vm13019_vm8 = vmpackc.low %vm1156_vm12, %vm1154_vm7  ;;  %11084 = vset.pattern.permute.xlu1 %v17880_v56  ;;  %vm838_vm7 = vcmp.eq.s32.totalorder %v761_v59, %v11735_v8 }
 0x1bb   :  { %v17919_v10 = vsel %vm13019_vm8, 4294967295, %v17918_v10  ;;  %v13024_v2 = vadd.f32 %v9354_v60, %v9242_v39  ;;  %v9357_v16 = vadd.f32 %v9356_v1, %v9355_v6  ;;  %7909 = vmatprep.mubr.msk.bf16.mxu1 %vm13019_vm8, %v17790_v38  ;;  %vm13029_vm1 = vmpackc.low %vm1155_vm9, %vm1153_vm0  ;;  %4064 = vperm.xlu1 %11084, %v8267_v26   ;;  %v8268_v6 = vld [vmem:[%s17183_s0 + $0x140] sm:$0xff]  ;;  %v8270_v26 = vld [vmem:[%s17183_s0 + $0x150] sm:$0xff]  ;;  %v17926_v60 = vmov 0 }
 0x1bc   :  { %17920 = vst [vmem:[#allocation76_spill] sm:$0xff] %v17919_v10  ;;  %v17923_v46 = vsel %vm13029_vm1, 4294967295, %v17922_v46  ;;  %v9246_v62 = vpop.f32.mrb[28].mxu0  ;;  %7911 = vmatmul.mubr.msk.bf16.gmra.mrb[96].mxu1 %vm13029_vm1, %v17790_v38  ;;  %4073 = vperm.xlu0 %11083, %v8270_v26   ;;  %vm17929_vm1 = vcmp.eq.s32.totalorder %v761_v59, %v11662_v51  ;;  %v8269_v59 = vld [vmem:[%s17183_s0 + $0x148] sm:$0xff]  ;;  %v17933_v10 = vmov 0 }
 0x1bd   :  { %17921 = vst [vmem:[#allocation77_spill] sm:$0xff] %v13024_v2  ;;  %17924 = vst [vmem:[#allocation78_spill] sm:$0xff] %v17923_v46  ;;  %v13037_v27 = vadd.f32 %v9357_v16, %v9245_v29  ;;  %v764_v39 = vpop.permute.xlu1 %763  ;;  %v9247_v1 = vpop.f32.mrb[29].mxu0  ;;  %v17937_v2 = vmov 0 }
 0x1be   :  { %vm839_vm9 = vcmp.eq.s32.totalorder %v764_v39, %v11662_v51  ;;  %vm840_vm0 = vcmp.eq.s32.totalorder %v764_v39, %v11735_v8  ;;  %v9248_v22 = vadd.f32 %v9247_v1, %v9246_v62  ;;  %v9249_v13 = vpop.f32.mrb[30].mxu0  ;;  %v1081_v16 = vpop.permute.xlu0 %1080  ;;  %v17930_v62 = vmov 0 }
 0x1bf   :  { %17925 = vst [vmem:[#allocation79_spill] sm:$0xff] %v13037_v27  ;;  %v9250_v29 = vpop.f32.mrb[31].mxu0  ;;  %vm13050_vm12 = vmpackc.low %vm840_vm0, %vm838_vm7  ;;  %11085 = vset.pattern.permute.xlu1 %v17873_v0  ;;  %vm1158_vm7 = vcmp.eq.s32.totalorder %v1081_v16, %v11735_v8  ;;  %vm1157_vm0 = vcmp.eq.s32.totalorder %v1081_v16, %v11662_v51 }
 0x1c0   :  { %v17927_v60 = vsel %vm13050_vm12, 4294967295, %v17926_v60  ;;  %v9251_v46 = vadd.f32 %v9250_v29, %v9249_v13  ;;  %7849 = vmatprep.mubr.msk.bf16.mxu0 %vm13050_vm12, %v17790_v38  ;;  %vm13060_vm8 = vmpackc.low %vm839_vm9, %vm17929_vm1  ;;  %3747 = vperm.xlu1 %11085, %v8268_v6  }
 0x1c1   :  { %17928 = vst [vmem:[#allocation80_spill] sm:$0xff] %v17927_v60  ;;  %v17931_v62 = vsel %vm13060_vm8, 4294967295, %v17930_v62  ;;  %v9358_v39 = vpop.f32.mrb[28].mxu1  ;;  %7851 = vmatmul.mubr.msk.bf16.gmra.mrb[100].mxu0 %vm13060_vm8, %v17790_v38  ;;  %11088 = vset.pattern.permute.xlu0 %v17873_v0 }
 0x1c2   :  { %17932 = vst [vmem:[#allocation81_spill] sm:$0xff] %v17931_v62  ;;  %v1084_v1 = vpop.permute.xlu1 %1083  ;;  %v9359_v13 = vpop.f32.mrb[29].mxu1  ;;  %3750 = vperm.xlu0 %11088, %v8269_v59  }
 0x1c3   :  { %vm1159_vm1 = vcmp.eq.s32.totalorder %v1084_v1, %v11662_v51  ;;  %vm1160_vm9 = vcmp.eq.s32.totalorder %v1084_v1, %v11735_v8  ;;  %v9360_v29 = vadd.f32 %v9359_v13, %v9358_v39  ;;  %v9361_v60 = vpop.f32.mrb[30].mxu1 }
 0x1c4   :  { %v9362_v62 = vpop.f32.mrb[31].mxu1  ;;  %vm13075_vm8 = vmpackc.low %vm1160_vm9, %vm1158_vm7  ;;  %11086 = vset.pattern.permute.xlu1 %v17880_v56  ;;  %vm844_vm7 = vcmp.eq.s32.totalorder %v13012_v63, %v11735_v8  ;;  %vm843_vm9 = vcmp.eq.s32.totalorder %v13012_v63, %v11662_v51  ;;  %v17944_v63 = vmov 0 }
 0x1c5   :  { %v17934_v10 = vsel %vm13075_vm8, 4294967295, %v17933_v10  ;;  %v13080_v16 = vadd.f32 %v9360_v29, %v9248_v22  ;;  %v9363_v27 = vadd.f32 %v9362_v62, %v9361_v60  ;;  %7913 = vmatprep.mubr.msk.bf16.mxu1 %vm13075_vm8, %v17790_v38  ;;  %vm13085_vm12 = vmpackc.low %vm1159_vm1, %vm1157_vm0  ;;  %4067 = vperm.xlu1 %11086, %v8268_v6   ;;  %v17941_v29 = vmov 0 }
 0x1c6   :  { %17935 = vst [vmem:[#allocation82_spill] sm:$0xff] %v17934_v10  ;;  %v17938_v2 = vsel %vm13085_vm12, 4294967295, %v17937_v2  ;;  %v9252_v39 = vpop.f32.mrb[32].mxu0  ;;  %7915 = vmatmul.mubr.msk.bf16.gmra.mrb[100].mxu1 %vm13085_vm12, %v17790_v38  ;;  %3753 = vperm.xlu0 %11088, %v8270_v26  }
 0x1c7   :  { %17936 = vst [vmem:[#allocation83_spill] sm:$0xff] %v13080_v16  ;;  %17939 = vst [vmem:[#allocation84_spill] sm:$0xff] %v17938_v2  ;;  %v13096_v22 = vadd.f32 %v9363_v27, %v9251_v46  ;;  %v767_v60 = vpop.permute.xlu1 %766  ;;  %v9253_v62 = vpop.f32.mrb[33].mxu0  ;;  %v8271_v27 = vld [vmem:[%s17183_s0 + $0x158] sm:$0xff] }
 0x1c8   :  { %vm841_vm0 = vcmp.eq.s32.totalorder %v767_v60, %v11662_v51  ;;  %vm842_vm1 = vcmp.eq.s32.totalorder %v767_v60, %v11735_v8  ;;  %v9254_v6 = vadd.f32 %v9253_v62, %v9252_v39  ;;  %v9255_v1 = vpop.f32.mrb[34].mxu0  ;;  %v1093_v46 = vpop.permute.xlu0 %1092 }
 0x1c9   :  { %17940 = vst [vmem:[#allocation85_spill] sm:$0xff] %v13096_v22  ;;  %v9256_v13 = vpop.f32.mrb[35].mxu0  ;;  %vm13100_vm8 = vmpackc.low %vm844_vm7, %vm842_vm1  ;;  %4070 = vperm.xlu1 %11086, %v8269_v59   ;;  %vm1166_vm2 = vcmp.eq.s32.totalorder %v1093_v46, %v11735_v8 }
 0x1ca   :  { %v17942_v29 = vsel %vm13100_vm8, 4294967295, %v17941_v29  ;;  %v9257_v2 = vadd.f32 %v9256_v13, %v9255_v1  ;;  %7853 = vmatprep.mubr.msk.bf16.mxu0 %vm13100_vm8, %v17790_v38  ;;  %vm13107_vm12 = vmpackc.low %vm843_vm9, %vm841_vm0 }
 0x1cb   :  { %17943 = vst [vmem:[#allocation86_spill] sm:$0xff] %v17942_v29  ;;  %v17945_v63 = vsel %vm13107_vm12, 4294967295, %v17944_v63  ;;  %7855 = vmatmul.mubr.msk.bf16.gmra.mrb[104].mxu0 %vm13107_vm12, %v17790_v38  ;;  %v17947_v29 = vmov 0 }
 0x1cc   :  { %17946 = vst [vmem:[#allocation87_spill] sm:$0xff] %v17945_v63  ;;  %v1087_v26 = vpop.permute.xlu1 %1086  ;;  %v773_v13 = vpop.permute.xlu0 %772 }
 0x1cd   :  { %11087 = vset.pattern.permute.xlu1 %v17873_v0  ;;  %vm1162_vm7 = vcmp.eq.s32.totalorder %v1087_v26, %v11735_v8  ;;  %vm1161_vm1 = vcmp.eq.s32.totalorder %v1087_v26, %v11662_v51 }
 0x1ce   :  { %3756 = vperm.xlu1 %11087, %v8271_v27  }
 0x1cf   :  { %v9364_v59 = vpop.f32.mrb[32].mxu1 }
 0x1d0   :  { %v1090_v39 = vpop.permute.xlu1 %1089  ;;  %v9365_v60 = vpop.f32.mrb[33].mxu1 }
 0x1d1   :  { %vm1163_vm9 = vcmp.eq.s32.totalorder %v1090_v39, %v11662_v51  ;;  %vm1164_vm0 = vcmp.eq.s32.totalorder %v1090_v39, %v11735_v8  ;;  %v9366_v62 = vadd.f32 %v9365_v60, %v9364_v59  ;;  %v9367_v1 = vpop.f32.mrb[34].mxu1  ;;  %v17951_v59 = vmov 0  ;;  %v8272_v60 = vld [vmem:[%s17183_s0 + $0x160] sm:$0xff] }
 0x1d2   :  { %v9368_v63 = vpop.f32.mrb[35].mxu1  ;;  %vm13122_vm12 = vmpackc.low %vm1164_vm0, %vm1162_vm7  ;;  %11089 = vset.pattern.permute.xlu1 %v17880_v56  ;;  %vm846_vm7 = vcmp.eq.s32.totalorder %v773_v13, %v11735_v8  ;;  %vm845_vm0 = vcmp.eq.s32.totalorder %v773_v13, %v11662_v51 }
 0x1d3   :  { %v17948_v29 = vsel %vm13122_vm12, 4294967295, %v17947_v29  ;;  %v13127_v10 = vadd.f32 %v9366_v62, %v9254_v6  ;;  %v9369_v22 = vadd.f32 %v9368_v63, %v9367_v1  ;;  %7917 = vmatprep.mubr.msk.bf16.mxu1 %vm13122_vm12, %v17790_v38  ;;  %vm13132_vm8 = vmpackc.low %vm1163_vm9, %vm1161_vm1  ;;  %4076 = vperm.xlu1 %11089, %v8271_v27  }
 0x1d4   :  { %17949 = vst [vmem:[#allocation88_spill] sm:$0xff] %v17948_v29  ;;  %v17952_v59 = vsel %vm13132_vm8, 4294967295, %v17951_v59  ;;  %v9258_v26 = vpop.f32.mrb[36].mxu0  ;;  %7919 = vmatmul.mubr.msk.bf16.gmra.mrb[104].mxu1 %vm13132_vm8, %v17790_v38 }
 0x1d5   :  { %17950 = vst [vmem:[#allocation89_spill] sm:$0xff] %v13127_v10  ;;  %17953 = vst [vmem:[#allocation90_spill] sm:$0xff] %v17952_v59  ;;  %v13140_v39 = vadd.f32 %v9369_v22, %v9257_v2  ;;  %v776_v6 = vpop.permute.xlu1 %775  ;;  %v9259_v63 = vpop.f32.mrb[37].mxu0  ;;  %v17955_v59 = vmov 0  ;;  %v17958_v22 = vmov 0 }
 0x1d6   :  { %vm847_vm9 = vcmp.eq.s32.totalorder %v776_v6, %v11662_v51  ;;  %vm848_vm1 = vcmp.eq.s32.totalorder %v776_v6, %v11735_v8  ;;  %v9260_v27 = vadd.f32 %v9259_v63, %v9258_v26  ;;  %v9261_v62 = vpop.f32.mrb[38].mxu0  ;;  %v8273_v63 = vld [vmem:[%s17183_s0 + $0x168] sm:$0xff] }
 0x1d7   :  { %17954 = vst [vmem:[#allocation91_spill] sm:$0xff] %v13140_v39  ;;  %v9262_v1 = vpop.f32.mrb[39].mxu0  ;;  %vm13148_vm8 = vmpackc.low %vm848_vm1, %vm846_vm7  ;;  %11090 = vset.pattern.permute.xlu1 %v17873_v0  ;;  %vm1165_vm7 = vcmp.eq.s32.totalorder %v1093_v46, %v11662_v51  ;;  %3762 = vperm.xlu0 %11088, %v8273_v63  }
 0x1d8   :  { %v17956_v59 = vsel %vm13148_vm8, 4294967295, %v17955_v59  ;;  %v9263_v2 = vadd.f32 %v9262_v1, %v9261_v62  ;;  %7857 = vmatprep.mubr.msk.bf16.mxu0 %vm13148_vm8, %v17790_v38  ;;  %vm13156_vm12 = vmpackc.low %vm847_vm9, %vm845_vm0  ;;  %3759 = vperm.xlu1 %11090, %v8272_v60  }
 0x1d9   :  { %17957 = vst [vmem:[#allocation92_spill] sm:$0xff] %v17956_v59  ;;  %v17959_v22 = vsel %vm13156_vm12, 4294967295, %v17958_v22  ;;  %v9370_v13 = vpop.f32.mrb[36].mxu1  ;;  %7859 = vmatmul.mubr.msk.bf16.gmra.mrb[108].mxu0 %vm13156_vm12, %v17790_v38  ;;  %v782_v59 = vpop.permute.xlu0 %781 }
 0x1da   :  { %17960 = vst [vmem:[#allocation93_spill] sm:$0xff] %v17959_v22  ;;  %v1096_v26 = vpop.permute.xlu1 %1095  ;;  %v9371_v6 = vpop.f32.mrb[37].mxu1  ;;  %v17961_v22 = vmov 0 }
 0x1db   :  { %vm1167_vm0 = vcmp.eq.s32.totalorder %v1096_v26, %v11662_v51  ;;  %vm1168_vm9 = vcmp.eq.s32.totalorder %v1096_v26, %v11735_v8  ;;  %v9372_v62 = vadd.f32 %v9371_v6, %v9370_v13  ;;  %v9373_v1 = vpop.f32.mrb[38].mxu1  ;;  %v17965_v13 = vmov 0 }
 0x1dc   :  { %v9374_v29 = vpop.f32.mrb[39].mxu1  ;;  %vm13170_vm1 = vmpackc.low %vm1168_vm9, %vm1166_vm2  ;;  %11091 = vset.pattern.permute.xlu1 %v17880_v56  ;;  %vm852_vm2 = vcmp.eq.s32.totalorder %v782_v59, %v11735_v8  ;;  %vm851_vm9 = vcmp.eq.s32.totalorder %v782_v59, %v11662_v51  ;;  %v8275_v59 = vld [vmem:[%s17183_s0 + $0x178] sm:$0xff] }
 0x1dd   :  { %v17962_v22 = vsel %vm13170_vm1, 4294967295, %v17961_v22  ;;  %v13175_v39 = vadd.f32 %v9372_v62, %v9260_v27  ;;  %v9375_v10 = vadd.f32 %v9374_v29, %v9373_v1  ;;  %7921 = vmatprep.mubr.msk.bf16.mxu1 %vm13170_vm1, %v17790_v38  ;;  %vm13182_vm12 = vmpackc.low %vm1167_vm0, %vm1165_vm7  ;;  %4079 = vperm.xlu1 %11091, %v8272_v60   ;;  %v17969_v1 = vmov 0 }
 0x1de   :  { %17963 = vst [vmem:[#allocation94_spill] sm:$0xff] %v17962_v22  ;;  %v17966_v13 = vsel %vm13182_vm12, 4294967295, %v17965_v13  ;;  %v9264_v26 = vpop.f32.mrb[40].mxu0  ;;  %7923 = vmatmul.mubr.msk.bf16.gmra.mrb[108].mxu1 %vm13182_vm12, %v17790_v38  ;;  %v17975_v22 = vmov 0 }
 0x1df   :  { %17964 = vst [vmem:[#allocation95_spill] sm:$0xff] %v13175_v39  ;;  %17967 = vst [vmem:[#allocation96_spill] sm:$0xff] %v17966_v13  ;;  %v13190_v27 = vadd.f32 %v9375_v10, %v9263_v2  ;;  %v779_v29 = vpop.permute.xlu1 %778  ;;  %v9265_v6 = vpop.f32.mrb[41].mxu0  ;;  %v17972_v10 = vmov 0  ;;  %v8274_v2 = vld [vmem:[%s17183_s0 + $0x170] sm:$0xff] }
 0x1e0   :  { %vm849_vm1 = vcmp.eq.s32.totalorder %v779_v29, %v11662_v51  ;;  %vm850_vm7 = vcmp.eq.s32.totalorder %v779_v29, %v11735_v8  ;;  %v9266_v46 = vadd.f32 %v9265_v6, %v9264_v26  ;;  %v9267_v62 = vpop.f32.mrb[42].mxu0  ;;  %3765 = vperm.xlu0 %11088, %v8274_v2   ;;  %v785_v29 = vpop.permute.xlu0 %784 }
 0x1e1   :  { %17968 = vst [vmem:[#allocation97_spill] sm:$0xff] %v13190_v27  ;;  %v9268_v60 = vpop.f32.mrb[43].mxu0  ;;  %vm13195_vm0 = vmpackc.low %vm852_vm2, %vm850_vm7  ;;  %4082 = vperm.xlu1 %11091, %v8273_v63  }
 0x1e2   :  { %v17970_v1 = vsel %vm13195_vm0, 4294967295, %v17969_v1  ;;  %v9269_v13 = vadd.f32 %v9268_v60, %v9267_v62  ;;  %7861 = vmatprep.mubr.msk.bf16.mxu0 %vm13195_vm0, %v17790_v38  ;;  %vm13202_vm12 = vmpackc.low %vm851_vm9, %vm849_vm1 }
 0x1e3   :  { %17971 = vst [vmem:[#allocation98_spill] sm:$0xff] %v17970_v1  ;;  %v17973_v10 = vsel %vm13202_vm12, 4294967295, %v17972_v10  ;;  %7863 = vmatmul.mubr.msk.bf16.gmra.mrb[112].mxu0 %vm13202_vm12, %v17790_v38 }
 0x1e4   :  { %17974 = vst [vmem:[#allocation99_spill] sm:$0xff] %v17973_v10  ;;  %v1099_v63 = vpop.permute.xlu1 %1098  ;;  %11093 = vset.pattern.permute.xlu0 %v17880_v56 }
 0x1e5   :  { %11092 = vset.pattern.permute.xlu1 %v17873_v0  ;;  %vm1170_vm1 = vcmp.eq.s32.totalorder %v1099_v63, %v11735_v8  ;;  %4085 = vperm.xlu0 %11093, %v8274_v2   ;;  %vm1169_vm7 = vcmp.eq.s32.totalorder %v1099_v63, %v11662_v51  ;;  %v1105_v63 = vpop.permute.xlu0 %1104 }
 0x1e6   :  { %3768 = vperm.xlu1 %11092, %v8275_v59  }
 0x1e7   :  { %v9376_v26 = vpop.f32.mrb[40].mxu1 }
 0x1e8   :  { %v1102_v6 = vpop.permute.xlu1 %1101  ;;  %v9377_v62 = vpop.f32.mrb[41].mxu1 }
 0x1e9   :  { %vm1171_vm2 = vcmp.eq.s32.totalorder %v1102_v6, %v11662_v51  ;;  %vm1172_vm9 = vcmp.eq.s32.totalorder %v1102_v6, %v11735_v8  ;;  %v9378_v60 = vadd.f32 %v9377_v62, %v9376_v26  ;;  %v9379_v10 = vpop.f32.mrb[42].mxu1  ;;  %v17979_v26 = vmov 0 }
 0x1ea   :  { %v9380_v1 = vpop.f32.mrb[43].mxu1  ;;  %vm13221_vm12 = vmpackc.low %vm1172_vm9, %vm1170_vm1  ;;  %11094 = vset.pattern.permute.xlu1 %v17880_v56  ;;  %vm854_vm1 = vcmp.eq.s32.totalorder %v785_v29, %v11735_v8 }
 0x1eb   :  { %v17976_v22 = vsel %vm13221_vm12, 4294967295, %v17975_v22  ;;  %v13226_v27 = vadd.f32 %v9378_v60, %v9266_v46  ;;  %v9381_v39 = vadd.f32 %v9380_v1, %v9379_v10  ;;  %7925 = vmatprep.mubr.msk.bf16.mxu1 %vm13221_vm12, %v17790_v38  ;;  %vm13231_vm0 = vmpackc.low %vm1171_vm2, %vm1169_vm7  ;;  %4088 = vperm.xlu1 %11094, %v8275_v59   ;;  %v8276_v1 = vld [vmem:[%s17183_s0 + $0x180] sm:$0xff]  ;;  %v8278_v10 = vld [vmem:[%s17183_s0 + $0x190] sm:$0xff]  ;;  %vm853_vm7 = vcmp.eq.s32.totalorder %v785_v29, %v11662_v51 }
 0x1ec   :  { %17977 = vst [vmem:[#allocation100_spill] sm:$0xff] %v17976_v22  ;;  %v17980_v26 = vsel %vm13231_vm0, 4294967295, %v17979_v26  ;;  %v9270_v2 = vpop.f32.mrb[44].mxu0  ;;  %7927 = vmatmul.mubr.msk.bf16.gmra.mrb[112].mxu1 %vm13231_vm0, %v17790_v38  ;;  %4097 = vperm.xlu0 %11093, %v8278_v10   ;;  %v17986_v22 = vmov 0 }
 0x1ed   :  { %17978 = vst [vmem:[#allocation101_spill] sm:$0xff] %v13226_v27  ;;  %17981 = vst [vmem:[#allocation102_spill] sm:$0xff] %v17980_v26  ;;  %v13238_v6 = vadd.f32 %v9381_v39, %v9269_v13  ;;  %v788_v46 = vpop.permute.xlu1 %787  ;;  %v9271_v62 = vpop.f32.mrb[45].mxu0  ;;  %v17983_v13 = vmov 0 }
 0x1ee   :  { %vm855_vm2 = vcmp.eq.s32.totalorder %v788_v46, %v11662_v51  ;;  %vm856_vm9 = vcmp.eq.s32.totalorder %v788_v46, %v11735_v8  ;;  %v9272_v59 = vadd.f32 %v9271_v62, %v9270_v2  ;;  %v9273_v60 = vpop.f32.mrb[46].mxu0  ;;  %v13271_v62 = vld [vmem:[%s17183_s0 + $0x188] sm:$0xff] }
 0x1ef   :  { %17982 = vst [vmem:[#allocation103_spill] sm:$0xff] %v13238_v6  ;;  %v9274_v39 = vpop.f32.mrb[47].mxu0  ;;  %vm13250_vm0 = vmpackc.low %vm856_vm9, %vm854_vm1  ;;  %11095 = vset.pattern.permute.xlu1 %v17873_v0  ;;  %vm1174_vm1 = vcmp.eq.s32.totalorder %v1105_v63, %v11735_v8  ;;  %vm1173_vm9 = vcmp.eq.s32.totalorder %v1105_v63, %v11662_v51  ;;  %v17989_v6 = vmov 0 }
 0x1f0   :  { %v17984_v13 = vsel %vm13250_vm0, 4294967295, %v17983_v13  ;;  %v9275_v26 = vadd.f32 %v9274_v39, %v9273_v60  ;;  %7865 = vmatprep.mubr.msk.bf16.mxu0 %vm13250_vm0, %v17790_v38  ;;  %vm13258_vm12 = vmpackc.low %vm855_vm2, %vm853_vm7  ;;  %3771 = vperm.xlu1 %11095, %v8276_v1  }
 0x1f1   :  { %17985 = vst [vmem:[#allocation104_spill] sm:$0xff] %v17984_v13  ;;  %v17987_v22 = vsel %vm13258_vm12, 4294967295, %v17986_v22  ;;  %v9382_v2 = vpop.f32.mrb[44].mxu1  ;;  %7867 = vmatmul.mubr.msk.bf16.gmra.mrb[116].mxu0 %vm13258_vm12, %v17790_v38  ;;  %11098 = vset.pattern.permute.xlu0 %v17873_v0 }
 0x1f2   :  { %17988 = vst [vmem:[#allocation105_spill] sm:$0xff] %v17987_v22  ;;  %v1108_v29 = vpop.permute.xlu1 %1107  ;;  %v9383_v46 = vpop.f32.mrb[45].mxu1  ;;  %3774 = vperm.xlu0 %11098, %v13271_v62  }
 0x1f3   :  { %vm1175_vm2 = vcmp.eq.s32.totalorder %v1108_v29, %v11662_v51  ;;  %vm1176_vm7 = vcmp.eq.s32.totalorder %v1108_v29, %v11735_v8  ;;  %v9384_v60 = vadd.f32 %v9383_v46, %v9382_v2  ;;  %v9385_v39 = vpop.f32.mrb[46].mxu1  ;;  %v794_v22 = vpop.permute.xlu0 %793  ;;  %v17992_v2 = vmov 0 }
 0x1f4   :  { %v9386_v13 = vpop.f32.mrb[47].mxu1  ;;  %vm13276_vm12 = vmpackc.low %vm1176_vm7, %vm1174_vm1  ;;  %11096 = vset.pattern.permute.xlu1 %v17880_v56  ;;  %vm860_vm1 = vcmp.eq.s32.totalorder %v794_v22, %v11735_v8  ;;  %vm859_vm7 = vcmp.eq.s32.totalorder %v794_v22, %v11662_v51  ;;  %v17999_v22 = vmov 0 }
 0x1f5   :  { %v17990_v6 = vsel %vm13276_vm12, 4294967295, %v17989_v6  ;;  %v13281_v27 = vadd.f32 %v9384_v60, %v9272_v59  ;;  %v9387_v16 = vadd.f32 %v9386_v13, %v9385_v39  ;;  %7929 = vmatprep.mubr.msk.bf16.mxu1 %vm13276_vm12, %v17790_v38  ;;  %vm13288_vm0 = vmpackc.low %vm1175_vm2, %vm1173_vm9  ;;  %4091 = vperm.xlu1 %11096, %v8276_v1   ;;  %v17996_v39 = vmov 0 }
 0x1f6   :  { %17991 = vst [vmem:[#allocation106_spill] sm:$0xff] %v17990_v6  ;;  %v17993_v2 = vsel %vm13288_vm0, 4294967295, %v17992_v2  ;;  %v9276_v29 = vpop.f32.mrb[48].mxu0  ;;  %7931 = vmatmul.mubr.msk.bf16.gmra.mrb[116].mxu1 %vm13288_vm0, %v17790_v38  ;;  %3777 = vperm.xlu0 %11098, %v8278_v10  }
 0x1f7   :  { %17994 = vst [vmem:[#allocation107_spill] sm:$0xff] %v17993_v2  ;;  %v13296_v59 = vadd.f32 %v9387_v16, %v9275_v26  ;;  %v791_v13 = vpop.permute.xlu1 %790  ;;  %v9277_v46 = vpop.f32.mrb[49].mxu0  ;;  %v8279_v26 = vld [vmem:[%s17183_s0 + $0x198] sm:$0xff] }
 0x1f8   :  { %vm857_vm9 = vcmp.eq.s32.totalorder %v791_v13, %v11662_v51  ;;  %vm858_vm2 = vcmp.eq.s32.totalorder %v791_v13, %v11735_v8  ;;  %v9278_v63 = vadd.f32 %v9277_v46, %v9276_v29  ;;  %v9279_v1 = vpop.f32.mrb[50].mxu0 }
 0x1f9   :  { %17995 = vst [vmem:[#allocation108_spill] sm:$0xff] %v13296_v59  ;;  %v9280_v60 = vpop.f32.mrb[51].mxu0  ;;  %vm13301_vm12 = vmpackc.low %vm860_vm1, %vm858_vm2  ;;  %4094 = vperm.xlu1 %11096, %v13271_v62  }
 0x1fa   :  { %v17997_v39 = vsel %vm13301_vm12, 4294967295, %v17996_v39  ;;  %v9281_v16 = vadd.f32 %v9280_v60, %v9279_v1  ;;  %7869 = vmatprep.mubr.msk.bf16.mxu0 %vm13301_vm12, %v17790_v38  ;;  %vm13309_vm0 = vmpackc.low %vm859_vm7, %vm857_vm9 }
 0x1fb   :  { %17998 = vst [vmem:[#allocation109_spill] sm:$0xff] %v17997_v39  ;;  %v18000_v22 = vsel %vm13309_vm0, 4294967295, %v17999_v22  ;;  %7871 = vmatmul.mubr.msk.bf16.gmra.mrb[120].mxu0 %vm13309_vm0, %v17790_v38  ;;  %v18002_v39 = vmov 0 }
 0x1fc   :  { %18001 = vst [vmem:[#allocation110_spill] sm:$0xff] %v18000_v22  ;;  %v1111_v10 = vpop.permute.xlu1 %1110  ;;  %v797_v22 = vpop.permute.xlu0 %796 }
 0x1fd   :  { %11097 = vset.pattern.permute.xlu1 %v17873_v0  ;;  %vm1178_vm1 = vcmp.eq.s32.totalorder %v1111_v10, %v11735_v8  ;;  %vm1177_vm2 = vcmp.eq.s32.totalorder %v1111_v10, %v11662_v51 }
 0x1fe   :  { %3780 = vperm.xlu1 %11097, %v8279_v26  }
 0x1ff   :  { %v9388_v29 = vpop.f32.mrb[48].mxu1 }
 0x200   :  { %v1114_v13 = vpop.permute.xlu1 %1113  ;;  %v9389_v46 = vpop.f32.mrb[49].mxu1 }
 0x201   :  { %vm1179_vm7 = vcmp.eq.s32.totalorder %v1114_v13, %v11662_v51  ;;  %vm1180_vm9 = vcmp.eq.s32.totalorder %v1114_v13, %v11735_v8  ;;  %v9390_v1 = vadd.f32 %v9389_v46, %v9388_v29  ;;  %v9391_v60 = vpop.f32.mrb[50].mxu1  ;;  %v18005_v29 = vmov 0 }
 0x202   :  { %v9392_v2 = vpop.f32.mrb[51].mxu1  ;;  %vm13324_vm0 = vmpackc.low %vm1180_vm9, %vm1178_vm1  ;;  %11099 = vset.pattern.permute.xlu1 %v17880_v56  ;;  %vm862_vm1 = vcmp.eq.s32.totalorder %v797_v22, %v11735_v8 }
 0x203   :  { %v18003_v39 = vsel %vm13324_vm0, 4294967295, %v18002_v39  ;;  %v13329_v6 = vadd.f32 %v9390_v1, %v9278_v63  ;;  %v9393_v59 = vadd.f32 %v9392_v2, %v9391_v60  ;;  %7933 = vmatprep.mubr.msk.bf16.mxu1 %vm13324_vm0, %v17790_v38  ;;  %vm13334_vm12 = vmpackc.low %vm1179_vm7, %vm1177_vm2  ;;  %4100 = vperm.xlu1 %11099, %v8279_v26   ;;  %v8280_v2 = vld [vmem:[%s17183_s0 + $0x1a0] sm:$0xff]  ;;  %v1117_v60 = vpop.permute.xlu0 %1116  ;;  %vm861_vm2 = vcmp.eq.s32.totalorder %v797_v22, %v11662_v51 }
 0x204   :  { %18004 = vst [vmem:[#allocation111_spill] sm:$0xff] %v18003_v39  ;;  %v18006_v29 = vsel %vm13334_vm12, 4294967295, %v18005_v29  ;;  %v9282_v10 = vpop.f32.mrb[52].mxu0  ;;  %7935 = vmatmul.mubr.msk.bf16.gmra.mrb[120].mxu1 %vm13334_vm12, %v17790_v38  ;;  %v18011_v39 = vmov 0 }
 0x205   :  { %18007 = vst [vmem:[#allocation112_spill] sm:$0xff] %v18006_v29  ;;  %v13341_v13 = vadd.f32 %v9393_v59, %v9281_v16  ;;  %v800_v46 = vpop.permute.xlu1 %799  ;;  %v9283_v63 = vpop.f32.mrb[53].mxu0  ;;  %v18008_v59 = vmov 0 }
 0x206   :  { %vm863_vm7 = vcmp.eq.s32.totalorder %v800_v46, %v11662_v51  ;;  %vm864_vm9 = vcmp.eq.s32.totalorder %v800_v46, %v11735_v8  ;;  %v9284_v26 = vadd.f32 %v9283_v63, %v9282_v10  ;;  %v9285_v1 = vpop.f32.mrb[54].mxu0 }
 0x207   :  { %v9286_v29 = vpop.f32.mrb[55].mxu0  ;;  %vm13350_vm12 = vmpackc.low %vm864_vm9, %vm862_vm1  ;;  %11100 = vset.pattern.permute.xlu1 %v17873_v0  ;;  %vm1182_vm1 = vcmp.eq.s32.totalorder %v1117_v60, %v11735_v8  ;;  %vm1181_vm9 = vcmp.eq.s32.totalorder %v1117_v60, %v11662_v51 }
 0x208   :  { %v18009_v59 = vsel %vm13350_vm12, 4294967295, %v18008_v59  ;;  %v9287_v16 = vadd.f32 %v9286_v29, %v9285_v1  ;;  %7873 = vmatprep.mubr.msk.bf16.mxu0 %vm13350_vm12, %v17790_v38  ;;  %vm13358_vm0 = vmpackc.low %vm863_vm7, %vm861_vm2  ;;  %3783 = vperm.xlu1 %11100, %v8280_v2   ;;  %v13373_v29 = vld [vmem:[%s17183_s0 + $0x1a8] sm:$0xff] }
 0x209   :  { %18010 = vst [vmem:[#allocation113_spill] sm:$0xff] %v18009_v59  ;;  %v18012_v39 = vsel %vm13358_vm0, 4294967295, %v18011_v39  ;;  %v9394_v10 = vpop.f32.mrb[52].mxu1  ;;  %7875 = vmatmul.mubr.msk.bf16.gmra.mrb[124].mxu0 %vm13358_vm0, %v17790_v38  ;;  %3786 = vperm.xlu0 %11098, %v13373_v29   ;;  %v18017_v59 = vmov 0 }
 0x20a   :  { %18013 = vst [vmem:[#allocation114_spill] sm:$0xff] %v18012_v39  ;;  %v1120_v22 = vpop.permute.xlu1 %1119  ;;  %v9395_v46 = vpop.f32.mrb[53].mxu1  ;;  %8005 = vmatprep.mubr.msk.bf16.mxu0 %vm11769_vm10, %v17790_v38  ;;  %v18014_v39 = vmov 0 }
 0x20b   :  { %vm1183_vm7 = vcmp.eq.s32.totalorder %v1120_v22, %v11662_v51  ;;  %vm1184_vm2 = vcmp.eq.s32.totalorder %v1120_v22, %v11735_v8  ;;  %v9396_v63 = vadd.f32 %v9395_v46, %v9394_v10  ;;  %v9397_v1 = vpop.f32.mrb[54].mxu1 }
 0x20c   :  { %vm13378_vm0 = vmpackc.low %vm1184_vm2, %vm1182_vm1  ;;  %v9398_v19 = vpop.f32.mrb[55].mxu1  ;;  %11101 = vset.pattern.permute.xlu1 %v17880_v56  ;;  %vm18026_vm1 = vnez %v17675_v58  ;;  %vm18029_vm2 = vnez %v17677_v50 }
 0x20d   :  { %v18015_v39 = vsel %vm13378_vm0, 4294967295, %v18014_v39  ;;  %v13383_v60 = vadd.f32 %v9396_v63, %v9284_v26  ;;  %vm13385_vm10 = vmpackc.low %vm1183_vm7, %vm1181_vm9  ;;  %v9399_v51 = vadd.f32 %v9398_v19, %v9397_v1  ;;  %7937 = vmatprep.mubr.msk.bf16.mxu1 %vm13378_vm0, %v17790_v38  ;;  %4103 = vperm.xlu1 %11101, %v8280_v2   ;;  %v11254_v26 = vld [vmem:[%s17184_s1 + $0x100] sm:$0xff]   ;;  %v11257_v2 = vld [vmem:[%s17184_s1 + $0x148] sm:$0xff]   ;;  %vm18027_vm9 = vnez %v17673_v55 }
 0x20e   :  { %18016 = vst [vmem:[#allocation115_spill] sm:$0xff] %v18015_v39  ;;  %v18018_v59 = vsel %vm13385_vm10, 4294967295, %v18017_v59  ;;  %v9288_v10 = vpop.f32.mrb[56].mxu0  ;;  %7939 = vmatmul.mubr.msk.bf16.gmra.mrb[124].mxu1 %vm13385_vm10, %v17790_v38  ;;  %3789 = vperm.xlu0 %11098, %v8282_v20   ;;  %vm18028_vm7 = vnez %v17679_v3  ;;  %v11283_v3 = vld [vmem:[%s17184_s1 + $0x1f8] sm:$0xff]  }
 0x20f   :  { %18019 = vst [vmem:[#allocation116_spill] sm:$0xff] %v18018_v59  ;;  %v13398_v22 = vadd.f32 %v9399_v51, %v9287_v16  ;;  %v9289_v46 = vpop.f32.mrb[57].mxu0  ;;  %8069 = vmatprep.mubr.msk.bf16.mxu1 %vm11746_vm4, %v17790_v38  ;;  %v11256_v16 = vld [vmem:[%s17184_s1 + $0x180] sm:$0xff]   ;;  %vm18020_vm4 = vnez %v17663_v33  ;;  %v11267_v33 = vld [vmem:[%s17184_s1 + $0x1d8] sm:$0xff]  }
 0x210   :  { %v9290_v63 = vadd.f32 %v9289_v46, %v9288_v10  ;;  %v9291_v1 = vpop.f32.mrb[58].mxu0  ;;  %v11259_v10 = vld [vmem:[%s17184_s1 + $0x1c8] sm:$0xff]   ;;  %v8283_v46 = vld [vmem:[%s17183_s0 + $0x1b8] sm:$0xff] }
 0x211   :  { %v9292_v19 = vpop.f32.mrb[59].mxu0  ;;  %8007 = vmatmul.mubr.msk.bf16.vlgmr.msra.gmra.mrb[128].mxu0 %vm11776_vm11, %v17790_v38  ;;  %4106 = vperm.xlu1 %11101, %v13373_v29   ;;  %vm18022_vm11 = vnez %v17667_v41  ;;  %v13498_v41 = vld [vmem:[%s17183_s0 + $0x1d0] sm:$0xff] }
 0x212   :  { %v9293_v51 = vadd.f32 %v9292_v19, %v9291_v1  ;;  %8009 = vmatprep.mubr.msk.bf16.mxu0 %vm11792_vm3, %v17790_v38  ;;  %9861 = vmatpush3.bf16.msra.mxu0 %v11254_v26  ;;  %v11262_v26 = vld [vmem:[%s17184_s1 + $0x110] sm:$0xff]   ;;  %v11265_v1 = vld [vmem:[%s17184_s1 + $0x158] sm:$0xff]   ;;  %vm18023_vm3 = vnez %v17665_v35  ;;  %v11272_v35 = vld [vmem:[%s17184_s1 + $0x1a0] sm:$0xff]  }
 0x213   :  { %9862 = vmatprep.subr.bf16.mxu0 %v11257_v2  ;;  %11103 = vset.pattern.permute.xlu0 %v17880_v56 }
 0x214   :  { %4109 = vperm.xlu0 %11103, %v8282_v20   ;;  %v11271_v20 = vld [vmem:[%s17184_s1 + $0x1e0] sm:$0xff]  }
 0x215   :  { %11102 = vset.pattern.permute.xlu1 %v17873_v0 }
 0x216   :  { %8071 = vmatmul.mubr.msk.bf16.vlgmr.msra.gmra.mrb[128].mxu1 %vm11753_vm5, %v17790_v38  ;;  %9863 = vmatpush3.bf16.msra.mxu0 %v11258_v12  ;;  %v11263_v12 = vld [vmem:[%s17184_s1 + $0x1d0] sm:$0xff]   ;;  %vm18021_vm5 = vnez %v17659_v28  ;;  %v11273_v28 = vld [vmem:[%s17184_s1 + $0x168] sm:$0xff]  }
 0x217   :  { %9973 = vmatpush3.bf16.msra.mxu1 %v11256_v16  ;;  %v9400_v2 = vpop.f32.mrb[56].mxu1  ;;  %8073 = vmatprep.mubr.msk.bf16.mxu1 %vm11801_vm6, %v17790_v38  ;;  %vm18024_vm6 = vnez %v17671_v54  ;;  %v11275_v54 = vld [vmem:[%s17184_s1 + $0x1e8] sm:$0xff]  }
 0x218   :  { %v9401_v19 = vpop.f32.mrb[57].mxu1  ;;  %9974 = vmatprep.subr.bf16.mxu1 %v11259_v10  ;;  %9864 = vmatprep.subr.bf16.mxu0 %v11261_v24  ;;  %v11266_v10 = vld [vmem:[%s17184_s1 + $0x118] sm:$0xff]  }
 0x219   :  { %v9402_v16 = vadd.f32 %v9401_v19, %v9400_v2  ;;  %v9403_v59 = vpop.f32.mrb[58].mxu1  ;;  %8011 = vmatmul.mubr.msk.bf16.gmra.mrb[132].mxu0 %vm11825_vm14, %v17790_v38  ;;  %3792 = vperm.xlu1 %11102, %v8283_v46   ;;  %v11270_v19 = vld [vmem:[%s17184_s1 + $0x120] sm:$0xff]   ;;  %vm18025_vm14 = vnez %v17669_v42  ;;  %v11276_v42 = vld [vmem:[%s17184_s1 + $0x1a8] sm:$0xff]  }
 0x21a   :  { %v9404_v25 = vpop.f32.mrb[59].mxu1  ;;  %8013 = vmatprep.mubr.msk.bf16.mxu0 %vm18020_vm4, %v17790_v38  ;;  %9865 = vmatpush3.bf16.msra.mxu0 %v11262_v26  ;;  %v11269_v26 = vld [vmem:[%s17184_s1 + $0x160] sm:$0xff]   ;;  %vm18030_vm4 = vnez %v17683_v18 }
 0x21b   :  { %v13459_v24 = vadd.f32 %v9402_v16, %v9290_v63  ;;  %v9405_v39 = vadd.f32 %v9404_v25, %v9403_v59  ;;  %9975 = vmatpush3.bf16.msra.mxu1 %v11260_v14  ;;  %9866 = vmatprep.subr.bf16.mxu0 %v11265_v1 }
 0x21c   :  { %v9294_v2 = vpop.f32.mrb[60].mxu0  ;;  %9976 = vmatprep.subr.bf16.mxu1 %v11263_v12  ;;  %4121 = vperm.xlu0 %11103, %v13498_v41  }
 0x21d   :  { %v13471_v63 = vadd.f32 %v9405_v39, %v9293_v51  ;;  %v9295_v59 = vpop.f32.mrb[61].mxu0  ;;  %11104 = vset.pattern.permute.xlu1 %v17880_v56  ;;  %v11268_v39 = vld [vmem:[%s17184_s1 + $0x198] sm:$0xff]  }
 0x21e   :  { %v9296_v14 = vadd.f32 %v9295_v59, %v9294_v2  ;;  %v9297_v1 = vpop.f32.mrb[62].mxu0  ;;  %8075 = vmatmul.mubr.msk.bf16.gmra.mrb[132].mxu1 %vm18021_vm5, %v17790_v38  ;;  %9867 = vmatpush3.bf16.msra.mxu0 %v11266_v10  ;;  %v11274_v10 = vld [vmem:[%s17184_s1 + $0x128] sm:$0xff]   ;;  %vm18031_vm5 = vnez %v17681_v7 }
 0x21f   :  { %v9298_v12 = vpop.f32.mrb[63].mxu0  ;;  %8077 = vmatprep.mubr.msk.bf16.mxu1 %vm18022_vm11, %v17790_v38  ;;  %9977 = vmatpush3.bf16.msra.mxu1 %v11264_v32  ;;  %vm18032_vm11 = vnez %v17687_v30 }
 0x220   :  { %v9299_v51 = vadd.f32 %v9298_v12, %v9297_v1  ;;  %9978 = vmatprep.subr.bf16.mxu1 %v11267_v33  ;;  %9868 = vmatprep.subr.bf16.mxu0 %v11269_v26  ;;  %v11277_v33 = vld [vmem:[%s17184_s1 + $0x170] sm:$0xff]  }
 0x221   :  { %v9406_v16 = vpop.f32.mrb[60].mxu1  ;;  %8015 = vmatmul.mubr.msk.bf16.gmra.mrb[136].mxu0 %vm18023_vm3, %v17790_v38  ;;  %4112 = vperm.xlu1 %11104, %v8283_v46   ;;  %v11278_v1 = vld [vmem:[%s17184_s1 + $0x130] sm:$0xff]   ;;  %vm18033_vm3 = vnez %v17685_v21 }
 0x222   :  { %v9407_v25 = vpop.f32.mrb[61].mxu1  ;;  %8017 = vmatprep.mubr.msk.bf16.mxu0 %vm18024_vm6, %v17790_v38  ;;  %9869 = vmatpush3.bf16.msra.mxu0 %v11270_v19  ;;  %v8284_v19 = vld [vmem:[%s17183_s0 + $0x1c0] sm:$0xff]  ;;  %vm18034_vm6 = vnez %v17691_v45  ;;  %v13609_v45 = vld [vmem:[%s17183_s0 + $0x1e8] sm:$0xff] }
 0x223   :  { %v9408_v32 = vadd.f32 %v9407_v25, %v9406_v16  ;;  %v9409_v2 = vpop.f32.mrb[62].mxu1  ;;  %9979 = vmatpush3.bf16.msra.mxu1 %v11268_v39  ;;  %9870 = vmatprep.subr.bf16.mxu0 %v11273_v28  ;;  %v11281_v39 = vld [vmem:[%s17184_s1 + $0x178] sm:$0xff]  }
 0x224   :  { %v9410_v46 = vpop.f32.mrb[63].mxu1  ;;  %9980 = vmatprep.subr.bf16.mxu1 %v11271_v20  ;;  %v11282_v25 = vld [vmem:[%s17184_s1 + $0x138] sm:$0xff]   ;;  %11108 = vset.pattern.permute.xlu0 %v17873_v0 }
 0x225   :  { %v13516_v26 = vadd.f32 %v9408_v32, %v9296_v14  ;;  %v9411_v59 = vadd.f32 %v9410_v46, %v9409_v2  ;;  %11105 = vset.pattern.permute.xlu1 %v17873_v0  ;;  %v11280_v2 = vld [vmem:[%s17184_s1 + $0x1b0] sm:$0xff]  }
 0x226   :  { %8079 = vmatmul.mubr.msk.bf16.gmra.mrb[136].mxu1 %vm18025_vm14, %v17790_v38  ;;  %9871 = vmatpush3.bf16.msra.mxu0 %v11274_v10  ;;  %v13554_v10 = vld [vmem:[%s17183_s0 + $0x1c8] sm:$0xff]  ;;  %vm18035_vm14 = vnez %v17689_v36 }
 0x227   :  { %v13528_v12 = vadd.f32 %v9411_v59, %v9299_v51  ;;  %v9428_v14 = vpop.f32.mrb[64].mxu0  ;;  %8081 = vmatprep.mubr.msk.bf16.mxu1 %vm18026_vm1, %v17790_v38  ;;  %9981 = vmatpush3.bf16.msra.mxu1 %v11272_v35  ;;  %v11279_v51 = vld [vmem:[%s17184_s1 + $0x1f0] sm:$0xff]   ;;  %v11285_v35 = vld [vmem:[#allocation2 + $0x40] sm:$0xff]   ;;  %vm18036_vm1 = vnez %v17695_v57 }
 0x228   :  { %v9429_v28 = vpop.f32.mrb[65].mxu0  ;;  %9982 = vmatprep.subr.bf16.mxu1 %v11275_v54  ;;  %9872 = vmatprep.subr.bf16.mxu0 %v11277_v33 }
 0x229   :  { %v9430_v20 = vadd.f32 %v9429_v28, %v9428_v14  ;;  %v9431_v16 = vpop.f32.mrb[66].mxu0  ;;  %8019 = vmatmul.mubr.msk.bf16.gmra.mrb[140].mxu0 %vm18027_vm9, %v17790_v38  ;;  %3795 = vperm.xlu1 %11105, %v8284_v19   ;;  %vm18037_vm9 = vnez %v17693_v47  ;;  %v8288_v47 = vld [vmem:[%s17183_s0 + $0x1e0] sm:$0xff] }
 0x22a   :  { %v9432_v58 = vpop.f32.mrb[67].mxu0  ;;  %8021 = vmatprep.mubr.msk.bf16.mxu0 %vm18028_vm7, %v17790_v38  ;;  %9873 = vmatpush3.bf16.msra.mxu0 %v11278_v1  ;;  %vm18038_vm7 = vnez %v17699_v11  ;;  %v13633_v11 = vpop.permute.xlu1 %3723 }
 0x22b   :  { %v2342_v32 = vadd.f32 %v9430_v20, %v12724_v49  ;;  %v9433_v55 = vadd.f32 %v9432_v58, %v9431_v16  ;;  %9983 = vmatpush3.bf16.msra.mxu1 %v11276_v42  ;;  %9874 = vmatprep.subr.bf16.mxu0 %v11281_v39  ;;  %v11284_v49 = vld [vmem:[%s17184_s1 + $0x1b8] sm:$0xff]  }
 0x22c   :  { %9984 = vmatprep.subr.bf16.mxu1 %v11279_v51  ;;  %3798 = vperm.xlu0 %11108, %v13554_v10   ;;  %v8287_v51 = vld [vmem:[%s17183_s0 + $0x1d8] sm:$0xff] }
 0x22d   :  { %v2345_v46 = vadd.f32 %v9433_v55, %v12731_v37  ;;  %11106 = vset.pattern.permute.xlu1 %v17880_v56  ;;  %v11287_v37 = vld [vmem:[#allocation2 + $0xc0] sm:$0xff]  }
 0x22e   :  { %8083 = vmatmul.mubr.msk.bf16.gmra.mrb[140].mxu1 %vm18029_vm2, %v17790_v38  ;;  %9875 = vmatpush3.bf16.msra.mxu0 %v11282_v25  ;;  %vm18039_vm2 = vnez %v17697_v61 }
 0x22f   :  { %8085 = vmatprep.mubr.msk.bf16.mxu1 %vm18030_vm4, %v17790_v38  ;;  %9985 = vmatpush3.bf16.msra.mxu1 %v11280_v2  ;;  %vm18040_vm4 = vnez %v17703_v17  ;;  %v13647_v17 = vld [vmem:[%s17183_s0 + $0x1f0] sm:$0xff] }
 0x230   :  { %v9540_v54 = vpop.f32.mrb[64].mxu1  ;;  %9986 = vmatprep.subr.bf16.mxu1 %v11283_v3  ;;  %10084 = vmatprep.subr.bf16.mxu0 %v11285_v35 }
 0x231   :  { %v9541_v33 = vpop.f32.mrb[65].mxu1  ;;  %8023 = vmatmul.mubr.msk.bf16.gmra.mrb[144].mxu0 %vm18031_vm5, %v17790_v38  ;;  %4115 = vperm.xlu1 %11106, %v8284_v19   ;;  %vm18041_vm5 = vnez %v17701_v15  ;;  %v13652_v15 = vpop.permute.xlu1 %4043 }
 0x232   :  { %v9542_v50 = vadd.f32 %v9541_v33, %v9540_v54  ;;  %v9543_v59 = vpop.f32.mrb[66].mxu1  ;;  %8025 = vmatprep.mubr.msk.bf16.mxu0 %vm18032_vm11, %v17790_v38  ;;  %3801 = vperm.xlu0 %11108, %v13498_v41   ;;  %vm18042_vm11 = vnez %v17707_v31 }
 0x233   :  { %v9544_v18 = vpop.f32.mrb[67].mxu1  ;;  %9987 = vmatpush3.bf16.msra.mxu1 %v11284_v49 }
 0x234   :  { %v13583_v1 = vadd.f32 %v9542_v50, %v2342_v32  ;;  %v9545_v14 = vadd.f32 %v9544_v18, %v9543_v59  ;;  %v9434_v42 = vpop.f32.mrb[68].mxu0  ;;  %10196 = vmatprep.subr.bf16.mxu1 %v11287_v37 }
 0x235   :  { %v9435_v39 = vpop.f32.mrb[69].mxu0  ;;  %4118 = vperm.xlu1 %11106, %v13554_v10  }
 0x236   :  { %v13586_v7 = vadd.f32 %v9545_v14, %v2345_v46  ;;  %v9436_v19 = vadd.f32 %v9435_v39, %v9434_v42  ;;  %v9437_v28 = vpop.f32.mrb[70].mxu0  ;;  %8087 = vmatmul.mubr.msk.bf16.gmra.mrb[144].mxu1 %vm18033_vm3, %v17790_v38  ;;  %3810 = vperm.xlu0 %11108, %v13609_v45   ;;  %vm18043_vm3 = vnez %v17705_v23 }
 0x237   :  { %v9438_v30 = vpop.f32.mrb[71].mxu0  ;;  %8089 = vmatprep.mubr.msk.bf16.mxu1 %vm18034_vm6, %v17790_v38  ;;  %vm18044_vm6 = vnez %v17711_v40 }
 0x238   :  { %v2350_v20 = vadd.f32 %v9436_v19, %v12762_v44  ;;  %v9439_v16 = vadd.f32 %v9438_v30, %v9437_v28  ;;  %v13670_v28 = vpop.permute.xlu1 %4046  ;;  %v8291_v30 = vld [vmem:[%s17183_s0 + $0x1f8] sm:$0xff] }
 0x239   :  { %v9546_v58 = vpop.f32.mrb[68].mxu1  ;;  %8027 = vmatmul.mubr.msk.bf16.gmra.mrb[148].mxu0 %vm18035_vm14, %v17790_v38  ;;  %11107 = vset.pattern.permute.xlu1 %v17873_v0  ;;  %vm18045_vm14 = vnez %v17709_v34 }
 0x23a   :  { %v2353_v21 = vadd.f32 %v9439_v16, %v12776_v4  ;;  %v9547_v25 = vpop.f32.mrb[69].mxu1  ;;  %8029 = vmatprep.mubr.msk.bf16.mxu0 %vm18036_vm1, %v17790_v38  ;;  %3804 = vperm.xlu1 %11107, %v8287_v51   ;;  %vm18046_vm1 = vnez %v17715_v52 }
 0x23b   :  { %v9548_v44 = vadd.f32 %v9547_v25, %v9546_v58  ;;  %v9549_v32 = vpop.f32.mrb[70].mxu1  ;;  %3813 = vperm.xlu0 %11108, %v13647_v17   ;;  %v18048_v58 = vld [vmem:[#allocation10_spill] sm:$0xff] }
 0x23c   :  { %v9550_v36 = vpop.f32.mrb[71].mxu1 }
 0x23d   :  { %v13612_v55 = vadd.f32 %v9548_v44, %v2350_v20  ;;  %v9551_v2 = vadd.f32 %v9550_v36, %v9549_v32  ;;  %v13685_v44 = vpop.permute.xlu1 %3732 }
 0x23e   :  { %v9440_v4 = vpop.f32.mrb[72].mxu0  ;;  %8091 = vmatmul.mubr.msk.bf16.gmra.mrb[148].mxu1 %vm18037_vm9, %v17790_v38  ;;  %11109 = vset.pattern.permute.xlu1 %v17880_v56  ;;  %vm18047_vm9 = vnez %v17713_v43  ;;  %v11443_v43 = vld [vmem:[%s17183_s0 + $0x108] sm:$0xff] }
 0x23f   :  { %v13618_v57 = vadd.f32 %v9551_v2, %v2353_v21  ;;  %v9441_v3 = vpop.f32.mrb[73].mxu0  ;;  %8093 = vmatprep.mubr.msk.bf16.mxu1 %vm18038_vm7, %v17790_v38  ;;  %4124 = vperm.xlu1 %11109, %v8287_v51   ;;  %vm18049_vm7 = vnez %v18048_v58  ;;  %v18051_v2 = vld [vmem:[#allocation9_spill] sm:$0xff]  ;;  %v18068_v58 = vld [vmem:[#allocation18_spill] sm:$0xff] }
 0x240   :  { %v9442_v35 = vadd.f32 %v9441_v3, %v9440_v4  ;;  %v9443_v46 = vpop.f32.mrb[74].mxu0  ;;  %11113 = vset.pattern.permute.xlu0 %v17880_v56 }
 0x241   :  { %v9444_v49 = vpop.f32.mrb[75].mxu0  ;;  %8031 = vmatmul.mubr.msk.bf16.gmra.mrb[152].mxu0 %vm18039_vm2, %v17790_v38  ;;  %4133 = vperm.xlu0 %11113, %v13647_v17   ;;  %vm18052_vm2 = vnez %v18051_v2 }
 0x242   :  { %v2358_v54 = vadd.f32 %v9442_v35, %v12815_v48  ;;  %v9445_v37 = vadd.f32 %v9444_v49, %v9443_v46  ;;  %8033 = vmatprep.mubr.msk.bf16.mxu0 %vm18040_vm4, %v17790_v38  ;;  %v18053_v35 = vld [vmem:[#allocation12_spill] sm:$0xff] }
 0x243   :  { %11110 = vset.pattern.permute.xlu1 %v17873_v0  ;;  %vm18054_vm4 = vnez %v18053_v35 }
 0x244   :  { %v2361_v33 = vadd.f32 %v9445_v37, %v12830_v9  ;;  %3807 = vperm.xlu1 %11110, %v8288_v47   ;;  %v18055_v37 = vld [vmem:[#allocation11_spill] sm:$0xff] }
 0x246   :  { %8095 = vmatmul.mubr.msk.bf16.gmra.mrb[152].mxu1 %vm18041_vm5, %v17790_v38  ;;  %vm18056_vm5 = vnez %v18055_v37  ;;  %v18074_v37 = vld [vmem:[#allocation71_spill] sm:$0xff] }
 0x247   :  { %v9552_v61 = vpop.f32.mrb[72].mxu1  ;;  %8097 = vmatprep.mubr.msk.bf16.mxu1 %vm18042_vm11, %v17790_v38 }
 0x248   :  { %v9553_v48 = vpop.f32.mrb[73].mxu1  ;;  %11111 = vset.pattern.permute.xlu1 %v17880_v56 }
 0x249   :  { %v9554_v50 = vadd.f32 %v9553_v48, %v9552_v61  ;;  %v9555_v9 = vpop.f32.mrb[74].mxu1  ;;  %8035 = vmatmul.mubr.msk.bf16.gmra.mrb[156].mxu0 %vm18043_vm3, %v17790_v38  ;;  %4127 = vperm.xlu1 %11111, %v8288_v47   ;;  %v11444_v47 = vld [vmem:[%s17183_s0 + $0x110] sm:$0xff] }
 0x24a   :  { %v9556_v59 = vpop.f32.mrb[75].mxu1  ;;  %8037 = vmatprep.mubr.msk.bf16.mxu0 %vm18044_vm6, %v17790_v38 }
 0x24b   :  { %v13658_v31 = vadd.f32 %v9554_v50, %v2358_v54  ;;  %v9557_v18 = vadd.f32 %v9556_v59, %v9555_v9  ;;  %v18058_v50 = vld [vmem:[#allocation14_spill] sm:$0xff]  ;;  %v18060_v9 = vld [vmem:[#allocation67_spill] sm:$0xff] }
 0x24c   :  { %v9446_v14 = vpop.f32.mrb[76].mxu0  ;;  %vm18059_vm11 = vnez %v18058_v50  ;;  %v18077_v50 = vld [vmem:[#allocation73_spill] sm:$0xff] }
 0x24d   :  { %v13660_v42 = vadd.f32 %v9557_v18, %v2361_v33  ;;  %v9447_v39 = vpop.f32.mrb[77].mxu0  ;;  %4130 = vperm.xlu1 %11111, %v13609_v45   ;;  %v18057_v33 = vld [vmem:[#allocation65_spill] sm:$0xff]  ;;  %v11445_v18 = vld [vmem:[%s17183_s0 + $0x100] sm:$0xff] }
 0x24e   :  { %v9448_v23 = vadd.f32 %v9447_v39, %v9446_v14  ;;  %v9449_v19 = vpop.f32.mrb[78].mxu0  ;;  %8099 = vmatmul.mubr.msk.bf16.gmra.mrb[156].mxu1 %vm18045_vm14, %v17790_v38  ;;  %v13722_v14 = vld [vmem:[%s17183_s0 + $0x128] sm:$0xff] }
 0x24f   :  { %v9450_v40 = vpop.f32.mrb[79].mxu0  ;;  %8101 = vmatprep.mubr.msk.bf16.mxu1 %vm18046_vm1, %v17790_v38  ;;  %v18061_v39 = vld [vmem:[#allocation13_spill] sm:$0xff]  ;;  %vm18069_vm1 = vnez %v18068_v58 }
 0x250   :  { %v2366_v51 = vadd.f32 %v9448_v23, %v12874_v5  ;;  %v9451_v20 = vadd.f32 %v9450_v40, %v9449_v19  ;;  %v18050_v5 = vmov 2   ;;  %vm18062_vm3 = vnez %v18061_v39  ;;  %v18063_v19 = vld [vmem:[#allocation16_spill] sm:$0xff]  ;;  %v11448_v39 = vld [vmem:[%s17183_s0 + $0x118] sm:$0xff]  ;;  %v18080_v58 = vld [vmem:[#allocation21_spill] sm:$0xff] }
 0x251   :  { %v9558_v34 = vpop.f32.mrb[76].mxu1  ;;  %8039 = vmatmul.mubr.msk.bf16.gmra.mrb[160].mxu0 %vm18047_vm9, %v17790_v38  ;;  %11112 = vset.pattern.permute.xlu1 %v17873_v0  ;;  %vm18064_vm6 = vnez %v18063_v19 }
 0x252   :  { %v2369_v52 = vadd.f32 %v9451_v20, %v12892_v53  ;;  %v9559_v16 = vpop.f32.mrb[77].mxu1  ;;  %8041 = vmatprep.mubr.msk.bf16.mxu0 %vm18049_vm7, %v17790_v38  ;;  %3816 = vperm.xlu1 %11112, %v8291_v30  }
 0x253   :  { %v9560_v21 = vadd.f32 %v9559_v16, %v9558_v34  ;;  %v9561_v25 = vpop.f32.mrb[78].mxu1  ;;  %11116 = vset.pattern.permute.xlu0 %v18050_v5 }
 0x254   :  { %v9562_v32 = vpop.f32.mrb[79].mxu1  ;;  %4366 = vperm.xlu0 %11116, %v11443_v43  }
 0x255   :  { %v13691_v0 = vadd.f32 %v9560_v21, %v2366_v51  ;;  %v9563_v53 = vadd.f32 %v9562_v32, %v9561_v25  ;;  %v18065_v51 = vmov 3  }
 0x256   :  { %v9452_v36 = vpop.f32.mrb[80].mxu0  ;;  %8103 = vmatmul.mubr.msk.bf16.gmra.mrb[160].mxu1 %vm18052_vm2, %v17790_v38  ;;  %11114 = vset.pattern.permute.xlu1 %v17880_v56  ;;  %v13708_v56 = vpop.permute.xlu1 %4052 }
 0x257   :  { %v13697_v4 = vadd.f32 %v9563_v53, %v2369_v52  ;;  %v9453_v3 = vpop.f32.mrb[81].mxu0  ;;  %8105 = vmatprep.mubr.msk.bf16.mxu1 %vm18054_vm4, %v17790_v38  ;;  %4136 = vperm.xlu1 %11114, %v8291_v30   ;;  %v18066_v52 = vld [vmem:[#allocation15_spill] sm:$0xff] }
 0x258   :  { %v9454_v46 = vadd.f32 %v9453_v3, %v9452_v36  ;;  %v9455_v49 = vpop.f32.mrb[82].mxu0  ;;  %4369 = vperm.xlu0 %11116, %v11444_v47   ;;  %vm18067_vm14 = vnez %v18066_v52 }
 0x259   :  { %v9456_v54 = vpop.f32.mrb[83].mxu0  ;;  %8043 = vmatmul.mubr.msk.bf16.gmra.mrb[164].mxu0 %vm18056_vm5, %v17790_v38  ;;  %vm18081_vm5 = vnez %v18080_v58 }
 0x25a   :  { %v2374_v61 = vadd.f32 %v9454_v46, %v18057_v33  ;;  %v9457_v48 = vadd.f32 %v9456_v54, %v9455_v49  ;;  %8045 = vmatprep.mubr.msk.bf16.mxu0 %vm18059_vm11, %v17790_v38  ;;  %v13731_v40 = vpop.permute.xlu1 %3735  ;;  %v18070_v46 = vld [vmem:[#allocation17_spill] sm:$0xff]  ;;  %v11447_v49 = vld [vmem:[%s17183_s0 + $0x130] sm:$0xff]  ;;  %v18072_v54 = vld [vmem:[#allocation20_spill] sm:$0xff] }
 0x25b   :  { %11115 = vset.pattern.permute.xlu1 %v18050_v5  ;;  %vm18071_vm9 = vnez %v18070_v46  ;;  %vm18073_vm7 = vnez %v18072_v54  ;;  %v18084_v54 = vld [vmem:[#allocation23_spill] sm:$0xff] }
 0x25c   :  { %v2377_v59 = vadd.f32 %v9457_v48, %v18060_v9  ;;  %4363 = vperm.xlu1 %11115, %v11445_v18   ;;  %4378 = vperm.xlu0 %11116, %v13722_v14   ;;  %v18075_v48 = vld [vmem:[#allocation19_spill] sm:$0xff] }
 0x25d   :  { %vm18076_vm2 = vnez %v18075_v48  ;;  %v18089_v48 = vld [vmem:[#allocation79_spill] sm:$0xff] }
 0x25e   :  { %8107 = vmatmul.mubr.msk.bf16.gmra.mrb[164].mxu1 %vm18062_vm3, %v17790_v38  ;;  %v13745_v2 = vpop.permute.xlu1 %4055  ;;  %vm18085_vm3 = vnez %v18084_v54 }
 0x25f   :  { %v9564_v23 = vpop.f32.mrb[80].mxu1  ;;  %8109 = vmatprep.mubr.msk.bf16.mxu1 %vm18064_vm6, %v17790_v38 }
 0x260   :  { %v9565_v30 = vpop.f32.mrb[81].mxu1  ;;  %11117 = vset.pattern.permute.xlu1 %v18065_v51  ;;  %11121 = vset.pattern.permute.xlu0 %v18065_v51 }
 0x261   :  { %v9566_v20 = vadd.f32 %v9565_v30, %v9564_v23  ;;  %v9567_v34 = vpop.f32.mrb[82].mxu1  ;;  %8047 = vmatmul.mubr.msk.bf16.gmra.mrb[168].mxu0 %vm18067_vm14, %v17790_v38  ;;  %4683 = vperm.xlu1 %11117, %v11445_v18   ;;  %v18078_v18 = vld [vmem:[#allocation22_spill] sm:$0xff] }
 0x262   :  { %v9568_v16 = vpop.f32.mrb[83].mxu1  ;;  %8049 = vmatprep.mubr.msk.bf16.mxu0 %vm18069_vm1, %v17790_v38  ;;  %4689 = vperm.xlu0 %11121, %v11444_v47   ;;  %vm18079_vm4 = vnez %v18078_v18  ;;  %v13768_v30 = vpop.permute.xlu1 %4058 }
 0x263   :  { %v13741_v21 = vadd.f32 %v9566_v20, %v2374_v61  ;;  %v9569_v25 = vadd.f32 %v9568_v16, %v9567_v34 }
 0x264   :  { %v9458_v32 = vpop.f32.mrb[84].mxu0 }
 0x265   :  { %v13743_v53 = vadd.f32 %v9569_v25, %v2377_v59  ;;  %v9459_v36 = vpop.f32.mrb[85].mxu0  ;;  %4686 = vperm.xlu1 %11117, %v11443_v43  }
 0x266   :  { %v9460_v3 = vadd.f32 %v9459_v36, %v9458_v32  ;;  %v9461_v35 = vpop.f32.mrb[86].mxu0  ;;  %8111 = vmatmul.mubr.msk.bf16.gmra.mrb[168].mxu1 %vm18071_vm9, %v17790_v38  ;;  %4701 = vperm.xlu0 %11121, %v11447_v49   ;;  %v18082_v36 = vld [vmem:[#allocation24_spill] sm:$0xff] }
 0x267   :  { %v9462_v47 = vpop.f32.mrb[87].mxu0  ;;  %8113 = vmatprep.mubr.msk.bf16.mxu1 %vm18073_vm7, %v17790_v38  ;;  %vm18083_vm11 = vnez %v18082_v36 }
 0x268   :  { %v2382_v33 = vadd.f32 %v9460_v3, %v18074_v37  ;;  %v9463_v61 = vadd.f32 %v9462_v47, %v9461_v35  ;;  %v13782_v3 = vpop.permute.xlu1 %3744  ;;  %v18086_v37 = vld [vmem:[#allocation77_spill] sm:$0xff] }
 0x269   :  { %v9570_v43 = vpop.f32.mrb[84].mxu1  ;;  %8051 = vmatmul.mubr.msk.bf16.gmra.mrb[172].mxu0 %vm18076_vm2, %v17790_v38  ;;  %11118 = vset.pattern.permute.xlu1 %v18050_v5 }
 0x26a   :  { %v2385_v9 = vadd.f32 %v9463_v61, %v18077_v50  ;;  %v9571_v59 = vpop.f32.mrb[85].mxu1  ;;  %8053 = vmatprep.mubr.msk.bf16.mxu0 %vm18079_vm4, %v17790_v38  ;;  %4372 = vperm.xlu1 %11118, %v11448_v39  }
 0x26b   :  { %v9572_v23 = vadd.f32 %v9571_v59, %v9570_v43  ;;  %v9573_v19 = vpop.f32.mrb[86].mxu1  ;;  %11124 = vset.pattern.permute.xlu0 %v18050_v5  ;;  %v18087_v43 = vld [vmem:[#allocation26_spill] sm:$0xff] }
 0x26c   :  { %v9574_v20 = vpop.f32.mrb[87].mxu1  ;;  %4381 = vperm.xlu0 %11124, %v11447_v49   ;;  %v13787_v49 = vld [vmem:[%s17183_s0 + $0x148] sm:$0xff]  ;;  %vm18088_vm6 = vnez %v18087_v43  ;;  %v11451_v59 = vld [vmem:[%s17183_s0 + $0x150] sm:$0xff]  ;;  %v13805_v18 = vpop.permute.xlu1 %4064 }
 0x26d   :  { %v13771_v34 = vadd.f32 %v9572_v23, %v2382_v33  ;;  %v9575_v52 = vadd.f32 %v9574_v20, %v9573_v19  ;;  %18090 = vst [vmem:[#allocation10_spill] sm:$0xff] %v13805_v18  ;;  %v18093_v19 = vld [vmem:[#allocation28_spill] sm:$0xff]  ;;  %v18141_v18 = vld [vmem:[#allocation46_spill] sm:$0xff] }
 0x26e   :  { %v9464_v16 = vpop.f32.mrb[88].mxu0  ;;  %8115 = vmatmul.mubr.msk.bf16.gmra.mrb[172].mxu1 %vm18081_vm5, %v17790_v38  ;;  %11119 = vset.pattern.permute.xlu1 %v18065_v51  ;;  %vm18094_vm1 = vnez %v18093_v19  ;;  %v18104_v19 = vld [vmem:[#allocation83_spill] sm:$0xff] }
 0x26f   :  { %v13777_v25 = vadd.f32 %v9575_v52, %v2385_v9  ;;  %v9465_v32 = vpop.f32.mrb[89].mxu0  ;;  %8117 = vmatprep.mubr.msk.bf16.mxu1 %vm18083_vm11, %v17790_v38  ;;  %4692 = vperm.xlu1 %11119, %v11448_v39   ;;  %v11450_v9 = vld [vmem:[%s17183_s0 + $0x120] sm:$0xff]  ;;  %v18091_v39 = vld [vmem:[#allocation25_spill] sm:$0xff] }
 0x270   :  { %v9466_v35 = vadd.f32 %v9465_v32, %v9464_v16  ;;  %v9467_v46 = vpop.f32.mrb[90].mxu0  ;;  %4390 = vperm.xlu0 %11124, %v13787_v49   ;;  %vm18092_vm14 = vnez %v18091_v39  ;;  %v13817_v52 = vld [vmem:[%s17183_s0 + $0x168] sm:$0xff]  ;;  %v18095_v32 = vld [vmem:[#allocation27_spill] sm:$0xff]  ;;  %v13828_v54 = vpop.permute.xlu1 %3747 }
 0x271   :  { %v9468_v47 = vpop.f32.mrb[91].mxu0  ;;  %8055 = vmatmul.mubr.msk.bf16.gmra.mrb[176].mxu0 %vm18085_vm3, %v17790_v38  ;;  %vm18096_vm9 = vnez %v18095_v32  ;;  %18099 = vst [vmem:[#allocation9_spill] sm:$0xff] %v13828_v54  ;;  %v18100_v39 = vld [vmem:[#allocation29_spill] sm:$0xff] }
 0x272   :  { %v2390_v33 = vadd.f32 %v9466_v35, %v18086_v37  ;;  %v9469_v61 = vadd.f32 %v9468_v47, %v9467_v46  ;;  %8057 = vmatprep.mubr.msk.bf16.mxu0 %vm18088_vm6, %v17790_v38  ;;  %v18097_v35 = vld [vmem:[#allocation30_spill] sm:$0xff]  ;;  %vm18101_vm2 = vnez %v18100_v39 }
 0x273   :  { %11120 = vset.pattern.permute.xlu1 %v18050_v5  ;;  %vm18098_vm7 = vnez %v18097_v35  ;;  %v18109_v35 = vld [vmem:[#allocation34_spill] sm:$0xff] }
 0x274   :  { %v2393_v50 = vadd.f32 %v9469_v61, %v18089_v48  ;;  %4375 = vperm.xlu1 %11120, %v11450_v9   ;;  %4393 = vperm.xlu0 %11124, %v11451_v59   ;;  %vm18110_vm11 = vnez %v18109_v35 }
 0x276   :  { %8119 = vmatmul.mubr.msk.bf16.gmra.mrb[176].mxu1 %vm18092_vm14, %v17790_v38 }
 0x277   :  { %v9576_v23 = vpop.f32.mrb[88].mxu1  ;;  %8121 = vmatprep.mubr.msk.bf16.mxu1 %vm18094_vm1, %v17790_v38 }
 0x278   :  { %v9577_v20 = vpop.f32.mrb[89].mxu1  ;;  %11122 = vset.pattern.permute.xlu1 %v18065_v51  ;;  %4402 = vperm.xlu0 %11124, %v13817_v52  }
 0x279   :  { %v9578_v16 = vadd.f32 %v9577_v20, %v9576_v23  ;;  %v9579_v58 = vpop.f32.mrb[90].mxu1  ;;  %8059 = vmatmul.mubr.msk.bf16.gmra.mrb[180].mxu0 %vm18096_vm9, %v17790_v38  ;;  %4695 = vperm.xlu1 %11122, %v11450_v9   ;;  %v18102_v23 = vld [vmem:[#allocation32_spill] sm:$0xff] }
 0x27a   :  { %v9580_v36 = vpop.f32.mrb[91].mxu1  ;;  %8061 = vmatprep.mubr.msk.bf16.mxu0 %vm18098_vm7, %v17790_v38  ;;  %vm18103_vm4 = vnez %v18102_v23 }
 0x27b   :  { %v13826_v46 = vadd.f32 %v9578_v16, %v2390_v33  ;;  %v9581_v47 = vadd.f32 %v9580_v36, %v9579_v58  ;;  %v18105_v58 = vld [vmem:[#allocation31_spill] sm:$0xff] }
 0x27c   :  { %v9470_v37 = vpop.f32.mrb[92].mxu0  ;;  %11131 = vset.pattern.permute.xlu0 %v18065_v51  ;;  %vm18106_vm5 = vnez %v18105_v58  ;;  %v11286_v58 = vld [vmem:[#allocation2] sm:$0xff]  }
 0x27d   :  { %v13831_v61 = vadd.f32 %v9581_v47, %v2393_v50  ;;  %v9471_v43 = vpop.f32.mrb[93].mxu0  ;;  %4698 = vperm.xlu1 %11122, %v13722_v14   ;;  %4713 = vperm.xlu0 %11131, %v11451_v59   ;;  %v13844_v14 = vpop.permute.xlu1 %4067  ;;  %v18108_v59 = vld [vmem:[#allocation85_spill] sm:$0xff]  ;;  %v11453_v47 = vld [vmem:[%s17183_s0 + $0x138] sm:$0xff] }
 0x27e   :  { %v9472_v48 = vadd.f32 %v9471_v43, %v9470_v37  ;;  %v9473_v9 = vpop.f32.mrb[94].mxu0  ;;  %8123 = vmatmul.mubr.msk.bf16.gmra.mrb[180].mxu1 %vm18101_vm2, %v17790_v38  ;;  %18107 = vst [vmem:[#allocation12_spill] sm:$0xff] %v13844_v14  ;;  %v11288_v14 = vld [vmem:[#allocation2 + $0x80] sm:$0xff]  }
 0x27f   :  { %v9474_v33 = vpop.f32.mrb[95].mxu0  ;;  %8125 = vmatprep.mubr.msk.bf16.mxu1 %vm18103_vm4, %v17790_v38  ;;  %vm18142_vm4 = vnez %v18141_v18 }
 0x280   :  { %v2398_v20 = vadd.f32 %v9472_v48, %v18104_v19  ;;  %v9475_v16 = vadd.f32 %v9474_v33, %v9473_v9  ;;  %v11454_v48 = vld [vmem:[%s17183_s0 + $0x170] sm:$0xff]  ;;  %v18111_v19 = vld [vmem:[#allocation33_spill] sm:$0xff] }
 0x281   :  { %v9582_v50 = vpop.f32.mrb[92].mxu1  ;;  %8063 = vmatmul.mubr.msk.bf16.gmra.mrb[184].mxu0 %vm18106_vm5, %v17790_v38  ;;  %11123 = vset.pattern.permute.xlu1 %v18050_v5  ;;  %vm18112_vm3 = vnez %v18111_v19 }
 0x282   :  { %v2401_v32 = vadd.f32 %v9475_v16, %v18108_v59  ;;  %v9583_v36 = vpop.f32.mrb[93].mxu1  ;;  %8065 = vmatprep.mubr.msk.bf16.mxu0 %vm18110_vm11, %v17790_v38  ;;  %4384 = vperm.xlu1 %11123, %v11453_v47   ;;  %v13868_v59 = vpop.permute.xlu1 %4070 }
 0x283   :  { %v9584_v37 = vadd.f32 %v9583_v36, %v9582_v50  ;;  %v9585_v43 = vpop.f32.mrb[94].mxu1  ;;  %4725 = vperm.xlu0 %11131, %v11454_v48   ;;  %18114 = vst [vmem:[#allocation11_spill] sm:$0xff] %v13868_v59 }
 0x284   :  { %v9586_v9 = vpop.f32.mrb[95].mxu1 }
 0x285   :  { %v13857_v39 = vadd.f32 %v9584_v37, %v2398_v20  ;;  %v9587_v33 = vadd.f32 %v9586_v9, %v9585_v43  ;;  %v18115_v37 = vld [vmem:[#allocation35_spill] sm:$0xff] }
 0x286   :  { %v9476_v23 = vpop.f32.mrb[96].mxu0  ;;  %8127 = vmatmul.mubr.msk.bf16.gmra.mrb[184].mxu1 %vm18112_vm3, %v17790_v38  ;;  %11125 = vset.pattern.permute.xlu1 %v18065_v51  ;;  %vm18116_vm6 = vnez %v18115_v37  ;;  %v13878_v19 = vpop.permute.xlu1 %3756 }
 0x287   :  { %v13863_v16 = vadd.f32 %v9587_v33, %v2401_v32  ;;  %v9477_v50 = vpop.f32.mrb[97].mxu0  ;;  %8129 = vmatprep.mubr.msk.bf16.mxu1 %vm12470_vm15, %v17790_v38  ;;  %4704 = vperm.xlu1 %11125, %v11453_v47   ;;  %v18117_v32 = vld [vmem:[#allocation89_spill] sm:$0xff]  ;;  %18119 = vst [vmem:[#allocation65_spill] sm:$0xff] %v13878_v19  ;;  %v18120_v47 = vld [vmem:[#allocation91_spill] sm:$0xff]  ;;  %v18125_v33 = vld [vmem:[#allocation38_spill] sm:$0xff] }
 0x288   :  { %v9478_v20 = vadd.f32 %v9477_v50, %v9476_v23  ;;  %v9479_v36 = vpop.f32.mrb[98].mxu0  ;;  %11134 = vset.pattern.permute.xlu0 %v18050_v5  ;;  %v11455_v50 = vld [vmem:[%s17183_s0 + $0x140] sm:$0xff]  ;;  %vm18126_vm14 = vnez %v18125_v33  ;;  %v11293_v33 = vld [vmem:[#allocation2 + $0x50] sm:$0xff]  }
 0x289   :  { %v9480_v35 = vpop.f32.mrb[99].mxu0  ;;  %8067 = vmatmul.mubr.msk.bf16.gmra.mrb[188].mxu0 %vm18116_vm6, %v17790_v38  ;;  %4405 = vperm.xlu0 %11134, %v11454_v48   ;;  %v18121_v48 = vld [vmem:[#allocation37_spill] sm:$0xff] }
 0x28a   :  { %v2406_v43 = vadd.f32 %v9478_v20, %v18117_v32  ;;  %v9481_v9 = vadd.f32 %v9480_v35, %v9479_v36  ;;  %8133 = vmatprep.mubr.msk.bf16.mxu0 %vm12498_vm13, %v17790_v38  ;;  %vm18122_vm15 = vnez %v18121_v48  ;;  %v18123_v36 = vld [vmem:[#allocation41_spill] sm:$0xff]  ;;  %v18128_v48 = vld [vmem:[#allocation42_spill] sm:$0xff] }
 0x28b   :  { %11126 = vset.pattern.permute.xlu1 %v18050_v5  ;;  %vm18124_vm13 = vnez %v18123_v36  ;;  %v11289_v35 = vld [vmem:[#allocation2 + $0x48] sm:$0xff]   ;;  %vm18129_vm1 = vnez %v18128_v48 }
 0x28c   :  { %v2409_v23 = vadd.f32 %v9481_v9, %v18120_v47  ;;  %4387 = vperm.xlu1 %11126, %v11455_v50   ;;  %v11290_v36 = vld [vmem:[#allocation2 + $0x8] sm:$0xff]  }
 0x28d   :  { %4414 = vperm.xlu0 %11134, %v13271_v62   ;;  %v13896_v62 = vpop.permute.xlu1 %4076 }
 0x28e   :  { %8131 = vmatmul.mubr.msk.bf16.gmra.mrb[188].mxu1 %vm18122_vm15, %v17790_v38  ;;  %18127 = vst [vmem:[#allocation14_spill] sm:$0xff] %v13896_v62 }
 0x28f   :  { %v9588_v20 = vpop.f32.mrb[96].mxu1  ;;  %8197 = vmatprep.mubr.msk.bf16.mxu1 %vm18124_vm13, %v17790_v38 }
 0x290   :  { %v9589_v37 = vpop.f32.mrb[97].mxu1  ;;  %11127 = vset.pattern.permute.xlu1 %v18065_v51 }
 0x291   :  { %v9590_v32 = vadd.f32 %v9589_v37, %v9588_v20  ;;  %v9591_v9 = vpop.f32.mrb[98].mxu1  ;;  %8135 = vmatmul.mubr.msk.bf16.vlgmr.msra.gmra.mrb[192].mxu0 %vm18126_vm14, %v17790_v38  ;;  %4707 = vperm.xlu1 %11127, %v11455_v50   ;;  %v13906_v20 = vld [vmem:[%s17183_s0 + $0x190] sm:$0xff]  ;;  %v11291_v37 = vld [vmem:[#allocation2 + $0xc8] sm:$0xff]  }
 0x292   :  { %v9592_v47 = vpop.f32.mrb[99].mxu1  ;;  %8137 = vmatprep.mubr.msk.bf16.mxu0 %vm18129_vm1, %v17790_v38  ;;  %10085 = vmatpush3.bf16.msra.mxu0 %v11286_v58 }
 0x293   :  { %v13901_v19 = vadd.f32 %v9590_v32, %v2406_v43  ;;  %v9593_v59 = vadd.f32 %v9592_v47, %v9591_v9  ;;  %10086 = vmatprep.subr.bf16.mxu0 %v11289_v35  ;;  %4417 = vperm.xlu0 %11134, %v13906_v20   ;;  %v18132_v32 = vld [vmem:[#allocation40_spill] sm:$0xff]  ;;  %v11294_v35 = vld [vmem:[#allocation2 + $0x10] sm:$0xff]  }
 0x294   :  { %v9482_v50 = vpop.f32.mrb[100].mxu0  ;;  %vm18133_vm9 = vnez %v18132_v32  ;;  %v18134_v47 = vld [vmem:[#allocation44_spill] sm:$0xff] }
 0x295   :  { %18130 = vst [vmem:[#allocation67_spill] sm:$0xff] %v13901_v19  ;;  %v13909_v62 = vadd.f32 %v9593_v59, %v2409_v23  ;;  %v9483_v48 = vpop.f32.mrb[101].mxu0  ;;  %4710 = vperm.xlu1 %11127, %v13787_v49   ;;  %vm18135_vm7 = vnez %v18134_v47  ;;  %v11292_v19 = vld [vmem:[#allocation2 + $0x88] sm:$0xff]   ;;  %v11297_v59 = vld [vmem:[#allocation2 + $0x58] sm:$0xff]   ;;  %v13918_v23 = vpop.permute.xlu1 %3759 }
 0x296   :  { %v9484_v43 = vadd.f32 %v9483_v48, %v9482_v50  ;;  %v9485_v58 = vpop.f32.mrb[102].mxu0  ;;  %8199 = vmatmul.mubr.msk.bf16.vlgmr.msra.gmra.mrb[192].mxu1 %vm18133_vm9, %v17790_v38  ;;  %10087 = vmatpush3.bf16.msra.mxu0 %v11290_v36  ;;  %18136 = vst [vmem:[#allocation16_spill] sm:$0xff] %v13918_v23  ;;  %v11295_v48 = vld [vmem:[#allocation2 + $0xd0] sm:$0xff]   ;;  %v18138_v36 = vld [vmem:[#allocation43_spill] sm:$0xff] }
 0x297   :  { %18131 = vst [vmem:[#allocation13_spill] sm:$0xff] %v13909_v62  ;;  %10197 = vmatpush3.bf16.msra.mxu1 %v11288_v14  ;;  %v9486_v9 = vpop.f32.mrb[103].mxu0  ;;  %8201 = vmatprep.mubr.msk.bf16.mxu1 %vm18135_vm7, %v17790_v38  ;;  %v18137_v62 = vld [vmem:[#allocation95_spill] sm:$0xff]  ;;  %vm18139_vm2 = vnez %v18138_v36  ;;  %v18140_v14 = vld [vmem:[#allocation97_spill] sm:$0xff]  ;;  %v11301_v36 = vld [vmem:[#allocation2 + $0x60] sm:$0xff]  }
 0x298   :  { %v2414_v49 = vadd.f32 %v9484_v43, %v18137_v62  ;;  %v9487_v50 = vadd.f32 %v9486_v9, %v9485_v58  ;;  %10198 = vmatprep.subr.bf16.mxu1 %v11291_v37  ;;  %10088 = vmatprep.subr.bf16.mxu0 %v11293_v33  ;;  %v11298_v62 = vld [vmem:[#allocation2 + $0x18] sm:$0xff]   ;;  %v11296_v33 = vld [vmem:[#allocation2 + $0x90] sm:$0xff]  }
 0x299   :  { %v9594_v32 = vpop.f32.mrb[100].mxu1  ;;  %8139 = vmatmul.mubr.msk.bf16.gmra.mrb[196].mxu0 %vm18139_vm2, %v17790_v38  ;;  %11128 = vset.pattern.permute.xlu1 %v18050_v5  ;;  %v11299_v9 = vld [vmem:[#allocation2 + $0xd8] sm:$0xff]   ;;  %v13934_v23 = vpop.permute.xlu1 %4079 }
 0x29a   :  { %v2417_v47 = vadd.f32 %v9487_v50, %v18140_v14  ;;  %v9595_v54 = vpop.f32.mrb[101].mxu1  ;;  %8141 = vmatprep.mubr.msk.bf16.mxu0 %vm18142_vm4, %v17790_v38  ;;  %10089 = vmatpush3.bf16.msra.mxu0 %v11294_v35  ;;  %v11457_v50 = vld [vmem:[%s17183_s0 + $0x158] sm:$0xff]  ;;  %18143 = vst [vmem:[#allocation15_spill] sm:$0xff] %v13934_v23  ;;  %v11302_v35 = vld [vmem:[#allocation2 + $0x20] sm:$0xff]  }
 0x29b   :  { %v9596_v43 = vadd.f32 %v9595_v54, %v9594_v32  ;;  %v9597_v37 = vpop.f32.mrb[102].mxu1  ;;  %10199 = vmatpush3.bf16.msra.mxu1 %v11292_v19  ;;  %10090 = vmatprep.subr.bf16.mxu0 %v11297_v59  ;;  %v18144_v19 = vld [vmem:[#allocation45_spill] sm:$0xff]  ;;  %v18147_v32 = vld [vmem:[#allocation48_spill] sm:$0xff] }
 0x29c   :  { %v9598_v58 = vpop.f32.mrb[103].mxu1  ;;  %10200 = vmatprep.subr.bf16.mxu1 %v11295_v48  ;;  %4396 = vperm.xlu1 %11128, %v11457_v50   ;;  %vm18145_vm5 = vnez %v18144_v19  ;;  %vm18148_vm11 = vnez %v18147_v32  ;;  %v18149_v19 = vld [vmem:[#allocation47_spill] sm:$0xff]  ;;  %v18152_v32 = vld [vmem:[#allocation50_spill] sm:$0xff] }
 0x29d   :  { %v13932_v14 = vadd.f32 %v9596_v43, %v2414_v49  ;;  %v9599_v18 = vadd.f32 %v9598_v58, %v9597_v37  ;;  %4426 = vperm.xlu0 %11134, %v13373_v29   ;;  %v11300_v49 = vld [vmem:[#allocation2 + $0x98] sm:$0xff]   ;;  %v11305_v43 = vld [vmem:[#allocation2 + $0x68] sm:$0xff]   ;;  %v11303_v29 = vld [vmem:[#allocation2 + $0xe0] sm:$0xff]   ;;  %vm18150_vm3 = vnez %v18149_v19  ;;  %vm18153_vm6 = vnez %v18152_v32 }
 0x29e   :  { %v9488_v54 = vpop.f32.mrb[104].mxu0  ;;  %8203 = vmatmul.mubr.msk.bf16.gmra.mrb[196].mxu1 %vm18145_vm5, %v17790_v38  ;;  %10091 = vmatpush3.bf16.msra.mxu0 %v11298_v62  ;;  %v11307_v19 = vld [vmem:[#allocation2 + $0xe8] sm:$0xff]  }
 0x29f   :  { %v13940_v59 = vadd.f32 %v9599_v18, %v2417_v47  ;;  %v9489_v48 = vpop.f32.mrb[105].mxu0  ;;  %8205 = vmatprep.mubr.msk.bf16.mxu1 %vm18148_vm11, %v17790_v38  ;;  %10201 = vmatpush3.bf16.msra.mxu1 %v11296_v33  ;;  %v18151_v47 = vld [vmem:[#allocation101_spill] sm:$0xff] }
 0x2a0   :  { %v9490_v37 = vadd.f32 %v9489_v48, %v9488_v54  ;;  %v9491_v58 = vpop.f32.mrb[106].mxu0  ;;  %10202 = vmatprep.subr.bf16.mxu1 %v11299_v9  ;;  %10092 = vmatprep.subr.bf16.mxu0 %v11301_v36  ;;  %v11306_v33 = vld [vmem:[#allocation2 + $0x28] sm:$0xff]   ;;  %v11304_v9 = vld [vmem:[#allocation2 + $0xa0] sm:$0xff]   ;;  %v13953_v36 = vpop.permute.xlu1 %4082  ;;  %v18155_v54 = vld [vmem:[#allocation103_spill] sm:$0xff] }
 0x2a1   :  { %18146 = vst [vmem:[#allocation18_spill] sm:$0xff] %v13940_v59  ;;  %v9492_v23 = vpop.f32.mrb[107].mxu0  ;;  %8143 = vmatmul.mubr.msk.bf16.gmra.mrb[200].mxu0 %vm18150_vm3, %v17790_v38  ;;  %11129 = vset.pattern.permute.xlu1 %v18065_v51  ;;  %18154 = vst [vmem:[#allocation17_spill] sm:$0xff] %v13953_v36  ;;  %v11309_v59 = vld [vmem:[#allocation2 + $0x70] sm:$0xff]  }
 0x2a2   :  { %v2422_v62 = vadd.f32 %v9490_v37, %v18151_v47  ;;  %v9493_v18 = vadd.f32 %v9492_v23, %v9491_v58  ;;  %8145 = vmatprep.mubr.msk.bf16.mxu0 %vm18153_vm6, %v17790_v38  ;;  %10093 = vmatpush3.bf16.msra.mxu0 %v11302_v35  ;;  %v18156_v23 = vld [vmem:[#allocation49_spill] sm:$0xff]  ;;  %v11310_v35 = vld [vmem:[#allocation2 + $0x30] sm:$0xff]  }
 0x2a3   :  { %10203 = vmatpush3.bf16.msra.mxu1 %v11300_v49  ;;  %10094 = vmatprep.subr.bf16.mxu0 %v11305_v43  ;;  %vm18157_vm15 = vnez %v18156_v23  ;;  %v18158_v49 = vld [vmem:[#allocation52_spill] sm:$0xff]  ;;  %v11308_v58 = vld [vmem:[#allocation2 + $0xa8] sm:$0xff]   ;;  %v18163_v23 = vld [vmem:[#allocation54_spill] sm:$0xff] }
 0x2a4   :  { %v2425_v48 = vadd.f32 %v9493_v18, %v18155_v54  ;;  %10204 = vmatprep.subr.bf16.mxu1 %v11303_v29  ;;  %4716 = vperm.xlu1 %11129, %v11457_v50   ;;  %vm18159_vm13 = vnez %v18158_v49  ;;  %v13963_v43 = vpop.permute.xlu1 %3768  ;;  %v11313_v29 = vld [vmem:[#allocation2 + $0x78] sm:$0xff]   ;;  %v11311_v50 = vld [vmem:[#allocation2 + $0xf0] sm:$0xff]   ;;  %vm18164_vm1 = vnez %v18163_v23 }
 0x2a5   :  { %11141 = vset.pattern.permute.xlu0 %v18065_v51  ;;  %18160 = vst [vmem:[#allocation20_spill] sm:$0xff] %v13963_v43  ;;  %v18161_v54 = vld [vmem:[#allocation51_spill] sm:$0xff]  ;;  %v11317_v43 = vld [vmem:[#allocation2 + $0x140] sm:$0xff]  }
 0x2a6   :  { %8207 = vmatmul.mubr.msk.bf16.gmra.mrb[200].mxu1 %vm18157_vm15, %v17790_v38  ;;  %10095 = vmatpush3.bf16.msra.mxu0 %v11306_v33  ;;  %vm18162_vm14 = vnez %v18161_v54  ;;  %v11458_v54 = vld [vmem:[%s17183_s0 + $0x160] sm:$0xff] }
 0x2a7   :  { %v9600_v37 = vpop.f32.mrb[104].mxu1  ;;  %8209 = vmatprep.mubr.msk.bf16.mxu1 %vm18159_vm13, %v17790_v38  ;;  %10205 = vmatpush3.bf16.msra.mxu1 %v11304_v9  ;;  %v11314_v9 = vld [vmem:[#allocation2 + $0x38] sm:$0xff]  }
 0x2a8   :  { %v9601_v47 = vpop.f32.mrb[105].mxu1  ;;  %10206 = vmatprep.subr.bf16.mxu1 %v11307_v19  ;;  %10096 = vmatprep.subr.bf16.mxu0 %v11309_v59  ;;  %v11312_v59 = vld [vmem:[#allocation2 + $0xb0] sm:$0xff]  }
 0x2a9   :  { %v9602_v18 = vadd.f32 %v9601_v47, %v9600_v37  ;;  %v9603_v32 = vpop.f32.mrb[106].mxu1  ;;  %8147 = vmatmul.mubr.msk.bf16.gmra.mrb[204].mxu0 %vm18162_vm14, %v17790_v38  ;;  %11130 = vset.pattern.permute.xlu1 %v18050_v5  ;;  %v11315_v47 = vld [vmem:[#allocation2 + $0xf8] sm:$0xff]  }
 0x2aa   :  { %v9604_v33 = vpop.f32.mrb[107].mxu1  ;;  %8149 = vmatprep.mubr.msk.bf16.mxu0 %vm18164_vm1, %v17790_v38  ;;  %10097 = vmatpush3.bf16.msra.mxu0 %v11310_v35  ;;  %v13979_v35 = vpop.permute.xlu1 %4088 }
 0x2ab   :  { %v13972_v49 = vadd.f32 %v9602_v18, %v2422_v62  ;;  %v9605_v19 = vadd.f32 %v9604_v33, %v9603_v32  ;;  %10207 = vmatpush3.bf16.msra.mxu1 %v11308_v58  ;;  %10098 = vmatprep.subr.bf16.mxu0 %v11313_v29  ;;  %v18165_v29 = vld [vmem:[#allocation53_spill] sm:$0xff]  ;;  %v18167_v18 = vld [vmem:[#allocation56_spill] sm:$0xff] }
 0x2ac   :  { %v9494_v37 = vpop.f32.mrb[108].mxu0  ;;  %10208 = vmatprep.subr.bf16.mxu1 %v11311_v50  ;;  %4399 = vperm.xlu1 %11130, %v11458_v54   ;;  %vm18166_vm9 = vnez %v18165_v29  ;;  %vm18168_vm7 = vnez %v18167_v18  ;;  %v18172_v18 = vld [vmem:[#allocation58_spill] sm:$0xff] }
 0x2ad   :  { %v13977_v36 = vadd.f32 %v9605_v19, %v2425_v48  ;;  %v9495_v23 = vpop.f32.mrb[109].mxu0  ;;  %4737 = vperm.xlu0 %11141, %v13906_v20   ;;  %v11316_v48 = vld [vmem:[#allocation2 + $0xb8] sm:$0xff]   ;;  %v11319_v20 = vld [vmem:[#allocation2 + $0x1c0] sm:$0xff]   ;;  %vm18173_vm4 = vnez %v18172_v18 }
 0x2ae   :  { %v9496_v62 = vadd.f32 %v9495_v23, %v9494_v37  ;;  %v9497_v58 = vpop.f32.mrb[110].mxu0  ;;  %8211 = vmatmul.mubr.msk.bf16.gmra.mrb[204].mxu1 %vm18166_vm9, %v17790_v38  ;;  %10099 = vmatpush3.bf16.msra.mxu0 %v11314_v9  ;;  %v18169_v37 = vld [vmem:[#allocation55_spill] sm:$0xff]  ;;  %v18171_v9 = vld [vmem:[#allocation108_spill] sm:$0xff] }
 0x2af   :  { %v9498_v50 = vpop.f32.mrb[111].mxu0  ;;  %8213 = vmatprep.mubr.msk.bf16.mxu1 %vm18168_vm7, %v17790_v38  ;;  %10209 = vmatpush3.bf16.msra.mxu1 %v11312_v59  ;;  %vm18170_vm2 = vnez %v18169_v37  ;;  %v18174_v37 = vld [vmem:[#allocation57_spill] sm:$0xff] }
 0x2b0   :  { %v2430_v32 = vadd.f32 %v9496_v62, %v13281_v27  ;;  %v9499_v33 = vadd.f32 %v9498_v50, %v9497_v58  ;;  %10210 = vmatprep.subr.bf16.mxu1 %v11315_v47  ;;  %10308 = vmatprep.subr.bf16.mxu0 %v11317_v43  ;;  %v13997_v47 = vpop.permute.xlu1 %3771  ;;  %v11459_v43 = vld [vmem:[%s17183_s0 + $0x1b0] sm:$0xff]  ;;  %vm18175_vm5 = vnez %v18174_v37 }
 0x2b1   :  { %v9606_v19 = vpop.f32.mrb[108].mxu1  ;;  %8151 = vmatmul.mubr.msk.bf16.gmra.mrb[208].mxu0 %vm18170_vm2, %v17790_v38  ;;  %11132 = vset.pattern.permute.xlu1 %v18065_v51 }
 0x2b2   :  { %v2433_v23 = vadd.f32 %v9499_v33, %v18171_v9  ;;  %v9607_v29 = vpop.f32.mrb[109].mxu1  ;;  %8153 = vmatprep.mubr.msk.bf16.mxu0 %vm18173_vm4, %v17790_v38  ;;  %4719 = vperm.xlu1 %11132, %v11458_v54  }
 0x2b3   :  { %v9608_v27 = vadd.f32 %v9607_v29, %v9606_v19  ;;  %v9609_v59 = vpop.f32.mrb[110].mxu1  ;;  %10211 = vmatpush3.bf16.msra.mxu1 %v11316_v48  ;;  %4749 = vperm.xlu0 %11141, %v11459_v43   ;;  %v18176_v19 = vld [vmem:[#allocation60_spill] sm:$0xff]  ;;  %v18178_v29 = vld [vmem:[#allocation59_spill] sm:$0xff] }
 0x2b4   :  { %v9610_v62 = vpop.f32.mrb[111].mxu1  ;;  %10420 = vmatprep.subr.bf16.mxu1 %v11319_v20  ;;  %vm18177_vm11 = vnez %v18176_v19  ;;  %vm18179_vm3 = vnez %v18178_v29  ;;  %v14017_v18 = vpop.permute.xlu1 %4091 }
 0x2b5   :  { %v14002_v58 = vadd.f32 %v9608_v27, %v2430_v32  ;;  %v9611_v50 = vadd.f32 %v9610_v62, %v9609_v59  ;;  %v18180_v27 = vld [vmem:[#allocation62_spill] sm:$0xff]  ;;  %v11460_v59 = vld [vmem:[%s17183_s0 + $0x178] sm:$0xff]  ;;  %v18182_v62 = vld [vmem:[#allocation61_spill] sm:$0xff] }
 0x2b6   :  { %v9500_v33 = vpop.f32.mrb[112].mxu0  ;;  %8215 = vmatmul.mubr.msk.bf16.gmra.mrb[208].mxu1 %vm18175_vm5, %v17790_v38  ;;  %4722 = vperm.xlu1 %11132, %v13817_v52   ;;  %vm18181_vm6 = vnez %v18180_v27  ;;  %vm18183_vm15 = vnez %v18182_v62 }
 0x2b7   :  { %v14008_v54 = vadd.f32 %v9611_v50, %v2433_v23  ;;  %v9501_v48 = vpop.f32.mrb[113].mxu0  ;;  %8217 = vmatprep.mubr.msk.bf16.mxu1 %vm18177_vm11, %v17790_v38  ;;  %11144 = vset.pattern.permute.xlu0 %v18050_v5  ;;  %v18184_v50 = vld [vmem:[#allocation64_spill] sm:$0xff] }
 0x2b8   :  { %v9502_v20 = vadd.f32 %v9501_v48, %v9500_v33  ;;  %v9503_v32 = vpop.f32.mrb[114].mxu0  ;;  %4429 = vperm.xlu0 %11144, %v11459_v43   ;;  %vm18185_vm13 = vnez %v18184_v50  ;;  %v14035_v33 = vpop.permute.xlu1 %4094  ;;  %v18190_v50 = vld [vmem:[#allocation66_spill] sm:$0xff] }
 0x2b9   :  { %v9504_v9 = vpop.f32.mrb[115].mxu0  ;;  %8155 = vmatmul.mubr.msk.bf16.gmra.mrb[212].mxu0 %vm18179_vm3, %v17790_v38  ;;  %vm18191_vm9 = vnez %v18190_v50 }
 0x2ba   :  { %v2438_v52 = vadd.f32 %v9502_v20, %v13329_v6  ;;  %v9505_v23 = vadd.f32 %v9504_v9, %v9503_v32  ;;  %8157 = vmatprep.mubr.msk.bf16.mxu0 %vm18181_vm6, %v17790_v38  ;;  %11133 = vset.pattern.permute.xlu1 %v18050_v5  ;;  %v18188_v20 = vld [vmem:[#allocation68_spill] sm:$0xff] }
 0x2bb   :  { %4408 = vperm.xlu1 %11133, %v11460_v59   ;;  %vm18189_vm1 = vnez %v18188_v20 }
 0x2bc   :  { %v2441_v43 = vadd.f32 %v9505_v23, %v13341_v13  ;;  %4438 = vperm.xlu0 %11144, %v13554_v10   ;;  %v18186_v10 = vld [vmem:[#allocation63_spill] sm:$0xff]  ;;  %v14047_v29 = vpop.permute.xlu1 %3780 }
 0x2bd   :  { %vm18187_vm14 = vnez %v18186_v10 }
 0x2be   :  { %8219 = vmatmul.mubr.msk.bf16.gmra.mrb[212].mxu1 %vm18183_vm15, %v17790_v38 }
 0x2bf   :  { %v9612_v6 = vpop.f32.mrb[112].mxu1  ;;  %8221 = vmatprep.mubr.msk.bf16.mxu1 %vm18185_vm13, %v17790_v38  ;;  %11135 = vset.pattern.permute.xlu1 %v18065_v51 }
 0x2c0   :  { %v9613_v37 = vpop.f32.mrb[113].mxu1  ;;  %4728 = vperm.xlu1 %11135, %v11460_v59   ;;  %4441 = vperm.xlu0 %11144, %v13498_v41   ;;  %v11461_v59 = vld [vmem:[%s17183_s0 + $0x180] sm:$0xff]  ;;  %v14069_v20 = vpop.permute.xlu1 %4100 }
 0x2c1   :  { %v9614_v13 = vadd.f32 %v9613_v37, %v9612_v6  ;;  %v9615_v48 = vpop.f32.mrb[114].mxu1  ;;  %8159 = vmatmul.mubr.msk.bf16.gmra.mrb[216].mxu0 %vm18187_vm14, %v17790_v38 }
 0x2c2   :  { %v9616_v19 = vpop.f32.mrb[115].mxu1  ;;  %8161 = vmatprep.mubr.msk.bf16.mxu0 %vm18189_vm1, %v17790_v38 }
 0x2c3   :  { %v14045_v32 = vadd.f32 %v9614_v13, %v2438_v52  ;;  %v9617_v9 = vadd.f32 %v9616_v19, %v9615_v48  ;;  %v11462_v52 = vld [vmem:[%s17183_s0 + $0x1d0] sm:$0xff]  ;;  %v18194_v19 = vld [vmem:[#allocation69_spill] sm:$0xff] }
 0x2c4   :  { %v9506_v23 = vpop.f32.mrb[116].mxu0  ;;  %11136 = vset.pattern.permute.xlu1 %v18050_v5  ;;  %11149 = vset.pattern.permute.xlu0 %v18065_v51  ;;  %vm18195_vm2 = vnez %v18194_v19 }
 0x2c5   :  { %v14051_v41 = vadd.f32 %v9617_v9, %v2441_v43  ;;  %v9507_v27 = vpop.f32.mrb[117].mxu0  ;;  %4411 = vperm.xlu1 %11136, %v11461_v59   ;;  %4761 = vperm.xlu0 %11149, %v11462_v52   ;;  %v18192_v43 = vld [vmem:[#allocation70_spill] sm:$0xff] }
 0x2c6   :  { %v9508_v62 = vadd.f32 %v9507_v27, %v9506_v23  ;;  %v9509_v6 = vpop.f32.mrb[118].mxu0  ;;  %8223 = vmatmul.mubr.msk.bf16.gmra.mrb[216].mxu1 %vm18191_vm9, %v17790_v38  ;;  %vm18193_vm7 = vnez %v18192_v43  ;;  %v18196_v27 = vld [vmem:[#allocation74_spill] sm:$0xff]  ;;  %v18198_v43 = vld [vmem:[#allocation72_spill] sm:$0xff] }
 0x2c7   :  { %v9510_v37 = vpop.f32.mrb[119].mxu0  ;;  %8225 = vmatprep.mubr.msk.bf16.mxu1 %vm18193_vm7, %v17790_v38  ;;  %vm18197_vm4 = vnez %v18196_v27  ;;  %vm18199_vm5 = vnez %v18198_v43  ;;  %v18202_v27 = vld [vmem:[#allocation75_spill] sm:$0xff] }
 0x2c8   :  { %v2446_v13 = vadd.f32 %v9508_v62, %v13383_v60  ;;  %v9511_v48 = vadd.f32 %v9510_v37, %v9509_v6  ;;  %vm18203_vm3 = vnez %v18202_v27 }
 0x2c9   :  { %v9618_v10 = vpop.f32.mrb[116].mxu1  ;;  %8163 = vmatmul.mubr.msk.bf16.gmra.mrb[220].mxu0 %vm18195_vm2, %v17790_v38  ;;  %11137 = vset.pattern.permute.xlu1 %v18065_v51 }
 0x2ca   :  { %v2449_v9 = vadd.f32 %v9511_v48, %v13398_v22  ;;  %v9619_v23 = vpop.f32.mrb[117].mxu1  ;;  %8165 = vmatprep.mubr.msk.bf16.mxu0 %vm18197_vm4, %v17790_v38  ;;  %4731 = vperm.xlu1 %11137, %v11461_v59   ;;  %v11463_v22 = vld [vmem:[%s17183_s0 + $0x188] sm:$0xff] }
 0x2cb   :  { %v9620_v52 = vadd.f32 %v9619_v23, %v9618_v10  ;;  %v9621_v60 = vpop.f32.mrb[118].mxu1  ;;  %11152 = vset.pattern.permute.xlu0 %v18050_v5  ;;  %v18200_v10 = vld [vmem:[#allocation76_spill] sm:$0xff] }
 0x2cc   :  { %v9622_v62 = vpop.f32.mrb[119].mxu1  ;;  %4450 = vperm.xlu0 %11152, %v13609_v45   ;;  %vm18201_vm11 = vnez %v18200_v10  ;;  %v14091_v45 = vpop.permute.xlu1 %3783 }
 0x2cd   :  { %v14078_v6 = vadd.f32 %v9620_v52, %v2446_v13  ;;  %v9623_v50 = vadd.f32 %v9622_v62, %v9621_v60  ;;  %v18204_v60 = vld [vmem:[#allocation80_spill] sm:$0xff]  ;;  %v11464_v62 = vld [vmem:[%s17183_s0 + $0x198] sm:$0xff] }
 0x2ce   :  { %v9512_v37 = vpop.f32.mrb[120].mxu0  ;;  %8227 = vmatmul.mubr.msk.bf16.gmra.mrb[220].mxu1 %vm18199_vm5, %v17790_v38  ;;  %4734 = vperm.xlu1 %11137, %v11463_v22   ;;  %vm18205_vm6 = vnez %v18204_v60  ;;  %v18209_v22 = vld [vmem:[#allocation82_spill] sm:$0xff] }
 0x2cf   :  { %v14086_v59 = vadd.f32 %v9623_v50, %v2449_v9  ;;  %v9513_v48 = vpop.f32.mrb[121].mxu0  ;;  %8229 = vmatprep.mubr.msk.bf16.mxu1 %vm18201_vm11, %v17790_v38  ;;  %vm18210_vm13 = vnez %v18209_v22 }
 0x2d0   :  { %v9514_v13 = vadd.f32 %v9513_v48, %v9512_v37  ;;  %v9515_v19 = vpop.f32.mrb[122].mxu0  ;;  %4453 = vperm.xlu0 %11152, %v13647_v17   ;;  %v14107_v37 = vpop.permute.xlu1 %4103 }
 0x2d1   :  { %v9516_v23 = vpop.f32.mrb[123].mxu0  ;;  %8167 = vmatmul.mubr.msk.bf16.gmra.mrb[224].mxu0 %vm18203_vm3, %v17790_v38  ;;  %18206 = vst [vmem:[#allocation71_spill] sm:$0xff] %v14107_v37 }
 0x2d2   :  { %v2454_v52 = vadd.f32 %v9514_v13, %v13459_v24  ;;  %v9517_v9 = vadd.f32 %v9516_v23, %v9515_v19  ;;  %8169 = vmatprep.mubr.msk.bf16.mxu0 %vm18205_vm6, %v17790_v38  ;;  %11138 = vset.pattern.permute.xlu1 %v18050_v5  ;;  %v18207_v24 = vld [vmem:[#allocation78_spill] sm:$0xff]  ;;  %v18211_v13 = vld [vmem:[#allocation81_spill] sm:$0xff] }
 0x2d3   :  { %4420 = vperm.xlu1 %11138, %v11464_v62   ;;  %vm18208_vm15 = vnez %v18207_v24  ;;  %vm18212_vm14 = vnez %v18211_v13  ;;  %v18213_v19 = vld [vmem:[#allocation86_spill] sm:$0xff]  ;;  %v18217_v13 = vld [vmem:[#allocation84_spill] sm:$0xff] }
 0x2d4   :  { %v2457_v50 = vadd.f32 %v9517_v9, %v13471_v63  ;;  %11155 = vset.pattern.permute.xlu0 %v18065_v51  ;;  %vm18214_vm1 = vnez %v18213_v19  ;;  %v14125_v9 = vpop.permute.xlu1 %4106  ;;  %vm18218_vm9 = vnez %v18217_v13  ;;  %v18229_v13 = vld [vmem:[#allocation93_spill] sm:$0xff] }
 0x2d5   :  { %4773 = vperm.xlu0 %11155, %v13647_v17   ;;  %18215 = vst [vmem:[#allocation19_spill] sm:$0xff] %v14125_v9  ;;  %vm18230_vm5 = vnez %v18229_v13  ;;  %v18233_v13 = vld [vmem:[#allocation96_spill] sm:$0xff] }
 0x2d6   :  { %8231 = vmatmul.mubr.msk.bf16.gmra.mrb[224].mxu1 %vm18208_vm15, %v17790_v38  ;;  %vm18234_vm3 = vnez %v18233_v13 }
 0x2d7   :  { %v9624_v43 = vpop.f32.mrb[120].mxu1  ;;  %8233 = vmatprep.mubr.msk.bf16.mxu1 %vm18210_vm13, %v17790_v38  ;;  %11139 = vset.pattern.permute.xlu1 %v18065_v51 }
 0x2d8   :  { %v9625_v48 = vpop.f32.mrb[121].mxu1  ;;  %4740 = vperm.xlu1 %11139, %v11464_v62  }
 0x2d9   :  { %v9626_v63 = vadd.f32 %v9625_v48, %v9624_v43  ;;  %v9627_v10 = vpop.f32.mrb[122].mxu1  ;;  %8171 = vmatmul.mubr.msk.bf16.gmra.mrb[228].mxu0 %vm18212_vm14, %v17790_v38  ;;  %v11465_v43 = vld [vmem:[%s17183_s0 + $0x1a0] sm:$0xff] }
 0x2da   :  { %v9628_v17 = vpop.f32.mrb[123].mxu1  ;;  %8173 = vmatprep.mubr.msk.bf16.mxu0 %vm18214_vm1, %v17790_v38 }
 0x2db   :  { %v14123_v23 = vadd.f32 %v9626_v63, %v2454_v52  ;;  %v9629_v27 = vadd.f32 %v9628_v17, %v9627_v10  ;;  %v18219_v63 = vld [vmem:[#allocation88_spill] sm:$0xff]  ;;  %v14139_v10 = vpop.permute.xlu1 %3792 }
 0x2dc   :  { %v9518_v60 = vpop.f32.mrb[124].mxu0  ;;  %11140 = vset.pattern.permute.xlu1 %v18050_v5  ;;  %vm18220_vm7 = vnez %v18219_v63  ;;  %18221 = vst [vmem:[#allocation22_spill] sm:$0xff] %v14139_v10 }
 0x2dd   :  { %v14128_v62 = vadd.f32 %v9629_v27, %v2457_v50  ;;  %v9519_v24 = vpop.f32.mrb[125].mxu0  ;;  %4423 = vperm.xlu1 %11140, %v11465_v43   ;;  %v18222_v27 = vld [vmem:[#allocation87_spill] sm:$0xff] }
 0x2de   :  { %v9520_v22 = vadd.f32 %v9519_v24, %v9518_v60  ;;  %v9521_v48 = vpop.f32.mrb[126].mxu0  ;;  %8235 = vmatmul.mubr.msk.bf16.gmra.mrb[228].mxu1 %vm18218_vm9, %v17790_v38  ;;  %vm18223_vm2 = vnez %v18222_v27 }
 0x2df   :  { %18216 = vst [vmem:[#allocation73_spill] sm:$0xff] %v14128_v62  ;;  %v9522_v52 = vpop.f32.mrb[127].mxu0  ;;  %8237 = vmatprep.mubr.msk.bf16.mxu1 %vm18220_vm7, %v17790_v38  ;;  %v14152_v27 = vpop.permute.xlu1 %4112 }
 0x2e0   :  { %v2462_v50 = vadd.f32 %v9520_v22, %v13516_v26  ;;  %v9523_v17 = vadd.f32 %v9522_v52, %v9521_v48 }
 0x2e1   :  { %v9630_v19 = vpop.f32.mrb[124].mxu1  ;;  %8175 = vmatmul.mubr.msk.bf16.gmra.mrb[232].mxu0 %vm18223_vm2, %v17790_v38  ;;  %11142 = vset.pattern.permute.xlu1 %v18065_v51 }
 0x2e2   :  { %v2465_v60 = vadd.f32 %v9523_v17, %v13528_v12  ;;  %v9631_v24 = vpop.f32.mrb[125].mxu1  ;;  %8177 = vmatprep.mubr.msk.bf16.mxu0 %vm13148_vm8, %v17790_v38  ;;  %4743 = vperm.xlu1 %11142, %v11465_v43   ;;  %v18225_v12 = vld [vmem:[#allocation90_spill] sm:$0xff]  ;;  %v11466_v43 = vld [vmem:[%s17183_s0 + $0x1a8] sm:$0xff] }
 0x2e3   :  { %v9632_v63 = vadd.f32 %v9631_v24, %v9630_v19  ;;  %v9633_v10 = vpop.f32.mrb[126].mxu1  ;;  %vm18226_vm4 = vnez %v18225_v12  ;;  %v14174_v12 = vpop.permute.xlu1 %3795 }
 0x2e4   :  { %v9634_v9 = vpop.f32.mrb[127].mxu1  ;;  %v9652_v26 = vpop.f32.mrb[128].mxu0 }
 0x2e5   :  { %v14150_v22 = vadd.f32 %v9632_v63, %v2462_v50  ;;  %v9635_v48 = vadd.f32 %v9634_v9, %v9633_v10  ;;  %v9653_v52 = vpop.f32.mrb[129].mxu0  ;;  %v18227_v50 = vld [vmem:[#allocation94_spill] sm:$0xff] }
 0x2e6   :  { %v9654_v37 = vadd.f32 %v9653_v52, %v9652_v26  ;;  %v9655_v62 = vpop.f32.mrb[130].mxu0  ;;  %8239 = vmatmul.mubr.msk.bf16.gmra.mrb[232].mxu1 %vm18226_vm4, %v17790_v38  ;;  %4746 = vperm.xlu1 %11142, %v11466_v43   ;;  %vm18228_vm8 = vnez %v18227_v50  ;;  %v18231_v52 = vld [vmem:[#allocation98_spill] sm:$0xff] }
 0x2e7   :  { %v14160_v17 = vadd.f32 %v9635_v48, %v2465_v60  ;;  %v9656_v19 = vpop.f32.mrb[131].mxu0  ;;  %8241 = vmatprep.mubr.msk.bf16.mxu1 %vm18228_vm8, %v17790_v38  ;;  %vm18232_vm11 = vnez %v18231_v52  ;;  %v18236_v52 = vld [vmem:[#allocation100_spill] sm:$0xff] }
 0x2e8   :  { %v3048_v9 = vadd.f32 %v9654_v37, %v13583_v1  ;;  %v9657_v10 = vadd.f32 %v9656_v19, %v9655_v62  ;;  %v11467_v1 = vld [vmem:[%s17183_s0 + $0x1b8] sm:$0xff]  ;;  %vm18237_vm6 = vnez %v18236_v52 }
 0x2e9   :  { %v9764_v24 = vpop.f32.mrb[128].mxu1  ;;  %8179 = vmatmul.mubr.msk.bf16.gmra.mrb[236].mxu0 %vm18230_vm5, %v17790_v38  ;;  %vm3819_vm5 = vcmp.eq.s32.totalorder %v13633_v11, %v11735_v8 }
 0x2ea   :  { %v3051_v63 = vadd.f32 %v9657_v10, %v13586_v7  ;;  %v9765_v26 = vpop.f32.mrb[129].mxu1  ;;  %8181 = vmatprep.mubr.msk.bf16.mxu0 %vm18232_vm11, %v17790_v38  ;;  %11143 = vset.pattern.permute.xlu1 %v18050_v5 }
 0x2eb   :  { %v9766_v60 = vadd.f32 %v9765_v26, %v9764_v24  ;;  %v9767_v48 = vpop.f32.mrb[130].mxu1  ;;  %4432 = vperm.xlu1 %11143, %v11467_v1  }
 0x2ec   :  { %v9658_v37 = vpop.f32.mrb[132].mxu0  ;;  %v9768_v62 = vpop.f32.mrb[131].mxu1 }
 0x2ed   :  { %v14179_v43 = vadd.f32 %v9766_v60, %v3048_v9  ;;  %v9769_v7 = vadd.f32 %v9768_v62, %v9767_v48  ;;  %v9659_v19 = vpop.f32.mrb[133].mxu0  ;;  %v14194_v62 = vpop.permute.xlu1 %4115 }
 0x2ee   :  { %v9660_v50 = vadd.f32 %v9659_v19, %v9658_v37  ;;  %v9661_v10 = vpop.f32.mrb[134].mxu0  ;;  %8243 = vmatmul.mubr.msk.bf16.gmra.mrb[236].mxu1 %vm18234_vm3, %v17790_v38  ;;  %v18238_v37 = vld [vmem:[#allocation99_spill] sm:$0xff]  ;;  %18240 = vst [vmem:[#allocation24_spill] sm:$0xff] %v14194_v62  ;;  %v18241_v19 = vld [vmem:[#allocation104_spill] sm:$0xff] }
 0x2ef   :  { %v14184_v24 = vadd.f32 %v9769_v7, %v3051_v63  ;;  %v9662_v26 = vpop.f32.mrb[135].mxu0  ;;  %8245 = vmatprep.mubr.msk.bf16.mxu1 %vm18237_vm6, %v17790_v38  ;;  %11145 = vset.pattern.permute.xlu1 %v18065_v51  ;;  %vm18239_vm15 = vnez %v18238_v37  ;;  %vm18242_vm13 = vnez %v18241_v19  ;;  %v18244_v37 = vld [vmem:[#allocation102_spill] sm:$0xff] }
 0x2f0   :  { %v3056_v9 = vadd.f32 %v9660_v50, %v13612_v55  ;;  %v9663_v60 = vadd.f32 %v9662_v26, %v9661_v10  ;;  %4752 = vperm.xlu1 %11145, %v11467_v1   ;;  %v11468_v26 = vld [vmem:[%s17183_s0 + $0x1c0] sm:$0xff]  ;;  %vm18245_vm14 = vnez %v18244_v37  ;;  %v18247_v19 = vld [vmem:[#allocation106_spill] sm:$0xff]  ;;  %v18252_v37 = vld [vmem:[#allocation109_spill] sm:$0xff] }
 0x2f1   :  { %18235 = vst [vmem:[#allocation21_spill] sm:$0xff] %v14184_v24  ;;  %v9770_v48 = vpop.f32.mrb[132].mxu1  ;;  %8183 = vmatmul.mubr.msk.bf16.gmra.mrb[240].mxu0 %vm18239_vm15, %v17790_v38  ;;  %vm18248_vm1 = vnez %v18247_v19  ;;  %vm18253_vm7 = vnez %v18252_v37  ;;  %vm4141_vm15 = vcmp.eq.s32.totalorder %v13670_v28, %v11735_v8 }
 0x2f2   :  { %v3059_v63 = vadd.f32 %v9663_v60, %v13618_v57  ;;  %v9771_v7 = vpop.f32.mrb[133].mxu1  ;;  %8185 = vmatprep.mubr.msk.bf16.mxu0 %vm18242_vm13, %v17790_v38 }
 0x2f3   :  { %v9772_v13 = vadd.f32 %v9771_v7, %v9770_v48  ;;  %v9773_v52 = vpop.f32.mrb[134].mxu1 }
 0x2f4   :  { %v9664_v24 = vpop.f32.mrb[136].mxu0  ;;  %v9774_v55 = vpop.f32.mrb[135].mxu1  ;;  %11146 = vset.pattern.permute.xlu1 %v18050_v5 }
 0x2f5   :  { %v14201_v1 = vadd.f32 %v9772_v13, %v3056_v9  ;;  %v9775_v50 = vadd.f32 %v9774_v55, %v9773_v52  ;;  %v9665_v10 = vpop.f32.mrb[137].mxu0  ;;  %4435 = vperm.xlu1 %11146, %v11468_v26   ;;  %v14214_v9 = vpop.permute.xlu1 %4118 }
 0x2f6   :  { %v9666_v57 = vadd.f32 %v9665_v10, %v9664_v24  ;;  %v9667_v60 = vpop.f32.mrb[138].mxu0  ;;  %8247 = vmatmul.mubr.msk.bf16.gmra.mrb[240].mxu1 %vm18245_vm14, %v17790_v38  ;;  %18249 = vst [vmem:[#allocation26_spill] sm:$0xff] %v14214_v9  ;;  %v18250_v24 = vld [vmem:[#allocation105_spill] sm:$0xff]  ;;  %v14221_v10 = vpop.permute.xlu0 %4049 }
 0x2f7   :  { %18243 = vst [vmem:[#allocation23_spill] sm:$0xff] %v14201_v1  ;;  %v14209_v48 = vadd.f32 %v9775_v50, %v3059_v63  ;;  %v9668_v7 = vpop.f32.mrb[139].mxu0  ;;  %8249 = vmatprep.mubr.msk.bf16.mxu1 %vm18248_vm1, %v17790_v38  ;;  %vm18251_vm9 = vnez %v18250_v24  ;;  %vm3825_vm1 = vcmp.eq.s32.totalorder %v13685_v44, %v11735_v8 }
 0x2f8   :  { %v3064_v13 = vadd.f32 %v9666_v57, %v13658_v31  ;;  %v9669_v52 = vadd.f32 %v9668_v7, %v9667_v60 }
 0x2f9   :  { %18246 = vst [vmem:[#allocation77_spill] sm:$0xff] %v14209_v48  ;;  %v9776_v55 = vpop.f32.mrb[136].mxu1  ;;  %8187 = vmatmul.mubr.msk.bf16.gmra.mrb[244].mxu0 %vm18251_vm9, %v17790_v38  ;;  %11147 = vset.pattern.permute.xlu1 %v18065_v51  ;;  %v14227_v57 = vpop.permute.xlu1 %3804 }
 0x2fa   :  { %v3067_v63 = vadd.f32 %v9669_v52, %v13660_v42  ;;  %v9777_v50 = vpop.f32.mrb[137].mxu1  ;;  %8189 = vmatprep.mubr.msk.bf16.mxu0 %vm18253_vm7, %v17790_v38  ;;  %4755 = vperm.xlu1 %11147, %v11468_v26   ;;  %v18254_v42 = vld [vmem:[#allocation107_spill] sm:$0xff]  ;;  %v11469_v26 = vld [vmem:[%s17183_s0 + $0x1c8] sm:$0xff] }
 0x2fb   :  { %v9778_v19 = vadd.f32 %v9777_v50, %v9776_v55  ;;  %v9779_v31 = vpop.f32.mrb[138].mxu1  ;;  %vm18255_vm2 = vnez %v18254_v42  ;;  %v18257_v50 = vld [vmem:[#allocation111_spill] sm:$0xff] }
 0x2fc   :  { %v9670_v60 = vpop.f32.mrb[140].mxu0  ;;  %v9780_v7 = vpop.f32.mrb[139].mxu1  ;;  %vm18258_vm4 = vnez %v18257_v50 }
 0x2fd   :  { %v14229_v24 = vadd.f32 %v9778_v19, %v3064_v13  ;;  %v9781_v48 = vadd.f32 %v9780_v7, %v9779_v31  ;;  %v9671_v1 = vpop.f32.mrb[141].mxu0  ;;  %v18259_v19 = vld [vmem:[#allocation110_spill] sm:$0xff]  ;;  %v14246_v31 = vpop.permute.xlu1 %4124 }
 0x2fe   :  { %v9672_v9 = vadd.f32 %v9671_v1, %v9670_v60  ;;  %v9673_v62 = vpop.f32.mrb[142].mxu0  ;;  %8251 = vmatmul.mubr.msk.bf16.gmra.mrb[244].mxu1 %vm18255_vm2, %v17790_v38  ;;  %4758 = vperm.xlu1 %11147, %v11469_v26   ;;  %vm18260_vm8 = vnez %v18259_v19  ;;  %v3727_v60 = vpop.permute.xlu0 %3726 }
 0x2ff   :  { %v14237_v52 = vadd.f32 %v9781_v48, %v3067_v63  ;;  %v9674_v55 = vpop.f32.mrb[143].mxu0  ;;  %8253 = vmatprep.mubr.msk.bf16.mxu1 %vm18258_vm4, %v17790_v38 }
 0x300   :  { %v3072_v13 = vadd.f32 %v9672_v9, %v13691_v0  ;;  %v9675_v1 = vadd.f32 %v9674_v55, %v9673_v62  ;;  %v11470_v62 = vld [vmem:[%s17183_s0 + $0x1d8] sm:$0xff] }
 0x301   :  { %18256 = vst [vmem:[#allocation79_spill] sm:$0xff] %v14237_v52  ;;  %v9782_v37 = vpop.f32.mrb[140].mxu1  ;;  %8191 = vmatmul.mubr.msk.bf16.gmra.mrb[248].mxu0 %vm18260_vm8, %v17790_v38 }
 0x302   :  { %v3075_v7 = vadd.f32 %v9675_v1, %v13697_v4  ;;  %v9783_v48 = vpop.f32.mrb[141].mxu1  ;;  %8193 = vmatprep.mubr.msk.bf16.mxu0 %vm13350_vm12, %v17790_v38  ;;  %11148 = vset.pattern.permute.xlu1 %v18050_v5  ;;  %vm3821_vm12 = vcmp.eq.s32.totalorder %v3727_v60, %v11735_v8  ;;  %v14261_v1 = vpop.permute.xlu0 %3729 }
 0x303   :  { %v9784_v42 = vadd.f32 %v9783_v48, %v9782_v37  ;;  %v9785_v0 = vpop.f32.mrb[142].mxu1  ;;  %4444 = vperm.xlu1 %11148, %v11470_v62   ;;  %v18263_v48 = vld [vmem:[#allocation112_spill] sm:$0xff]  ;;  %vm14275_vm3 = vmpackc.low %vm3821_vm12, %vm3819_vm5  ;;  %vm3823_vm9 = vcmp.eq.s32.totalorder %v14261_v1, %v11735_v8  ;;  %vm4143_vm5 = vcmp.eq.s32.totalorder %v14221_v10, %v11735_v8  ;;  %vm4145_vm12 = vcmp.eq.s32.totalorder %v13708_v56, %v11735_v8 }
 0x304   :  { %v9676_v9 = vpop.f32.mrb[144].mxu0  ;;  %v9786_v26 = vpop.f32.mrb[143].mxu1  ;;  %vm18264_vm11 = vnez %v18263_v48  ;;  %vm14340_vm2 = vmpackc.low %vm3825_vm1, %vm3823_vm9 }
 0x305   :  { %v14256_v55 = vadd.f32 %v9784_v42, %v3072_v13  ;;  %v9787_v50 = vadd.f32 %v9786_v26, %v9785_v0  ;;  %v9677_v4 = vpop.f32.mrb[145].mxu0  ;;  %v14271_v42 = vpop.permute.xlu1 %3807 }
 0x306   :  { %v9678_v37 = vadd.f32 %v9677_v4, %v9676_v9  ;;  %v9679_v19 = vpop.f32.mrb[146].mxu0  ;;  %8255 = vmatmul.mubr.msk.bf16.gmra.mrb[248].mxu1 %vm18264_vm11, %v17790_v38  ;;  %v18267_v9 = vmov 0 }
 0x307   :  { %18262 = vst [vmem:[#allocation25_spill] sm:$0xff] %v14256_v55  ;;  %v14266_v63 = vadd.f32 %v9787_v50, %v3075_v7  ;;  %v9680_v52 = vpop.f32.mrb[147].mxu0  ;;  %8257 = vmatprep.mubr.msk.bf16.mxu1 %vm13378_vm0, %v17790_v38  ;;  %11150 = vset.pattern.permute.xlu1 %v18065_v51  ;;  %v18268_v9 = vsel %vm14275_vm3, 4294967295, %v18267_v9  ;;  %v18270_v7 = vld [vmem:[#allocation114_spill] sm:$0xff]  ;;  %vm4139_vm0 = vcmp.eq.s32.totalorder %v13652_v15, %v11735_v8 }
 0x308   :  { %v3080_v0 = vadd.f32 %v9678_v37, %v13741_v21  ;;  %v9681_v26 = vadd.f32 %v9680_v52, %v9679_v19  ;;  %4764 = vperm.xlu1 %11150, %v11470_v62   ;;  %18269 = vst [vmem:[#allocation27_spill] sm:$0xff] %v18268_v9  ;;  %vm18271_vm6 = vnez %v18270_v7  ;;  %v14290_v21 = vpop.permute.xlu0 %3738  ;;  %vm14316_vm7 = vmpackc.low %vm4141_vm15, %vm4139_vm0  ;;  %vm3827_vm15 = vcmp.eq.s32.totalorder %v13731_v40, %v11735_v8 }
 0x309   :  { %18265 = vst [vmem:[#allocation28_spill] sm:$0xff] %v14266_v63  ;;  %v9788_v4 = vpop.f32.mrb[144].mxu1  ;;  %8195 = vmatmul.mubr.msk.bf16.gmra.mrb[252].mxu0 %vm18271_vm6, %v17790_v38  ;;  %v14298_v9 = vpop.permute.xlu1 %4127 }
 0x30a   :  { %v3083_v50 = vadd.f32 %v9681_v26, %v13743_v53  ;;  %v9789_v48 = vpop.f32.mrb[145].mxu1  ;;  %8613 = vmatprep.mubr.msk.bf16.mxu0 %vm14275_vm3, %v17790_v38  ;;  %v18272_v53 = vld [vmem:[#allocation8_spill] sm:$0xff]  ;;  %18274 = vst [vmem:[#allocation29_spill] sm:$0xff] %v14298_v9 }
 0x30b   :  { %v9790_v52 = vadd.f32 %v9789_v48, %v9788_v4  ;;  %v9791_v62 = vpop.f32.mrb[146].mxu1  ;;  %vm3818_vm13 = vcmp.eq.s32.totalorder %v13633_v11, %v18272_v53  ;;  %vm3820_vm14 = vcmp.eq.s32.totalorder %v3727_v60, %v18272_v53  ;;  %v11471_v4 = vld [vmem:[%s17183_s0 + $0x1e0] sm:$0xff]  ;;  %vm4138_vm4 = vcmp.eq.s32.totalorder %v13652_v15, %v18272_v53  ;;  %v11322_v60 = vld [vmem:[#allocation2 + $0x108] sm:$0xff]  }
 0x30c   :  { %v9682_v37 = vpop.f32.mrb[148].mxu0  ;;  %v9792_v19 = vpop.f32.mrb[147].mxu1  ;;  %11151 = vset.pattern.permute.xlu1 %v18050_v5  ;;  %vm4140_vm8 = vcmp.eq.s32.totalorder %v13670_v28, %v18272_v53  ;;  %vm3824_vm6 = vcmp.eq.s32.totalorder %v13685_v44, %v18272_v53  ;;  %vm3822_vm0 = vcmp.eq.s32.totalorder %v14261_v1, %v18272_v53  ;;  %v18294_v1 = vmov 0 }
 0x30d   :  { %v14296_v13 = vadd.f32 %v9790_v52, %v3080_v0  ;;  %v9793_v26 = vadd.f32 %v9792_v19, %v9791_v62  ;;  %v9683_v7 = vpop.f32.mrb[149].mxu0  ;;  %4447 = vperm.xlu1 %11151, %v11471_v4   ;;  %v18276_v52 = vmov 0  ;;  %v11318_v62 = vld [vmem:[#allocation2 + $0x100] sm:$0xff]   ;;  %v14320_v19 = vpop.permute.xlu0 %3741  ;;  %v18279_v0 = vmov 0  ;;  %vm14368_vm11 = vmpackc.low %vm4140_vm8, %vm4138_vm4 }
 0x30e   :  { %v9684_v48 = vadd.f32 %v9683_v7, %v9682_v37  ;;  %v9685_v63 = vpop.f32.mrb[150].mxu0  ;;  %8259 = vmatmul.mubr.msk.bf16.gmra.mrb[252].mxu1 %vm13385_vm10, %v17790_v38  ;;  %v18277_v52 = vsel %vm14316_vm7, 4294967295, %v18276_v52  ;;  %v11321_v7 = vld [vmem:[#allocation2 + $0x148] sm:$0xff]   ;;  %vm14332_vm10 = vmpackc.low %vm3820_vm14, %vm3818_vm13  ;;  %vm3829_vm13 = vcmp.eq.s32.totalorder %v14290_v21, %v11735_v8  ;;  %vm4142_vm4 = vcmp.eq.s32.totalorder %v14221_v10, %v18272_v53 }
 0x30f   :  { %18273 = vst [vmem:[#allocation30_spill] sm:$0xff] %v14296_v13  ;;  %18278 = vst [vmem:[#allocation32_spill] sm:$0xff] %v18277_v52  ;;  %v14322_v13 = vadd.f32 %v9793_v26, %v3083_v50  ;;  %v9686_v37 = vpop.f32.mrb[151].mxu0  ;;  %8677 = vmatprep.mubr.msk.bf16.mxu1 %vm14316_vm7, %v17790_v38  ;;  %v18280_v0 = vsel %vm14332_vm10, 4294967295, %v18279_v0  ;;  %v18282_v50 = vmov 0  ;;  %v11323_v52 = vld [vmem:[#allocation2 + $0x1c8] sm:$0xff]   ;;  %vm4144_vm8 = vcmp.eq.s32.totalorder %v13708_v56, %v18272_v53 }
 0x310   :  { %18281 = vst [vmem:[#allocation83_spill] sm:$0xff] %v18280_v0  ;;  %v3088_v55 = vadd.f32 %v9684_v48, %v13771_v34  ;;  %v9687_v9 = vadd.f32 %v9686_v37, %v9685_v63  ;;  %v18283_v50 = vsel %vm14340_vm2, 4294967295, %v18282_v50  ;;  %v11320_v37 = vld [vmem:[#allocation2 + $0x180] sm:$0xff]   ;;  %v14360_v0 = vpop.permute.xlu1 %4130  ;;  %vm14393_vm14 = vmpackc.low %vm4145_vm12, %vm4143_vm5  ;;  %vm4147_vm5 = vcmp.eq.s32.totalorder %v13745_v2, %v11735_v8 }
 0x311   :  { %18284 = vst [vmem:[#allocation31_spill] sm:$0xff] %v18283_v50  ;;  %v9794_v26 = vpop.f32.mrb[148].mxu1  ;;  %8615 = vmatmul.mubr.msk.bf16.vlgmr.msra.gmra.mrb[0].mxu0 %vm14332_vm10, %v17790_v38  ;;  %11153 = vset.pattern.permute.xlu1 %v18065_v51  ;;  %v11325_v50 = vld [vmem:[#allocation2 + $0x150] sm:$0xff]   ;;  %vm14410_vm1 = vmpackc.low %vm3824_vm6, %vm3822_vm0  ;;  %vm4149_vm12 = vcmp.eq.s32.totalorder %v13768_v30, %v11735_v8  ;;  %vm3826_vm0 = vcmp.eq.s32.totalorder %v13731_v40, %v18272_v53  ;;  %v18306_v40 = vmov 0 }
 0x312   :  { %v3091_v11 = vadd.f32 %v9687_v9, %v13777_v25  ;;  %v9795_v34 = vpop.f32.mrb[149].mxu1  ;;  %8617 = vmatprep.mubr.msk.bf16.mxu0 %vm14340_vm2, %v17790_v38  ;;  %10309 = vmatpush3.bf16.msra.mxu0 %v11318_v62  ;;  %v18285_v62 = vmov 0  ;;  %vm14421_vm9 = vmpackc.low %vm3829_vm13, %vm3827_vm15  ;;  %vm3828_vm15 = vcmp.eq.s32.totalorder %v14290_v21, %v18272_v53  ;;  %vm3831_vm13 = vcmp.eq.s32.totalorder %v14320_v19, %v11735_v8 }
 0x313   :  { %v9796_v63 = vadd.f32 %v9795_v34, %v9794_v26  ;;  %v9797_v48 = vpop.f32.mrb[150].mxu1  ;;  %10310 = vmatprep.subr.bf16.mxu0 %v11321_v7  ;;  %4767 = vperm.xlu1 %11153, %v11471_v4   ;;  %v18286_v62 = vsel %vm14368_vm11, 4294967295, %v18285_v62  ;;  %v14376_v4 = vpop.permute.xlu0 %4061  ;;  %v18295_v1 = vsel %vm14421_vm9, 4294967295, %v18294_v1  ;;  %vm14451_vm6 = vmpackc.low %vm4144_vm8, %vm4142_vm4  ;;  %vm3833_vm4 = vcmp.eq.s32.totalorder %v13782_v3, %v11735_v8 }
 0x314   :  { %v9688_v25 = vpop.f32.mrb[152].mxu0  ;;  %v9798_v9 = vpop.f32.mrb[151].mxu1  ;;  %18287 = vst [vmem:[#allocation85_spill] sm:$0xff] %v18286_v62  ;;  %18296 = vst [vmem:[#allocation36_spill] sm:$0xff] %v18295_v1  ;;  %v11331_v1 = vld [vmem:[#allocation2 + $0x1d8] sm:$0xff]  }
 0x315   :  { %v14378_v7 = vadd.f32 %v9796_v63, %v3088_v55  ;;  %v9799_v26 = vadd.f32 %v9798_v9, %v9797_v48  ;;  %v9689_v34 = vpop.f32.mrb[153].mxu0  ;;  %v18288_v55 = vmov 0  ;;  %v11326_v63 = vld [vmem:[#allocation2 + $0x110] sm:$0xff]   ;;  %v11324_v9 = vld [vmem:[#allocation2 + $0x188] sm:$0xff]   ;;  %v14402_v62 = vpop.permute.xlu1 %3816  ;;  %vm14477_vm8 = vmpackc.low %vm4149_vm12, %vm4147_vm5 }
 0x316   :  { %v9690_v15 = vadd.f32 %v9689_v34, %v9688_v25  ;;  %v9691_v28 = vpop.f32.mrb[154].mxu0  ;;  %8679 = vmatmul.mubr.msk.bf16.vlgmr.msra.gmra.mrb[0].mxu1 %vm14368_vm11, %v17790_v38  ;;  %v18289_v55 = vsel %vm14393_vm14, 4294967295, %v18288_v55  ;;  %10311 = vmatpush3.bf16.msra.mxu0 %v11322_v60  ;;  %v11329_v34 = vld [vmem:[#allocation2 + $0x158] sm:$0xff]   ;;  %v18291_v60 = vmov 0  ;;  %vm14492_vm5 = vmpackc.low %vm3828_vm15, %vm3826_vm0  ;;  %vm4146_vm0 = vcmp.eq.s32.totalorder %v13745_v2, %v18272_v53  ;;  %v18313_v2 = vld [vmem:[#allocation9_spill] sm:$0xff] }
 0x317   :  { %18290 = vst [vmem:[#allocation34_spill] sm:$0xff] %v18289_v55  ;;  %v14397_v48 = vadd.f32 %v9799_v26, %v3091_v11  ;;  %10421 = vmatpush3.bf16.msra.mxu1 %v11320_v37  ;;  %v9692_v25 = vpop.f32.mrb[155].mxu0  ;;  %8681 = vmatprep.mubr.msk.bf16.mxu1 %vm14393_vm14, %v17790_v38  ;;  %v18292_v60 = vsel %vm14410_vm1, 4294967295, %v18291_v60  ;;  %v11327_v26 = vld [vmem:[#allocation2 + $0x1d0] sm:$0xff]   ;;  %v11333_v55 = vld [vmem:[#allocation2 + $0x160] sm:$0xff]   ;;  %vm14506_vm12 = vmpackc.low %vm3833_vm4, %vm3831_vm13  ;;  %vm4148_vm15 = vcmp.eq.s32.totalorder %v13768_v30, %v18272_v53 }
 0x318   :  { %18293 = vst [vmem:[#allocation33_spill] sm:$0xff] %v18292_v60  ;;  %v3096_v11 = vadd.f32 %v9690_v15, %v13826_v46  ;;  %v9693_v37 = vadd.f32 %v9692_v25, %v9691_v28  ;;  %10422 = vmatprep.subr.bf16.mxu1 %v11323_v52  ;;  %10312 = vmatprep.subr.bf16.mxu0 %v11325_v50  ;;  %v11472_v46 = vld [vmem:[%s17183_s0 + $0x1e8] sm:$0xff]  ;;  %v11330_v15 = vld [vmem:[#allocation2 + $0x118] sm:$0xff]   ;;  %v14443_v28 = vpop.permute.xlu0 %4073  ;;  %v11328_v60 = vld [vmem:[#allocation2 + $0x190] sm:$0xff]   ;;  %v18307_v40 = vsel %vm14506_vm12, 4294967295, %v18306_v40 }
 0x319   :  { %v9800_v44 = vpop.f32.mrb[152].mxu1  ;;  %8619 = vmatmul.mubr.msk.bf16.gmra.mrb[4].mxu0 %vm14410_vm1, %v17790_v38  ;;  %4770 = vperm.xlu1 %11153, %v11472_v46   ;;  %18308 = vst [vmem:[#allocation91_spill] sm:$0xff] %v18307_v40  ;;  %v11339_v40 = vld [vmem:[#allocation2 + $0x1e8] sm:$0xff]   ;;  %vm14535_vm13 = vmpackc.low %vm4148_vm15, %vm4146_vm0  ;;  %vm18314_vm15 = vcmp.eq.s32.totalorder %v14376_v4, %v11735_v8  ;;  %vm18320_vm0 = vcmp.eq.s32.totalorder %v14320_v19, %v18272_v53 }
 0x31a   :  { %v3099_v52 = vadd.f32 %v9693_v37, %v13831_v61  ;;  %v9801_v50 = vpop.f32.mrb[153].mxu1  ;;  %8621 = vmatprep.mubr.msk.bf16.mxu0 %vm14421_vm9, %v17790_v38  ;;  %10313 = vmatpush3.bf16.msra.mxu0 %v11326_v63  ;;  %v18297_v63 = vmov 0  ;;  %vm3873_vm9 = vcmp.eq.s32.totalorder %v14227_v57, %v11735_v8 }
 0x31b   :  { %v9802_v25 = vadd.f32 %v9801_v50, %v9800_v44  ;;  %v9803_v46 = vpop.f32.mrb[154].mxu1  ;;  %10423 = vmatpush3.bf16.msra.mxu1 %v11324_v9  ;;  %10314 = vmatprep.subr.bf16.mxu0 %v11329_v34  ;;  %v18298_v63 = vsel %vm14451_vm6, 4294967295, %v18297_v63  ;;  %v14461_v44 = vpop.permute.xlu1 %4136 }
 0x31c   :  { %v9694_v61 = vpop.f32.mrb[156].mxu0  ;;  %v9804_v37 = vpop.f32.mrb[155].mxu1  ;;  %10424 = vmatprep.subr.bf16.mxu1 %v11327_v26  ;;  %18299 = vst [vmem:[#allocation35_spill] sm:$0xff] %v18298_v63  ;;  %v11341_v63 = vld [vmem:[#allocation2 + $0x170] sm:$0xff]  }
 0x31d   :  { %v14459_v9 = vadd.f32 %v9802_v25, %v3096_v11  ;;  %v9805_v34 = vadd.f32 %v9804_v37, %v9803_v46  ;;  %v9695_v26 = vpop.f32.mrb[157].mxu0  ;;  %11154 = vset.pattern.permute.xlu1 %v18050_v5  ;;  %v18300_v5 = vmov 0  ;;  %v11334_v11 = vld [vmem:[#allocation2 + $0x120] sm:$0xff]   ;;  %v11332_v46 = vld [vmem:[#allocation2 + $0x198] sm:$0xff]   ;;  %v18303_v37 = vmov 0  ;;  %v14517_v21 = vpop.permute.xlu0 %3750 }
 0x31e   :  { %v9696_v56 = vadd.f32 %v9695_v26, %v9694_v61  ;;  %v9697_v10 = vpop.f32.mrb[158].mxu0  ;;  %8683 = vmatmul.mubr.msk.bf16.gmra.mrb[4].mxu1 %vm14451_vm6, %v17790_v38  ;;  %v18301_v5 = vsel %vm14477_vm8, 4294967295, %v18300_v5  ;;  %10315 = vmatpush3.bf16.msra.mxu0 %v11330_v15  ;;  %v11337_v61 = vld [vmem:[#allocation2 + $0x168] sm:$0xff]   ;;  %v18304_v37 = vsel %vm14492_vm5, 4294967295, %v18303_v37 }
 0x31f   :  { %18302 = vst [vmem:[#allocation89_spill] sm:$0xff] %v18301_v5  ;;  %v14481_v50 = vadd.f32 %v9805_v34, %v3099_v52  ;;  %v9698_v25 = vpop.f32.mrb[159].mxu0  ;;  %8685 = vmatprep.mubr.msk.bf16.mxu1 %vm14477_vm8, %v17790_v38  ;;  %10425 = vmatpush3.bf16.msra.mxu1 %v11328_v60  ;;  %18305 = vst [vmem:[#allocation39_spill] sm:$0xff] %v18304_v37  ;;  %v11335_v34 = vld [vmem:[#allocation2 + $0x1e0] sm:$0xff]   ;;  %v14527_v37 = vpop.permute.xlu1 %4363 }
 0x320   :  { %v3104_v52 = vadd.f32 %v9696_v56, %v13857_v39  ;;  %v9699_v15 = vadd.f32 %v9698_v25, %v9697_v10  ;;  %10426 = vmatprep.subr.bf16.mxu1 %v11331_v1  ;;  %10316 = vmatprep.subr.bf16.mxu0 %v11333_v55  ;;  %v11473_v39 = vld [vmem:[%s17183_s0 + $0x1f8] sm:$0xff]  ;;  %v11338_v1 = vld [vmem:[#allocation2 + $0x128] sm:$0xff]   ;;  %v18309_v56 = vld [vmem:[#allocation10_spill] sm:$0xff] }
 0x321   :  { %v9806_v26 = vpop.f32.mrb[156].mxu1  ;;  %8623 = vmatmul.mubr.msk.bf16.gmra.mrb[8].mxu0 %vm14492_vm5, %v17790_v38  ;;  %4456 = vperm.xlu1 %11154, %v11473_v39   ;;  %v11336_v5 = vld [vmem:[#allocation2 + $0x1a0] sm:$0xff]   ;;  %vm3835_vm5 = vcmp.eq.s32.totalorder %v18313_v2, %v11735_v8 }
 0x322   :  { %v3107_v55 = vadd.f32 %v9699_v15, %v13863_v16  ;;  %v9807_v60 = vpop.f32.mrb[157].mxu1  ;;  %8625 = vmatprep.mubr.msk.bf16.mxu0 %vm14506_vm12, %v17790_v38  ;;  %10317 = vmatpush3.bf16.msra.mxu0 %v11334_v11  ;;  %v18310_v11 = vmov 0  ;;  %vm18315_vm12 = vcmp.eq.s32.totalorder %v18309_v56, %v11735_v8 }
 0x323   :  { %v9808_v10 = vadd.f32 %v9807_v60, %v9806_v26  ;;  %v9809_v25 = vpop.f32.mrb[158].mxu1  ;;  %10427 = vmatpush3.bf16.msra.mxu1 %v11332_v46  ;;  %10318 = vmatprep.subr.bf16.mxu0 %v11337_v61  ;;  %v18311_v11 = vsel %vm14535_vm13, 4294967295, %v18310_v11  ;;  %vm14559_vm4 = vmpackc.low %vm18315_vm12, %vm18314_vm15  ;;  %vm18321_vm12 = vcmp.eq.s32.totalorder %v13782_v3, %v18272_v53  ;;  %v18327_v3 = vmov 0 }
 0x324   :  { %v9700_v16 = vpop.f32.mrb[160].mxu0  ;;  %v9810_v15 = vpop.f32.mrb[159].mxu1  ;;  %10428 = vmatprep.subr.bf16.mxu1 %v11335_v34  ;;  %18312 = vst [vmem:[#allocation37_spill] sm:$0xff] %v18311_v11  ;;  %vm14574_vm15 = vmpackc.low %vm18321_vm12, %vm18320_vm0  ;;  %vm4150_vm0 = vcmp.eq.s32.totalorder %v14376_v4, %v18272_v53  ;;  %vm4152_vm12 = vcmp.eq.s32.totalorder %v18309_v56, %v18272_v53  ;;  %v11344_v11 = vld [vmem:[#allocation2 + $0x1b0] sm:$0xff]   ;;  %v18336_v4 = vld [vmem:[#allocation65_spill] sm:$0xff] }
 0x325   :  { %v14543_v46 = vadd.f32 %v9808_v10, %v3104_v52  ;;  %v9811_v61 = vadd.f32 %v9810_v15, %v9809_v25  ;;  %v9701_v34 = vpop.f32.mrb[161].mxu0  ;;  %11156 = vset.pattern.permute.xlu1 %v18065_v51  ;;  %v18316_v51 = vmov 0  ;;  %v11342_v52 = vld [vmem:[#allocation2 + $0x130] sm:$0xff]   ;;  %v11340_v25 = vld [vmem:[#allocation2 + $0x1a8] sm:$0xff]   ;;  %v18322_v15 = vmov 0 }
 0x326   :  { %v9702_v30 = vadd.f32 %v9701_v34, %v9700_v16  ;;  %v9703_v26 = vpop.f32.mrb[162].mxu0  ;;  %8687 = vmatmul.mubr.msk.bf16.gmra.mrb[8].mxu1 %vm14535_vm13, %v17790_v38  ;;  %v18317_v51 = vsel %vm14559_vm4, 4294967295, %v18316_v51  ;;  %10319 = vmatpush3.bf16.msra.mxu0 %v11338_v1  ;;  %v11345_v16 = vld [vmem:[#allocation2 + $0x178] sm:$0xff]   ;;  %v18323_v15 = vsel %vm14574_vm15, 4294967295, %v18322_v15 }
 0x327   :  { %18318 = vst [vmem:[#allocation41_spill] sm:$0xff] %v18317_v51  ;;  %v14563_v60 = vadd.f32 %v9811_v61, %v3107_v55  ;;  %v9704_v10 = vpop.f32.mrb[163].mxu0  ;;  %8689 = vmatprep.mubr.msk.bf16.mxu1 %vm14559_vm4, %v17790_v38  ;;  %10429 = vmatpush3.bf16.msra.mxu1 %v11336_v5  ;;  %18324 = vst [vmem:[#allocation42_spill] sm:$0xff] %v18323_v15  ;;  %v14578_v55 = vpop.permute.xlu0 %3753  ;;  %v18325_v1 = vld [vmem:[#allocation67_spill] sm:$0xff]  ;;  %v11343_v5 = vld [vmem:[#allocation2 + $0x1f0] sm:$0xff]   ;;  %vm18326_vm4 = vcmp.eq.s32.totalorder %v14517_v21, %v11735_v8 }
 0x328   :  { %v3112_v61 = vadd.f32 %v9702_v30, %v18325_v1  ;;  %v9705_v34 = vadd.f32 %v9704_v10, %v9703_v26  ;;  %10430 = vmatprep.subr.bf16.mxu1 %v11339_v40  ;;  %10320 = vmatprep.subr.bf16.mxu0 %v11341_v63  ;;  %vm14587_vm13 = vmpackc.low %vm18326_vm4, %vm3835_vm5  ;;  %v14594_v30 = vpop.permute.xlu1 %4683  ;;  %v18330_v63 = vld [vmem:[#allocation13_spill] sm:$0xff]  ;;  %v11346_v10 = vld [vmem:[#allocation2 + $0x138] sm:$0xff]  }
 0x329   :  { %18319 = vst [vmem:[#allocation38_spill] sm:$0xff] %v14563_v60  ;;  %v18328_v3 = vsel %vm14587_vm13, 4294967295, %v18327_v3  ;;  %v9812_v19 = vpop.f32.mrb[160].mxu1  ;;  %8627 = vmatmul.mubr.msk.bf16.gmra.mrb[12].mxu0 %vm14574_vm15, %v17790_v38  ;;  %4776 = vperm.xlu1 %11156, %v11473_v39   ;;  %v18331_v1 = vld [vmem:[#allocation12_spill] sm:$0xff]  ;;  %v18332_v39 = vld [vmem:[#allocation11_spill] sm:$0xff]  ;;  %vm14617_vm4 = vmpackc.low %vm4152_vm12, %vm4150_vm0  ;;  %vm3839_vm0 = vcmp.eq.s32.totalorder %v14578_v55, %v11735_v8  ;;  %vm18342_vm15 = vcmp.eq.s32.totalorder %v18313_v2, %v18272_v53 }
 0x32a   :  { %18329 = vst [vmem:[#allocation40_spill] sm:$0xff] %v18328_v3  ;;  %v3115_v40 = vadd.f32 %v9705_v34, %v18330_v63  ;;  %v9813_v26 = vpop.f32.mrb[161].mxu1  ;;  %8629 = vmatprep.mubr.msk.bf16.mxu0 %vm14587_vm13, %v17790_v38  ;;  %10321 = vmatpush3.bf16.msra.mxu0 %v11342_v52  ;;  %v11347_v63 = vld [vmem:[#allocation2 + $0x1f8] sm:$0xff]   ;;  %v11349_v52 = vld [vmem:[%s17184_s1 + $0x40] sm:$0xff]   ;;  %vm18337_vm12 = vcmp.eq.s32.totalorder %v18331_v1, %v11735_v8 }
 0x32b   :  { %v9814_v15 = vadd.f32 %v9813_v26, %v9812_v19  ;;  %v9815_v51 = vpop.f32.mrb[162].mxu1  ;;  %10431 = vmatpush3.bf16.msra.mxu1 %v11340_v25  ;;  %10322 = vmatprep.subr.bf16.mxu0 %v11345_v16  ;;  %v18333_v19 = vmov 0  ;;  %v14625_v25 = vpop.permute.xlu0 %3762  ;;  %vm18338_vm13 = vcmp.eq.s32.totalorder %v18332_v39, %v11735_v8 }
 0x32c   :  { %v9706_v60 = vpop.f32.mrb[164].mxu0  ;;  %v9816_v34 = vpop.f32.mrb[163].mxu1  ;;  %10432 = vmatprep.subr.bf16.mxu1 %v11343_v5  ;;  %v18334_v19 = vsel %vm14617_vm4, 4294967295, %v18333_v19  ;;  %vm14642_vm5 = vmpackc.low %vm18338_vm13, %vm18337_vm12  ;;  %vm18343_vm13 = vcmp.eq.s32.totalorder %v14517_v21, %v18272_v53  ;;  %v18348_v21 = vmov 0  ;;  %vm3845_vm8 = vcmp.eq.s32.totalorder %v14625_v25, %v11735_v8 }
 0x32d   :  { %18335 = vst [vmem:[#allocation44_spill] sm:$0xff] %v18334_v19  ;;  %v14627_v16 = vadd.f32 %v9814_v15, %v3112_v61  ;;  %v9817_v5 = vadd.f32 %v9816_v34, %v9815_v51  ;;  %v9707_v26 = vpop.f32.mrb[165].mxu0  ;;  %v18339_v51 = vmov 0  ;;  %v11348_v34 = vld [vmem:[#allocation2 + $0x1b8] sm:$0xff]   ;;  %vm14659_vm12 = vmpackc.low %vm18343_vm13, %vm18342_vm15  ;;  %vm4154_vm15 = vcmp.eq.s32.totalorder %v18331_v1, %v18272_v53 }
 0x32e   :  { %v9708_v56 = vadd.f32 %v9707_v26, %v9706_v60  ;;  %v9709_v3 = vpop.f32.mrb[166].mxu0  ;;  %8691 = vmatmul.mubr.msk.bf16.gmra.mrb[12].mxu1 %vm14617_vm4, %v17790_v38  ;;  %v18340_v51 = vsel %vm14642_vm5, 4294967295, %v18339_v51  ;;  %10323 = vmatpush3.bf16.msra.mxu0 %v11346_v10  ;;  %v14651_v60 = vpop.permute.xlu1 %4686  ;;  %v18344_v26 = vmov 0  ;;  %vm4156_vm13 = vcmp.eq.s32.totalorder %v18332_v39, %v18272_v53 }
 0x32f   :  { %18341 = vst [vmem:[#allocation95_spill] sm:$0xff] %v18340_v51  ;;  %v14646_v15 = vadd.f32 %v9817_v5, %v3115_v40  ;;  %v9710_v61 = vpop.f32.mrb[167].mxu0  ;;  %8693 = vmatprep.mubr.msk.bf16.mxu1 %vm14642_vm5, %v17790_v38  ;;  %10433 = vmatpush3.bf16.msra.mxu1 %v11344_v11  ;;  %v18345_v26 = vsel %vm14659_vm12, 4294967295, %v18344_v26  ;;  %v11351_v11 = vld [vmem:[%s17184_s1 + $0xc0] sm:$0xff]   ;;  %vm18347_vm5 = vcmp.eq.s32.totalorder %v18336_v4, %v11735_v8  ;;  %v14677_v2 = vpop.permute.xlu0 %3765  ;;  %v18352_v5 = vld [vmem:[#allocation14_spill] sm:$0xff]  ;;  %v18371_v51 = vmov 0 }
 0x330   :  { %18346 = vst [vmem:[#allocation43_spill] sm:$0xff] %v18345_v26  ;;  %v3120_v40 = vadd.f32 %v9708_v56, %v13932_v14  ;;  %v9711_v10 = vadd.f32 %v9710_v61, %v9709_v3  ;;  %10434 = vmatprep.subr.bf16.mxu1 %v11347_v63  ;;  %10532 = vmatprep.subr.bf16.mxu0 %v11349_v52  ;;  %vm14673_vm4 = vmpackc.low %vm18347_vm5, %vm3839_vm0  ;;  %v18351_v3 = vld [vmem:[#allocation18_spill] sm:$0xff] }
 0x331   :  { %v18349_v21 = vsel %vm14673_vm4, 4294967295, %v18348_v21  ;;  %v9818_v14 = vpop.f32.mrb[164].mxu1  ;;  %8631 = vmatmul.mubr.msk.bf16.gmra.mrb[16].mxu0 %vm14659_vm12, %v17790_v38  ;;  %vm14696_vm12 = vmpackc.low %vm4156_vm13, %vm4154_vm15  ;;  %vm3838_vm5 = vcmp.eq.s32.totalorder %v14578_v55, %v18272_v53  ;;  %vm18357_vm15 = vcmp.eq.s32.totalorder %v14443_v28, %v11735_v8  ;;  %vm18358_vm13 = vcmp.eq.s32.totalorder %v18352_v5, %v11735_v8 }
 0x332   :  { %18350 = vst [vmem:[#allocation97_spill] sm:$0xff] %v18349_v21  ;;  %v3123_v63 = vadd.f32 %v9711_v10, %v18351_v3  ;;  %v9819_v52 = vpop.f32.mrb[165].mxu1  ;;  %8633 = vmatprep.mubr.msk.bf16.mxu0 %vm14673_vm4, %v17790_v38  ;;  %v14694_v26 = vpop.permute.xlu1 %4372  ;;  %v18353_v10 = vmov 0  ;;  %v18356_v21 = vld [vmem:[#allocation16_spill] sm:$0xff]  ;;  %vm14719_vm4 = vmpackc.low %vm18358_vm13, %vm18357_vm15  ;;  %v18359_v55 = vmov 0 }
 0x333   :  { %v9820_v56 = vadd.f32 %v9819_v52, %v9818_v14  ;;  %v9821_v61 = vpop.f32.mrb[166].mxu1  ;;  %10435 = vmatpush3.bf16.msra.mxu1 %v11348_v34  ;;  %v18354_v10 = vsel %vm14696_vm12, 4294967295, %v18353_v10  ;;  %vm3843_vm0 = vcmp.eq.s32.totalorder %v18356_v21, %v11735_v8  ;;  %v18360_v55 = vsel %vm14719_vm4, 4294967295, %v18359_v55 }
 0x334   :  { %v9712_v1 = vpop.f32.mrb[168].mxu0  ;;  %v9822_v39 = vpop.f32.mrb[167].mxu1  ;;  %10644 = vmatprep.subr.bf16.mxu1 %v11351_v11  ;;  %18355 = vst [vmem:[#allocation46_spill] sm:$0xff] %v18354_v10  ;;  %18361 = vst [vmem:[#allocation45_spill] sm:$0xff] %v18360_v55  ;;  %v18366_v10 = vmov 0 }
 0x335   :  { %v14704_v3 = vadd.f32 %v9820_v56, %v3120_v40  ;;  %v9823_v14 = vadd.f32 %v9822_v39, %v9821_v61  ;;  %v9713_v52 = vpop.f32.mrb[169].mxu0  ;;  %v14723_v40 = vpop.permute.xlu0 %4085  ;;  %vm14738_vm15 = vmpackc.low %vm3845_vm8, %vm3843_vm0  ;;  %vm18379_vm0 = vcmp.eq.s32.totalorder %v14625_v25, %v18272_v53 }
 0x336   :  { %v9714_v34 = vadd.f32 %v9713_v52, %v9712_v1  ;;  %v9715_v11 = vpop.f32.mrb[170].mxu0  ;;  %8695 = vmatmul.mubr.msk.bf16.gmra.mrb[16].mxu1 %vm14696_vm12, %v17790_v38  ;;  %vm18362_vm12 = vcmp.eq.s32.totalorder %v18336_v4, %v18272_v53  ;;  %v18363_v1 = vmov 0  ;;  %v18367_v10 = vsel %vm14738_vm15, 4294967295, %v18366_v10 }
 0x337   :  { %v14725_v56 = vadd.f32 %v9823_v14, %v3123_v63  ;;  %v9716_v61 = vpop.f32.mrb[171].mxu0  ;;  %8697 = vmatprep.mubr.msk.bf16.mxu1 %vm14719_vm4, %v17790_v38  ;;  %vm14733_vm6 = vmpackc.low %vm18362_vm12, %vm3838_vm5  ;;  %18368 = vst [vmem:[#allocation47_spill] sm:$0xff] %v18367_v10  ;;  %v14745_v14 = vpop.permute.xlu1 %4692  ;;  %vm4158_vm12 = vcmp.eq.s32.totalorder %v14443_v28, %v18272_v53  ;;  %vm4160_vm5 = vcmp.eq.s32.totalorder %v18352_v5, %v18272_v53 }
 0x338   :  { %v18364_v1 = vsel %vm14733_vm6, 4294967295, %v18363_v1  ;;  %v3128_v39 = vadd.f32 %v9714_v34, %v13972_v49  ;;  %v9717_v52 = vadd.f32 %v9716_v61, %v9715_v11  ;;  %v18369_v34 = vld [vmem:[#allocation15_spill] sm:$0xff]  ;;  %v18370_v11 = vld [vmem:[#allocation17_spill] sm:$0xff]  ;;  %vm14759_vm13 = vmpackc.low %vm4160_vm5, %vm4158_vm12 }
 0x339   :  { %18365 = vst [vmem:[#allocation48_spill] sm:$0xff] %v18364_v1  ;;  %v9824_v63 = vpop.f32.mrb[168].mxu1  ;;  %8635 = vmatmul.mubr.msk.bf16.gmra.mrb[20].mxu0 %vm14733_vm6, %v17790_v38  ;;  %vm4163_vm8 = vcmp.eq.s32.totalorder %v18369_v34, %v11735_v8  ;;  %v18372_v51 = vsel %vm14759_vm13, 4294967295, %v18371_v51  ;;  %vm3842_vm6 = vcmp.eq.s32.totalorder %v18356_v21, %v18272_v53  ;;  %vm18375_vm5 = vcmp.eq.s32.totalorder %v18370_v11, %v11735_v8 }
 0x33a   :  { %v3131_v49 = vadd.f32 %v9717_v52, %v13977_v36  ;;  %v9825_v4 = vpop.f32.mrb[169].mxu1  ;;  %8637 = vmatprep.mubr.msk.bf16.mxu0 %vm14738_vm15, %v17790_v38  ;;  %18373 = vst [vmem:[#allocation101_spill] sm:$0xff] %v18372_v51  ;;  %v14767_v36 = vpop.permute.xlu0 %4097  ;;  %vm14784_vm15 = vmpackc.low %vm18375_vm5, %vm4163_vm8  ;;  %vm18383_vm8 = vcmp.eq.s32.totalorder %v14677_v2, %v11735_v8  ;;  %v18384_v21 = vmov 0 }
 0x33b   :  { %v9826_v61 = vadd.f32 %v9825_v4, %v9824_v63  ;;  %v9827_v1 = vpop.f32.mrb[170].mxu1  ;;  %v18374_v63 = vld [vmem:[#allocation20_spill] sm:$0xff] }
 0x33c   :  { %v9718_v55 = vpop.f32.mrb[172].mxu0  ;;  %v9828_v28 = vpop.f32.mrb[171].mxu1  ;;  %vm3849_vm12 = vcmp.eq.s32.totalorder %v18374_v63, %v11735_v8 }
 0x33d   :  { %v14769_v5 = vadd.f32 %v9826_v61, %v3128_v39  ;;  %v9829_v52 = vadd.f32 %v9828_v28, %v9827_v1  ;;  %v9719_v10 = vpop.f32.mrb[173].mxu0  ;;  %v18376_v1 = vmov 0  ;;  %vm14812_vm5 = vmpackc.low %vm3849_vm12, %vm18383_vm8  ;;  %vm3851_vm12 = vcmp.eq.s32.totalorder %v13997_v47, %v11735_v8 }
 0x33e   :  { %v9720_v4 = vadd.f32 %v9719_v10, %v9718_v55  ;;  %v9721_v19 = vpop.f32.mrb[174].mxu0  ;;  %8699 = vmatmul.mubr.msk.bf16.gmra.mrb[20].mxu1 %vm14759_vm13, %v17790_v38  ;;  %v18377_v1 = vsel %vm14784_vm15, 4294967295, %v18376_v1  ;;  %v14793_v10 = vpop.permute.xlu1 %4375  ;;  %vm14801_vm13 = vmpackc.low %vm18379_vm0, %vm3842_vm6  ;;  %v18380_v55 = vmov 0  ;;  %v18385_v21 = vsel %vm14812_vm5, 4294967295, %v18384_v21 }
 0x33f   :  { %18378 = vst [vmem:[#allocation50_spill] sm:$0xff] %v18377_v1  ;;  %v14788_v39 = vadd.f32 %v9829_v52, %v3131_v49  ;;  %v9722_v61 = vpop.f32.mrb[175].mxu0  ;;  %8701 = vmatprep.mubr.msk.bf16.mxu1 %vm14784_vm15, %v17790_v38  ;;  %v18381_v55 = vsel %vm14801_vm13, 4294967295, %v18380_v55  ;;  %18386 = vst [vmem:[#allocation49_spill] sm:$0xff] %v18385_v21  ;;  %vm4162_vm6 = vcmp.eq.s32.totalorder %v18369_v34, %v18272_v53  ;;  %v3775_v25 = vpop.permute.xlu0 %3774 }
 0x340   :  { %18382 = vst [vmem:[#allocation103_spill] sm:$0xff] %v18381_v55  ;;  %v3136_v49 = vadd.f32 %v9720_v4, %v14002_v58  ;;  %v9723_v28 = vadd.f32 %v9722_v61, %v9721_v19  ;;  %vm4164_vm0 = vcmp.eq.s32.totalorder %v18370_v11, %v18272_v53  ;;  %v18387_v11 = vmov 0 }
 0x341   :  { %v9830_v52 = vpop.f32.mrb[172].mxu1  ;;  %8639 = vmatmul.mubr.msk.bf16.gmra.mrb[24].mxu0 %vm14801_vm13, %v17790_v38  ;;  %vm4167_vm13 = vcmp.eq.s32.totalorder %v14723_v40, %v11735_v8  ;;  %vm14828_vm8 = vmpackc.low %vm4164_vm0, %vm4162_vm6  ;;  %vm3853_vm6 = vcmp.eq.s32.totalorder %v3775_v25, %v11735_v8  ;;  %vm18390_vm0 = vcmp.eq.s32.totalorder %v13979_v35, %v11735_v8 }
 0x342   :  { %v3139_v58 = vadd.f32 %v9723_v28, %v14008_v54  ;;  %v9831_v19 = vpop.f32.mrb[173].mxu1  ;;  %8641 = vmatprep.mubr.msk.bf16.mxu0 %vm14812_vm5, %v17790_v38  ;;  %v18388_v11 = vsel %vm14828_vm8, 4294967295, %v18387_v11  ;;  %vm3848_vm5 = vcmp.eq.s32.totalorder %v18374_v63, %v18272_v53  ;;  %v14838_v1 = vpop.permute.xlu1 %4695  ;;  %vm14852_vm15 = vmpackc.low %vm18390_vm0, %vm4167_vm13  ;;  %v18391_v63 = vmov 0 }
 0x343   :  { %v9832_v4 = vadd.f32 %v9831_v19, %v9830_v52  ;;  %v9833_v61 = vpop.f32.mrb[174].mxu1  ;;  %18389 = vst [vmem:[#allocation52_spill] sm:$0xff] %v18388_v11  ;;  %v18392_v63 = vsel %vm14852_vm15, 4294967295, %v18391_v63  ;;  %vm14869_vm13 = vmpackc.low %vm3853_vm6, %vm3851_vm12  ;;  %vm4171_vm12 = vcmp.eq.s32.totalorder %v14017_v18, %v11735_v8  ;;  %vm3857_vm6 = vcmp.eq.s32.totalorder %v14047_v29, %v11735_v8 }
 0x344   :  { %v9724_v34 = vpop.f32.mrb[176].mxu0  ;;  %v9834_v55 = vpop.f32.mrb[175].mxu1  ;;  %18393 = vst [vmem:[#allocation51_spill] sm:$0xff] %v18392_v63 }
 0x345   :  { %v14836_v54 = vadd.f32 %v9832_v4, %v3136_v49  ;;  %v9835_v28 = vadd.f32 %v9834_v55, %v9833_v61  ;;  %v9725_v21 = vpop.f32.mrb[177].mxu0 }
 0x346   :  { %v9726_v52 = vadd.f32 %v9725_v21, %v9724_v34  ;;  %v9727_v19 = vpop.f32.mrb[178].mxu0  ;;  %8703 = vmatmul.mubr.msk.bf16.gmra.mrb[24].mxu1 %vm14828_vm8, %v17790_v38  ;;  %vm18394_vm8 = vcmp.eq.s32.totalorder %v14677_v2, %v18272_v53  ;;  %v18395_v21 = vmov 0  ;;  %v18398_v34 = vmov 0 }
 0x347   :  { %v14856_v55 = vadd.f32 %v9835_v28, %v3139_v58  ;;  %v9728_v49 = vpop.f32.mrb[179].mxu0  ;;  %8705 = vmatprep.mubr.msk.bf16.mxu1 %vm14852_vm15, %v17790_v38  ;;  %vm14864_vm4 = vmpackc.low %vm3848_vm5, %vm18394_vm8  ;;  %v18399_v34 = vsel %vm14869_vm13, 4294967295, %v18398_v34  ;;  %v14873_v58 = vpop.permute.xlu0 %3777  ;;  %vm4166_vm5 = vcmp.eq.s32.totalorder %v14723_v40, %v18272_v53  ;;  %vm4168_vm8 = vcmp.eq.s32.totalorder %v13979_v35, %v18272_v53 }
 0x348   :  { %v18396_v21 = vsel %vm14864_vm4, 4294967295, %v18395_v21  ;;  %v3144_v4 = vadd.f32 %v9726_v52, %v14045_v32  ;;  %v9729_v61 = vadd.f32 %v9728_v49, %v9727_v19  ;;  %18400 = vst [vmem:[#allocation53_spill] sm:$0xff] %v18399_v34  ;;  %v14890_v49 = vpop.permute.xlu1 %4698  ;;  %vm14892_vm0 = vmpackc.low %vm4168_vm8, %vm4166_vm5  ;;  %v18401_v35 = vmov 0 }
 0x349   :  { %18397 = vst [vmem:[#allocation54_spill] sm:$0xff] %v18396_v21  ;;  %v9836_v28 = vpop.f32.mrb[176].mxu1  ;;  %8643 = vmatmul.mubr.msk.bf16.gmra.mrb[28].mxu0 %vm14864_vm4, %v17790_v38  ;;  %v18402_v35 = vsel %vm14892_vm0, 4294967295, %v18401_v35  ;;  %vm3850_vm4 = vcmp.eq.s32.totalorder %v13997_v47, %v18272_v53  ;;  %vm3855_vm5 = vcmp.eq.s32.totalorder %v14873_v58, %v11735_v8  ;;  %vm18404_vm8 = vcmp.eq.s32.totalorder %v14035_v33, %v11735_v8 }
 0x34a   :  { %v3147_v32 = vadd.f32 %v9729_v61, %v14051_v41  ;;  %v9837_v2 = vpop.f32.mrb[177].mxu1  ;;  %8645 = vmatprep.mubr.msk.bf16.mxu0 %vm14869_vm13, %v17790_v38  ;;  %18403 = vst [vmem:[#allocation56_spill] sm:$0xff] %v18402_v35  ;;  %vm14916_vm13 = vmpackc.low %vm18404_vm8, %vm4171_vm12 }
 0x34b   :  { %v9838_v52 = vadd.f32 %v9837_v2, %v9836_v28  ;;  %v9839_v19 = vpop.f32.mrb[178].mxu1  ;;  %v14899_v41 = vpop.permute.xlu0 %3786  ;;  %vm14937_vm12 = vmpackc.low %vm3857_vm6, %vm3855_vm5  ;;  %vm4175_vm6 = vcmp.eq.s32.totalorder %v14767_v36, %v11735_v8  ;;  %vm3859_vm5 = vcmp.eq.s32.totalorder %v14091_v45, %v11735_v8 }
 0x34c   :  { %v9730_v40 = vpop.f32.mrb[180].mxu0  ;;  %v9840_v21 = vpop.f32.mrb[179].mxu1 }
 0x34d   :  { %v14901_v61 = vadd.f32 %v9838_v52, %v3144_v4  ;;  %v9841_v34 = vadd.f32 %v9840_v21, %v9839_v19  ;;  %v9731_v28 = vpop.f32.mrb[181].mxu0  ;;  %v18405_v21 = vmov 0  ;;  %v14925_v19 = vpop.permute.xlu1 %4384 }
 0x34e   :  { %v9732_v2 = vadd.f32 %v9731_v28, %v9730_v40  ;;  %v9733_v63 = vpop.f32.mrb[182].mxu0  ;;  %8707 = vmatmul.mubr.msk.bf16.gmra.mrb[28].mxu1 %vm14892_vm0, %v17790_v38  ;;  %v18406_v21 = vsel %vm14916_vm13, 4294967295, %v18405_v21  ;;  %vm18408_vm0 = vcmp.eq.s32.totalorder %v3775_v25, %v18272_v53  ;;  %v18409_v40 = vmov 0 }
 0x34f   :  { %18407 = vst [vmem:[#allocation55_spill] sm:$0xff] %v18406_v21  ;;  %v14920_v4 = vadd.f32 %v9841_v34, %v3147_v32  ;;  %v9734_v52 = vpop.f32.mrb[183].mxu0  ;;  %8709 = vmatprep.mubr.msk.bf16.mxu1 %vm14916_vm13, %v17790_v38  ;;  %vm14932_vm15 = vmpackc.low %vm18408_vm0, %vm3850_vm4  ;;  %v18412_v32 = vmov 0  ;;  %v14941_v21 = vpop.permute.xlu0 %3789  ;;  %vm4170_vm4 = vcmp.eq.s32.totalorder %v14017_v18, %v18272_v53  ;;  %vm4172_vm0 = vcmp.eq.s32.totalorder %v14035_v33, %v18272_v53 }
 0x350   :  { %v18410_v40 = vsel %vm14932_vm15, 4294967295, %v18409_v40  ;;  %v3152_v28 = vadd.f32 %v9732_v2, %v14078_v6  ;;  %v9735_v34 = vadd.f32 %v9734_v52, %v9733_v63  ;;  %v18413_v32 = vsel %vm14937_vm12, 4294967295, %v18412_v32  ;;  %vm14958_vm8 = vmpackc.low %vm4172_vm0, %vm4170_vm4 }
 0x351   :  { %18411 = vst [vmem:[#allocation108_spill] sm:$0xff] %v18410_v40  ;;  %18414 = vst [vmem:[#allocation58_spill] sm:$0xff] %v18413_v32  ;;  %v9842_v35 = vpop.f32.mrb[180].mxu1  ;;  %8647 = vmatmul.mubr.msk.bf16.gmra.mrb[32].mxu0 %vm14932_vm15, %v17790_v38  ;;  %v18415_v52 = vmov 0  ;;  %v14968_v32 = vpop.permute.xlu1 %4704  ;;  %vm3861_vm4 = vcmp.eq.s32.totalorder %v14899_v41, %v11735_v8  ;;  %vm18418_vm0 = vcmp.eq.s32.totalorder %v14069_v20, %v11735_v8 }
 0x352   :  { %v3155_v47 = vadd.f32 %v9735_v34, %v14086_v59  ;;  %v9843_v6 = vpop.f32.mrb[181].mxu1  ;;  %8649 = vmatprep.mubr.msk.bf16.mxu0 %vm14937_vm12, %v17790_v38  ;;  %v18416_v52 = vsel %vm14958_vm8, 4294967295, %v18415_v52  ;;  %vm3854_vm12 = vcmp.eq.s32.totalorder %v14873_v58, %v18272_v53  ;;  %vm14983_vm15 = vmpackc.low %vm18418_vm0, %vm4175_vm6  ;;  %vm4174_vm0 = vcmp.eq.s32.totalorder %v14767_v36, %v18272_v53 }
 0x353   :  { %v9844_v25 = vadd.f32 %v9843_v6, %v9842_v35  ;;  %v9845_v63 = vpop.f32.mrb[182].mxu1  ;;  %18417 = vst [vmem:[#allocation57_spill] sm:$0xff] %v18416_v52  ;;  %vm15005_vm6 = vmpackc.low %vm3861_vm4, %vm3859_vm5 }
 0x354   :  { %v9736_v2 = vpop.f32.mrb[184].mxu0  ;;  %v9846_v18 = vpop.f32.mrb[183].mxu1 }
 0x355   :  { %v14966_v33 = vadd.f32 %v9844_v25, %v3152_v28  ;;  %v9847_v59 = vadd.f32 %v9846_v18, %v9845_v63  ;;  %v9737_v34 = vpop.f32.mrb[185].mxu0  ;;  %v18419_v28 = vmov 0  ;;  %v14987_v25 = vpop.permute.xlu0 %4109  ;;  %v18423_v18 = vmov 0 }
 0x356   :  { %v9738_v35 = vadd.f32 %v9737_v34, %v9736_v2  ;;  %v9739_v6 = vpop.f32.mrb[186].mxu0  ;;  %8711 = vmatmul.mubr.msk.bf16.gmra.mrb[32].mxu1 %vm14958_vm8, %v17790_v38  ;;  %v18420_v28 = vsel %vm14983_vm15, 4294967295, %v18419_v28  ;;  %vm18422_vm8 = vcmp.eq.s32.totalorder %v14047_v29, %v18272_v53  ;;  %v18429_v29 = vld [vmem:[#allocation73_spill] sm:$0xff] }
 0x357   :  { %18421 = vst [vmem:[#allocation60_spill] sm:$0xff] %v18420_v28  ;;  %v14989_v63 = vadd.f32 %v9847_v59, %v3155_v47  ;;  %v9740_v2 = vpop.f32.mrb[187].mxu0  ;;  %8713 = vmatprep.mubr.msk.bf16.mxu1 %vm14983_vm15, %v17790_v38  ;;  %vm15000_vm13 = vmpackc.low %vm18422_vm8, %vm3854_vm12  ;;  %v18426_v47 = vmov 0  ;;  %vm4176_vm12 = vcmp.eq.s32.totalorder %v14069_v20, %v18272_v53  ;;  %v18432_v20 = vmov 0 }
 0x358   :  { %v18424_v18 = vsel %vm15000_vm13, 4294967295, %v18423_v18  ;;  %v3160_v34 = vadd.f32 %v9738_v35, %v14123_v23  ;;  %v9741_v52 = vadd.f32 %v9740_v2, %v9739_v6  ;;  %v18427_v47 = vsel %vm15005_vm6, 4294967295, %v18426_v47  ;;  %v18430_v23 = vld [vmem:[#allocation71_spill] sm:$0xff]  ;;  %vm15026_vm4 = vmpackc.low %vm4176_vm12, %vm4174_vm0 }
 0x359   :  { %18425 = vst [vmem:[#allocation59_spill] sm:$0xff] %v18424_v18  ;;  %18428 = vst [vmem:[#allocation62_spill] sm:$0xff] %v18427_v47  ;;  %v9848_v59 = vpop.f32.mrb[184].mxu1  ;;  %8651 = vmatmul.mubr.msk.bf16.gmra.mrb[36].mxu0 %vm15000_vm13, %v17790_v38  ;;  %vm4179_vm5 = vcmp.eq.s32.totalorder %v18430_v23, %v11735_v8  ;;  %v18431_v35 = vld [vmem:[#allocation19_spill] sm:$0xff]  ;;  %v15024_v18 = vpop.permute.xlu1 %4387  ;;  %v18433_v20 = vsel %vm15026_vm4, 4294967295, %v18432_v20  ;;  %vm3863_vm8 = vcmp.eq.s32.totalorder %v14941_v21, %v11735_v8  ;;  %v18435_v47 = vld [vmem:[#allocation22_spill] sm:$0xff] }
 0x35a   :  { %v3163_v58 = vadd.f32 %v9741_v52, %v18429_v29  ;;  %v9849_v28 = vpop.f32.mrb[185].mxu1  ;;  %8653 = vmatprep.mubr.msk.bf16.mxu0 %vm15005_vm6, %v17790_v38  ;;  %18434 = vst [vmem:[#allocation61_spill] sm:$0xff] %v18433_v20  ;;  %vm3860_vm6 = vcmp.eq.s32.totalorder %v14899_v41, %v18272_v53  ;;  %v15034_v52 = vpop.permute.xlu0 %4121  ;;  %vm3865_vm0 = vcmp.eq.s32.totalorder %v18435_v47, %v11735_v8  ;;  %v18437_v41 = vmov 0 }
 0x35b   :  { %v9850_v6 = vadd.f32 %v9849_v28, %v9848_v59  ;;  %v9851_v2 = vpop.f32.mrb[186].mxu1  ;;  %vm18436_vm12 = vcmp.eq.s32.totalorder %v18431_v35, %v11735_v8  ;;  %v18467_v20 = vmov 0 }
 0x35c   :  { %v9742_v36 = vpop.f32.mrb[188].mxu0  ;;  %v9852_v40 = vpop.f32.mrb[187].mxu1  ;;  %vm15051_vm13 = vmpackc.low %vm18436_vm12, %vm4179_vm5 }
 0x35d   :  { %v15036_v29 = vadd.f32 %v9850_v6, %v3160_v34  ;;  %v9853_v28 = vadd.f32 %v9852_v40, %v9851_v2  ;;  %v9743_v59 = vpop.f32.mrb[189].mxu0  ;;  %v18438_v41 = vsel %vm15051_vm13, 4294967295, %v18437_v41  ;;  %v18441_v6 = vmov 0  ;;  %vm15071_vm5 = vmpackc.low %vm3865_vm0, %vm3863_vm8 }
 0x35e   :  { %v9744_v11 = vadd.f32 %v9743_v59, %v9742_v36  ;;  %v9745_v51 = vpop.f32.mrb[190].mxu0  ;;  %8715 = vmatmul.mubr.msk.bf16.gmra.mrb[36].mxu1 %vm15026_vm4, %v17790_v38  ;;  %18439 = vst [vmem:[#allocation64_spill] sm:$0xff] %v18438_v41  ;;  %vm18440_vm4 = vcmp.eq.s32.totalorder %v14091_v45, %v18272_v53  ;;  %vm3867_vm0 = vcmp.eq.s32.totalorder %v14174_v12, %v11735_v8 }
 0x35f   :  { %v15055_v40 = vadd.f32 %v9853_v28, %v3163_v58  ;;  %v9746_v34 = vpop.f32.mrb[191].mxu0  ;;  %8717 = vmatprep.mubr.msk.bf16.mxu1 %vm15051_vm13, %v17790_v38  ;;  %vm15063_vm15 = vmpackc.low %vm3860_vm6, %vm18440_vm4  ;;  %v18444_v58 = vmov 0  ;;  %v15075_v28 = vpop.permute.xlu1 %4707  ;;  %vm4178_vm6 = vcmp.eq.s32.totalorder %v18430_v23, %v18272_v53  ;;  %vm4180_vm4 = vcmp.eq.s32.totalorder %v18431_v35, %v18272_v53 }
 0x360   :  { %v18442_v6 = vsel %vm15063_vm15, 4294967295, %v18441_v6  ;;  %v3168_v2 = vadd.f32 %v9744_v11, %v14150_v22  ;;  %v9747_v36 = vadd.f32 %v9746_v34, %v9745_v51  ;;  %v18445_v58 = vsel %vm15071_vm5, 4294967295, %v18444_v58  ;;  %v3799_v51 = vpop.permute.xlu0 %3798  ;;  %vm15089_vm12 = vmpackc.low %vm4180_vm4, %vm4178_vm6 }
 0x361   :  { %18443 = vst [vmem:[#allocation63_spill] sm:$0xff] %v18442_v6  ;;  %v9854_v59 = vpop.f32.mrb[188].mxu1  ;;  %8655 = vmatmul.mubr.msk.bf16.gmra.mrb[40].mxu0 %vm15063_vm15, %v17790_v38  ;;  %18446 = vst [vmem:[#allocation68_spill] sm:$0xff] %v18445_v58  ;;  %v18447_v35 = vmov 0  ;;  %vm3869_vm8 = vcmp.eq.s32.totalorder %v3799_v51, %v11735_v8  ;;  %vm18451_vm6 = vcmp.eq.s32.totalorder %v14987_v25, %v11735_v8  ;;  %vm18452_vm4 = vcmp.eq.s32.totalorder %v14152_v27, %v11735_v8 }
 0x362   :  { %v3171_v45 = vadd.f32 %v9747_v36, %v14160_v17  ;;  %v9855_v22 = vpop.f32.mrb[189].mxu1  ;;  %8657 = vmatprep.mubr.msk.bf16.mxu0 %vm15071_vm5, %v17790_v38  ;;  %v18448_v35 = vsel %vm15089_vm12, 4294967295, %v18447_v35  ;;  %vm3864_vm5 = vcmp.eq.s32.totalorder %v18435_v47, %v18272_v53  ;;  %vm15111_vm15 = vmpackc.low %vm18452_vm4, %vm18451_vm6  ;;  %v18453_v47 = vmov 0 }
 0x363   :  { %v9856_v11 = vadd.f32 %v9855_v22, %v9854_v59  ;;  %v9857_v34 = vpop.f32.mrb[190].mxu1  ;;  %18449 = vst [vmem:[#allocation66_spill] sm:$0xff] %v18448_v35  ;;  %v18454_v47 = vsel %vm15111_vm15, 4294967295, %v18453_v47  ;;  %vm15130_vm6 = vmpackc.low %vm3869_vm8, %vm3867_vm0  ;;  %vm4182_vm4 = vcmp.eq.s32.totalorder %v14987_v25, %v18272_v53 }
 0x364   :  { %v9858_v23 = vpop.f32.mrb[191].mxu1  ;;  %v9876_v6 = vpop.f32.mrb[192].mxu0  ;;  %18455 = vst [vmem:[#allocation69_spill] sm:$0xff] %v18454_v47  ;;  %v18464_v47 = vld [vmem:[#allocation21_spill] sm:$0xff] }
 0x365   :  { %v15097_v17 = vadd.f32 %v9856_v11, %v3168_v2  ;;  %v9859_v36 = vadd.f32 %v9858_v23, %v9857_v34  ;;  %v9877_v58 = vpop.f32.mrb[193].mxu0 }
 0x366   :  { %v9878_v59 = vadd.f32 %v9877_v58, %v9876_v6  ;;  %v9879_v22 = vpop.f32.mrb[194].mxu0  ;;  %8719 = vmatmul.mubr.msk.bf16.gmra.mrb[40].mxu1 %vm15089_vm12, %v17790_v38  ;;  %v15120_v6 = vpop.permute.xlu1 %4710  ;;  %vm18457_vm12 = vcmp.eq.s32.totalorder %v14941_v21, %v18272_v53  ;;  %v18458_v58 = vmov 0 }
 0x367   :  { %18450 = vst [vmem:[#allocation70_spill] sm:$0xff] %v15097_v17  ;;  %v15115_v2 = vadd.f32 %v9859_v36, %v3171_v45  ;;  %v9880_v11 = vpop.f32.mrb[195].mxu0  ;;  %8721 = vmatprep.mubr.msk.bf16.mxu1 %vm15111_vm15, %v17790_v38  ;;  %vm15125_vm13 = vmpackc.low %vm3864_vm5, %vm18457_vm12  ;;  %v18461_v45 = vmov 0  ;;  %vm4184_vm5 = vcmp.eq.s32.totalorder %v14152_v27, %v18272_v53  ;;  %v15141_v21 = vpop.permute.xlu0 %3801 }
 0x368   :  { %v18459_v58 = vsel %vm15125_vm13, 4294967295, %v18458_v58  ;;  %v3370_v34 = vadd.f32 %v9878_v59, %v14179_v43  ;;  %v9881_v23 = vadd.f32 %v9880_v11, %v9879_v22  ;;  %v18462_v45 = vsel %vm15130_vm6, 4294967295, %v18461_v45  ;;  %v18465_v22 = vld [vmem:[#allocation24_spill] sm:$0xff]  ;;  %v18466_v11 = vld [vmem:[#allocation26_spill] sm:$0xff]  ;;  %vm15153_vm12 = vmpackc.low %vm4184_vm5, %vm4182_vm4 }
 0x369   :  { %18456 = vst [vmem:[#allocation74_spill] sm:$0xff] %v15115_v2  ;;  %18460 = vst [vmem:[#allocation72_spill] sm:$0xff] %v18459_v58  ;;  %v9988_v36 = vpop.f32.mrb[192].mxu1  ;;  %8659 = vmatmul.mubr.msk.bf16.gmra.mrb[44].mxu0 %vm15125_vm13, %v17790_v38  ;;  %vm4187_vm8 = vcmp.eq.s32.totalorder %v18465_v22, %v11735_v8  ;;  %vm4189_vm0 = vcmp.eq.s32.totalorder %v18466_v11, %v11735_v8  ;;  %v18468_v20 = vsel %vm15153_vm12, 4294967295, %v18467_v20  ;;  %v18469_v2 = vmov 0 }
 0x36a   :  { %18463 = vst [vmem:[#allocation76_spill] sm:$0xff] %v18462_v45  ;;  %v3373_v43 = vadd.f32 %v9881_v23, %v18464_v47  ;;  %v9989_v59 = vpop.f32.mrb[193].mxu1  ;;  %8661 = vmatprep.mubr.msk.bf16.mxu0 %vm15130_vm6, %v17790_v38  ;;  %v15151_v35 = vpop.permute.xlu1 %4396  ;;  %vm3866_vm13 = vcmp.eq.s32.totalorder %v14174_v12, %v18272_v53  ;;  %vm3868_vm6 = vcmp.eq.s32.totalorder %v3799_v51, %v18272_v53  ;;  %vm15160_vm15 = vmpackc.low %vm4189_vm0, %vm4187_vm8 }
 0x36b   :  { %v9990_v58 = vadd.f32 %v9989_v59, %v9988_v36  ;;  %v9991_v25 = vpop.f32.mrb[194].mxu1  ;;  %v18470_v2 = vsel %vm15160_vm15, 4294967295, %v18469_v2  ;;  %vm3871_vm4 = vcmp.eq.s32.totalorder %v15141_v21, %v11735_v8  ;;  %v15168_v36 = vpop.permute.xlu0 %3810  ;;  %vm15181_vm5 = vmpackc.low %vm3868_vm6, %vm3866_vm13  ;;  %vm4186_vm13 = vcmp.eq.s32.totalorder %v18465_v22, %v18272_v53 }
 0x36c   :  { %v9882_v27 = vpop.f32.mrb[196].mxu0  ;;  %v9992_v41 = vpop.f32.mrb[195].mxu1  ;;  %vm15186_vm8 = vmpackc.low %vm3873_vm9, %vm3871_vm4  ;;  %vm4188_vm6 = vcmp.eq.s32.totalorder %v18466_v11, %v18272_v53  ;;  %vm4191_vm9 = vcmp.eq.s32.totalorder %v15034_v52, %v11735_v8  ;;  %vm4193_vm0 = vcmp.eq.s32.totalorder %v14246_v31, %v11735_v8  ;;  %v18479_v11 = vmov 0 }
 0x36d   :  { %v3531_v47 = vadd.f32 %v9990_v58, %v3370_v34  ;;  %v9993_v23 = vadd.f32 %v9992_v41, %v9991_v25  ;;  %v9883_v45 = vpop.f32.mrb[197].mxu0  ;;  %v18471_v34 = vmov 0  ;;  %vm15209_vm4 = vmpackc.low %vm4188_vm6, %vm4186_vm13  ;;  %vm3877_vm13 = vcmp.eq.s32.totalorder %v15168_v36, %v11735_v8 }
 0x36e   :  { %v9884_v59 = vadd.f32 %v9883_v45, %v9882_v27  ;;  %v9885_v17 = vpop.f32.mrb[198].mxu0  ;;  %8723 = vmatmul.mubr.msk.bf16.gmra.mrb[44].mxu1 %vm15153_vm12, %v17790_v38  ;;  %v18472_v34 = vsel %vm15181_vm5, 4294967295, %v18471_v34  ;;  %v18474_v45 = vld [vmem:[#allocation23_spill] sm:$0xff]  ;;  %v15193_v12 = vpop.permute.xlu1 %4716  ;;  %v18480_v11 = vsel %vm15209_vm4, 4294967295, %v18479_v11  ;;  %vm3875_vm12 = vcmp.eq.s32.totalorder %v14271_v42, %v11735_v8 }
 0x36f   :  { %3657 = vst [vmem:[#allocation5] sm:$0xff] %v3531_v47  ;;  %v3534_v41 = vadd.f32 %v9993_v23, %v3373_v43  ;;  %v9886_v58 = vpop.f32.mrb[199].mxu0  ;;  %8725 = vmatprep.mubr.msk.bf16.mxu1 %vm15160_vm15, %v17790_v38  ;;  %18473 = vst [vmem:[#allocation75_spill] sm:$0xff] %v18472_v34  ;;  %v18475_v47 = vmov 0  ;;  %v15199_v51 = vpop.permute.xlu0 %3813  ;;  %v18482_v34 = vmov 0 }
 0x370   :  { %v3378_v25 = vadd.f32 %v9884_v59, %v18474_v45  ;;  %v9887_v27 = vadd.f32 %v9886_v58, %v9885_v17  ;;  %v18476_v47 = vsel %vm15186_vm8, 4294967295, %v18475_v47  ;;  %v18478_v17 = vld [vmem:[#allocation77_spill] sm:$0xff]  ;;  %18481 = vst [vmem:[#allocation78_spill] sm:$0xff] %v18480_v11  ;;  %vm15217_vm15 = vmpackc.low %vm4193_vm0, %vm4191_vm9  ;;  %vm4197_vm0 = vcmp.eq.s32.totalorder %v14360_v0, %v11735_v8 }
 0x371   :  { %18477 = vst [vmem:[#allocation80_spill] sm:$0xff] %v18476_v47  ;;  %3658 = vst [vmem:[#allocation5 + $0x8] sm:$0xff] %v3534_v41  ;;  %v9994_v43 = vpop.f32.mrb[196].mxu1  ;;  %8663 = vmatmul.mubr.msk.bf16.gmra.mrb[48].mxu0 %vm15181_vm5, %v17790_v38  ;;  %vm3872_vm5 = vcmp.eq.s32.totalorder %v14227_v57, %v18272_v53  ;;  %v18483_v34 = vsel %vm15217_vm15, 4294967295, %v18482_v34  ;;  %v18491_v57 = vld [vmem:[#allocation79_spill] sm:$0xff] }
 0x372   :  { %v3381_v23 = vadd.f32 %v9887_v27, %v18478_v17  ;;  %v9995_v59 = vpop.f32.mrb[197].mxu1  ;;  %8665 = vmatprep.mubr.msk.bf16.mxu0 %vm15186_vm8, %v17790_v38  ;;  %vm3870_vm8 = vcmp.eq.s32.totalorder %v15141_v21, %v18272_v53  ;;  %18484 = vst [vmem:[#allocation82_spill] sm:$0xff] %v18483_v34  ;;  %vm15246_vm9 = vmpackc.low %vm3877_vm13, %vm3875_vm12 }
 0x373   :  { %v9996_v41 = vadd.f32 %v9995_v59, %v9994_v43  ;;  %v9997_v22 = vpop.f32.mrb[198].mxu1  ;;  %vm15239_vm6 = vmpackc.low %vm3872_vm5, %vm3870_vm8  ;;  %vm4190_vm5 = vcmp.eq.s32.totalorder %v15034_v52, %v18272_v53  ;;  %vm4192_vm8 = vcmp.eq.s32.totalorder %v14246_v31, %v18272_v53 }
 0x374   :  { %v9888_v58 = vpop.f32.mrb[200].mxu0  ;;  %v9998_v45 = vpop.f32.mrb[199].mxu1  ;;  %vm15265_vm13 = vmpackc.low %vm4192_vm8, %vm4190_vm5  ;;  %vm3881_vm5 = vcmp.eq.s32.totalorder %v14402_v62, %v11735_v8  ;;  %vm3879_vm8 = vcmp.eq.s32.totalorder %v15199_v51, %v11735_v8 }
 0x375   :  { %v3539_v27 = vadd.f32 %v9996_v41, %v3378_v25  ;;  %v9999_v17 = vadd.f32 %v9998_v45, %v9997_v22  ;;  %v9889_v47 = vpop.f32.mrb[201].mxu0  ;;  %v15231_v22 = vpop.permute.xlu1 %4399 }
 0x376   :  { %v9890_v43 = vadd.f32 %v9889_v47, %v9888_v58  ;;  %v9891_v59 = vpop.f32.mrb[202].mxu0  ;;  %8727 = vmatmul.mubr.msk.bf16.gmra.mrb[48].mxu1 %vm15209_vm4, %v17790_v38  ;;  %v18485_v47 = vmov 0  ;;  %v15243_v58 = vpop.permute.xlu0 %4133  ;;  %vm4459_vm4 = vcmp.eq.s32.totalorder %v14527_v37, %v11735_v8 }
 0x377   :  { %3659 = vst [vmem:[#allocation5 + $0x10] sm:$0xff] %v3539_v27  ;;  %v3542_v25 = vadd.f32 %v9999_v17, %v3381_v23  ;;  %v9892_v41 = vpop.f32.mrb[203].mxu0  ;;  %8729 = vmatprep.mubr.msk.bf16.mxu1 %vm15217_vm15, %v17790_v38  ;;  %v18486_v47 = vsel %vm15239_vm6, 4294967295, %v18485_v47  ;;  %v18488_v27 = vmov 0 }
 0x378   :  { %18487 = vst [vmem:[#allocation81_spill] sm:$0xff] %v18486_v47  ;;  %v3386_v23 = vadd.f32 %v9890_v43, %v14229_v24  ;;  %v9893_v45 = vadd.f32 %v9892_v41, %v9891_v59  ;;  %v18489_v27 = vsel %vm15246_vm9, 4294967295, %v18488_v27  ;;  %v18492_v43 = vld [vmem:[#allocation29_spill] sm:$0xff]  ;;  %v18493_v47 = vmov 0 }
 0x379   :  { %18490 = vst [vmem:[#allocation86_spill] sm:$0xff] %v18489_v27  ;;  %3660 = vst [vmem:[#allocation5 + $0x18] sm:$0xff] %v3542_v25  ;;  %v10000_v17 = vpop.f32.mrb[200].mxu1  ;;  %8667 = vmatmul.mubr.msk.bf16.gmra.mrb[52].mxu0 %vm15239_vm6, %v17790_v38  ;;  %vm4195_vm12 = vcmp.eq.s32.totalorder %v18492_v43, %v11735_v8  ;;  %v18494_v47 = vsel %vm15265_vm13, 4294967295, %v18493_v47  ;;  %vm3874_vm6 = vcmp.eq.s32.totalorder %v14271_v42, %v18272_v53  ;;  %v15273_v27 = vpop.permute.xlu1 %4719 }
 0x37a   :  { %v3389_v21 = vadd.f32 %v9893_v45, %v18491_v57  ;;  %v10001_v24 = vpop.f32.mrb[201].mxu1  ;;  %8669 = vmatprep.mubr.msk.bf16.mxu0 %vm15246_vm9, %v17790_v38  ;;  %vm3876_vm9 = vcmp.eq.s32.totalorder %v15168_v36, %v18272_v53  ;;  %vm15275_vm15 = vmpackc.low %vm4197_vm0, %vm4195_vm12  ;;  %v18504_v36 = vld [vmem:[#allocation28_spill] sm:$0xff] }
 0x37b   :  { %v10002_v59 = vadd.f32 %v10001_v24, %v10000_v17  ;;  %v10003_v25 = vpop.f32.mrb[202].mxu1  ;;  %v18495_v17 = vmov 0  ;;  %v15283_v24 = vpop.permute.xlu0 %4366  ;;  %vm15297_vm12 = vmpackc.low %vm3876_vm9, %vm3874_vm6  ;;  %vm4196_vm6 = vcmp.eq.s32.totalorder %v14360_v0, %v18272_v53  ;;  %vm4201_vm9 = vcmp.eq.s32.totalorder %v14461_v44, %v11735_v8 }
 0x37c   :  { %v9894_v41 = vpop.f32.mrb[204].mxu0  ;;  %v10004_v52 = vpop.f32.mrb[203].mxu1  ;;  %v18496_v17 = vsel %vm15275_vm15, 4294967295, %v18495_v17  ;;  %vm15302_vm0 = vmpackc.low %vm3881_vm5, %vm3879_vm8  ;;  %vm4199_vm5 = vcmp.eq.s32.totalorder %v15243_v58, %v11735_v8 }
 0x37d   :  { %v3547_v31 = vadd.f32 %v10002_v59, %v3386_v23  ;;  %v10005_v45 = vadd.f32 %v10004_v52, %v10003_v25  ;;  %v9895_v57 = vpop.f32.mrb[205].mxu0  ;;  %v18497_v25 = vmov 0 }
 0x37e   :  { %v9896_v34 = vadd.f32 %v9895_v57, %v9894_v41  ;;  %v9897_v11 = vpop.f32.mrb[206].mxu0  ;;  %8731 = vmatmul.mubr.msk.bf16.gmra.mrb[52].mxu1 %vm15265_vm13, %v17790_v38  ;;  %v18498_v25 = vsel %vm15297_vm12, 4294967295, %v18497_v25  ;;  %v18500_v41 = vld [vmem:[#allocation25_spill] sm:$0xff]  ;;  %vm15333_vm13 = vmpackc.low %vm4201_vm9, %vm4199_vm5  ;;  %vm4781_vm5 = vcmp.eq.s32.totalorder %v14651_v60, %v11735_v8 }
 0x37f   :  { %3661 = vst [vmem:[#allocation5 + $0x20] sm:$0xff] %v3547_v31  ;;  %v3550_v23 = vadd.f32 %v10005_v45, %v3389_v21  ;;  %v9898_v59 = vpop.f32.mrb[207].mxu0  ;;  %8733 = vmatprep.mubr.msk.bf16.mxu1 %vm15275_vm15, %v17790_v38  ;;  %18499 = vst [vmem:[#allocation84_spill] sm:$0xff] %v18498_v25  ;;  %v18501_v21 = vmov 0  ;;  %vm4194_vm15 = vcmp.eq.s32.totalorder %v18492_v43, %v18272_v53  ;;  %v15313_v42 = vpop.permute.xlu0 %4369 }
 0x380   :  { %v3394_v52 = vadd.f32 %v9896_v34, %v18500_v41  ;;  %v9899_v57 = vadd.f32 %v9898_v59, %v9897_v11  ;;  %v18502_v21 = vsel %vm15302_vm0, 4294967295, %v18501_v21  ;;  %vm15325_vm8 = vmpackc.low %vm4196_vm6, %vm4194_vm15  ;;  %v18505_v41 = vmov 0 }
 0x381   :  { %18503 = vst [vmem:[#allocation88_spill] sm:$0xff] %v18502_v21  ;;  %3662 = vst [vmem:[#allocation5 + $0x28] sm:$0xff] %v3550_v23  ;;  %v10006_v31 = vpop.f32.mrb[204].mxu1  ;;  %8671 = vmatmul.mubr.msk.bf16.gmra.mrb[56].mxu0 %vm15297_vm12, %v17790_v38  ;;  %v15323_v23 = vpop.permute.xlu1 %4722  ;;  %v18506_v41 = vsel %vm15325_vm8, 4294967295, %v18505_v41  ;;  %vm3880_vm12 = vcmp.eq.s32.totalorder %v14402_v62, %v18272_v53  ;;  %vm4461_vm15 = vcmp.eq.s32.totalorder %v15283_v24, %v11735_v8 }
 0x382   :  { %v3397_v34 = vadd.f32 %v9899_v57, %v18504_v36  ;;  %v10007_v11 = vpop.f32.mrb[205].mxu1  ;;  %8673 = vmatprep.mubr.msk.bf16.mxu0 %vm15302_vm0, %v17790_v38  ;;  %vm3878_vm0 = vcmp.eq.s32.totalorder %v15199_v51, %v18272_v53  ;;  %vm15362_vm9 = vmpackc.low %vm4461_vm15, %vm4459_vm4  ;;  %vm4779_vm4 = vcmp.eq.s32.totalorder %v14594_v30, %v11735_v8 }
 0x383   :  { %v10008_v45 = vadd.f32 %v10007_v11, %v10006_v31  ;;  %v10009_v43 = vpop.f32.mrb[206].mxu1  ;;  %v18507_v31 = vmov 0  ;;  %vm15355_vm6 = vmpackc.low %vm3880_vm12, %vm3878_vm0  ;;  %vm4200_vm12 = vcmp.eq.s32.totalorder %v14461_v44, %v18272_v53  ;;  %vm4198_vm0 = vcmp.eq.s32.totalorder %v15243_v58, %v18272_v53 }
 0x384   :  { %v9900_v0 = vpop.f32.mrb[208].mxu0  ;;  %v10010_v59 = vpop.f32.mrb[207].mxu1  ;;  %v18508_v31 = vsel %vm15333_vm13, 4294967295, %v18507_v31  ;;  %vm15381_vm15 = vmpackc.low %vm4200_vm12, %vm4198_vm0  ;;  %vm4463_vm12 = vcmp.eq.s32.totalorder %v15313_v42, %v11735_v8  ;;  %vm4465_vm0 = vcmp.eq.s32.totalorder %v14694_v26, %v11735_v8 }
 0x385   :  { %v3555_v57 = vadd.f32 %v10008_v45, %v3394_v52  ;;  %v10011_v36 = vadd.f32 %v10010_v59, %v10009_v43  ;;  %v9901_v21 = vpop.f32.mrb[209].mxu0  ;;  %18509 = vst [vmem:[#allocation87_spill] sm:$0xff] %v18508_v31  ;;  %v15347_v43 = vpop.permute.xlu1 %4408 }
 0x386   :  { %v9902_v11 = vadd.f32 %v9901_v21, %v9900_v0  ;;  %v9903_v25 = vpop.f32.mrb[210].mxu0  ;;  %8735 = vmatmul.mubr.msk.bf16.gmra.mrb[56].mxu1 %vm15325_vm8, %v17790_v38  ;;  %v18510_v21 = vmov 0  ;;  %v15359_v0 = vpop.permute.xlu0 %4378  ;;  %vm4489_vm8 = vcmp.eq.s32.totalorder %v15347_v43, %v11735_v8 }
 0x387   :  { %3663 = vst [vmem:[#allocation5 + $0x30] sm:$0xff] %v3555_v57  ;;  %v3558_v52 = vadd.f32 %v10011_v36, %v3397_v34  ;;  %v9904_v45 = vpop.f32.mrb[211].mxu0  ;;  %8737 = vmatprep.mubr.msk.bf16.mxu1 %vm15333_vm13, %v17790_v38  ;;  %v18511_v21 = vsel %vm15355_vm6, 4294967295, %v18510_v21  ;;  %v18513_v34 = vld [vmem:[#allocation30_spill] sm:$0xff]  ;;  %v18514_v36 = vmov 0  ;;  %vm15391_vm13 = vmpackc.low %vm4781_vm5, %vm4779_vm4 }
 0x388   :  { %18512 = vst [vmem:[#allocation92_spill] sm:$0xff] %v18511_v21  ;;  %v3402_v59 = vadd.f32 %v9902_v11, %v18513_v34  ;;  %v9905_v57 = vadd.f32 %v9904_v45, %v9903_v25  ;;  %v18515_v36 = vsel %vm15362_vm9, 4294967295, %v18514_v36  ;;  %v18517_v45 = vmov 0  ;;  %vm15427_vm5 = vmpackc.low %vm4465_vm0, %vm4463_vm12 }
 0x389   :  { %18516 = vst [vmem:[#allocation90_spill] sm:$0xff] %v18515_v36  ;;  %3664 = vst [vmem:[#allocation5 + $0x38] sm:$0xff] %v3558_v52  ;;  %v10012_v31 = vpop.f32.mrb[208].mxu1  ;;  %8675 = vmatmul.mubr.msk.bf16.gmra.mrb[60].mxu0 %vm15355_vm6, %v17790_v38  ;;  %v18518_v45 = vsel %vm15381_vm15, 4294967295, %v18517_v45  ;;  %vm4458_vm6 = vcmp.eq.s32.totalorder %v14527_v37, %v18272_v53  ;;  %vm4467_vm0 = vcmp.eq.s32.totalorder %v14793_v10, %v11735_v8 }
 0x38a   :  { %v3405_v62 = vadd.f32 %v9905_v57, %v14322_v13  ;;  %v10013_v51 = vpop.f32.mrb[209].mxu1  ;;  %8741 = vmatprep.mubr.msk.bf16.mxu0 %vm15362_vm9, %v17790_v38  ;;  %vm4460_vm9 = vcmp.eq.s32.totalorder %v15283_v24, %v18272_v53  ;;  %v15389_v57 = vpop.permute.xlu1 %4728 }
 0x38b   :  { %v10014_v25 = vadd.f32 %v10013_v51, %v10012_v31  ;;  %v10015_v11 = vpop.f32.mrb[210].mxu1  ;;  %v18519_v31 = vmov 0  ;;  %v15399_v51 = vpop.permute.xlu0 %4689  ;;  %vm15419_vm4 = vmpackc.low %vm4460_vm9, %vm4458_vm6  ;;  %vm4778_vm6 = vcmp.eq.s32.totalorder %v14594_v30, %v18272_v53  ;;  %vm4780_vm9 = vcmp.eq.s32.totalorder %v14651_v60, %v18272_v53 }
 0x38c   :  { %v9906_v52 = vpop.f32.mrb[212].mxu0  ;;  %v10016_v44 = vpop.f32.mrb[211].mxu1  ;;  %v18520_v31 = vsel %vm15391_vm13, 4294967295, %v18519_v31  ;;  %vm15468_vm12 = vmpackc.low %vm4780_vm9, %vm4778_vm6  ;;  %vm18531_vm6 = vcmp.eq.s32.totalorder %v14745_v14, %v11735_v8  ;;  %v18532_v30 = vmov 0 }
 0x38d   :  { %v3563_v13 = vadd.f32 %v10014_v25, %v3402_v59  ;;  %v10017_v58 = vadd.f32 %v10016_v44, %v10015_v11  ;;  %v9907_v34 = vpop.f32.mrb[213].mxu0  ;;  %18521 = vst [vmem:[#allocation94_spill] sm:$0xff] %v18520_v31  ;;  %v11350_v59 = vld [vmem:[%s17184_s1] sm:$0xff]   ;;  %v18522_v44 = vmov 0 }
 0x38e   :  { %v9908_v36 = vadd.f32 %v9907_v34, %v9906_v52  ;;  %v9909_v21 = vpop.f32.mrb[214].mxu0  ;;  %8739 = vmatmul.mubr.msk.bf16.gmra.mrb[60].mxu1 %vm15381_vm15, %v17790_v38  ;;  %v11353_v52 = vld [vmem:[%s17184_s1 + $0x48] sm:$0xff]   ;;  %v18523_v44 = vsel %vm15419_vm4, 4294967295, %v18522_v44 }
 0x38f   :  { %3665 = vst [vmem:[#allocation5 + $0x40] sm:$0xff] %v3563_v13  ;;  %v3566_v25 = vadd.f32 %v10017_v58, %v3405_v62  ;;  %v9910_v11 = vpop.f32.mrb[215].mxu0  ;;  %8805 = vmatprep.mubr.msk.bf16.mxu1 %vm15391_vm13, %v17790_v38  ;;  %18524 = vst [vmem:[#allocation93_spill] sm:$0xff] %v18523_v44  ;;  %v18525_v58 = vmov 0  ;;  %v11357_v44 = vld [vmem:[%s17184_s1 + $0x50] sm:$0xff]   ;;  %vm18530_vm13 = vcmp.eq.s32.totalorder %v15399_v51, %v11735_v8 }
 0x390   :  { %v3410_v62 = vadd.f32 %v9908_v36, %v14378_v7  ;;  %v9911_v13 = vadd.f32 %v9910_v11, %v9909_v21  ;;  %v18526_v58 = vsel %vm15427_vm5, 4294967295, %v18525_v58  ;;  %v15438_v7 = vpop.permute.xlu0 %4701  ;;  %v11354_v21 = vld [vmem:[%s17184_s1 + $0x8] sm:$0xff]   ;;  %v15454_v11 = vpop.permute.xlu1 %4411  ;;  %vm15484_vm9 = vmpackc.low %vm18531_vm6, %vm18530_vm13  ;;  %vm18534_vm13 = vcmp.eq.s32.totalorder %v15313_v42, %v18272_v53 }
 0x391   :  { %18527 = vst [vmem:[#allocation98_spill] sm:$0xff] %v18526_v58  ;;  %3666 = vst [vmem:[#allocation5 + $0x48] sm:$0xff] %v3566_v25  ;;  %v10018_v34 = vpop.f32.mrb[212].mxu1  ;;  %8743 = vmatmul.mubr.msk.bf16.vlgmr.msra.gmra.mrb[64].mxu0 %vm15419_vm4, %v17790_v38  ;;  %v11355_v58 = vld [vmem:[%s17184_s1 + $0xc8] sm:$0xff]   ;;  %vm4469_vm4 = vcmp.eq.s32.totalorder %v15359_v0, %v11735_v8  ;;  %v18533_v30 = vsel %vm15484_vm9, 4294967295, %v18532_v30 }
 0x392   :  { %v3413_v37 = vadd.f32 %v9911_v13, %v14397_v48  ;;  %v10019_v24 = vpop.f32.mrb[213].mxu1  ;;  %8745 = vmatprep.mubr.msk.bf16.mxu0 %vm15427_vm5, %v17790_v38  ;;  %10533 = vmatpush3.bf16.msra.mxu0 %v11350_v59  ;;  %v11352_v48 = vld [vmem:[%s17184_s1 + $0x80] sm:$0xff]   ;;  %vm4464_vm5 = vcmp.eq.s32.totalorder %v14694_v26, %v18272_v53  ;;  %v18538_v26 = vmov 0 }
 0x393   :  { %v10020_v36 = vadd.f32 %v10019_v24, %v10018_v34  ;;  %v10021_v25 = vpop.f32.mrb[214].mxu1  ;;  %10534 = vmatprep.subr.bf16.mxu0 %v11353_v52  ;;  %v18528_v52 = vmov 0  ;;  %vm15511_vm6 = vmpackc.low %vm4464_vm5, %vm18534_vm13  ;;  %vm4784_vm5 = vcmp.eq.s32.totalorder %v14745_v14, %v18272_v53  ;;  %vm4782_vm13 = vcmp.eq.s32.totalorder %v15399_v51, %v18272_v53 }
 0x394   :  { %v9912_v59 = vpop.f32.mrb[216].mxu0  ;;  %v10022_v13 = vpop.f32.mrb[215].mxu1  ;;  %v18529_v52 = vsel %vm15468_vm12, 4294967295, %v18528_v52  ;;  %v18545_v51 = vmov 0 }
 0x395   :  { %v3571_v34 = vadd.f32 %v10020_v36, %v3410_v62  ;;  %v10023_v24 = vadd.f32 %v10022_v13, %v10021_v25  ;;  %v9913_v31 = vpop.f32.mrb[217].mxu0  ;;  %v11358_v36 = vld [vmem:[%s17184_s1 + $0x10] sm:$0xff]  }
 0x396   :  { %v9914_v60 = vadd.f32 %v9913_v31, %v9912_v59  ;;  %v9915_v62 = vpop.f32.mrb[218].mxu0  ;;  %8807 = vmatmul.mubr.msk.bf16.vlgmr.msra.gmra.mrb[64].mxu1 %vm15468_vm12, %v17790_v38  ;;  %10535 = vmatpush3.bf16.msra.mxu0 %v11354_v21  ;;  %v11356_v31 = vld [vmem:[%s17184_s1 + $0x88] sm:$0xff]   ;;  %v11361_v21 = vld [vmem:[%s17184_s1 + $0x58] sm:$0xff]  }
 0x397   :  { %3667 = vst [vmem:[#allocation5 + $0x50] sm:$0xff] %v3571_v34  ;;  %v3574_v25 = vadd.f32 %v10023_v24, %v3413_v37  ;;  %10645 = vmatpush3.bf16.msra.mxu1 %v11352_v48  ;;  %v9916_v13 = vpop.f32.mrb[219].mxu0  ;;  %8809 = vmatprep.mubr.msk.bf16.mxu1 %vm15484_vm9, %v17790_v38  ;;  %v18535_v37 = vmov 0  ;;  %v11359_v34 = vld [vmem:[%s17184_s1 + $0xd0] sm:$0xff]   ;;  %vm15525_vm9 = vmpackc.low %vm4469_vm4, %vm4467_vm0  ;;  %vm18544_vm0 = vcmp.eq.s32.totalorder %v14890_v49, %v11735_v8 }
 0x398   :  { %v18536_v37 = vsel %vm15511_vm6, 4294967295, %v18535_v37  ;;  %v3418_v48 = vadd.f32 %v9914_v60, %v14459_v9  ;;  %v9917_v59 = vadd.f32 %v9916_v13, %v9915_v62  ;;  %10646 = vmatprep.subr.bf16.mxu1 %v11355_v58  ;;  %10536 = vmatprep.subr.bf16.mxu0 %v11357_v44  ;;  %v18539_v26 = vsel %vm15525_vm9, 4294967295, %v18538_v26  ;;  %v15532_v9 = vpop.permute.xlu1 %4731  ;;  %v15538_v44 = vpop.permute.xlu0 %4381  ;;  %v11362_v60 = vld [vmem:[%s17184_s1 + $0x18] sm:$0xff]   ;;  %vm15568_vm4 = vmpackc.low %vm4784_vm5, %vm4782_vm13 }
 0x399   :  { %18537 = vst [vmem:[#allocation96_spill] sm:$0xff] %v18536_v37  ;;  %18540 = vst [vmem:[#allocation100_spill] sm:$0xff] %v18539_v26  ;;  %v10024_v42 = vpop.f32.mrb[216].mxu1  ;;  %8747 = vmatmul.mubr.msk.bf16.gmra.mrb[68].mxu0 %vm15511_vm6, %v17790_v38  ;;  %v11365_v26 = vld [vmem:[%s17184_s1 + $0x60] sm:$0xff]   ;;  %vm18543_vm6 = vcmp.eq.s32.totalorder %v14838_v1, %v11735_v8  ;;  %vm4473_vm5 = vcmp.eq.s32.totalorder %v14925_v19, %v11735_v8  ;;  %vm4471_vm13 = vcmp.eq.s32.totalorder %v15538_v44, %v11735_v8 }
 0x39a   :  { %3668 = vst [vmem:[#allocation5 + $0x58] sm:$0xff] %v3574_v25  ;;  %v3421_v58 = vadd.f32 %v9917_v59, %v14481_v50  ;;  %v10025_v24 = vpop.f32.mrb[217].mxu1  ;;  %8749 = vmatprep.mubr.msk.bf16.mxu0 %vm15525_vm9, %v17790_v38  ;;  %10537 = vmatpush3.bf16.msra.mxu0 %v11358_v36  ;;  %v11360_v50 = vld [vmem:[%s17184_s1 + $0x90] sm:$0xff]   ;;  %v11363_v59 = vld [vmem:[%s17184_s1 + $0xd8] sm:$0xff]   ;;  %vm4466_vm9 = vcmp.eq.s32.totalorder %v14793_v10, %v18272_v53  ;;  %vm15580_vm12 = vmpackc.low %vm18544_vm0, %vm18543_vm6  ;;  %v18550_v10 = vmov 0 }
 0x39b   :  { %v10026_v62 = vadd.f32 %v10025_v24, %v10024_v42  ;;  %v10027_v25 = vpop.f32.mrb[218].mxu1  ;;  %10647 = vmatpush3.bf16.msra.mxu1 %v11356_v31  ;;  %10538 = vmatprep.subr.bf16.mxu0 %v11361_v21  ;;  %v18541_v31 = vmov 0  ;;  %v18546_v51 = vsel %vm15580_vm12, 4294967295, %v18545_v51  ;;  %vm18547_vm6 = vcmp.eq.s32.totalorder %v15359_v0, %v18272_v53 }
 0x39c   :  { %v9918_v13 = vpop.f32.mrb[220].mxu0  ;;  %v10028_v36 = vpop.f32.mrb[219].mxu1  ;;  %10648 = vmatprep.subr.bf16.mxu1 %v11359_v34  ;;  %v18542_v31 = vsel %vm15568_vm4, 4294967295, %v18541_v31  ;;  %vm15613_vm0 = vmpackc.low %vm18547_vm6, %vm4466_vm9  ;;  %vm4786_vm9 = vcmp.eq.s32.totalorder %v14838_v1, %v18272_v53  ;;  %vm4788_vm6 = vcmp.eq.s32.totalorder %v14890_v49, %v18272_v53  ;;  %v18558_v1 = vmov 0 }
 0x39d   :  { %v3579_v21 = vadd.f32 %v10026_v62, %v3418_v48  ;;  %v10029_v34 = vadd.f32 %v10028_v36, %v10027_v25  ;;  %v9919_v42 = vpop.f32.mrb[221].mxu0  ;;  %v15588_v14 = vpop.permute.xlu0 %4390  ;;  %v11366_v62 = vld [vmem:[%s17184_s1 + $0x20] sm:$0xff]  }
 0x39e   :  { %v9920_v48 = vadd.f32 %v9919_v42, %v9918_v13  ;;  %v9921_v24 = vpop.f32.mrb[222].mxu0  ;;  %8811 = vmatmul.mubr.msk.bf16.gmra.mrb[68].mxu1 %vm15568_vm4, %v17790_v38  ;;  %10539 = vmatpush3.bf16.msra.mxu0 %v11362_v60  ;;  %v15599_v37 = vpop.permute.xlu1 %4734  ;;  %v11364_v13 = vld [vmem:[%s17184_s1 + $0x98] sm:$0xff]   ;;  %v11369_v60 = vld [vmem:[%s17184_s1 + $0x68] sm:$0xff]   ;;  %vm18557_vm4 = vcmp.eq.s32.totalorder %v14968_v32, %v11735_v8 }
 0x39f   :  { %3669 = vst [vmem:[#allocation5 + $0x60] sm:$0xff] %v3579_v21  ;;  %v3582_v25 = vadd.f32 %v10029_v34, %v3421_v58  ;;  %v9922_v36 = vpop.f32.mrb[223].mxu0  ;;  %8813 = vmatprep.mubr.msk.bf16.mxu1 %vm15580_vm12, %v17790_v38  ;;  %10649 = vmatpush3.bf16.msra.mxu1 %v11360_v50  ;;  %v18548_v58 = vmov 0  ;;  %v11367_v34 = vld [vmem:[%s17184_s1 + $0xe0] sm:$0xff]   ;;  %vm15627_vm12 = vmpackc.low %vm4473_vm5, %vm4471_vm13  ;;  %vm4472_vm5 = vcmp.eq.s32.totalorder %v14925_v19, %v18272_v53  ;;  %v18562_v19 = vmov 0 }
 0x3a0   :  { %v18549_v58 = vsel %vm15613_vm0, 4294967295, %v18548_v58  ;;  %v3426_v50 = vadd.f32 %v9920_v48, %v14543_v46  ;;  %v9923_v21 = vadd.f32 %v9922_v36, %v9921_v24  ;;  %10650 = vmatprep.subr.bf16.mxu1 %v11363_v59  ;;  %10540 = vmatprep.subr.bf16.mxu0 %v11365_v26  ;;  %v18551_v10 = vsel %vm15627_vm12, 4294967295, %v18550_v10  ;;  %v18553_v26 = vld [vmem:[#allocation38_spill] sm:$0xff]  ;;  %v11370_v48 = vld [vmem:[%s17184_s1 + $0x28] sm:$0xff]   ;;  %vm15668_vm13 = vmpackc.low %vm4788_vm6, %vm4786_vm9 }
 0x3a1   :  { %18552 = vst [vmem:[#allocation99_spill] sm:$0xff] %v18551_v10  ;;  %3670 = vst [vmem:[#allocation5 + $0x68] sm:$0xff] %v3582_v25  ;;  %v10030_v0 = vpop.f32.mrb[220].mxu1  ;;  %8751 = vmatmul.mubr.msk.bf16.gmra.mrb[72].mxu0 %vm15613_vm0, %v17790_v38  ;;  %v15638_v46 = vpop.permute.xlu0 %4393  ;;  %v11371_v10 = vld [vmem:[%s17184_s1 + $0xe8] sm:$0xff]   ;;  %vm18556_vm0 = vcmp.eq.s32.totalorder %v15438_v7, %v11735_v8  ;;  %vm4475_vm9 = vcmp.eq.s32.totalorder %v15024_v18, %v11735_v8  ;;  %vm4477_vm6 = vcmp.eq.s32.totalorder %v15588_v14, %v11735_v8 }
 0x3a2   :  { %v3429_v59 = vadd.f32 %v9923_v21, %v18553_v26  ;;  %v10031_v42 = vpop.f32.mrb[221].mxu1  ;;  %8753 = vmatprep.mubr.msk.bf16.mxu0 %vm15627_vm12, %v17790_v38  ;;  %10541 = vmatpush3.bf16.msra.mxu0 %v11366_v62  ;;  %v15651_v36 = vpop.permute.xlu1 %4420  ;;  %v11368_v21 = vld [vmem:[%s17184_s1 + $0xa0] sm:$0xff]   ;;  %vm4470_vm12 = vcmp.eq.s32.totalorder %v15538_v44, %v18272_v53  ;;  %vm15682_vm15 = vmpackc.low %vm18557_vm4, %vm18556_vm0  ;;  %vm4790_vm0 = vcmp.eq.s32.totalorder %v15438_v7, %v18272_v53 }
 0x3a3   :  { %v10032_v24 = vadd.f32 %v10031_v42, %v10030_v0  ;;  %v10033_v25 = vpop.f32.mrb[222].mxu1  ;;  %10651 = vmatpush3.bf16.msra.mxu1 %v11364_v13  ;;  %10542 = vmatprep.subr.bf16.mxu0 %v11369_v60  ;;  %v11373_v0 = vld [vmem:[%s17184_s1 + $0x70] sm:$0xff]   ;;  %v18554_v13 = vmov 0  ;;  %v18559_v1 = vsel %vm15682_vm15, 4294967295, %v18558_v1  ;;  %vm15711_vm4 = vmpackc.low %vm4472_vm5, %vm4470_vm12  ;;  %vm4792_vm5 = vcmp.eq.s32.totalorder %v14968_v32, %v18272_v53 }
 0x3a4   :  { %v9924_v62 = vpop.f32.mrb[224].mxu0  ;;  %v10034_v26 = vpop.f32.mrb[223].mxu1  ;;  %10652 = vmatprep.subr.bf16.mxu1 %v11367_v34  ;;  %v18555_v13 = vsel %vm15668_vm13, 4294967295, %v18554_v13  ;;  %vm15727_vm12 = vmpackc.low %vm4477_vm6, %vm4475_vm9  ;;  %vm4474_vm9 = vcmp.eq.s32.totalorder %v15024_v18, %v18272_v53  ;;  %v18569_v32 = vmov 0  ;;  %v18573_v18 = vmov 0 }
 0x3a5   :  { %v3587_v60 = vadd.f32 %v10032_v24, %v3426_v50  ;;  %v10035_v34 = vadd.f32 %v10034_v26, %v10033_v25  ;;  %v9925_v42 = vpop.f32.mrb[225].mxu0  ;;  %v11374_v24 = vld [vmem:[%s17184_s1 + $0x30] sm:$0xff]   ;;  %v18563_v19 = vsel %vm15727_vm12, 4294967295, %v18562_v19  ;;  %vm15766_vm6 = vmpackc.low %vm4792_vm5, %vm4790_vm0  ;;  %vm4479_vm0 = vcmp.eq.s32.totalorder %v15638_v46, %v11735_v8 }
 0x3a6   :  { %v9926_v49 = vadd.f32 %v9925_v42, %v9924_v62  ;;  %v9927_v50 = vpop.f32.mrb[226].mxu0  ;;  %8815 = vmatmul.mubr.msk.bf16.gmra.mrb[72].mxu1 %vm15668_vm13, %v17790_v38  ;;  %10543 = vmatpush3.bf16.msra.mxu0 %v11370_v48  ;;  %v11372_v62 = vld [vmem:[%s17184_s1 + $0xa8] sm:$0xff]   ;;  %v11377_v48 = vld [vmem:[%s17184_s1 + $0x78] sm:$0xff]   ;;  %v11375_v42 = vld [vmem:[%s17184_s1 + $0xf0] sm:$0xff]   ;;  %18564 = vst [vmem:[#allocation104_spill] sm:$0xff] %v18563_v19  ;;  %vm4481_vm5 = vcmp.eq.s32.totalorder %v15151_v35, %v11735_v8 }
 0x3a7   :  { %3671 = vst [vmem:[#allocation5 + $0x70] sm:$0xff] %v3587_v60  ;;  %v3590_v25 = vadd.f32 %v10035_v34, %v3429_v59  ;;  %v9928_v26 = vpop.f32.mrb[227].mxu0  ;;  %8817 = vmatprep.mubr.msk.bf16.mxu1 %vm15682_vm15, %v17790_v38  ;;  %10653 = vmatpush3.bf16.msra.mxu1 %v11368_v21  ;;  %v18560_v59 = vmov 0  ;;  %v15715_v60 = vpop.permute.xlu0 %4402  ;;  %v11381_v19 = vld [vmem:[%s17184_s1 + $0x140] sm:$0xff]   ;;  %vm18568_vm15 = vcmp.eq.s32.totalorder %v15120_v6, %v11735_v8 }
 0x3a8   :  { %v18561_v59 = vsel %vm15711_vm4, 4294967295, %v18560_v59  ;;  %v3434_v21 = vadd.f32 %v9926_v49, %v14627_v16  ;;  %v9929_v34 = vadd.f32 %v9928_v26, %v9927_v50  ;;  %10654 = vmatprep.subr.bf16.mxu1 %v11371_v10  ;;  %10544 = vmatprep.subr.bf16.mxu0 %v11373_v0  ;;  %v15734_v16 = vpop.permute.xlu1 %4740  ;;  %v11378_v49 = vld [vmem:[%s17184_s1 + $0x38] sm:$0xff]  }
 0x3a9   :  { %3672 = vst [vmem:[#allocation5 + $0x78] sm:$0xff] %v3590_v25  ;;  %v10036_v44 = vpop.f32.mrb[224].mxu1  ;;  %8755 = vmatmul.mubr.msk.bf16.gmra.mrb[76].mxu0 %vm15711_vm4, %v17790_v38  ;;  %vm18567_vm4 = vcmp.eq.s32.totalorder %v15075_v28, %v11735_v8 }
 0x3aa   :  { %v3437_v10 = vadd.f32 %v9929_v34, %v14646_v15  ;;  %v10037_v0 = vpop.f32.mrb[225].mxu1  ;;  %8757 = vmatprep.mubr.msk.bf16.mxu0 %vm15727_vm12, %v17790_v38  ;;  %10545 = vmatpush3.bf16.msra.mxu0 %v11374_v24  ;;  %v11376_v15 = vld [vmem:[%s17184_s1 + $0xb0] sm:$0xff]   ;;  %v11379_v34 = vld [vmem:[%s17184_s1 + $0xf8] sm:$0xff]   ;;  %vm4476_vm12 = vcmp.eq.s32.totalorder %v15588_v14, %v18272_v53  ;;  %vm15780_vm13 = vmpackc.low %vm18568_vm15, %vm18567_vm4 }
 0x3ab   :  { %v10038_v50 = vadd.f32 %v10037_v0, %v10036_v44  ;;  %v10039_v25 = vpop.f32.mrb[226].mxu1  ;;  %10655 = vmatpush3.bf16.msra.mxu1 %v11372_v62  ;;  %10546 = vmatprep.subr.bf16.mxu0 %v11377_v48  ;;  %v18565_v62 = vmov 0  ;;  %v18570_v32 = vsel %vm15780_vm13, 4294967295, %v18569_v32  ;;  %v15788_v7 = vpop.permute.xlu0 %4713  ;;  %vm15807_vm15 = vmpackc.low %vm4476_vm12, %vm4474_vm9  ;;  %vm4794_vm12 = vcmp.eq.s32.totalorder %v15075_v28, %v18272_v53 }
 0x3ac   :  { %v9930_v26 = vpop.f32.mrb[228].mxu0  ;;  %v10040_v24 = vpop.f32.mrb[227].mxu1  ;;  %10656 = vmatprep.subr.bf16.mxu1 %v11375_v42  ;;  %v18566_v62 = vsel %vm15766_vm6, 4294967295, %v18565_v62  ;;  %vm15821_vm4 = vmpackc.low %vm4481_vm5, %vm4479_vm0  ;;  %vm4796_vm9 = vcmp.eq.s32.totalorder %v15120_v6, %v18272_v53  ;;  %vm4485_vm5 = vcmp.eq.s32.totalorder %v15715_v60, %v11735_v8  ;;  %vm4483_vm0 = vcmp.eq.s32.totalorder %v15231_v22, %v11735_v8 }
 0x3ad   :  { %v3595_v48 = vadd.f32 %v10038_v50, %v3434_v21  ;;  %v10041_v42 = vadd.f32 %v10040_v24, %v10039_v25  ;;  %v9931_v44 = vpop.f32.mrb[229].mxu0  ;;  %v15796_v24 = vpop.permute.xlu1 %4423  ;;  %v18574_v18 = vsel %vm15821_vm4, 4294967295, %v18573_v18 }
 0x3ae   :  { %v9932_v21 = vadd.f32 %v9931_v44, %v9930_v26  ;;  %v9933_v0 = vpop.f32.mrb[230].mxu0  ;;  %8819 = vmatmul.mubr.msk.bf16.gmra.mrb[76].mxu1 %vm15766_vm6, %v17790_v38  ;;  %10547 = vmatpush3.bf16.msra.mxu0 %v11378_v49  ;;  %v11380_v26 = vld [vmem:[%s17184_s1 + $0xb8] sm:$0xff]  }
 0x3af   :  { %3673 = vst [vmem:[#allocation5 + $0x80] sm:$0xff] %v3595_v48  ;;  %v3598_v50 = vadd.f32 %v10041_v42, %v3437_v10  ;;  %v9934_v25 = vpop.f32.mrb[231].mxu0  ;;  %8821 = vmatprep.mubr.msk.bf16.mxu1 %vm15780_vm13, %v17790_v38  ;;  %10657 = vmatpush3.bf16.msra.mxu1 %v11376_v15  ;;  %v18571_v10 = vmov 0  ;;  %v11383_v15 = vld [vmem:[%s17184_s1 + $0x1c0] sm:$0xff]  }
 0x3b0   :  { %v18572_v10 = vsel %vm15807_vm15, 4294967295, %v18571_v10  ;;  %v3442_v49 = vadd.f32 %v9932_v21, %v14704_v3  ;;  %v9935_v48 = vadd.f32 %v9934_v25, %v9933_v0  ;;  %10658 = vmatprep.subr.bf16.mxu1 %v11379_v34  ;;  %10756 = vmatprep.subr.bf16.mxu0 %v11381_v19  ;;  %v15840_v34 = vpop.permute.xlu0 %4725 }
 0x3b1   :  { %3674 = vst [vmem:[#allocation5 + $0x88] sm:$0xff] %v3598_v50  ;;  %v10042_v14 = vpop.f32.mrb[228].mxu1  ;;  %8759 = vmatmul.mubr.msk.bf16.gmra.mrb[80].mxu0 %vm15807_vm15, %v17790_v38  ;;  %vm15842_vm15 = vmpackc.low %vm4796_vm9, %vm4794_vm12  ;;  %v15850_v25 = vpop.permute.xlu1 %4743  ;;  %vm18577_vm12 = vcmp.eq.s32.totalorder %v15788_v7, %v11735_v8  ;;  %vm18578_vm9 = vcmp.eq.s32.totalorder %v15193_v12, %v11735_v8 }
 0x3b2   :  { %v3445_v3 = vadd.f32 %v9935_v48, %v14725_v56  ;;  %v10043_v19 = vpop.f32.mrb[229].mxu1  ;;  %8761 = vmatprep.mubr.msk.bf16.mxu0 %vm15821_vm4, %v17790_v38  ;;  %v18575_v56 = vmov 0  ;;  %vm4478_vm4 = vcmp.eq.s32.totalorder %v15638_v46, %v18272_v53  ;;  %vm15860_vm13 = vmpackc.low %vm18578_vm9, %vm18577_vm12  ;;  %vm18581_vm12 = vcmp.eq.s32.totalorder %v15151_v35, %v18272_v53 }
 0x3b3   :  { %v10044_v42 = vadd.f32 %v10043_v19, %v10042_v14  ;;  %v10045_v28 = vpop.f32.mrb[230].mxu1  ;;  %10659 = vmatpush3.bf16.msra.mxu1 %v11380_v26  ;;  %v18576_v56 = vsel %vm15842_vm15, 4294967295, %v18575_v56  ;;  %v18579_v26 = vmov 0  ;;  %vm15878_vm9 = vmpackc.low %vm18581_vm12, %vm4478_vm4  ;;  %v18582_v19 = vmov 0 }
 0x3b4   :  { %v9936_v44 = vpop.f32.mrb[232].mxu0  ;;  %v10046_v6 = vpop.f32.mrb[231].mxu1  ;;  %10868 = vmatprep.subr.bf16.mxu1 %v11383_v15  ;;  %v18580_v26 = vsel %vm15860_vm13, 4294967295, %v18579_v26  ;;  %v18583_v19 = vsel %vm15878_vm9, 4294967295, %v18582_v19  ;;  %vm4798_vm4 = vcmp.eq.s32.totalorder %v15788_v7, %v18272_v53 }
 0x3b5   :  { %v3603_v21 = vadd.f32 %v10044_v42, %v3442_v49  ;;  %v10047_v0 = vadd.f32 %v10046_v6, %v10045_v28  ;;  %v9937_v50 = vpop.f32.mrb[233].mxu0  ;;  %v15894_v35 = vpop.permute.xlu0 %4405 }
 0x3b6   :  { %v9938_v49 = vadd.f32 %v9937_v50, %v9936_v44  ;;  %v9939_v48 = vpop.f32.mrb[234].mxu0  ;;  %8823 = vmatmul.mubr.msk.bf16.gmra.mrb[80].mxu1 %vm15842_vm15, %v17790_v38  ;;  %vm15883_vm15 = vmpackc.low %vm4485_vm5, %vm4483_vm0  ;;  %vm4803_vm0 = vcmp.eq.s32.totalorder %v15273_v27, %v11735_v8  ;;  %vm4805_vm5 = vcmp.eq.s32.totalorder %v15323_v23, %v11735_v8  ;;  %vm4487_vm12 = vcmp.eq.s32.totalorder %v15894_v35, %v11735_v8 }
 0x3b7   :  { %3675 = vst [vmem:[#allocation5 + $0x90] sm:$0xff] %v3603_v21  ;;  %v3606_v15 = vadd.f32 %v10047_v0, %v3445_v3  ;;  %v9940_v14 = vpop.f32.mrb[235].mxu0  ;;  %8825 = vmatprep.mubr.msk.bf16.mxu1 %vm15860_vm13, %v17790_v38  ;;  %v18584_v3 = vmov 0  ;;  %vm4800_vm13 = vcmp.eq.s32.totalorder %v15193_v12, %v18272_v53  ;;  %v15904_v21 = vpop.permute.xlu1 %4746  ;;  %vm15914_vm6 = vmpackc.low %vm4805_vm5, %vm4803_vm0  ;;  %vm4802_vm5 = vcmp.eq.s32.totalorder %v15273_v27, %v18272_v53 }
 0x3b8   :  { %v3450_v42 = vadd.f32 %v9938_v49, %v14769_v5  ;;  %v9941_v28 = vadd.f32 %v9940_v14, %v9939_v48  ;;  %v18585_v3 = vsel %vm15883_vm15, 4294967295, %v18584_v3  ;;  %vm15943_vm0 = vmpackc.low %vm4489_vm8, %vm4487_vm12  ;;  %vm4807_vm8 = vcmp.eq.s32.totalorder %v15840_v34, %v11735_v8 }
 0x3b9   :  { %3676 = vst [vmem:[#allocation5 + $0x98] sm:$0xff] %v3606_v15  ;;  %v10048_v44 = vpop.f32.mrb[232].mxu1  ;;  %8763 = vmatmul.mubr.msk.bf16.gmra.mrb[84].mxu0 %vm15878_vm9, %v17790_v38  ;;  %vm15908_vm9 = vmpackc.low %vm4800_vm13, %vm4798_vm4  ;;  %v18588_v15 = vmov 0  ;;  %v15922_v14 = vpop.permute.xlu0 %4414  ;;  %vm18590_vm13 = vcmp.eq.s32.totalorder %v15715_v60, %v18272_v53  ;;  %vm4809_vm12 = vcmp.eq.s32.totalorder %v15389_v57, %v11735_v8 }
 0x3ba   :  { %v3453_v5 = vadd.f32 %v9941_v28, %v14788_v39  ;;  %v10049_v46 = vpop.f32.mrb[233].mxu1  ;;  %8765 = vmatprep.mubr.msk.bf16.mxu0 %vm15883_vm15, %v17790_v38  ;;  %v18586_v39 = vmov 0  ;;  %vm4482_vm15 = vcmp.eq.s32.totalorder %v15231_v22, %v18272_v53  ;;  %v18589_v15 = vsel %vm15914_vm6, 4294967295, %v18588_v15 }
 0x3bb   :  { %v10050_v6 = vadd.f32 %v10049_v46, %v10048_v44  ;;  %v10051_v12 = vpop.f32.mrb[234].mxu1  ;;  %v18587_v39 = vsel %vm15908_vm9, 4294967295, %v18586_v39  ;;  %vm15938_vm4 = vmpackc.low %vm18590_vm13, %vm4482_vm15  ;;  %vm4804_vm15 = vcmp.eq.s32.totalorder %v15323_v23, %v18272_v53  ;;  %v18597_v23 = vmov 0 }
 0x3bc   :  { %v9942_v7 = vpop.f32.mrb[236].mxu0  ;;  %v10052_v0 = vpop.f32.mrb[235].mxu1  ;;  %vm15964_vm13 = vmpackc.low %vm4804_vm15, %vm4802_vm5  ;;  %vm4491_vm5 = vcmp.eq.s32.totalorder %v15454_v11, %v11735_v8  ;;  %vm4493_vm15 = vcmp.eq.s32.totalorder %v15922_v14, %v11735_v8 }
 0x3bd   :  { %v3611_v50 = vadd.f32 %v10050_v6, %v3450_v42  ;;  %v10053_v49 = vadd.f32 %v10052_v0, %v10051_v12  ;;  %v9943_v48 = vpop.f32.mrb[237].mxu0  ;;  %v15930_v6 = vpop.permute.xlu1 %4432  ;;  %v18591_v12 = vmov 0  ;;  %v18594_v0 = vmov 0 }
 0x3be   :  { %v9944_v28 = vadd.f32 %v9943_v48, %v9942_v7  ;;  %v9945_v44 = vpop.f32.mrb[238].mxu0  ;;  %8827 = vmatmul.mubr.msk.bf16.gmra.mrb[84].mxu1 %vm15908_vm9, %v17790_v38  ;;  %v18592_v12 = vsel %vm15938_vm4, 4294967295, %v18591_v12  ;;  %v18595_v0 = vsel %vm15943_vm0, 4294967295, %v18594_v0  ;;  %v15962_v60 = vpop.permute.xlu0 %4417  ;;  %v18598_v23 = vsel %vm15964_vm13, 4294967295, %v18597_v23 }
 0x3bf   :  { %3677 = vst [vmem:[#allocation5 + $0xa0] sm:$0xff] %v3611_v50  ;;  %v3614_v42 = vadd.f32 %v10053_v49, %v3453_v5  ;;  %v9946_v46 = vpop.f32.mrb[239].mxu0  ;;  %8829 = vmatprep.mubr.msk.bf16.mxu1 %vm15914_vm6, %v17790_v38  ;;  %18593 = vst [vmem:[#allocation102_spill] sm:$0xff] %v18592_v12  ;;  %vm4495_vm9 = vcmp.eq.s32.totalorder %v15962_v60, %v11735_v8 }
 0x3c0   :  { %v3458_v7 = vadd.f32 %v9944_v28, %v14836_v54  ;;  %v9947_v5 = vadd.f32 %v9946_v46, %v9945_v44  ;;  %18596 = vst [vmem:[#allocation106_spill] sm:$0xff] %v18595_v0  ;;  %18599 = vst [vmem:[#allocation105_spill] sm:$0xff] %v18598_v23 }
 0x3c1   :  { %3678 = vst [vmem:[#allocation5 + $0xa8] sm:$0xff] %v3614_v42  ;;  %v10054_v50 = vpop.f32.mrb[236].mxu1  ;;  %8767 = vmatmul.mubr.msk.bf16.gmra.mrb[88].mxu0 %vm15938_vm4, %v17790_v38  ;;  %vm4488_vm4 = vcmp.eq.s32.totalorder %v15347_v43, %v18272_v53  ;;  %v15972_v46 = vpop.permute.xlu1 %4752  ;;  %vm15974_vm6 = vmpackc.low %vm4809_vm12, %vm4807_vm8 }
 0x3c2   :  { %v3461_v22 = vadd.f32 %v9947_v5, %v14856_v55  ;;  %v10055_v54 = vpop.f32.mrb[237].mxu1  ;;  %8769 = vmatprep.mubr.msk.bf16.mxu0 %vm15943_vm0, %v17790_v38  ;;  %vm4486_vm0 = vcmp.eq.s32.totalorder %v15894_v35, %v18272_v53  ;;  %v18600_v5 = vmov 0  ;;  %vm15999_vm12 = vmpackc.low %vm4493_vm15, %vm4491_vm5  ;;  %v16010_v43 = vpop.permute.xlu0 %4426  ;;  %vm4813_vm5 = vcmp.eq.s32.totalorder %v15599_v37, %v11735_v8 }
 0x3c3   :  { %v10056_v49 = vadd.f32 %v10055_v54, %v10054_v50  ;;  %v10057_v27 = vpop.f32.mrb[238].mxu1  ;;  %v18601_v5 = vsel %vm15974_vm6, 4294967295, %v18600_v5  ;;  %vm15994_vm8 = vmpackc.low %vm4488_vm4, %vm4486_vm0  ;;  %vm4808_vm4 = vcmp.eq.s32.totalorder %v15389_v57, %v18272_v53  ;;  %vm4811_vm0 = vcmp.eq.s32.totalorder %v15532_v9, %v11735_v8 }
 0x3c4   :  { %v9948_v48 = vpop.f32.mrb[240].mxu0  ;;  %v10058_v28 = vpop.f32.mrb[239].mxu1  ;;  %18602 = vst [vmem:[#allocation109_spill] sm:$0xff] %v18601_v5 }
 0x3c5   :  { %v3619_v55 = vadd.f32 %v10056_v49, %v3458_v7  ;;  %v10059_v44 = vadd.f32 %v10058_v28, %v10057_v27  ;;  %v9949_v42 = vpop.f32.mrb[241].mxu0  ;;  %v18603_v27 = vmov 0 }
 0x3c6   :  { %v9950_v50 = vadd.f32 %v9949_v42, %v9948_v48  ;;  %v9951_v54 = vpop.f32.mrb[242].mxu0  ;;  %8831 = vmatmul.mubr.msk.bf16.gmra.mrb[88].mxu1 %vm15964_vm13, %v17790_v38  ;;  %v18604_v27 = vsel %vm15994_vm8, 4294967295, %v18603_v27  ;;  %v16020_v42 = vpop.permute.xlu1 %4435  ;;  %vm16030_vm13 = vmpackc.low %vm4813_vm5, %vm4811_vm0 }
 0x3c7   :  { %3679 = vst [vmem:[#allocation5 + $0xb0] sm:$0xff] %v3619_v55  ;;  %v3622_v7 = vadd.f32 %v10059_v44, %v3461_v22  ;;  %v9952_v49 = vpop.f32.mrb[243].mxu0  ;;  %8833 = vmatprep.mubr.msk.bf16.mxu1 %vm15974_vm6, %v17790_v38  ;;  %18605 = vst [vmem:[#allocation107_spill] sm:$0xff] %v18604_v27  ;;  %v18606_v22 = vmov 0  ;;  %vm4806_vm6 = vcmp.eq.s32.totalorder %v15840_v34, %v18272_v53  ;;  %v18743_v27 = vld [vmem:[#allocation46_spill] sm:$0xff] }
 0x3c8   :  { %v3466_v48 = vadd.f32 %v9950_v50, %v14901_v61  ;;  %v9953_v28 = vadd.f32 %v9952_v49, %v9951_v54  ;;  %v18607_v22 = vsel %vm15999_vm12, 4294967295, %v18606_v22  ;;  %vm16022_vm15 = vmpackc.low %vm4808_vm4, %vm4806_vm6  ;;  %v18609_v54 = vmov 0 }
 0x3c9   :  { %18608 = vst [vmem:[#allocation111_spill] sm:$0xff] %v18607_v22  ;;  %3680 = vst [vmem:[#allocation5 + $0xb8] sm:$0xff] %v3622_v7  ;;  %v10060_v55 = vpop.f32.mrb[240].mxu1  ;;  %8771 = vmatmul.mubr.msk.bf16.gmra.mrb[92].mxu0 %vm15994_vm8, %v17790_v38  ;;  %v18610_v54 = vsel %vm16022_vm15, 4294967295, %v18609_v54  ;;  %vm4490_vm8 = vcmp.eq.s32.totalorder %v15454_v11, %v18272_v53  ;;  %vm4497_vm6 = vcmp.eq.s32.totalorder %v15651_v36, %v11735_v8  ;;  %v18729_v22 = vld [vmem:[#allocation41_spill] sm:$0xff] }
 0x3ca   :  { %v3469_v61 = vadd.f32 %v9953_v28, %v14920_v4  ;;  %v10061_v35 = vpop.f32.mrb[241].mxu1  ;;  %8773 = vmatprep.mubr.msk.bf16.mxu0 %vm15999_vm12, %v17790_v38  ;;  %18611 = vst [vmem:[#allocation110_spill] sm:$0xff] %v18610_v54  ;;  %vm4492_vm12 = vcmp.eq.s32.totalorder %v15922_v14, %v18272_v53  ;;  %v18612_v28 = vmov 0  ;;  %vm16052_vm0 = vmpackc.low %vm4497_vm6, %vm4495_vm9  ;;  %vm4817_vm9 = vcmp.eq.s32.totalorder %v15734_v16, %v11735_v8 }
 0x3cb   :  { %v10062_v44 = vadd.f32 %v10061_v35, %v10060_v55  ;;  %v10063_v34 = vpop.f32.mrb[242].mxu1  ;;  %v18613_v28 = vsel %vm16030_vm13, 4294967295, %v18612_v28  ;;  %vm16047_vm4 = vmpackc.low %vm4492_vm12, %vm4490_vm8  ;;  %vm4810_vm8 = vcmp.eq.s32.totalorder %v15532_v9, %v18272_v53  ;;  %vm4812_vm12 = vcmp.eq.s32.totalorder %v15599_v37, %v18272_v53 }
 0x3cc   :  { %v9954_v57 = vpop.f32.mrb[244].mxu0  ;;  %v10064_v50 = vpop.f32.mrb[243].mxu1  ;;  %18614 = vst [vmem:[#allocation113_spill] sm:$0xff] %v18613_v28  ;;  %vm16072_vm6 = vmpackc.low %vm4812_vm12, %vm4810_vm8  ;;  %v18621_v9 = vmov 0  ;;  %vm4499_vm8 = vcmp.eq.s32.totalorder %v15796_v24, %v11735_v8  ;;  %v18721_v28 = vld [vmem:[#allocation89_spill] sm:$0xff] }
 0x3cd   :  { %v3627_v4 = vadd.f32 %v10062_v44, %v3466_v48  ;;  %v10065_v7 = vadd.f32 %v10064_v50, %v10063_v34  ;;  %v9955_v49 = vpop.f32.mrb[245].mxu0  ;;  %v18615_v44 = vmov 0  ;;  %v4738_v34 = vpop.permute.xlu0 %4737  ;;  %v18622_v9 = vsel %vm16072_vm6, 4294967295, %v18621_v9 }
 0x3ce   :  { %v9956_v55 = vadd.f32 %v9955_v49, %v9954_v57  ;;  %v9957_v35 = vpop.f32.mrb[246].mxu0  ;;  %8835 = vmatmul.mubr.msk.bf16.gmra.mrb[92].mxu1 %vm16022_vm15, %v17790_v38  ;;  %v18616_v44 = vsel %vm16047_vm4, 4294967295, %v18615_v44  ;;  %v18618_v49 = vmov 0  ;;  %vm4815_vm5 = vcmp.eq.s32.totalorder %v4738_v34, %v11735_v8  ;;  %18623 = vst [vmem:[#allocation114_spill] sm:$0xff] %v18622_v9  ;;  %v18719_v9 = vld [vmem:[#allocation35_spill] sm:$0xff] }
 0x3cf   :  { %3681 = vst [vmem:[#allocation5 + $0xc0] sm:$0xff] %v3627_v4  ;;  %v3630_v14 = vadd.f32 %v10065_v7, %v3469_v61  ;;  %v9958_v48 = vpop.f32.mrb[247].mxu0  ;;  %8837 = vmatprep.mubr.msk.bf16.mxu1 %vm16030_vm13, %v17790_v38  ;;  %18617 = vst [vmem:[#allocation112_spill] sm:$0xff] %v18616_v44  ;;  %v18619_v49 = vsel %vm16052_vm0, 4294967295, %v18618_v49  ;;  %v16059_v4 = vpop.permute.xlu1 %4755  ;;  %vm4496_vm13 = vcmp.eq.s32.totalorder %v15651_v36, %v18272_v53 }
 0x3d0   :  { %v3474_v57 = vadd.f32 %v9956_v55, %v14966_v33  ;;  %v9959_v50 = vadd.f32 %v9958_v48, %v9957_v35  ;;  %18620 = vst [vmem:[#allocation115_spill] sm:$0xff] %v18619_v49  ;;  %vm16084_vm15 = vmpackc.low %vm4817_vm9, %vm4815_vm5  ;;  %vm4816_vm5 = vcmp.eq.s32.totalorder %v15734_v16, %v18272_v53 }
 0x3d1   :  { %3682 = vst [vmem:[#allocation5 + $0xc8] sm:$0xff] %v3630_v14  ;;  %v10066_v61 = vpop.f32.mrb[244].mxu1  ;;  %8775 = vmatmul.mubr.msk.bf16.gmra.mrb[96].mxu0 %vm16047_vm4, %v17790_v38  ;;  %vm4494_vm4 = vcmp.eq.s32.totalorder %v15962_v60, %v18272_v53 }
 0x3d2   :  { %v3477_v33 = vadd.f32 %v9959_v50, %v14989_v63  ;;  %v10067_v11 = vpop.f32.mrb[245].mxu1  ;;  %8777 = vmatprep.mubr.msk.bf16.mxu0 %vm16052_vm0, %v17790_v38  ;;  %v16080_v63 = vpop.permute.xlu0 %4749  ;;  %vm4501_vm0 = vcmp.eq.s32.totalorder %v16010_v43, %v11735_v8  ;;  %vm16104_vm12 = vmpackc.low %vm4496_vm13, %vm4494_vm4  ;;  %vm4814_vm13 = vcmp.eq.s32.totalorder %v4738_v34, %v18272_v53  ;;  %vm4819_vm4 = vcmp.eq.s32.totalorder %v15850_v25, %v11735_v8 }
 0x3d3   :  { %v10068_v7 = vadd.f32 %v10067_v11, %v10066_v61  ;;  %v10069_v55 = vpop.f32.mrb[246].mxu1  ;;  %v18624_v61 = vmov 0  ;;  %vm16109_vm9 = vmpackc.low %vm4501_vm0, %vm4499_vm8  ;;  %vm4821_vm0 = vcmp.eq.s32.totalorder %v15904_v21, %v11735_v8  ;;  %vm4500_vm8 = vcmp.eq.s32.totalorder %v16010_v43, %v18272_v53  ;;  %v18646_v43 = vld [vmem:[#allocation74_spill] sm:$0xff] }
 0x3d4   :  { %v9960_v35 = vpop.f32.mrb[248].mxu0  ;;  %v10070_v14 = vpop.f32.mrb[247].mxu1  ;;  %v18625_v61 = vsel %vm16084_vm15, 4294967295, %v18624_v61 }
 0x3d5   :  { %v3635_v37 = vadd.f32 %v10068_v7, %v3474_v57  ;;  %v10071_v48 = vadd.f32 %v10070_v14, %v10069_v55  ;;  %v9961_v50 = vpop.f32.mrb[249].mxu0  ;;  %18626 = vst [vmem:[#allocation8_spill] sm:$0xff] %v18625_v61  ;;  %v16096_v55 = vpop.permute.xlu1 %4758 }
 0x3d6   :  { %v9962_v11 = vadd.f32 %v9961_v50, %v9960_v35  ;;  %v9963_v49 = vpop.f32.mrb[250].mxu0  ;;  %8839 = vmatmul.mubr.msk.bf16.gmra.mrb[96].mxu1 %vm16072_vm6, %v17790_v38  ;;  %v18627_v35 = vmov 0  ;;  %vm4505_vm6 = vcmp.eq.s32.totalorder %v15930_v6, %v11735_v8 }
 0x3d7   :  { %3683 = vst [vmem:[#allocation5 + $0xd0] sm:$0xff] %v3635_v37  ;;  %v3638_v57 = vadd.f32 %v10071_v48, %v3477_v33  ;;  %v9964_v7 = vpop.f32.mrb[251].mxu0  ;;  %8841 = vmatprep.mubr.msk.bf16.mxu1 %vm16084_vm15, %v17790_v38  ;;  %v18628_v35 = vsel %vm16104_vm12, 4294967295, %v18627_v35  ;;  %v18630_v37 = vmov 0  ;;  %vm16137_vm15 = vmpackc.low %vm4821_vm0, %vm4819_vm4  ;;  %vm4820_vm0 = vcmp.eq.s32.totalorder %v15904_v21, %v18272_v53 }
 0x3d8   :  { %18629 = vst [vmem:[#allocation116_spill] sm:$0xff] %v18628_v35  ;;  %v3482_v14 = vadd.f32 %v9962_v11, %v15036_v29  ;;  %v9965_v33 = vadd.f32 %v9964_v7, %v9963_v49  ;;  %v18631_v37 = vsel %vm16109_vm9, 4294967295, %v18630_v37  ;;  %v4430_v29 = vpop.permute.xlu0 %4429  ;;  %v18647_v21 = vmov 0 }
 0x3d9   :  { %18632 = vst [vmem:[#allocation10_spill] sm:$0xff] %v18631_v37  ;;  %3684 = vst [vmem:[#allocation5 + $0xd8] sm:$0xff] %v3638_v57  ;;  %v10072_v48 = vpop.f32.mrb[248].mxu1  ;;  %8779 = vmatmul.mubr.msk.bf16.gmra.mrb[100].mxu0 %vm16104_vm12, %v17790_v38 }
 0x3da   :  { %v3485_v36 = vadd.f32 %v9965_v33, %v15055_v40  ;;  %v10073_v60 = vpop.f32.mrb[249].mxu1  ;;  %8781 = vmatprep.mubr.msk.bf16.mxu0 %vm16109_vm9, %v17790_v38  ;;  %vm16129_vm12 = vmpackc.low %vm4816_vm5, %vm4814_vm13  ;;  %v18633_v40 = vmov 0  ;;  %vm4498_vm9 = vcmp.eq.s32.totalorder %v15796_v24, %v18272_v53  ;;  %v16135_v33 = vpop.permute.xlu1 %4444  ;;  %vm4503_vm5 = vcmp.eq.s32.totalorder %v4430_v29, %v11735_v8 }
 0x3db   :  { %v10074_v49 = vadd.f32 %v10073_v60, %v10072_v48  ;;  %v10075_v50 = vpop.f32.mrb[250].mxu1  ;;  %v18634_v40 = vsel %vm16129_vm12, 4294967295, %v18633_v40  ;;  %v18636_v48 = vmov 0  ;;  %vm16156_vm13 = vmpackc.low %vm4500_vm8, %vm4498_vm9  ;;  %vm4818_vm9 = vcmp.eq.s32.totalorder %v15850_v25, %v18272_v53 }
 0x3dc   :  { %v9966_v11 = vpop.f32.mrb[252].mxu0  ;;  %v10076_v16 = vpop.f32.mrb[251].mxu1  ;;  %18635 = vst [vmem:[#allocation9_spill] sm:$0xff] %v18634_v40  ;;  %v18637_v48 = vsel %vm16137_vm15, 4294967295, %v18636_v48  ;;  %vm16161_vm4 = vmpackc.low %vm4505_vm6, %vm4503_vm5  ;;  %vm4823_vm6 = vcmp.eq.s32.totalorder %v16080_v63, %v11735_v8  ;;  %vm4825_vm8 = vcmp.eq.s32.totalorder %v15972_v46, %v11735_v8 }
 0x3dd   :  { %v3643_v34 = vadd.f32 %v10074_v49, %v3482_v14  ;;  %v10077_v57 = vadd.f32 %v10076_v16, %v10075_v50  ;;  %v9967_v7 = vpop.f32.mrb[253].mxu0  ;;  %18638 = vst [vmem:[#allocation67_spill] sm:$0xff] %v18637_v48  ;;  %v18639_v50 = vmov 0  ;;  %vm16182_vm5 = vmpackc.low %vm4820_vm0, %vm4818_vm9 }
 0x3de   :  { %v9968_v60 = vadd.f32 %v9967_v7, %v9966_v11  ;;  %v9969_v37 = vpop.f32.mrb[254].mxu0  ;;  %8843 = vmatmul.mubr.msk.bf16.gmra.mrb[100].mxu1 %vm16129_vm12, %v17790_v38  ;;  %v18640_v50 = vsel %vm16156_vm13, 4294967295, %v18639_v50  ;;  %v18642_v11 = vld [vmem:[#allocation70_spill] sm:$0xff]  ;;  %v16168_v24 = vpop.permute.xlu1 %4764  ;;  %v18648_v21 = vsel %vm16182_vm5, 4294967295, %v18647_v21  ;;  %vm4507_vm12 = vcmp.eq.s32.totalorder %v16020_v42, %v11735_v8 }
 0x3df   :  { %3685 = vst [vmem:[#allocation5 + $0xe0] sm:$0xff] %v3643_v34  ;;  %v3646_v14 = vadd.f32 %v10077_v57, %v3485_v36  ;;  %v9970_v49 = vpop.f32.mrb[255].mxu0  ;;  %8845 = vmatprep.mubr.msk.bf16.mxu1 %vm16137_vm15, %v17790_v38  ;;  %18641 = vst [vmem:[#allocation13_spill] sm:$0xff] %v18640_v50  ;;  %v18643_v36 = vmov 0  ;;  %v4439_v57 = vpop.permute.xlu0 %4438  ;;  %vm4502_vm15 = vcmp.eq.s32.totalorder %v4430_v29, %v18272_v53  ;;  %v18650_v50 = vmov 0 }
 0x3e0   :  { %v3490_v16 = vadd.f32 %v9968_v60, %v18642_v11  ;;  %v9971_v7 = vadd.f32 %v9970_v49, %v9969_v37  ;;  %v18644_v36 = vsel %vm16161_vm4, 4294967295, %v18643_v36  ;;  %18649 = vst [vmem:[#allocation11_spill] sm:$0xff] %v18648_v21  ;;  %vm4509_vm9 = vcmp.eq.s32.totalorder %v4439_v57, %v11735_v8 }
 0x3e1   :  { %18645 = vst [vmem:[#allocation12_spill] sm:$0xff] %v18644_v36  ;;  %3686 = vst [vmem:[#allocation5 + $0xe8] sm:$0xff] %v3646_v14  ;;  %v10078_v34 = vpop.f32.mrb[252].mxu1  ;;  %8783 = vmatmul.mubr.msk.bf16.gmra.mrb[104].mxu0 %vm16156_vm13, %v17790_v38  ;;  %vm4504_vm13 = vcmp.eq.s32.totalorder %v15930_v6, %v18272_v53 }
 0x3e2   :  { %v3493_v37 = vadd.f32 %v9971_v7, %v18646_v43  ;;  %v10079_v60 = vpop.f32.mrb[253].mxu1  ;;  %8785 = vmatprep.mubr.msk.bf16.mxu0 %vm16161_vm4, %v17790_v38  ;;  %vm16189_vm4 = vmpackc.low %vm4825_vm8, %vm4823_vm6  ;;  %vm4822_vm8 = vcmp.eq.s32.totalorder %v16080_v63, %v18272_v53 }
 0x3e3   :  { %v10080_v14 = vadd.f32 %v10079_v60, %v10078_v34  ;;  %v10081_v49 = vpop.f32.mrb[254].mxu1  ;;  %v18651_v50 = vsel %vm16189_vm4, 4294967295, %v18650_v50  ;;  %v16199_v48 = vpop.permute.xlu0 %4441  ;;  %vm16211_vm0 = vmpackc.low %vm4504_vm13, %vm4502_vm15  ;;  %vm4824_vm15 = vcmp.eq.s32.totalorder %v15972_v46, %v18272_v53  ;;  %vm4829_vm13 = vcmp.eq.s32.totalorder %v16096_v55, %v11735_v8 }
 0x3e4   :  { %v10082_v25 = vpop.f32.mrb[255].mxu1  ;;  %v10100_v11 = vpop.f32.mrb[0].mxu0  ;;  %18652 = vst [vmem:[#allocation65_spill] sm:$0xff] %v18651_v50  ;;  %vm16215_vm6 = vmpackc.low %vm4509_vm9, %vm4507_vm12  ;;  %vm4827_vm12 = vcmp.eq.s32.totalorder %v16059_v4, %v11735_v8 }
 0x3e5   :  { %v3651_v7 = vadd.f32 %v10080_v14, %v3490_v16  ;;  %v10083_v43 = vadd.f32 %v10082_v25, %v10081_v49  ;;  %v10101_v36 = vpop.f32.mrb[1].mxu0  ;;  %v16204_v49 = vpop.permute.xlu1 %4447  ;;  %vm16235_vm9 = vmpackc.low %vm4824_vm15, %vm4822_vm8  ;;  %vm4513_vm8 = vcmp.eq.s32.totalorder %v16135_v33, %v11735_v8  ;;  %vm4511_vm15 = vcmp.eq.s32.totalorder %v16199_v48, %v11735_v8 }
 0x3e6   :  { %v10102_v34 = vadd.f32 %v10101_v36, %v10100_v11  ;;  %v10103_v60 = vpop.f32.mrb[2].mxu0  ;;  %8847 = vmatmul.mubr.msk.bf16.gmra.mrb[104].mxu1 %vm16182_vm5, %v17790_v38  ;;  %v18653_v36 = vmov 0  ;;  %v18656_v11 = vmov 0  ;;  %vm4514_vm1 = vcmp.eq.s32.totalorder %v16204_v49, %v18272_v53 }
 0x3e7   :  { %3687 = vst [vmem:[#allocation5 + $0xf0] sm:$0xff] %v3651_v7  ;;  %v3654_v16 = vadd.f32 %v10083_v43, %v3493_v37  ;;  %v10104_v14 = vpop.f32.mrb[3].mxu0  ;;  %8849 = vmatprep.mubr.msk.bf16.mxu1 %vm16189_vm4, %v17790_v38  ;;  %v18654_v36 = vsel %vm16211_vm0, 4294967295, %v18653_v36  ;;  %v18657_v11 = vsel %vm16215_vm6, 4294967295, %v18656_v11  ;;  %v16233_v43 = vpop.permute.xlu0 %4761  ;;  %vm16246_vm4 = vmpackc.low %vm4829_vm13, %vm4827_vm12 }
 0x3e8   :  { %18655 = vst [vmem:[#allocation18_spill] sm:$0xff] %v18654_v36  ;;  %v10105_v25 = vadd.f32 %v10104_v14, %v10103_v60  ;;  %18658 = vst [vmem:[#allocation14_spill] sm:$0xff] %v18657_v11 }
 0x3e9   :  { %3688 = vst [vmem:[#allocation5 + $0xf8] sm:$0xff] %v3654_v16  ;;  %v10212_v37 = vpop.f32.mrb[0].mxu1  ;;  %8787 = vmatmul.mubr.msk.bf16.gmra.mrb[108].mxu0 %vm16211_vm0, %v17790_v38  ;;  %v18659_v16 = vmov 0  ;;  %vm4506_vm0 = vcmp.eq.s32.totalorder %v16020_v42, %v18272_v53  ;;  %v16244_v36 = vpop.permute.xlu1 %4767  ;;  %vm16269_vm13 = vmpackc.low %vm4513_vm8, %vm4511_vm15  ;;  %vm4831_vm8 = vcmp.eq.s32.totalorder %v16233_v43, %v11735_v8  ;;  %vm18674_vm15 = vcmp.eq.s32.totalorder %v16168_v24, %v11735_v8 }
 0x3ea   :  { %v10213_v6 = vpop.f32.mrb[1].mxu1  ;;  %8789 = vmatprep.mubr.msk.bf16.mxu0 %vm16215_vm6, %v17790_v38  ;;  %v18660_v16 = vsel %vm16235_vm9, 4294967295, %v18659_v16  ;;  %vm4508_vm6 = vcmp.eq.s32.totalorder %v4439_v57, %v18272_v53  ;;  %vm16305_vm5 = vmpackc.low %vm18674_vm15, %vm4831_vm8  ;;  %vm4835_vm15 = vcmp.eq.s32.totalorder %v16244_v36, %v11735_v8 }
 0x3eb   :  { %v10214_v29 = vadd.f32 %v10213_v6, %v10212_v37  ;;  %v10215_v7 = vpop.f32.mrb[2].mxu1  ;;  %18661 = vst [vmem:[#allocation16_spill] sm:$0xff] %v18660_v16  ;;  %v18662_v37 = vmov 0  ;;  %vm16265_vm12 = vmpackc.low %vm4508_vm6, %vm4506_vm0  ;;  %vm4828_vm0 = vcmp.eq.s32.totalorder %v16096_v55, %v18272_v53  ;;  %vm4512_vm6 = vcmp.eq.s32.totalorder %v16135_v33, %v18272_v53 }
 0x3ec   :  { %v10106_v60 = vpop.f32.mrb[4].mxu0  ;;  %v10216_v63 = vpop.f32.mrb[3].mxu1  ;;  %v18663_v37 = vsel %vm16246_vm4, 4294967295, %v18662_v37 }
 0x3ed   :  { %v16242_v46 = vadd.f32 %v10214_v29, %v10102_v34  ;;  %v10217_v14 = vadd.f32 %v10216_v63, %v10215_v7  ;;  %v10107_v11 = vpop.f32.mrb[5].mxu0  ;;  %18664 = vst [vmem:[#allocation15_spill] sm:$0xff] %v18663_v37  ;;  %v18665_v29 = vmov 0  ;;  %v18668_v7 = vmov 0 }
 0x3ee   :  { %v10108_v6 = vadd.f32 %v10107_v11, %v10106_v60  ;;  %v10109_v50 = vpop.f32.mrb[6].mxu0  ;;  %8851 = vmatmul.mubr.msk.bf16.gmra.mrb[108].mxu1 %vm16235_vm9, %v17790_v38  ;;  %v18666_v29 = vsel %vm16265_vm12, 4294967295, %v18665_v29  ;;  %v18669_v7 = vsel %vm16269_vm13, 4294967295, %v18668_v7 }
 0x3ef   :  { %v16257_v57 = vadd.f32 %v10217_v14, %v10105_v25  ;;  %v10110_v34 = vpop.f32.mrb[7].mxu0  ;;  %8853 = vmatprep.mubr.msk.bf16.mxu1 %vm16246_vm4, %v17790_v38  ;;  %18667 = vst [vmem:[#allocation17_spill] sm:$0xff] %v18666_v29  ;;  %18670 = vst [vmem:[#allocation20_spill] sm:$0xff] %v18669_v7  ;;  %v4451_v25 = vpop.permute.xlu0 %4450  ;;  %vm4826_vm4 = vcmp.eq.s32.totalorder %v16059_v4, %v18272_v53  ;;  %v18675_v29 = vmov 0 }
 0x3f0   :  { %v10111_v11 = vadd.f32 %v10110_v34, %v10109_v50  ;;  %v16287_v14 = vpop.permute.xlu1 %4770  ;;  %vm16292_vm9 = vmpackc.low %vm4828_vm0, %vm4826_vm4  ;;  %v18671_v34 = vmov 0  ;;  %v18676_v29 = vsel %vm16305_vm5, 4294967295, %v18675_v29  ;;  %vm18678_vm4 = vcmp.eq.s32.totalorder %v16204_v49, %v11735_v8 }
 0x3f1   :  { %v10218_v60 = vpop.f32.mrb[4].mxu1  ;;  %8791 = vmatmul.mubr.msk.bf16.gmra.mrb[112].mxu0 %vm16265_vm12, %v17790_v38  ;;  %vm4517_vm12 = vcmp.eq.s32.totalorder %v4451_v25, %v11735_v8  ;;  %v18672_v34 = vsel %vm16292_vm9, 4294967295, %v18671_v34  ;;  %18677 = vst [vmem:[#allocation71_spill] sm:$0xff] %v18676_v29  ;;  %v18691_v49 = vmov 0 }
 0x3f2   :  { %v10219_v42 = vpop.f32.mrb[5].mxu1  ;;  %8793 = vmatprep.mubr.msk.bf16.mxu0 %vm16269_vm13, %v17790_v38  ;;  %18673 = vst [vmem:[#allocation73_spill] sm:$0xff] %v18672_v34  ;;  %vm4510_vm13 = vcmp.eq.s32.totalorder %v16199_v48, %v18272_v53  ;;  %vm16320_vm0 = vmpackc.low %vm4517_vm12, %vm18678_vm4  ;;  %vm4837_vm12 = vcmp.eq.s32.totalorder %v16287_v14, %v11735_v8 }
 0x3f3   :  { %v10220_v50 = vadd.f32 %v10219_v42, %v10218_v60  ;;  %v10221_v63 = vpop.f32.mrb[6].mxu1  ;;  %vm16324_vm8 = vmpackc.low %vm4512_vm6, %vm4510_vm13  ;;  %vm4832_vm13 = vcmp.eq.s32.totalorder %v16168_v24, %v18272_v53  ;;  %vm4830_vm6 = vcmp.eq.s32.totalorder %v16233_v43, %v18272_v53  ;;  %v18688_v24 = vmov 0 }
 0x3f4   :  { %v10112_v4 = vpop.f32.mrb[8].mxu0  ;;  %v10222_v55 = vpop.f32.mrb[7].mxu1  ;;  %vm16342_vm4 = vmpackc.low %vm4837_vm12, %vm4835_vm15 }
 0x3f5   :  { %v16300_v60 = vadd.f32 %v10220_v50, %v10108_v6  ;;  %v10223_v42 = vadd.f32 %v10222_v55, %v10221_v63  ;;  %v10113_v7 = vpop.f32.mrb[9].mxu0  ;;  %v18679_v6 = vmov 0  ;;  %v4454_v63 = vpop.permute.xlu0 %4453 }
 0x3f6   :  { %v10114_v37 = vadd.f32 %v10113_v7, %v10112_v4  ;;  %v10115_v16 = vpop.f32.mrb[10].mxu0  ;;  %8855 = vmatmul.mubr.msk.bf16.gmra.mrb[112].mxu1 %vm16292_vm9, %v17790_v38  ;;  %v18680_v6 = vsel %vm16320_vm0, 4294967295, %v18679_v6  ;;  %v18682_v7 = vmov 0  ;;  %v4457_v4 = vpop.permute.xlu1 %4456  ;;  %vm16348_vm9 = vmpackc.low %vm4832_vm13, %vm4830_vm6 }
 0x3f7   :  { %v16312_v33 = vadd.f32 %v10223_v42, %v10111_v11  ;;  %v10116_v48 = vpop.f32.mrb[11].mxu0  ;;  %8857 = vmatprep.mubr.msk.bf16.mxu1 %vm16305_vm5, %v17790_v38  ;;  %18681 = vst [vmem:[#allocation19_spill] sm:$0xff] %v18680_v6  ;;  %v18683_v7 = vsel %vm16324_vm8, 4294967295, %v18682_v7  ;;  %vm4519_vm5 = vcmp.eq.s32.totalorder %v4454_v63, %v11735_v8  ;;  %v18689_v24 = vsel %vm16348_vm9, 4294967295, %v18688_v24 }
 0x3f8   :  { %18684 = vst [vmem:[#allocation22_spill] sm:$0xff] %v18683_v7  ;;  %v10117_v50 = vadd.f32 %v10116_v48, %v10115_v16  ;;  %v18685_v48 = vmov 0  ;;  %18690 = vst [vmem:[#allocation24_spill] sm:$0xff] %v18689_v24 }
 0x3f9   :  { %v10224_v11 = vpop.f32.mrb[8].mxu1  ;;  %8795 = vmatmul.mubr.msk.bf16.gmra.mrb[116].mxu0 %vm16324_vm8, %v17790_v38  ;;  %v18686_v48 = vsel %vm16342_vm4, 4294967295, %v18685_v48  ;;  %vm4521_vm8 = vcmp.eq.s32.totalorder %v4457_v4, %v11735_v8  ;;  %v4774_v6 = vpop.permute.xlu0 %4773 }
 0x3fa   :  { %v10225_v16 = vpop.f32.mrb[9].mxu1  ;;  %8797 = vmatprep.mubr.msk.bf16.mxu0 %vm16320_vm0, %v17790_v38  ;;  %18687 = vst [vmem:[#allocation21_spill] sm:$0xff] %v18686_v48  ;;  %vm4516_vm0 = vcmp.eq.s32.totalorder %v4451_v25, %v18272_v53  ;;  %v4777_v40 = vpop.permute.xlu1 %4776  ;;  %vm16369_vm15 = vmpackc.low %vm4521_vm8, %vm4519_vm5  ;;  %vm4839_vm6 = vcmp.eq.s32.totalorder %v4774_v6, %v11735_v8  ;;  %vm4834_vm5 = vcmp.eq.s32.totalorder %v16244_v36, %v18272_v53 }
 0x3fb   :  { %v10226_v55 = vadd.f32 %v10225_v16, %v10224_v11  ;;  %v10227_v42 = vpop.f32.mrb[10].mxu1  ;;  %v18692_v49 = vsel %vm16369_vm15, 4294967295, %v18691_v49  ;;  %vm16373_vm12 = vmpackc.low %vm4516_vm0, %vm4514_vm1  ;;  %vm4841_vm13 = vcmp.eq.s32.totalorder %v4777_v40, %v11735_v8  ;;  %vm4836_vm8 = vcmp.eq.s32.totalorder %v16287_v14, %v18272_v53 }
 0x3fc   :  { %v10118_v7 = vpop.f32.mrb[12].mxu0  ;;  %v10228_v29 = vpop.f32.mrb[11].mxu1  ;;  %18693 = vst [vmem:[#allocation26_spill] sm:$0xff] %v18692_v49  ;;  %vm16389_vm1 = vmpackc.low %vm4841_vm13, %vm4839_vm6  ;;  %v18700_v8 = vmov 0  ;;  %vm4840_vm6 = vcmp.eq.s32.totalorder %v4777_v40, %v18272_v53 }
 0x3fd   :  { %v16355_v43 = vadd.f32 %v10226_v55, %v10114_v37  ;;  %v10229_v11 = vadd.f32 %v10228_v29, %v10227_v42  ;;  %v10119_v16 = vpop.f32.mrb[13].mxu0  ;;  %v18694_v37 = vmov 0  ;;  %v18697_v42 = vmov 0  ;;  %vm16393_vm0 = vmpackc.low %vm4836_vm8, %vm4834_vm5 }
 0x3fe   :  { %v10120_v34 = vadd.f32 %v10119_v16, %v10118_v7  ;;  %v10121_v21 = vpop.f32.mrb[14].mxu0  ;;  %8859 = vmatmul.mubr.msk.bf16.gmra.mrb[116].mxu1 %vm16348_vm9, %v17790_v38  ;;  %v18695_v37 = vsel %vm16373_vm12, 4294967295, %v18694_v37  ;;  %v18698_v42 = vsel %vm16389_vm1, 4294967295, %v18697_v42  ;;  %v18701_v8 = vsel %vm16393_vm0, 4294967295, %v18700_v8 }
 0x3ff   :  { %v16360_v35 = vadd.f32 %v10229_v11, %v10117_v50  ;;  %v10122_v61 = vpop.f32.mrb[15].mxu0  ;;  %8861 = vmatprep.mubr.msk.bf16.mxu1 %vm16342_vm4, %v17790_v38  ;;  %18696 = vst [vmem:[#allocation23_spill] sm:$0xff] %v18695_v37  ;;  %18699 = vst [vmem:[#allocation77_spill] sm:$0xff] %v18698_v42  ;;  %vm4518_vm4 = vcmp.eq.s32.totalorder %v4454_v63, %v18272_v53  ;;  %vm4838_vm5 = vcmp.eq.s32.totalorder %v4774_v6, %v18272_v53  ;;  %v11393_v37 = vld [vmem:[%s17184_s1 + $0x158] sm:$0xff]  }
 0x400   :  { %v10123_v29 = vadd.f32 %v10122_v61, %v10121_v21  ;;  %18702 = vst [vmem:[#allocation79_spill] sm:$0xff] %v18701_v8  ;;  %vm18730_vm8 = vnez %v18729_v22  ;;  %v18731_v22 = vld [vmem:[#allocation42_spill] sm:$0xff] }
 0x401   :  { %v10230_v25 = vpop.f32.mrb[12].mxu1  ;;  %8799 = vmatmul.mubr.msk.bf16.gmra.mrb[120].mxu0 %vm16373_vm12, %v17790_v38  ;;  %vm4520_vm12 = vcmp.eq.s32.totalorder %v4457_v4, %v18272_v53  ;;  %v18703_v4 = vmov 0 }
 0x402   :  { %v10231_v7 = vpop.f32.mrb[13].mxu1  ;;  %8801 = vmatprep.mubr.msk.bf16.mxu0 %vm16369_vm15, %v17790_v38  ;;  %vm16409_vm13 = vmpackc.low %vm4520_vm12, %vm4518_vm4 }
 0x403   :  { %v10232_v61 = vadd.f32 %v10231_v7, %v10230_v25  ;;  %v10233_v21 = vpop.f32.mrb[14].mxu1  ;;  %v18704_v4 = vsel %vm16409_vm13, 4294967295, %v18703_v4  ;;  %vm16421_vm4 = vmpackc.low %vm4840_vm6, %vm4838_vm5  ;;  %vm18732_vm6 = vnez %v18731_v22 }
 0x404   :  { %v10124_v50 = vpop.f32.mrb[16].mxu0  ;;  %v10234_v55 = vpop.f32.mrb[15].mxu1  ;;  %18705 = vst [vmem:[#allocation29_spill] sm:$0xff] %v18704_v4  ;;  %v11386_v4 = vld [vmem:[%s17184_s1 + $0x108] sm:$0xff]  }
 0x405   :  { %v16399_v36 = vadd.f32 %v10232_v61, %v10120_v34  ;;  %v10235_v14 = vadd.f32 %v10234_v55, %v10233_v21  ;;  %v10125_v11 = vpop.f32.mrb[17].mxu0 }
 0x406   :  { %v10126_v16 = vadd.f32 %v10125_v11, %v10124_v50  ;;  %v10127_v25 = vpop.f32.mrb[18].mxu0  ;;  %8863 = vmatmul.mubr.msk.bf16.gmra.mrb[120].mxu1 %vm16393_vm0, %v17790_v38  ;;  %v18707_v50 = vmov 0 }
 0x407   :  { %v16404_v7 = vadd.f32 %v10235_v14, %v10123_v29  ;;  %v10128_v49 = vpop.f32.mrb[19].mxu0  ;;  %8865 = vmatprep.mubr.msk.bf16.mxu1 %vm16389_vm1, %v17790_v38  ;;  %v18708_v50 = vsel %vm16421_vm4, 4294967295, %v18707_v50 }
 0x408   :  { %v10129_v34 = vadd.f32 %v10128_v49, %v10127_v25  ;;  %18709 = vst [vmem:[#allocation25_spill] sm:$0xff] %v18708_v50  ;;  %v11387_v50 = vld [vmem:[%s17184_s1 + $0x1c8] sm:$0xff]  }
 0x409   :  { %v10236_v63 = vpop.f32.mrb[16].mxu1  ;;  %8803 = vmatmul.mubr.msk.bf16.gmra.mrb[124].mxu0 %vm16409_vm13, %v17790_v38 }
 0x40a   :  { %v10237_v29 = vpop.f32.mrb[17].mxu1  ;;  %8933 = vmatprep.mubr.msk.bf16.mxu0 %vm14275_vm3, %v17790_v38 }
 0x40b   :  { %v10238_v21 = vadd.f32 %v10237_v29, %v10236_v63  ;;  %v10239_v49 = vpop.f32.mrb[18].mxu1  ;;  %v11382_v63 = vld [vmem:[%s17184_s1 + $0x100] sm:$0xff]  }
 0x40c   :  { %v10130_v55 = vpop.f32.mrb[20].mxu0  ;;  %v10240_v40 = vpop.f32.mrb[19].mxu1 }
 0x40d   :  { %v16425_v14 = vadd.f32 %v10238_v21, %v10126_v16  ;;  %v10241_v53 = vadd.f32 %v10240_v40, %v10239_v49  ;;  %v10131_v6 = vpop.f32.mrb[21].mxu0  ;;  %v11385_v16 = vld [vmem:[%s17184_s1 + $0x148] sm:$0xff]  }
 0x40e   :  { %v10132_v11 = vadd.f32 %v10131_v6, %v10130_v55  ;;  %v10133_v25 = vpop.f32.mrb[22].mxu0  ;;  %8867 = vmatmul.mubr.msk.bf16.gmra.mrb[124].mxu1 %vm16421_vm4, %v17790_v38 }
 0x40f   :  { %v16433_v29 = vadd.f32 %v10241_v53, %v10129_v34  ;;  %v10134_v61 = vpop.f32.mrb[23].mxu0  ;;  %8997 = vmatprep.mubr.msk.bf16.mxu1 %vm14316_vm7, %v17790_v38 }
 0x410   :  { %v10135_v21 = vadd.f32 %v10134_v61, %v10133_v25  ;;  %v11384_v25 = vld [vmem:[%s17184_s1 + $0x180] sm:$0xff]  }
 0x411   :  { %v10242_v49 = vpop.f32.mrb[20].mxu1  ;;  %8935 = vmatmul.mubr.msk.bf16.vlgmr.msra.gmra.mrb[128].mxu0 %vm14332_vm10, %v17790_v38  ;;  %vm18720_vm10 = vnez %v18719_v9  ;;  %v11401_v9 = vld [vmem:[%s17184_s1 + $0x168] sm:$0xff]  }
 0x412   :  { %v10243_v40 = vpop.f32.mrb[21].mxu1  ;;  %8937 = vmatprep.mubr.msk.bf16.mxu0 %vm14340_vm2, %v17790_v38  ;;  %10757 = vmatpush3.bf16.msra.mxu0 %v11382_v63  ;;  %v11389_v63 = vld [vmem:[%s17184_s1 + $0x150] sm:$0xff]   ;;  %vm18722_vm2 = vnez %v18721_v28  ;;  %v18723_v28 = vld [vmem:[#allocation39_spill] sm:$0xff] }
 0x413   :  { %v10244_v34 = vadd.f32 %v10243_v40, %v10242_v49  ;;  %v10245_v53 = vpop.f32.mrb[22].mxu1  ;;  %10758 = vmatprep.subr.bf16.mxu0 %v11385_v16  ;;  %v11390_v16 = vld [vmem:[%s17184_s1 + $0x110] sm:$0xff]  }
 0x414   :  { %v10136_v61 = vpop.f32.mrb[24].mxu0  ;;  %v10246_v55 = vpop.f32.mrb[23].mxu1 }
 0x415   :  { %v16459_v6 = vadd.f32 %v10244_v34, %v10132_v11  ;;  %v10247_v42 = vadd.f32 %v10246_v55, %v10245_v53  ;;  %v10137_v49 = vpop.f32.mrb[25].mxu0  ;;  %v11388_v34 = vld [vmem:[%s17184_s1 + $0x188] sm:$0xff]   ;;  %v11392_v55 = vld [vmem:[%s17184_s1 + $0x190] sm:$0xff]   ;;  %v11395_v11 = vld [vmem:[%s17184_s1 + $0x1d8] sm:$0xff]  }
 0x416   :  { %v10138_v40 = vadd.f32 %v10137_v49, %v10136_v61  ;;  %v10139_v8 = vpop.f32.mrb[26].mxu0  ;;  %8999 = vmatmul.mubr.msk.bf16.vlgmr.msra.gmra.mrb[128].mxu1 %vm14368_vm11, %v17790_v38  ;;  %10759 = vmatpush3.bf16.msra.mxu0 %v11386_v4  ;;  %v18715_v53 = vld [vmem:[#allocation33_spill] sm:$0xff]  ;;  %v18717_v61 = vld [vmem:[#allocation36_spill] sm:$0xff]  ;;  %vm18724_vm11 = vnez %v18723_v28 }
 0x417   :  { %v16467_v48 = vadd.f32 %v10247_v42, %v10135_v21  ;;  %10869 = vmatpush3.bf16.msra.mxu1 %v11384_v25  ;;  %v10140_v24 = vpop.f32.mrb[27].mxu0  ;;  %9001 = vmatprep.mubr.msk.bf16.mxu1 %vm14393_vm14, %v17790_v38  ;;  %v11391_v42 = vld [vmem:[%s17184_s1 + $0x1d0] sm:$0xff]   ;;  %vm18716_vm3 = vnez %v18715_v53  ;;  %vm18718_vm7 = vnez %v18717_v61 }
 0x418   :  { %v10141_v4 = vadd.f32 %v10140_v24, %v10139_v8  ;;  %10870 = vmatprep.subr.bf16.mxu1 %v11387_v50  ;;  %10760 = vmatprep.subr.bf16.mxu0 %v11389_v63  ;;  %v11394_v24 = vld [vmem:[%s17184_s1 + $0x118] sm:$0xff]  }
 0x419   :  { %v10248_v21 = vpop.f32.mrb[24].mxu1  ;;  %8939 = vmatmul.mubr.msk.bf16.gmra.mrb[132].mxu0 %vm18716_vm3, %v17790_v38 }
 0x41a   :  { %v10249_v25 = vpop.f32.mrb[25].mxu1  ;;  %8941 = vmatprep.mubr.msk.bf16.mxu0 %vm18718_vm7, %v17790_v38  ;;  %10761 = vmatpush3.bf16.msra.mxu0 %v11390_v16  ;;  %v11397_v16 = vld [vmem:[%s17184_s1 + $0x160] sm:$0xff]  }
 0x41b   :  { %v10250_v8 = vadd.f32 %v10249_v25, %v10248_v21  ;;  %v10251_v50 = vpop.f32.mrb[26].mxu1  ;;  %10871 = vmatpush3.bf16.msra.mxu1 %v11388_v34  ;;  %10762 = vmatprep.subr.bf16.mxu0 %v11393_v37  ;;  %v11398_v37 = vld [vmem:[%s17184_s1 + $0x120] sm:$0xff]  }
 0x41c   :  { %v10142_v63 = vpop.f32.mrb[28].mxu0  ;;  %v10252_v49 = vpop.f32.mrb[27].mxu1  ;;  %10872 = vmatprep.subr.bf16.mxu1 %v11391_v42 }
 0x41d   :  { %v16499_v53 = vadd.f32 %v10250_v8, %v10138_v40  ;;  %v10253_v21 = vadd.f32 %v10252_v49, %v10251_v50  ;;  %v10143_v34 = vpop.f32.mrb[29].mxu0  ;;  %v11396_v40 = vld [vmem:[%s17184_s1 + $0x198] sm:$0xff]  }
 0x41e   :  { %v10144_v25 = vadd.f32 %v10143_v34, %v10142_v63  ;;  %v10145_v61 = vpop.f32.mrb[30].mxu0  ;;  %9003 = vmatmul.mubr.msk.bf16.gmra.mrb[132].mxu1 %vm18720_vm10, %v17790_v38  ;;  %10763 = vmatpush3.bf16.msra.mxu0 %v11394_v24  ;;  %v11403_v34 = vld [vmem:[%s17184_s1 + $0x1e8] sm:$0xff]  }
 0x41f   :  { %v16507_v42 = vadd.f32 %v10253_v21, %v10141_v4  ;;  %v10146_v44 = vpop.f32.mrb[31].mxu0  ;;  %9005 = vmatprep.mubr.msk.bf16.mxu1 %vm18722_vm2, %v17790_v38  ;;  %10873 = vmatpush3.bf16.msra.mxu1 %v11392_v55  ;;  %v11399_v4 = vld [vmem:[%s17184_s1 + $0x1e0] sm:$0xff]   ;;  %v18725_v55 = vld [vmem:[#allocation91_spill] sm:$0xff] }
 0x420   :  { %v10147_v24 = vadd.f32 %v10146_v44, %v10145_v61  ;;  %10874 = vmatprep.subr.bf16.mxu1 %v11395_v11  ;;  %10764 = vmatprep.subr.bf16.mxu0 %v11397_v16  ;;  %vm18726_vm14 = vnez %v18725_v55  ;;  %v11402_v44 = vld [vmem:[%s17184_s1 + $0x128] sm:$0xff]   ;;  %v11400_v11 = vld [vmem:[%s17184_s1 + $0x1a0] sm:$0xff]   ;;  %v11405_v61 = vld [vmem:[%s17184_s1 + $0x170] sm:$0xff]  }
 0x421   :  { %v10254_v8 = vpop.f32.mrb[28].mxu1  ;;  %8943 = vmatmul.mubr.msk.bf16.gmra.mrb[136].mxu0 %vm18724_vm11, %v17790_v38  ;;  %v18727_v55 = vld [vmem:[#allocation37_spill] sm:$0xff]  ;;  %vm18744_vm11 = vnez %v18743_v27 }
 0x422   :  { %v10255_v50 = vpop.f32.mrb[29].mxu1  ;;  %8945 = vmatprep.mubr.msk.bf16.mxu0 %vm18726_vm14, %v17790_v38  ;;  %10765 = vmatpush3.bf16.msra.mxu0 %v11398_v37  ;;  %vm18728_vm12 = vnez %v18727_v55 }
 0x423   :  { %v10256_v63 = vadd.f32 %v10255_v50, %v10254_v8  ;;  %v10257_v49 = vpop.f32.mrb[30].mxu1  ;;  %10875 = vmatpush3.bf16.msra.mxu1 %v11396_v40  ;;  %10766 = vmatprep.subr.bf16.mxu0 %v11401_v9  ;;  %v11406_v9 = vld [vmem:[%s17184_s1 + $0x130] sm:$0xff]  }
 0x424   :  { %v10148_v16 = vpop.f32.mrb[32].mxu0  ;;  %v10258_v21 = vpop.f32.mrb[31].mxu1  ;;  %10876 = vmatprep.subr.bf16.mxu1 %v11399_v4 }
 0x425   :  { %v16539_v37 = vadd.f32 %v10256_v63, %v10144_v25  ;;  %v10259_v8 = vadd.f32 %v10258_v21, %v10257_v49  ;;  %v10149_v40 = vpop.f32.mrb[33].mxu0  ;;  %v11404_v25 = vld [vmem:[%s17184_s1 + $0x1a8] sm:$0xff]  }
 0x426   :  { %v10150_v28 = vadd.f32 %v10149_v40, %v10148_v16  ;;  %v10151_v50 = vpop.f32.mrb[34].mxu0  ;;  %9007 = vmatmul.mubr.msk.bf16.gmra.mrb[136].mxu1 %vm18728_vm12, %v17790_v38  ;;  %10767 = vmatpush3.bf16.msra.mxu0 %v11402_v44  ;;  %v11409_v44 = vld [vmem:[%s17184_s1 + $0x178] sm:$0xff]   ;;  %v18733_v16 = vld [vmem:[#allocation40_spill] sm:$0xff] }
 0x427   :  { %v16547_v4 = vadd.f32 %v10259_v8, %v10147_v24  ;;  %v10152_v54 = vpop.f32.mrb[35].mxu0  ;;  %9009 = vmatprep.mubr.msk.bf16.mxu1 %vm18730_vm8, %v17790_v38  ;;  %10877 = vmatpush3.bf16.msra.mxu1 %v11400_v11  ;;  %v11407_v24 = vld [vmem:[%s17184_s1 + $0x1f0] sm:$0xff]   ;;  %vm18734_vm5 = vnez %v18733_v16 }
 0x428   :  { %v10153_v63 = vadd.f32 %v10152_v54, %v10151_v50  ;;  %10878 = vmatprep.subr.bf16.mxu1 %v11403_v34  ;;  %10768 = vmatprep.subr.bf16.mxu0 %v11405_v61  ;;  %v11410_v54 = vld [vmem:[%s17184_s1 + $0x138] sm:$0xff]   ;;  %v11408_v61 = vld [vmem:[%s17184_s1 + $0x1b0] sm:$0xff]  }
 0x429   :  { %v10260_v49 = vpop.f32.mrb[32].mxu1  ;;  %8947 = vmatmul.mubr.msk.bf16.gmra.mrb[140].mxu0 %vm18732_vm6, %v17790_v38  ;;  %v11411_v50 = vld [vmem:[%s17184_s1 + $0x1f8] sm:$0xff]  }
 0x42a   :  { %v10261_v11 = vpop.f32.mrb[33].mxu1  ;;  %8949 = vmatprep.mubr.msk.bf16.mxu0 %vm18734_vm5, %v17790_v38  ;;  %10769 = vmatpush3.bf16.msra.mxu0 %v11406_v9 }
 0x42b   :  { %v10262_v21 = vadd.f32 %v10261_v11, %v10260_v49  ;;  %v10263_v34 = vpop.f32.mrb[34].mxu1  ;;  %10879 = vmatpush3.bf16.msra.mxu1 %v11404_v25  ;;  %10770 = vmatprep.subr.bf16.mxu0 %v11409_v44  ;;  %v18735_v25 = vld [vmem:[#allocation44_spill] sm:$0xff] }
 0x42c   :  { %v10154_v8 = vpop.f32.mrb[36].mxu0  ;;  %v10264_v40 = vpop.f32.mrb[35].mxu1  ;;  %10880 = vmatprep.subr.bf16.mxu1 %v11407_v24  ;;  %vm18736_vm3 = vnez %v18735_v25  ;;  %v18737_v24 = vld [vmem:[#allocation95_spill] sm:$0xff] }
 0x42d   :  { %v16576_v55 = vadd.f32 %v10262_v21, %v10150_v28  ;;  %v10265_v9 = vadd.f32 %v10264_v40, %v10263_v34  ;;  %v10155_v22 = vpop.f32.mrb[37].mxu0  ;;  %vm18738_vm7 = vnez %v18737_v24  ;;  %v11412_v28 = vld [vmem:[%s17184_s1 + $0x1b8] sm:$0xff]   ;;  %s11530_s1 = smov [#allocation5]  }
 0x42e   :  { %v10156_v16 = vadd.f32 %v10155_v22, %v10154_v8  ;;  %v10157_v49 = vpop.f32.mrb[38].mxu0  ;;  %9011 = vmatmul.mubr.msk.bf16.gmra.mrb[140].mxu1 %vm18736_vm3, %v17790_v38  ;;  %10771 = vmatpush3.bf16.msra.mxu0 %v11410_v54  ;;  %v18739_v8 = vld [vmem:[#allocation43_spill] sm:$0xff]  ;;  %s7352_s23 = sshll.u32 %s11530_s1, 4  ;;  %s7353_s23 = int_to_ptr.vmem [resolvable:$true] %s7352_s23 }
 0x42f   :  { %v16581_v11 = vadd.f32 %v10265_v9, %v10153_v63  ;;  %v10158_v44 = vpop.f32.mrb[39].mxu0  ;;  %9013 = vmatprep.mubr.msk.bf16.mxu1 %vm18738_vm7, %v17790_v38  ;;  %10881 = vmatpush3.bf16.msra.mxu1 %v11408_v61  ;;  %vm18740_vm10 = vnez %v18739_v8  ;;  %v18741_v63 = vld [vmem:[#allocation97_spill] sm:$0xff]  ;;  %s11496_s24 = scalar_lea.vmem %s7353_s23, 8192  ;;  %p11501_p9 = scmp.lt.s32.totalorder %s7353_s23, %s7353_s23 }
 0x430   :  { %v10159_v21 = vadd.f32 %v10158_v44, %v10157_v49  ;;  %10882 = vmatprep.subr.bf16.mxu1 %v11411_v50  ;;  %vm18742_vm2 = vnez %v18741_v63  ;;  %v18745_v63 = vld [vmem:[#allocation45_spill] sm:$0xff]  ;;  %p11497_p8 = scmp.ne.s32.totalorder %s7353_s23, %s11496_s24  ;;  %p11502_p10 = scmp.lt.s32.totalorder %s11496_s24, %s11496_s24 }
 0x431   :  { %v10266_v34 = vpop.f32.mrb[36].mxu1  ;;  %8951 = vmatmul.mubr.msk.bf16.gmra.mrb[144].mxu0 %vm18740_vm10, %v17790_v38  ;;  %vm18746_vm14 = vnez %v18745_v63 }
 0x432   :  { %v10267_v54 = vpop.f32.mrb[37].mxu1  ;;  %8953 = vmatprep.mubr.msk.bf16.mxu0 %vm18742_vm2, %v17790_v38  ;;  %p11503_p11 = por %p11502_p10, %p11501_p9 }
 0x433   :  { %v10268_v40 = vadd.f32 %v10267_v54, %v10266_v34  ;;  %v10269_v9 = vpop.f32.mrb[38].mxu1  ;;  %10883 = vmatpush3.bf16.msra.mxu1 %v11412_v28 }
 0x434   :  { %v10160_v61 = vpop.f32.mrb[40].mxu0  ;;  %v10270_v22 = vpop.f32.mrb[39].mxu1  ;;  %p11504_p12 = pnand %p11503_p11, %p11497_p8 }
 0x435   :  { %v16595_v25 = vadd.f32 %v10268_v40, %v10156_v16  ;;  %v10271_v24 = vadd.f32 %v10270_v22, %v10269_v9  ;;  %v10161_v49 = vpop.f32.mrb[41].mxu0  ;;  %v18747_v16 = vld [vmem:[#allocation48_spill] sm:$0xff]  ;;  %v18749_v40 = vld [vmem:[#allocation47_spill] sm:$0xff] }
 0x436   :  { %v10162_v50 = vadd.f32 %v10161_v49, %v10160_v61  ;;  %v10163_v44 = vpop.f32.mrb[42].mxu0  ;;  %9015 = vmatmul.mubr.msk.bf16.gmra.mrb[144].mxu1 %vm18744_vm11, %v17790_v38  ;;  %vm18748_vm12 = vnez %v18747_v16  ;;  %vm18750_vm8 = vnez %v18749_v40  ;;  %v18753_v40 = vld [vmem:[#allocation50_spill] sm:$0xff] }
 0x437   :  { %v16600_v8 = vadd.f32 %v10271_v24, %v10159_v21  ;;  %v10164_v5 = vpop.f32.mrb[43].mxu0  ;;  %9017 = vmatprep.mubr.msk.bf16.mxu1 %vm18746_vm14, %v17790_v38  ;;  %vm18754_vm5 = vnez %v18753_v40 }
 0x438   :  { %v10165_v28 = vadd.f32 %v10164_v5, %v10163_v44  ;;  %v18751_v44 = vld [vmem:[#allocation101_spill] sm:$0xff] }
 0x439   :  { %v10272_v34 = vpop.f32.mrb[40].mxu1  ;;  %8955 = vmatmul.mubr.msk.bf16.gmra.mrb[148].mxu0 %vm18748_vm12, %v17790_v38  ;;  %vm18752_vm6 = vnez %v18751_v44 }
 0x43a   :  { %v10273_v54 = vpop.f32.mrb[41].mxu1  ;;  %8957 = vmatprep.mubr.msk.bf16.mxu0 %vm18750_vm8, %v17790_v38 }
 0x43b   :  { %v10274_v27 = vadd.f32 %v10273_v54, %v10272_v34  ;;  %v10275_v9 = vpop.f32.mrb[42].mxu1 }
 0x43c   :  { %v10166_v21 = vpop.f32.mrb[44].mxu0  ;;  %v10276_v61 = vpop.f32.mrb[43].mxu1 }
 0x43d   :  { %v16611_v22 = vadd.f32 %v10274_v27, %v10162_v50  ;;  %v10277_v24 = vadd.f32 %v10276_v61, %v10275_v9  ;;  %v10167_v49 = vpop.f32.mrb[45].mxu0  ;;  %v18755_v50 = vld [vmem:[#allocation103_spill] sm:$0xff]  ;;  %v18757_v9 = vld [vmem:[#allocation49_spill] sm:$0xff] }
 0x43e   :  { %v10168_v63 = vadd.f32 %v10167_v49, %v10166_v21  ;;  %v10169_v5 = vpop.f32.mrb[46].mxu0  ;;  %9019 = vmatmul.mubr.msk.bf16.gmra.mrb[148].mxu1 %vm18752_vm6, %v17790_v38  ;;  %vm18756_vm3 = vnez %v18755_v50  ;;  %vm18758_vm7 = vnez %v18757_v9  ;;  %v18763_v9 = vld [vmem:[#allocation51_spill] sm:$0xff] }
 0x43f   :  { %v16616_v16 = vadd.f32 %v10277_v24, %v10165_v28  ;;  %v10170_v23 = vpop.f32.mrb[47].mxu0  ;;  %9021 = vmatprep.mubr.msk.bf16.mxu1 %vm18754_vm5, %v17790_v38  ;;  %vm18764_vm2 = vnez %v18763_v9 }
 0x440   :  { %v10171_v34 = vadd.f32 %v10170_v23, %v10169_v5  ;;  %v18760_v5 = vld [vmem:[#allocation52_spill] sm:$0xff] }
 0x441   :  { %v10278_v54 = vpop.f32.mrb[44].mxu1  ;;  %8959 = vmatmul.mubr.msk.bf16.gmra.mrb[152].mxu0 %vm18756_vm3, %v17790_v38  ;;  %vm18761_vm10 = vnez %v18760_v5 }
 0x442   :  { %v10279_v27 = vpop.f32.mrb[45].mxu1  ;;  %8961 = vmatprep.mubr.msk.bf16.mxu0 %vm18758_vm7, %v17790_v38 }
 0x443   :  { %v10280_v21 = vadd.f32 %v10279_v27, %v10278_v54  ;;  %v10281_v61 = vpop.f32.mrb[46].mxu1 }
 0x444   :  { %v10172_v28 = vpop.f32.mrb[48].mxu0  ;;  %v10282_v24 = vpop.f32.mrb[47].mxu1 }
 0x445   :  { %v16627_v49 = vadd.f32 %v10280_v21, %v10168_v63  ;;  %v10283_v44 = vadd.f32 %v10282_v24, %v10281_v61  ;;  %v10173_v40 = vpop.f32.mrb[49].mxu0  ;;  %v18765_v63 = vld [vmem:[#allocation54_spill] sm:$0xff]  ;;  %v18767_v61 = vld [vmem:[#allocation53_spill] sm:$0xff] }
 0x446   :  { %v10174_v0 = vadd.f32 %v10173_v40, %v10172_v28  ;;  %v10175_v23 = vpop.f32.mrb[50].mxu0  ;;  %9023 = vmatmul.mubr.msk.bf16.gmra.mrb[152].mxu1 %vm18761_vm10, %v17790_v38  ;;  %vm18766_vm11 = vnez %v18765_v63  ;;  %vm18768_vm14 = vnez %v18767_v61  ;;  %v18773_v61 = vld [vmem:[#allocation55_spill] sm:$0xff] }
 0x447   :  { %18759 = vst [vmem:[#allocation28_spill] sm:$0xff] %v16627_v49  ;;  %v16632_v50 = vadd.f32 %v10283_v44, %v10171_v34  ;;  %v10176_v12 = vpop.f32.mrb[51].mxu0  ;;  %9025 = vmatprep.mubr.msk.bf16.mxu1 %vm18764_vm2, %v17790_v38  ;;  %vm18774_vm8 = vnez %v18773_v61 }
 0x448   :  { %v10177_v54 = vadd.f32 %v10176_v12, %v10175_v23  ;;  %v18770_v23 = vld [vmem:[#allocation56_spill] sm:$0xff] }
 0x449   :  { %18762 = vst [vmem:[#allocation30_spill] sm:$0xff] %v16632_v50  ;;  %v10284_v27 = vpop.f32.mrb[48].mxu1  ;;  %8963 = vmatmul.mubr.msk.bf16.gmra.mrb[156].mxu0 %vm18766_vm11, %v17790_v38  ;;  %vm18771_vm12 = vnez %v18770_v23 }
 0x44a   :  { %v10285_v21 = vpop.f32.mrb[49].mxu1  ;;  %8965 = vmatprep.mubr.msk.bf16.mxu0 %vm18768_vm14, %v17790_v38 }
 0x44b   :  { %v10286_v28 = vadd.f32 %v10285_v21, %v10284_v27  ;;  %v10287_v24 = vpop.f32.mrb[50].mxu1 }
 0x44c   :  { %v10178_v34 = vpop.f32.mrb[52].mxu0  ;;  %v10288_v44 = vpop.f32.mrb[51].mxu1 }
 0x44d   :  { %v16643_v40 = vadd.f32 %v10286_v28, %v10174_v0  ;;  %v10289_v5 = vadd.f32 %v10288_v44, %v10287_v24  ;;  %v10179_v9 = vpop.f32.mrb[53].mxu0  ;;  %v18775_v0 = vld [vmem:[#allocation108_spill] sm:$0xff]  ;;  %v18777_v24 = vld [vmem:[#allocation58_spill] sm:$0xff] }
 0x44e   :  { %v10180_v50 = vadd.f32 %v10179_v9, %v10178_v34  ;;  %v10181_v12 = vpop.f32.mrb[54].mxu0  ;;  %9027 = vmatmul.mubr.msk.bf16.gmra.mrb[156].mxu1 %vm18771_vm12, %v17790_v38  ;;  %vm18776_vm6 = vnez %v18775_v0  ;;  %vm18778_vm5 = vnez %v18777_v24  ;;  %v18783_v24 = vld [vmem:[#allocation60_spill] sm:$0xff] }
 0x44f   :  { %18769 = vst [vmem:[#allocation38_spill] sm:$0xff] %v16643_v40  ;;  %v16648_v63 = vadd.f32 %v10289_v5, %v10177_v54  ;;  %v10182_v49 = vpop.f32.mrb[55].mxu0  ;;  %9029 = vmatprep.mubr.msk.bf16.mxu1 %vm18774_vm8, %v17790_v38  ;;  %vm18784_vm7 = vnez %v18783_v24 }
 0x450   :  { %v10183_v27 = vadd.f32 %v10182_v49, %v10181_v12  ;;  %v18780_v12 = vld [vmem:[#allocation57_spill] sm:$0xff] }
 0x451   :  { %18772 = vst [vmem:[#allocation70_spill] sm:$0xff] %v16648_v63  ;;  %v10290_v21 = vpop.f32.mrb[52].mxu1  ;;  %8967 = vmatmul.mubr.msk.bf16.gmra.mrb[160].mxu0 %vm18776_vm6, %v17790_v38  ;;  %vm18781_vm3 = vnez %v18780_v12 }
 0x452   :  { %v10291_v28 = vpop.f32.mrb[53].mxu1  ;;  %8969 = vmatprep.mubr.msk.bf16.mxu0 %vm18778_vm5, %v17790_v38 }
 0x453   :  { %v10292_v34 = vadd.f32 %v10291_v28, %v10290_v21  ;;  %v10293_v44 = vpop.f32.mrb[54].mxu1 }
 0x454   :  { %v10184_v54 = vpop.f32.mrb[56].mxu0  ;;  %v10294_v5 = vpop.f32.mrb[55].mxu1 }
 0x455   :  { %v16659_v9 = vadd.f32 %v10292_v34, %v10180_v50  ;;  %v10295_v23 = vadd.f32 %v10294_v5, %v10293_v44  ;;  %v10185_v61 = vpop.f32.mrb[57].mxu0  ;;  %v18785_v50 = vld [vmem:[#allocation59_spill] sm:$0xff]  ;;  %v18787_v44 = vld [vmem:[#allocation62_spill] sm:$0xff] }
 0x456   :  { %v10186_v63 = vadd.f32 %v10185_v61, %v10184_v54  ;;  %v10187_v49 = vpop.f32.mrb[58].mxu0  ;;  %9031 = vmatmul.mubr.msk.bf16.gmra.mrb[160].mxu1 %vm18781_vm3, %v17790_v38  ;;  %vm18786_vm10 = vnez %v18785_v50  ;;  %vm18788_vm2 = vnez %v18787_v44  ;;  %v18793_v44 = vld [vmem:[#allocation64_spill] sm:$0xff] }
 0x457   :  { %18779 = vst [vmem:[#allocation74_spill] sm:$0xff] %v16659_v9  ;;  %v16664_v0 = vadd.f32 %v10295_v23, %v10183_v27  ;;  %v10188_v40 = vpop.f32.mrb[59].mxu0  ;;  %9033 = vmatprep.mubr.msk.bf16.mxu1 %vm18784_vm7, %v17790_v38  ;;  %vm18794_vm14 = vnez %v18793_v44 }
 0x458   :  { %v10189_v21 = vadd.f32 %v10188_v40, %v10187_v49  ;;  %v18790_v49 = vld [vmem:[#allocation61_spill] sm:$0xff] }
 0x459   :  { %18782 = vst [vmem:[#allocation27_spill] sm:$0xff] %v16664_v0  ;;  %v10296_v28 = vpop.f32.mrb[56].mxu1  ;;  %8971 = vmatmul.mubr.msk.bf16.gmra.mrb[164].mxu0 %vm18786_vm10, %v17790_v38  ;;  %vm18791_vm11 = vnez %v18790_v49  ;;  %vm18807_vm10 = vnez %v18468_v20  ;;  %v18811_v20 = vld [vmem:[#allocation80_spill] sm:$0xff] }
 0x45a   :  { %v10297_v34 = vpop.f32.mrb[57].mxu1  ;;  %8973 = vmatprep.mubr.msk.bf16.mxu0 %vm18788_vm2, %v17790_v38  ;;  %vm18808_vm2 = vnez %v18470_v2 }
 0x45b   :  { %v10298_v54 = vadd.f32 %v10297_v34, %v10296_v28  ;;  %v10299_v5 = vpop.f32.mrb[58].mxu1 }
 0x45c   :  { %v10190_v27 = vpop.f32.mrb[60].mxu0  ;;  %v10300_v23 = vpop.f32.mrb[59].mxu1 }
 0x45d   :  { %v16675_v61 = vadd.f32 %v10298_v54, %v10186_v63  ;;  %v10301_v12 = vadd.f32 %v10300_v23, %v10299_v5  ;;  %v10191_v24 = vpop.f32.mrb[61].mxu0  ;;  %v18795_v63 = vld [vmem:[#allocation63_spill] sm:$0xff]  ;;  %v18797_v5 = vld [vmem:[#allocation68_spill] sm:$0xff] }
 0x45e   :  { %v10192_v0 = vadd.f32 %v10191_v24, %v10190_v27  ;;  %v10193_v40 = vpop.f32.mrb[62].mxu0  ;;  %9035 = vmatmul.mubr.msk.bf16.gmra.mrb[164].mxu1 %vm18791_vm11, %v17790_v38  ;;  %vm18796_vm12 = vnez %v18795_v63  ;;  %vm18798_vm8 = vnez %v18797_v5  ;;  %v18801_v5 = vld [vmem:[#allocation69_spill] sm:$0xff] }
 0x45f   :  { %18789 = vst [vmem:[#allocation32_spill] sm:$0xff] %v16675_v61  ;;  %v16680_v50 = vadd.f32 %v10301_v12, %v10189_v21  ;;  %v10194_v9 = vpop.f32.mrb[63].mxu0  ;;  %9037 = vmatprep.mubr.msk.bf16.mxu1 %vm18794_vm14, %v17790_v38  ;;  %vm18802_vm5 = vnez %v18801_v5  ;;  %vm18812_vm14 = vnez %v18811_v20 }
 0x460   :  { %v10195_v28 = vadd.f32 %v10194_v9, %v10193_v40  ;;  %v18799_v40 = vld [vmem:[#allocation66_spill] sm:$0xff] }
 0x461   :  { %18792 = vst [vmem:[#allocation83_spill] sm:$0xff] %v16680_v50  ;;  %v10302_v34 = vpop.f32.mrb[60].mxu1  ;;  %8975 = vmatmul.mubr.msk.bf16.gmra.mrb[168].mxu0 %vm18796_vm12, %v17790_v38  ;;  %vm18800_vm6 = vnez %v18799_v40 }
 0x462   :  { %v10303_v54 = vpop.f32.mrb[61].mxu1  ;;  %8977 = vmatprep.mubr.msk.bf16.mxu0 %vm18798_vm8, %v17790_v38 }
 0x463   :  { %v10304_v27 = vadd.f32 %v10303_v54, %v10302_v34  ;;  %v10305_v23 = vpop.f32.mrb[62].mxu1 }
 0x464   :  { %v10306_v21 = vpop.f32.mrb[63].mxu1  ;;  %v10324_v12 = vpop.f32.mrb[64].mxu0 }
 0x465   :  { %v16691_v24 = vadd.f32 %v10304_v27, %v10192_v0  ;;  %v10307_v49 = vadd.f32 %v10306_v21, %v10305_v23  ;;  %v10325_v44 = vpop.f32.mrb[65].mxu0  ;;  %v18803_v27 = vld [vmem:[#allocation72_spill] sm:$0xff] }
 0x466   :  { %v10326_v50 = vadd.f32 %v10325_v44, %v10324_v12  ;;  %v10327_v9 = vpop.f32.mrb[66].mxu0  ;;  %9039 = vmatmul.mubr.msk.bf16.gmra.mrb[168].mxu1 %vm18800_vm6, %v17790_v38  ;;  %vm18804_vm3 = vnez %v18803_v27  ;;  %v18805_v12 = vld [vmem:[#allocation76_spill] sm:$0xff] }
 0x467   :  { %v16696_v63 = vadd.f32 %v10307_v49, %v10195_v28  ;;  %v10328_v61 = vpop.f32.mrb[67].mxu0  ;;  %9041 = vmatprep.mubr.msk.bf16.mxu1 %vm18802_vm5, %v17790_v38  ;;  %vm18806_vm7 = vnez %v18805_v12 }
 0x468   :  { %v5999_v34 = vadd.f32 %v10326_v50, %v16242_v46  ;;  %v10329_v54 = vadd.f32 %v10328_v61, %v10327_v9 }
 0x469   :  { %v10436_v0 = vpop.f32.mrb[64].mxu1  ;;  %8979 = vmatmul.mubr.msk.bf16.gmra.mrb[172].mxu0 %vm18804_vm3, %v17790_v38  ;;  %vm18821_vm3 = vnez %v18494_v47  ;;  %v18825_v47 = vld [vmem:[#allocation88_spill] sm:$0xff] }
 0x46a   :  { %v6002_v23 = vadd.f32 %v10329_v54, %v16257_v57  ;;  %v10437_v21 = vpop.f32.mrb[65].mxu1  ;;  %8981 = vmatprep.mubr.msk.bf16.mxu0 %vm18806_vm7, %v17790_v38  ;;  %vm18822_vm7 = vnez %v18496_v17 }
 0x46b   :  { %v10438_v28 = vadd.f32 %v10437_v21, %v10436_v0  ;;  %v10439_v49 = vpop.f32.mrb[66].mxu1  ;;  %v18809_v21 = vld [vmem:[#allocation75_spill] sm:$0xff] }
 0x46c   :  { %v10330_v44 = vpop.f32.mrb[68].mxu0  ;;  %v10440_v40 = vpop.f32.mrb[67].mxu1  ;;  %vm18810_vm11 = vnez %v18809_v21 }
 0x46d   :  { %v16709_v5 = vadd.f32 %v10438_v28, %v5999_v34  ;;  %v10441_v46 = vadd.f32 %v10440_v40, %v10439_v49  ;;  %v10331_v61 = vpop.f32.mrb[69].mxu0 }
 0x46e   :  { %v10332_v50 = vadd.f32 %v10331_v61, %v10330_v44  ;;  %v10333_v9 = vpop.f32.mrb[70].mxu0  ;;  %9043 = vmatmul.mubr.msk.bf16.gmra.mrb[172].mxu1 %vm18807_vm10, %v17790_v38 }
 0x46f   :  { %v16714_v57 = vadd.f32 %v10441_v46, %v6002_v23  ;;  %v10334_v54 = vpop.f32.mrb[71].mxu0  ;;  %9045 = vmatprep.mubr.msk.bf16.mxu1 %vm18808_vm2, %v17790_v38  ;;  %vm18826_vm2 = vnez %v18825_v47 }
 0x470   :  { %v6007_v0 = vadd.f32 %v10332_v50, %v16300_v60  ;;  %v10335_v27 = vadd.f32 %v10334_v54, %v10333_v9  ;;  %v18813_v9 = vld [vmem:[#allocation78_spill] sm:$0xff] }
 0x471   :  { %v10442_v34 = vpop.f32.mrb[68].mxu1  ;;  %8983 = vmatmul.mubr.msk.bf16.gmra.mrb[176].mxu0 %vm18810_vm11, %v17790_v38  ;;  %vm18814_vm12 = vnez %v18813_v9  ;;  %vm18827_vm11 = vnez %v18506_v41  ;;  %v18832_v41 = vld [vmem:[#allocation90_spill] sm:$0xff] }
 0x472   :  { %v6010_v12 = vadd.f32 %v10335_v27, %v16312_v33  ;;  %v10443_v28 = vpop.f32.mrb[69].mxu1  ;;  %8985 = vmatprep.mubr.msk.bf16.mxu0 %vm18812_vm14, %v17790_v38  ;;  %v18815_v27 = vld [vmem:[#allocation82_spill] sm:$0xff] }
 0x473   :  { %v10444_v23 = vadd.f32 %v10443_v28, %v10442_v34  ;;  %v10445_v49 = vpop.f32.mrb[70].mxu1  ;;  %vm18816_vm8 = vnez %v18815_v27  ;;  %v18817_v28 = vld [vmem:[#allocation81_spill] sm:$0xff] }
 0x474   :  { %v10336_v44 = vpop.f32.mrb[72].mxu0  ;;  %v10446_v2 = vpop.f32.mrb[71].mxu1  ;;  %vm18818_vm6 = vnez %v18817_v28 }
 0x475   :  { %v16727_v40 = vadd.f32 %v10444_v23, %v6007_v0  ;;  %v10447_v60 = vadd.f32 %v10446_v2, %v10445_v49  ;;  %v10337_v46 = vpop.f32.mrb[73].mxu0  ;;  %v18819_v49 = vld [vmem:[#allocation86_spill] sm:$0xff] }
 0x476   :  { %v10338_v61 = vadd.f32 %v10337_v46, %v10336_v44  ;;  %v10339_v50 = vpop.f32.mrb[74].mxu0  ;;  %9047 = vmatmul.mubr.msk.bf16.gmra.mrb[176].mxu1 %vm18814_vm12, %v17790_v38  ;;  %vm18820_vm5 = vnez %v18819_v49 }
 0x477   :  { %v16732_v33 = vadd.f32 %v10447_v60, %v6010_v12  ;;  %v10340_v54 = vpop.f32.mrb[75].mxu0  ;;  %9049 = vmatprep.mubr.msk.bf16.mxu1 %vm18816_vm8, %v17790_v38  ;;  %vm18833_vm8 = vnez %v18832_v41 }
 0x478   :  { %v6015_v34 = vadd.f32 %v10338_v61, %v16355_v43  ;;  %v10341_v21 = vadd.f32 %v10340_v54, %v10339_v50 }
 0x479   :  { %v10448_v0 = vpop.f32.mrb[72].mxu1  ;;  %8987 = vmatmul.mubr.msk.bf16.gmra.mrb[180].mxu0 %vm18818_vm6, %v17790_v38  ;;  %vm18834_vm6 = vnez %v18518_v45  ;;  %v18839_v45 = vld [vmem:[#allocation98_spill] sm:$0xff] }
 0x47a   :  { %v6018_v20 = vadd.f32 %v10341_v21, %v16360_v35  ;;  %v10449_v23 = vpop.f32.mrb[73].mxu1  ;;  %8989 = vmatprep.mubr.msk.bf16.mxu0 %vm18820_vm5, %v17790_v38 }
 0x47b   :  { %v10450_v12 = vadd.f32 %v10449_v23, %v10448_v0  ;;  %v10451_v44 = vpop.f32.mrb[74].mxu1  ;;  %v18823_v0 = vld [vmem:[#allocation84_spill] sm:$0xff] }
 0x47c   :  { %v10342_v2 = vpop.f32.mrb[76].mxu0  ;;  %v10452_v60 = vpop.f32.mrb[75].mxu1  ;;  %vm18824_vm10 = vnez %v18823_v0 }
 0x47d   :  { %v16745_v46 = vadd.f32 %v10450_v12, %v6015_v34  ;;  %v10453_v43 = vadd.f32 %v10452_v60, %v10451_v44  ;;  %v10343_v61 = vpop.f32.mrb[77].mxu0 }
 0x47e   :  { %v10344_v50 = vadd.f32 %v10343_v61, %v10342_v2  ;;  %v10345_v9 = vpop.f32.mrb[78].mxu0  ;;  %9051 = vmatmul.mubr.msk.bf16.gmra.mrb[180].mxu1 %vm18821_vm3, %v17790_v38 }
 0x47f   :  { %v16750_v35 = vadd.f32 %v10453_v43, %v6018_v20  ;;  %v10346_v54 = vpop.f32.mrb[79].mxu0  ;;  %9053 = vmatprep.mubr.msk.bf16.mxu1 %vm18822_vm7, %v17790_v38  ;;  %vm18840_vm7 = vnez %v18839_v45 }
 0x480   :  { %v6023_v27 = vadd.f32 %v10344_v50, %v16399_v36  ;;  %v10347_v21 = vadd.f32 %v10346_v54, %v10345_v9  ;;  %v18828_v50 = vld [vmem:[#allocation87_spill] sm:$0xff] }
 0x481   :  { %v10454_v34 = vpop.f32.mrb[76].mxu1  ;;  %8991 = vmatmul.mubr.msk.bf16.gmra.mrb[184].mxu0 %vm18824_vm10, %v17790_v38  ;;  %vm18829_vm14 = vnez %v18828_v50  ;;  %vm18841_vm10 = vnez %v18529_v52  ;;  %v18845_v52 = vld [vmem:[#allocation100_spill] sm:$0xff] }
 0x482   :  { %v6026_v28 = vadd.f32 %v10347_v21, %v16404_v7  ;;  %v10455_v23 = vpop.f32.mrb[77].mxu1  ;;  %8993 = vmatprep.mubr.msk.bf16.mxu0 %vm18826_vm2, %v17790_v38  ;;  %v18830_v21 = vld [vmem:[#allocation92_spill] sm:$0xff]  ;;  %vm18842_vm2 = vnez %v18533_v30 }
 0x483   :  { %v10456_v20 = vadd.f32 %v10455_v23, %v10454_v34  ;;  %v10457_v49 = vpop.f32.mrb[78].mxu1  ;;  %vm18831_vm12 = vnez %v18830_v21 }
 0x484   :  { %v10348_v12 = vpop.f32.mrb[80].mxu0  ;;  %v10458_v17 = vpop.f32.mrb[79].mxu1 }
 0x485   :  { %v16763_v44 = vadd.f32 %v10456_v20, %v6023_v27  ;;  %v10459_v36 = vadd.f32 %v10458_v17, %v10457_v49  ;;  %v10349_v2 = vpop.f32.mrb[81].mxu0 }
 0x486   :  { %v10350_v60 = vadd.f32 %v10349_v2, %v10348_v12  ;;  %v10351_v43 = vpop.f32.mrb[82].mxu0  ;;  %9055 = vmatmul.mubr.msk.bf16.gmra.mrb[184].mxu1 %vm18827_vm11, %v17790_v38 }
 0x487   :  { %v16768_v7 = vadd.f32 %v10459_v36, %v6026_v28  ;;  %v10352_v61 = vpop.f32.mrb[83].mxu0  ;;  %9057 = vmatprep.mubr.msk.bf16.mxu1 %vm18829_vm14, %v17790_v38  ;;  %vm18846_vm14 = vnez %v18845_v52 }
 0x488   :  { %v6031_v9 = vadd.f32 %v10350_v60, %v16425_v14  ;;  %v10353_v54 = vadd.f32 %v10352_v61, %v10351_v43  ;;  %v18835_v60 = vld [vmem:[#allocation94_spill] sm:$0xff] }
 0x489   :  { %v10460_v27 = vpop.f32.mrb[80].mxu1  ;;  %8995 = vmatmul.mubr.msk.bf16.gmra.mrb[188].mxu0 %vm18831_vm12, %v17790_v38  ;;  %vm18836_vm5 = vnez %v18835_v60  ;;  %vm18847_vm12 = vnez %v18542_v31  ;;  %v18850_v31 = vld [vmem:[#allocation99_spill] sm:$0xff] }
 0x48a   :  { %v6034_v34 = vadd.f32 %v10353_v54, %v16433_v29  ;;  %v10461_v0 = vpop.f32.mrb[81].mxu1  ;;  %9061 = vmatprep.mubr.msk.bf16.mxu0 %vm18833_vm8, %v17790_v38  ;;  %vm18848_vm8 = vnez %v18546_v51 }
 0x48b   :  { %v10462_v28 = vadd.f32 %v10461_v0, %v10460_v27  ;;  %v10463_v23 = vpop.f32.mrb[82].mxu1 }
 0x48c   :  { %v10354_v47 = vpop.f32.mrb[84].mxu0  ;;  %v10464_v20 = vpop.f32.mrb[83].mxu1 }
 0x48d   :  { %v16781_v49 = vadd.f32 %v10462_v28, %v6031_v9  ;;  %v10465_v14 = vadd.f32 %v10464_v20, %v10463_v23  ;;  %v10355_v12 = vpop.f32.mrb[85].mxu0  ;;  %v18837_v9 = vld [vmem:[#allocation93_spill] sm:$0xff] }
 0x48e   :  { %v10356_v17 = vadd.f32 %v10355_v12, %v10354_v47  ;;  %v10357_v36 = vpop.f32.mrb[86].mxu0  ;;  %9059 = vmatmul.mubr.msk.bf16.gmra.mrb[188].mxu1 %vm18834_vm6, %v17790_v38  ;;  %vm18838_vm3 = vnez %v18837_v9  ;;  %vm18849_vm6 = vnez %v18549_v58 }
 0x48f   :  { %v16786_v29 = vadd.f32 %v10465_v14, %v6034_v34  ;;  %v10358_v2 = vpop.f32.mrb[87].mxu0  ;;  %9125 = vmatprep.mubr.msk.bf16.mxu1 %vm18836_vm5, %v17790_v38  ;;  %vm18851_vm5 = vnez %v18850_v31 }
 0x490   :  { %v6039_v43 = vadd.f32 %v10356_v17, %v16459_v6  ;;  %v10359_v61 = vadd.f32 %v10358_v2, %v10357_v36  ;;  %v18843_v2 = vld [vmem:[#allocation96_spill] sm:$0xff] }
 0x491   :  { %v10466_v50 = vpop.f32.mrb[84].mxu1  ;;  %9063 = vmatmul.mubr.msk.bf16.vlgmr.msra.gmra.mrb[192].mxu0 %vm18838_vm3, %v17790_v38  ;;  %vm18844_vm11 = vnez %v18843_v2  ;;  %vm18852_vm3 = vnez %v18555_v13  ;;  %v18855_v13 = vld [vmem:[#allocation104_spill] sm:$0xff] }
 0x492   :  { %v6042_v54 = vadd.f32 %v10359_v61, %v16467_v48  ;;  %v10467_v27 = vpop.f32.mrb[85].mxu1  ;;  %9065 = vmatprep.mubr.msk.bf16.mxu0 %vm18840_vm7, %v17790_v38  ;;  %vm18853_vm7 = vnez %v18559_v1 }
 0x493   :  { %v10468_v21 = vadd.f32 %v10467_v27, %v10466_v50  ;;  %v10469_v34 = vpop.f32.mrb[86].mxu1 }
 0x494   :  { %v10360_v0 = vpop.f32.mrb[88].mxu0  ;;  %v10470_v41 = vpop.f32.mrb[87].mxu1 }
 0x495   :  { %v16799_v28 = vadd.f32 %v10468_v21, %v6039_v43  ;;  %v10471_v6 = vadd.f32 %v10470_v41, %v10469_v34  ;;  %v10361_v23 = vpop.f32.mrb[89].mxu0 }
 0x496   :  { %v10362_v47 = vadd.f32 %v10361_v23, %v10360_v0  ;;  %v10363_v20 = vpop.f32.mrb[90].mxu0  ;;  %9127 = vmatmul.mubr.msk.bf16.vlgmr.msra.gmra.mrb[192].mxu1 %vm18841_vm10, %v17790_v38  ;;  %vm18854_vm10 = vnez %v18561_v59 }
 0x497   :  { %v16804_v48 = vadd.f32 %v10471_v6, %v6042_v54  ;;  %v10364_v14 = vpop.f32.mrb[91].mxu0  ;;  %9129 = vmatprep.mubr.msk.bf16.mxu1 %vm18842_vm2, %v17790_v38  ;;  %vm18856_vm2 = vnez %v18855_v13 }
 0x498   :  { %v6047_v12 = vadd.f32 %v10362_v47, %v16499_v53  ;;  %v10365_v17 = vadd.f32 %v10364_v14, %v10363_v20 }
 0x499   :  { %v10472_v36 = vpop.f32.mrb[88].mxu1  ;;  %9067 = vmatmul.mubr.msk.bf16.gmra.mrb[196].mxu0 %vm18844_vm11, %v17790_v38  ;;  %vm18857_vm11 = vnez %v18566_v62 }
 0x49a   :  { %v6050_v60 = vadd.f32 %v10365_v17, %v16507_v42  ;;  %v10473_v43 = vpop.f32.mrb[89].mxu1  ;;  %9069 = vmatprep.mubr.msk.bf16.mxu0 %vm18846_vm14, %v17790_v38  ;;  %vm18858_vm14 = vnez %v18570_v32 }
 0x49b   :  { %v10474_v61 = vadd.f32 %v10473_v43, %v10472_v36  ;;  %v10475_v50 = vpop.f32.mrb[90].mxu1 }
 0x49c   :  { %v10366_v9 = vpop.f32.mrb[92].mxu0  ;;  %v10476_v30 = vpop.f32.mrb[91].mxu1 }
 0x49d   :  { %v16817_v54 = vadd.f32 %v10474_v61, %v6047_v12  ;;  %v10477_v53 = vadd.f32 %v10476_v30, %v10475_v50  ;;  %v10367_v27 = vpop.f32.mrb[93].mxu0 }
 0x49e   :  { %v10368_v45 = vadd.f32 %v10367_v27, %v10366_v9  ;;  %v10369_v21 = vpop.f32.mrb[94].mxu0  ;;  %9131 = vmatmul.mubr.msk.bf16.gmra.mrb[196].mxu1 %vm18847_vm12, %v17790_v38  ;;  %vm18859_vm12 = vnez %v18572_v10 }
 0x49f   :  { %v16822_v42 = vadd.f32 %v10477_v53, %v6050_v60  ;;  %v10370_v34 = vpop.f32.mrb[95].mxu0  ;;  %9133 = vmatprep.mubr.msk.bf16.mxu1 %vm18848_vm8, %v17790_v38  ;;  %vm18860_vm8 = vnez %v18574_v18 }
 0x4a0   :  { %v6055_v0 = vadd.f32 %v10368_v45, %v16539_v37  ;;  %v10371_v41 = vadd.f32 %v10370_v34, %v10369_v21 }
 0x4a1   :  { %v10478_v6 = vpop.f32.mrb[92].mxu1  ;;  %9071 = vmatmul.mubr.msk.bf16.gmra.mrb[200].mxu0 %vm18849_vm6, %v17790_v38  ;;  %vm18861_vm6 = vnez %v18576_v56 }
 0x4a2   :  { %v6058_v23 = vadd.f32 %v10371_v41, %v16547_v4  ;;  %v10479_v47 = vpop.f32.mrb[93].mxu1  ;;  %9073 = vmatprep.mubr.msk.bf16.mxu0 %vm18851_vm5, %v17790_v38  ;;  %vm18862_vm5 = vnez %v18580_v26 }
 0x4a3   :  { %v10480_v20 = vadd.f32 %v10479_v47, %v10478_v6  ;;  %v10481_v14 = vpop.f32.mrb[94].mxu1 }
 0x4a4   :  { %v10372_v12 = vpop.f32.mrb[96].mxu0  ;;  %v10482_v51 = vpop.f32.mrb[95].mxu1 }
 0x4a5   :  { %v16835_v17 = vadd.f32 %v10480_v20, %v6055_v0  ;;  %v10483_v37 = vadd.f32 %v10482_v51, %v10481_v14  ;;  %v10373_v36 = vpop.f32.mrb[97].mxu0 }
 0x4a6   :  { %v10374_v2 = vadd.f32 %v10373_v36, %v10372_v12  ;;  %v10375_v60 = vpop.f32.mrb[98].mxu0  ;;  %9135 = vmatmul.mubr.msk.bf16.gmra.mrb[200].mxu1 %vm18852_vm3, %v17790_v38  ;;  %vm18863_vm3 = vnez %v18583_v19 }
 0x4a7   :  { %v16840_v58 = vadd.f32 %v10483_v37, %v6058_v23  ;;  %v10376_v4 = vpop.f32.mrb[99].mxu0  ;;  %9137 = vmatprep.mubr.msk.bf16.mxu1 %vm18853_vm7, %v17790_v38  ;;  %vm18864_vm7 = vnez %v18585_v3  ;;  %v18867_v3 = vld [vmem:[#allocation28_spill] sm:$0xff] }
 0x4a8   :  { %v6063_v43 = vadd.f32 %v10374_v2, %v16576_v55  ;;  %v10377_v52 = vadd.f32 %v10376_v4, %v10375_v60 }
 0x4a9   :  { %v10484_v61 = vpop.f32.mrb[96].mxu1  ;;  %9075 = vmatmul.mubr.msk.bf16.gmra.mrb[204].mxu0 %vm18854_vm10, %v17790_v38  ;;  %vm18865_vm10 = vnez %v18587_v39  ;;  %v18871_v39 = vld [vmem:[#allocation106_spill] sm:$0xff] }
 0x4aa   :  { %v6066_v50 = vadd.f32 %v10377_v52, %v16581_v11  ;;  %v10485_v9 = vpop.f32.mrb[97].mxu1  ;;  %9077 = vmatprep.mubr.msk.bf16.mxu0 %vm18856_vm2, %v17790_v38  ;;  %vm18866_vm2 = vnez %v18589_v15 }
 0x4ab   :  { %v10486_v30 = vadd.f32 %v10485_v9, %v10484_v61  ;;  %v10487_v53 = vpop.f32.mrb[98].mxu1 }
 0x4ac   :  { %v10378_v27 = vpop.f32.mrb[100].mxu0  ;;  %v10488_v1 = vpop.f32.mrb[99].mxu1 }
 0x4ad   :  { %v16853_v45 = vadd.f32 %v10486_v30, %v6063_v43  ;;  %v10489_v55 = vadd.f32 %v10488_v1, %v10487_v53  ;;  %v10379_v21 = vpop.f32.mrb[101].mxu0 }
 0x4ae   :  { %v10380_v34 = vadd.f32 %v10379_v21, %v10378_v27  ;;  %v10381_v0 = vpop.f32.mrb[102].mxu0  ;;  %9139 = vmatmul.mubr.msk.bf16.gmra.mrb[204].mxu1 %vm18857_vm11, %v17790_v38  ;;  %v18870_v21 = vld [vmem:[#allocation30_spill] sm:$0xff] }
 0x4af   :  { %v16858_v59 = vadd.f32 %v10489_v55, %v6066_v50  ;;  %v10382_v11 = vpop.f32.mrb[103].mxu0  ;;  %9141 = vmatprep.mubr.msk.bf16.mxu1 %vm18858_vm14, %v17790_v38  ;;  %v18868_v55 = vld [vmem:[#allocation102_spill] sm:$0xff]  ;;  %vm18872_vm14 = vnez %v18871_v39 }
 0x4b0   :  { %v6071_v41 = vadd.f32 %v10380_v34, %v16595_v25  ;;  %v10383_v6 = vadd.f32 %v10382_v11, %v10381_v0  ;;  %vm18869_vm11 = vnez %v18868_v55  ;;  %v18885_v55 = vld [vmem:[#allocation113_spill] sm:$0xff] }
 0x4b1   :  { %v10490_v23 = vpop.f32.mrb[100].mxu1  ;;  %9079 = vmatmul.mubr.msk.bf16.gmra.mrb[208].mxu0 %vm18859_vm12, %v17790_v38 }
 0x4b2   :  { %v6074_v47 = vadd.f32 %v10383_v6, %v16600_v8  ;;  %v10491_v31 = vpop.f32.mrb[101].mxu1  ;;  %9081 = vmatprep.mubr.msk.bf16.mxu0 %vm18860_vm8, %v17790_v38 }
 0x4b3   :  { %v10492_v62 = vadd.f32 %v10491_v31, %v10490_v23  ;;  %v10493_v20 = vpop.f32.mrb[102].mxu1 }
 0x4b4   :  { %v10384_v14 = vpop.f32.mrb[104].mxu0  ;;  %v10494_v32 = vpop.f32.mrb[103].mxu1 }
 0x4b5   :  { %v16871_v12 = vadd.f32 %v10492_v62, %v6071_v41  ;;  %v10495_v25 = vadd.f32 %v10494_v32, %v10493_v20  ;;  %v10385_v51 = vpop.f32.mrb[105].mxu0 }
 0x4b6   :  { %v10386_v37 = vadd.f32 %v10385_v51, %v10384_v14  ;;  %v10387_v36 = vpop.f32.mrb[106].mxu0  ;;  %9143 = vmatmul.mubr.msk.bf16.gmra.mrb[208].mxu1 %vm18861_vm6, %v17790_v38  ;;  %v18873_v14 = vld [vmem:[#allocation105_spill] sm:$0xff] }
 0x4b7   :  { %v16876_v10 = vadd.f32 %v10495_v25, %v6074_v47  ;;  %v10388_v8 = vpop.f32.mrb[107].mxu0  ;;  %9145 = vmatprep.mubr.msk.bf16.mxu1 %vm18862_vm5, %v17790_v38  ;;  %vm18874_vm12 = vnez %v18873_v14  ;;  %v18875_v51 = vld [vmem:[#allocation109_spill] sm:$0xff] }
 0x4b8   :  { %v6079_v18 = vadd.f32 %v10386_v37, %v16611_v22  ;;  %v10389_v2 = vadd.f32 %v10388_v8, %v10387_v36  ;;  %vm18876_vm8 = vnez %v18875_v51  ;;  %v18877_v37 = vld [vmem:[#allocation38_spill] sm:$0xff] }
 0x4b9   :  { %v10496_v60 = vpop.f32.mrb[104].mxu1  ;;  %9083 = vmatmul.mubr.msk.bf16.gmra.mrb[212].mxu0 %vm18863_vm3, %v17790_v38 }
 0x4ba   :  { %v6082_v4 = vadd.f32 %v10389_v2, %v16616_v16  ;;  %v10497_v43 = vpop.f32.mrb[105].mxu1  ;;  %9085 = vmatprep.mubr.msk.bf16.mxu0 %vm18864_vm7, %v17790_v38  ;;  %v18878_v2 = vld [vmem:[#allocation107_spill] sm:$0xff]  ;;  %vm18886_vm7 = vnez %v18885_v55 }
 0x4bb   :  { %v10498_v56 = vadd.f32 %v10497_v43, %v10496_v60  ;;  %v10499_v52 = vpop.f32.mrb[106].mxu1  ;;  %vm18879_vm6 = vnez %v18878_v2  ;;  %v18880_v60 = vld [vmem:[#allocation70_spill] sm:$0xff] }
 0x4bc   :  { %v10390_v61 = vpop.f32.mrb[108].mxu0  ;;  %v10500_v26 = vpop.f32.mrb[107].mxu1 }
 0x4bd   :  { %v16889_v50 = vadd.f32 %v10498_v56, %v6079_v18  ;;  %v10501_v22 = vadd.f32 %v10500_v26, %v10499_v52  ;;  %v10391_v9 = vpop.f32.mrb[109].mxu0  ;;  %v18881_v56 = vld [vmem:[#allocation111_spill] sm:$0xff] }
 0x4be   :  { %v10392_v13 = vadd.f32 %v10391_v9, %v10390_v61  ;;  %v10393_v30 = vpop.f32.mrb[110].mxu0  ;;  %9147 = vmatmul.mubr.msk.bf16.gmra.mrb[212].mxu1 %vm18865_vm10, %v17790_v38  ;;  %vm18882_vm5 = vnez %v18881_v56 }
 0x4bf   :  { %v16894_v19 = vadd.f32 %v10501_v22, %v6082_v4  ;;  %v10394_v16 = vpop.f32.mrb[111].mxu0  ;;  %9149 = vmatprep.mubr.msk.bf16.mxu1 %vm18866_vm2, %v17790_v38 }
 0x4c0   :  { %v6087_v53 = vadd.f32 %v10392_v13, %v18867_v3  ;;  %v10395_v27 = vadd.f32 %v10394_v16, %v10393_v30 }
 0x4c1   :  { %v10502_v1 = vpop.f32.mrb[108].mxu1  ;;  %9087 = vmatmul.mubr.msk.bf16.gmra.mrb[216].mxu0 %vm18869_vm11, %v17790_v38 }
 0x4c2   :  { %v6090_v34 = vadd.f32 %v10395_v27, %v18870_v21  ;;  %v10503_v0 = vpop.f32.mrb[109].mxu1  ;;  %9089 = vmatprep.mubr.msk.bf16.mxu0 %vm18872_vm14, %v17790_v38  ;;  %v18887_v21 = vld [vmem:[#allocation74_spill] sm:$0xff] }
 0x4c3   :  { %v10504_v11 = vadd.f32 %v10503_v0, %v10502_v1  ;;  %v10505_v41 = vpop.f32.mrb[110].mxu1 }
 0x4c4   :  { %v10396_v6 = vpop.f32.mrb[112].mxu0  ;;  %v10506_v15 = vpop.f32.mrb[111].mxu1 }
 0x4c5   :  { %v16907_v23 = vadd.f32 %v10504_v11, %v6087_v53  ;;  %v10507_v47 = vadd.f32 %v10506_v15, %v10505_v41  ;;  %v10397_v31 = vpop.f32.mrb[113].mxu0  ;;  %v18883_v53 = vld [vmem:[#allocation110_spill] sm:$0xff]  ;;  %v18888_v11 = vld [vmem:[#allocation112_spill] sm:$0xff]  ;;  %v18890_v41 = vld [vmem:[#allocation27_spill] sm:$0xff] }
 0x4c6   :  { %v10398_v62 = vadd.f32 %v10397_v31, %v10396_v6  ;;  %v10399_v20 = vpop.f32.mrb[114].mxu0  ;;  %9151 = vmatmul.mubr.msk.bf16.gmra.mrb[216].mxu1 %vm18874_vm12, %v17790_v38  ;;  %vm18884_vm3 = vnez %v18883_v53  ;;  %vm18889_vm10 = vnez %v18888_v11 }
 0x4c7   :  { %v16912_v32 = vadd.f32 %v10507_v47, %v6090_v34  ;;  %v10400_v25 = vpop.f32.mrb[115].mxu0  ;;  %9153 = vmatprep.mubr.msk.bf16.mxu1 %vm18876_vm8, %v17790_v38  ;;  %v18891_v47 = vld [vmem:[#allocation115_spill] sm:$0xff] }
 0x4c8   :  { %v6095_v36 = vadd.f32 %v10398_v62, %v18877_v37  ;;  %v10401_v8 = vadd.f32 %v10400_v25, %v10399_v20  ;;  %vm18892_vm2 = vnez %v18891_v47  ;;  %v18905_v47 = vld [vmem:[#allocation67_spill] sm:$0xff] }
 0x4c9   :  { %v10508_v18 = vpop.f32.mrb[112].mxu1  ;;  %9091 = vmatmul.mubr.msk.bf16.gmra.mrb[220].mxu0 %vm18879_vm6, %v17790_v38 }
 0x4ca   :  { %v6098_v4 = vadd.f32 %v10401_v8, %v18880_v60  ;;  %v10509_v43 = vpop.f32.mrb[113].mxu1  ;;  %9093 = vmatprep.mubr.msk.bf16.mxu0 %vm18882_vm5, %v17790_v38  ;;  %vm18906_vm5 = vnez %v18905_v47 }
 0x4cb   :  { %v10510_v52 = vadd.f32 %v10509_v43, %v10508_v18  ;;  %v10511_v61 = vpop.f32.mrb[114].mxu1  ;;  %v18893_v18 = vld [vmem:[#allocation114_spill] sm:$0xff]  ;;  %v18897_v43 = vld [vmem:[#allocation32_spill] sm:$0xff] }
 0x4cc   :  { %v10402_v26 = vpop.f32.mrb[116].mxu0  ;;  %v10512_v22 = vpop.f32.mrb[115].mxu1  ;;  %vm18894_vm11 = vnez %v18893_v18 }
 0x4cd   :  { %v16925_v9 = vadd.f32 %v10510_v52, %v6095_v36  ;;  %v10513_v13 = vadd.f32 %v10512_v22, %v10511_v61  ;;  %v10403_v30 = vpop.f32.mrb[117].mxu0  ;;  %v18900_v22 = vld [vmem:[#allocation83_spill] sm:$0xff] }
 0x4ce   :  { %v10404_v16 = vadd.f32 %v10403_v30, %v10402_v26  ;;  %v10405_v3 = vpop.f32.mrb[118].mxu0  ;;  %9155 = vmatmul.mubr.msk.bf16.gmra.mrb[220].mxu1 %vm18884_vm3, %v17790_v38  ;;  %v18898_v26 = vld [vmem:[#allocation116_spill] sm:$0xff] }
 0x4cf   :  { %v16930_v27 = vadd.f32 %v10513_v13, %v6098_v4  ;;  %v10406_v1 = vpop.f32.mrb[119].mxu0  ;;  %9157 = vmatprep.mubr.msk.bf16.mxu1 %vm18886_vm7, %v17790_v38  ;;  %v18895_v4 = vld [vmem:[#allocation8_spill] sm:$0xff]  ;;  %vm18899_vm12 = vnez %v18898_v26  ;;  %v18911_v26 = vld [vmem:[#allocation11_spill] sm:$0xff] }
 0x4d0   :  { %v6103_v34 = vadd.f32 %v10404_v16, %v18887_v21  ;;  %v10407_v0 = vadd.f32 %v10406_v1, %v10405_v3  ;;  %vm18896_vm14 = vnez %v18895_v4  ;;  %v18901_v16 = vld [vmem:[#allocation10_spill] sm:$0xff] }
 0x4d1   :  { %v10514_v39 = vpop.f32.mrb[116].mxu1  ;;  %9095 = vmatmul.mubr.msk.bf16.gmra.mrb[224].mxu0 %vm18889_vm10, %v17790_v38  ;;  %vm18902_vm8 = vnez %v18901_v16  ;;  %vm18912_vm10 = vnez %v18911_v26 }
 0x4d2   :  { %v6106_v6 = vadd.f32 %v10407_v0, %v18890_v41  ;;  %v10515_v15 = vpop.f32.mrb[117].mxu1  ;;  %9097 = vmatprep.mubr.msk.bf16.mxu0 %vm18892_vm2, %v17790_v38  ;;  %v18903_v41 = vld [vmem:[#allocation9_spill] sm:$0xff] }
 0x4d3   :  { %v10516_v31 = vadd.f32 %v10515_v15, %v10514_v39  ;;  %v10517_v62 = vpop.f32.mrb[118].mxu1  ;;  %vm18904_vm6 = vnez %v18903_v41 }
 0x4d4   :  { %v10408_v20 = vpop.f32.mrb[120].mxu0  ;;  %v10518_v14 = vpop.f32.mrb[119].mxu1 }
 0x4d5   :  { %v16943_v25 = vadd.f32 %v10516_v31, %v6103_v34  ;;  %v10519_v51 = vadd.f32 %v10518_v14, %v10517_v62  ;;  %v10409_v37 = vpop.f32.mrb[121].mxu0  ;;  %v18907_v14 = vld [vmem:[#allocation13_spill] sm:$0xff] }
 0x4d6   :  { %v10410_v36 = vadd.f32 %v10409_v37, %v10408_v20  ;;  %v10411_v8 = vpop.f32.mrb[122].mxu0  ;;  %9159 = vmatmul.mubr.msk.bf16.gmra.mrb[224].mxu1 %vm18894_vm11, %v17790_v38  ;;  %vm18908_vm3 = vnez %v18907_v14 }
 0x4d7   :  { %v16948_v2 = vadd.f32 %v10519_v51, %v6106_v6  ;;  %v10412_v60 = vpop.f32.mrb[123].mxu0  ;;  %9161 = vmatprep.mubr.msk.bf16.mxu1 %vm18896_vm14, %v17790_v38 }
 0x4d8   :  { %v6111_v56 = vadd.f32 %v10410_v36, %v18897_v43  ;;  %v10413_v52 = vadd.f32 %v10412_v60, %v10411_v8  ;;  %v18909_v36 = vld [vmem:[#allocation12_spill] sm:$0xff] }
 0x4d9   :  { %v10520_v61 = vpop.f32.mrb[120].mxu1  ;;  %9099 = vmatmul.mubr.msk.bf16.gmra.mrb[228].mxu0 %vm18899_vm12, %v17790_v38  ;;  %vm18910_vm7 = vnez %v18909_v36 }
 0x4da   :  { %v6114_v13 = vadd.f32 %v10413_v52, %v18900_v22  ;;  %v10521_v30 = vpop.f32.mrb[121].mxu1  ;;  %9101 = vmatprep.mubr.msk.bf16.mxu0 %vm18902_vm8, %v17790_v38 }
 0x4db   :  { %v10522_v3 = vadd.f32 %v10521_v30, %v10520_v61  ;;  %v10523_v53 = vpop.f32.mrb[122].mxu1 }
 0x4dc   :  { %v10414_v1 = vpop.f32.mrb[124].mxu0  ;;  %v10524_v55 = vpop.f32.mrb[123].mxu1 }
 0x4dd   :  { %v16961_v21 = vadd.f32 %v10522_v3, %v6111_v56  ;;  %v10525_v34 = vadd.f32 %v10524_v55, %v10523_v53  ;;  %v10415_v0 = vpop.f32.mrb[125].mxu0  ;;  %v18915_v53 = vld [vmem:[#allocation18_spill] sm:$0xff] }
 0x4de   :  { %v10416_v39 = vadd.f32 %v10415_v0, %v10414_v1  ;;  %v10417_v11 = vpop.f32.mrb[126].mxu0  ;;  %9163 = vmatmul.mubr.msk.bf16.gmra.mrb[228].mxu1 %vm18904_vm6, %v17790_v38  ;;  %vm18916_vm11 = vnez %v18915_v53 }
 0x4df   :  { %v16966_v6 = vadd.f32 %v10525_v34, %v6114_v13  ;;  %v10418_v15 = vpop.f32.mrb[127].mxu0  ;;  %9165 = vmatprep.mubr.msk.bf16.mxu1 %vm18906_vm5, %v17790_v38  ;;  %v18913_v13 = vld [vmem:[#allocation65_spill] sm:$0xff]  ;;  %v18917_v34 = vld [vmem:[#allocation14_spill] sm:$0xff] }
 0x4e0   :  { %v6119_v31 = vadd.f32 %v10416_v39, %v16691_v24  ;;  %v10419_v62 = vadd.f32 %v10418_v15, %v10417_v11  ;;  %vm18914_vm2 = vnez %v18913_v13  ;;  %vm18918_vm14 = vnez %v18917_v34 }
 0x4e1   :  { %v10526_v20 = vpop.f32.mrb[124].mxu1  ;;  %9103 = vmatmul.mubr.msk.bf16.gmra.mrb[232].mxu0 %vm18908_vm3, %v17790_v38 }
 0x4e2   :  { %v6122_v51 = vadd.f32 %v10419_v62, %v16696_v63  ;;  %v10527_v37 = vpop.f32.mrb[125].mxu1  ;;  %9105 = vmatprep.mubr.msk.bf16.mxu0 %vm18910_vm7, %v17790_v38 }
 0x4e3   :  { %v10528_v8 = vadd.f32 %v10527_v37, %v10526_v20  ;;  %v10529_v18 = vpop.f32.mrb[126].mxu1  ;;  %v18919_v20 = vld [vmem:[#allocation16_spill] sm:$0xff] }
 0x4e4   :  { %v10530_v60 = vpop.f32.mrb[127].mxu1  ;;  %v10548_v4 = vpop.f32.mrb[128].mxu0  ;;  %vm18920_vm12 = vnez %v18919_v20 }
 0x4e5   :  { %v16979_v43 = vadd.f32 %v10528_v8, %v6119_v31  ;;  %v10531_v24 = vadd.f32 %v10530_v60, %v10529_v18  ;;  %v10549_v56 = vpop.f32.mrb[129].mxu0  ;;  %v18923_v18 = vld [vmem:[#allocation17_spill] sm:$0xff] }
 0x4e6   :  { %v10550_v52 = vadd.f32 %v10549_v56, %v10548_v4  ;;  %v10551_v61 = vpop.f32.mrb[130].mxu0  ;;  %9167 = vmatmul.mubr.msk.bf16.gmra.mrb[232].mxu1 %vm18912_vm10, %v17790_v38  ;;  %vm18924_vm6 = vnez %v18923_v18 }
 0x4e7   :  { %v16984_v63 = vadd.f32 %v10531_v24, %v6122_v51  ;;  %v10552_v22 = vpop.f32.mrb[131].mxu0  ;;  %9169 = vmatprep.mubr.msk.bf16.mxu1 %vm18914_vm2, %v17790_v38  ;;  %v18921_v51 = vld [vmem:[#allocation15_spill] sm:$0xff]  ;;  %v18925_v24 = vld [vmem:[#allocation20_spill] sm:$0xff] }
 0x4e8   :  { %v6705_v30 = vadd.f32 %v10550_v52, %v16709_v5  ;;  %v10553_v16 = vadd.f32 %v10552_v22, %v10551_v61  ;;  %vm18922_vm8 = vnez %v18921_v51  ;;  %vm18926_vm5 = vnez %v18925_v24 }
 0x4e9   :  { %v10660_v3 = vpop.f32.mrb[128].mxu1  ;;  %9107 = vmatmul.mubr.msk.bf16.gmra.mrb[236].mxu0 %vm18916_vm11, %v17790_v38 }
 0x4ea   :  { %v6708_v1 = vadd.f32 %v10553_v16, %v16714_v57  ;;  %v10661_v55 = vpop.f32.mrb[129].mxu1  ;;  %9109 = vmatprep.mubr.msk.bf16.mxu0 %vm18918_vm14, %v17790_v38 }
 0x4eb   :  { %v10662_v0 = vadd.f32 %v10661_v55, %v10660_v3  ;;  %v10663_v39 = vpop.f32.mrb[130].mxu1  ;;  %v18927_v3 = vld [vmem:[#allocation73_spill] sm:$0xff] }
 0x4ec   :  { %v10554_v11 = vpop.f32.mrb[132].mxu0  ;;  %v10664_v41 = vpop.f32.mrb[131].mxu1  ;;  %vm18928_vm3 = vnez %v18927_v3 }
 0x4ed   :  { %v16997_v15 = vadd.f32 %v10662_v0, %v6705_v30  ;;  %v10665_v5 = vadd.f32 %v10664_v41, %v10663_v39  ;;  %v10555_v47 = vpop.f32.mrb[133].mxu0  ;;  %v18931_v39 = vld [vmem:[#allocation22_spill] sm:$0xff] }
 0x4ee   :  { %v10556_v31 = vadd.f32 %v10555_v47, %v10554_v11  ;;  %v10557_v62 = vpop.f32.mrb[134].mxu0  ;;  %9171 = vmatmul.mubr.msk.bf16.gmra.mrb[236].mxu1 %vm18920_vm12, %v17790_v38  ;;  %vm18932_vm10 = vnez %v18931_v39 }
 0x4ef   :  { %v17002_v57 = vadd.f32 %v10665_v5, %v6708_v1  ;;  %v10558_v14 = vpop.f32.mrb[135].mxu0  ;;  %9173 = vmatprep.mubr.msk.bf16.mxu1 %vm18922_vm8, %v17790_v38  ;;  %v18929_v1 = vld [vmem:[#allocation71_spill] sm:$0xff] }
 0x4f0   :  { %v6713_v37 = vadd.f32 %v10556_v31, %v16727_v40  ;;  %v10559_v36 = vadd.f32 %v10558_v14, %v10557_v62  ;;  %vm18930_vm7 = vnez %v18929_v1  ;;  %v18933_v5 = vld [vmem:[#allocation19_spill] sm:$0xff] }
 0x4f1   :  { %v10666_v8 = vpop.f32.mrb[132].mxu1  ;;  %9111 = vmatmul.mubr.msk.bf16.gmra.mrb[240].mxu0 %vm18924_vm6, %v17790_v38  ;;  %vm18934_vm2 = vnez %v18933_v5 }
 0x4f2   :  { %v6716_v60 = vadd.f32 %v10559_v36, %v16732_v33  ;;  %v10667_v4 = vpop.f32.mrb[133].mxu1  ;;  %9113 = vmatprep.mubr.msk.bf16.mxu0 %vm18926_vm5, %v17790_v38 }
 0x4f3   :  { %v10668_v56 = vadd.f32 %v10667_v4, %v10666_v8  ;;  %v10669_v52 = vpop.f32.mrb[134].mxu1 }
 0x4f4   :  { %v10560_v61 = vpop.f32.mrb[136].mxu0  ;;  %v10670_v26 = vpop.f32.mrb[135].mxu1 }
 0x4f5   :  { %v17015_v22 = vadd.f32 %v10668_v56, %v6713_v37  ;;  %v10671_v40 = vadd.f32 %v10670_v26, %v10669_v52  ;;  %v10561_v13 = vpop.f32.mrb[137].mxu0  ;;  %v18938_v52 = vld [vmem:[#allocation23_spill] sm:$0xff] }
 0x4f6   :  { %v10562_v30 = vadd.f32 %v10561_v13, %v10560_v61  ;;  %v10563_v16 = vpop.f32.mrb[138].mxu0  ;;  %9175 = vmatmul.mubr.msk.bf16.gmra.mrb[240].mxu1 %vm18928_vm3, %v17790_v38  ;;  %vm18939_vm14 = vnez %v18938_v52 }
 0x4f7   :  { %v17020_v33 = vadd.f32 %v10671_v40, %v6716_v60  ;;  %v10564_v53 = vpop.f32.mrb[139].mxu0  ;;  %9177 = vmatprep.mubr.msk.bf16.mxu1 %vm18930_vm7, %v17790_v38  ;;  %v18936_v60 = vld [vmem:[#allocation21_spill] sm:$0xff] }
 0x4f8   :  { %v6721_v55 = vadd.f32 %v10562_v30, %v16745_v46  ;;  %v10565_v34 = vadd.f32 %v10564_v53, %v10563_v16  ;;  %vm18937_vm11 = vnez %v18936_v60 }
 0x4f9   :  { %v10672_v0 = vpop.f32.mrb[136].mxu1  ;;  %9115 = vmatmul.mubr.msk.bf16.gmra.mrb[244].mxu0 %vm18932_vm10, %v17790_v38 }
 0x4fa   :  { %v6724_v11 = vadd.f32 %v10565_v34, %v16750_v35  ;;  %v10673_v41 = vpop.f32.mrb[137].mxu1  ;;  %9117 = vmatprep.mubr.msk.bf16.mxu0 %vm18934_vm2, %v17790_v38 }
 0x4fb   :  { %v10674_v47 = vadd.f32 %v10673_v41, %v10672_v0  ;;  %v10675_v31 = vpop.f32.mrb[138].mxu1 }
 0x4fc   :  { %v10566_v62 = vpop.f32.mrb[140].mxu0  ;;  %v10676_v20 = vpop.f32.mrb[139].mxu1 }
 0x4fd   :  { %v17033_v14 = vadd.f32 %v10674_v47, %v6721_v55  ;;  %v10677_v46 = vadd.f32 %v10676_v20, %v10675_v31  ;;  %v10567_v51 = vpop.f32.mrb[141].mxu0 }
 0x4fe   :  { %v10568_v37 = vadd.f32 %v10567_v51, %v10566_v62  ;;  %v10569_v36 = vpop.f32.mrb[142].mxu0  ;;  %9179 = vmatmul.mubr.msk.bf16.gmra.mrb[244].mxu1 %vm16348_vm9, %v17790_v38 }
 0x4ff   :  { %v17038_v35 = vadd.f32 %v10677_v46, %v6724_v11  ;;  %v10570_v18 = vpop.f32.mrb[143].mxu0  ;;  %9181 = vmatprep.mubr.msk.bf16.mxu1 %vm18937_vm11, %v17790_v38 }
 0x500   :  { %v6729_v4 = vadd.f32 %v10568_v37, %v16763_v44  ;;  %v10571_v24 = vadd.f32 %v10570_v18, %v10569_v36 }
 0x501   :  { %v10678_v56 = vpop.f32.mrb[140].mxu1  ;;  %9119 = vmatmul.mubr.msk.bf16.gmra.mrb[248].mxu0 %vm18939_vm14, %v17790_v38 }
 0x502   :  { %v6732_v61 = vadd.f32 %v10571_v24, %v16768_v7  ;;  %v10679_v26 = vpop.f32.mrb[141].mxu1  ;;  %9121 = vmatprep.mubr.msk.bf16.mxu0 %vm16369_vm15, %v17790_v38 }
 0x503   :  { %v10680_v13 = vadd.f32 %v10679_v26, %v10678_v56  ;;  %v10681_v30 = vpop.f32.mrb[142].mxu1 }
 0x504   :  { %v10572_v16 = vpop.f32.mrb[144].mxu0  ;;  %v10682_v3 = vpop.f32.mrb[143].mxu1 }
 0x505   :  { %v17051_v53 = vadd.f32 %v10680_v13, %v6729_v4  ;;  %v10683_v44 = vadd.f32 %v10682_v3, %v10681_v30  ;;  %v10573_v1 = vpop.f32.mrb[145].mxu0 }
 0x506   :  { %v10574_v55 = vadd.f32 %v10573_v1, %v10572_v16  ;;  %v10575_v34 = vpop.f32.mrb[146].mxu0  ;;  %9183 = vmatmul.mubr.msk.bf16.gmra.mrb[248].mxu1 %vm16393_vm0, %v17790_v38 }
 0x507   :  { %v17056_v7 = vadd.f32 %v10683_v44, %v6732_v61  ;;  %v10576_v39 = vpop.f32.mrb[147].mxu0  ;;  %9185 = vmatprep.mubr.msk.bf16.mxu1 %vm16389_vm1, %v17790_v38 }
 0x508   :  { %v6737_v41 = vadd.f32 %v10574_v55, %v16781_v49  ;;  %v10577_v5 = vadd.f32 %v10576_v39, %v10575_v34 }
 0x509   :  { %v10684_v47 = vpop.f32.mrb[144].mxu1  ;;  %9123 = vmatmul.mubr.msk.bf16.gmra.mrb[252].mxu0 %vm16409_vm13, %v17790_v38 }
 0x50a   :  { %v6740_v62 = vadd.f32 %v10577_v5, %v16786_v29  ;;  %v10685_v20 = vpop.f32.mrb[145].mxu1 }
 0x50b   :  { %v10686_v46 = vadd.f32 %v10685_v20, %v10684_v47  ;;  %v10687_v51 = vpop.f32.mrb[146].mxu1 }
 0x50c   :  { %v10578_v37 = vpop.f32.mrb[148].mxu0  ;;  %v10688_v36 = vpop.f32.mrb[147].mxu1 }
 0x50d   :  { %v17066_v8 = vadd.f32 %v10686_v46, %v6737_v41  ;;  %v10689_v18 = vadd.f32 %v10688_v36, %v10687_v51  ;;  %v10579_v60 = vpop.f32.mrb[149].mxu0 }
 0x50e   :  { %v10580_v4 = vadd.f32 %v10579_v60, %v10578_v37  ;;  %v10581_v24 = vpop.f32.mrb[150].mxu0  ;;  %9187 = vmatmul.mubr.msk.bf16.gmra.mrb[252].mxu1 %vm16421_vm4, %v17790_v38 }
 0x50f   :  { %v17071_v56 = vadd.f32 %v10689_v18, %v6740_v62  ;;  %v10582_v52 = vpop.f32.mrb[151].mxu0 }
 0x510   :  { %v6745_v29 = vadd.f32 %v10580_v4, %v16799_v28  ;;  %v10583_v61 = vadd.f32 %v10582_v52, %v10581_v24 }
 0x511   :  { %v10690_v26 = vpop.f32.mrb[148].mxu1 }
 0x512   :  { %v6748_v40 = vadd.f32 %v10583_v61, %v16804_v48  ;;  %v10691_v13 = vpop.f32.mrb[149].mxu1 }
 0x513   :  { %v10692_v30 = vadd.f32 %v10691_v13, %v10690_v26  ;;  %v10693_v16 = vpop.f32.mrb[150].mxu1 }
 0x514   :  { %v10584_v3 = vpop.f32.mrb[152].mxu0  ;;  %v10694_v44 = vpop.f32.mrb[151].mxu1 }
 0x515   :  { %v17075_v1 = vadd.f32 %v10692_v30, %v6745_v29  ;;  %v10695_v55 = vadd.f32 %v10694_v44, %v10693_v16  ;;  %v10585_v34 = vpop.f32.mrb[153].mxu0 }
 0x516   :  { %v10586_v0 = vadd.f32 %v10585_v34, %v10584_v3  ;;  %v10587_v38 = vpop.f32.mrb[154].mxu0 }
 0x517   :  { %v17077_v39 = vadd.f32 %v10695_v55, %v6748_v40  ;;  %v10588_v11 = vpop.f32.mrb[155].mxu0 }
 0x518   :  { %v6753_v28 = vadd.f32 %v10586_v0, %v16817_v54  ;;  %v10589_v41 = vadd.f32 %v10588_v11, %v10587_v38 }
 0x519   :  { %v10696_v5 = vpop.f32.mrb[152].mxu1 }
 0x51a   :  { %v6756_v48 = vadd.f32 %v10589_v41, %v16822_v42  ;;  %v10697_v47 = vpop.f32.mrb[153].mxu1 }
 0x51b   :  { %v10698_v31 = vadd.f32 %v10697_v47, %v10696_v5  ;;  %v10699_v62 = vpop.f32.mrb[154].mxu1 }
 0x51c   :  { %v10590_v20 = vpop.f32.mrb[156].mxu0  ;;  %v10700_v46 = vpop.f32.mrb[155].mxu1 }
 0x51d   :  { %v17081_v51 = vadd.f32 %v10698_v31, %v6753_v28  ;;  %v10701_v37 = vadd.f32 %v10700_v46, %v10699_v62  ;;  %v10591_v36 = vpop.f32.mrb[157].mxu0 }
 0x51e   :  { %v10592_v18 = vadd.f32 %v10591_v36, %v10590_v20  ;;  %v10593_v60 = vpop.f32.mrb[158].mxu0 }
 0x51f   :  { %v17083_v4 = vadd.f32 %v10701_v37, %v6756_v48  ;;  %v10594_v24 = vpop.f32.mrb[159].mxu0 }
 0x520   :  { %v6761_v54 = vadd.f32 %v10592_v18, %v16835_v17  ;;  %v10595_v49 = vadd.f32 %v10594_v24, %v10593_v60 }
 0x521   :  { %v10702_v52 = vpop.f32.mrb[156].mxu1 }
 0x522   :  { %v6764_v42 = vadd.f32 %v10595_v49, %v16840_v58  ;;  %v10703_v29 = vpop.f32.mrb[157].mxu1 }
 0x523   :  { %v10704_v61 = vadd.f32 %v10703_v29, %v10702_v52  ;;  %v10705_v26 = vpop.f32.mrb[158].mxu1 }
 0x524   :  { %v10596_v40 = vpop.f32.mrb[160].mxu0  ;;  %v10706_v13 = vpop.f32.mrb[159].mxu1 }
 0x525   :  { %v17087_v30 = vadd.f32 %v10704_v61, %v6761_v54  ;;  %v10707_v16 = vadd.f32 %v10706_v13, %v10705_v26  ;;  %v10597_v3 = vpop.f32.mrb[161].mxu0 }
 0x526   :  { %v10598_v44 = vadd.f32 %v10597_v3, %v10596_v40  ;;  %v10599_v55 = vpop.f32.mrb[162].mxu0 }
 0x527   :  { %v17089_v34 = vadd.f32 %v10707_v16, %v6764_v42  ;;  %v10600_v0 = vpop.f32.mrb[163].mxu0 }
 0x528   :  { %v6769_v17 = vadd.f32 %v10598_v44, %v16853_v45  ;;  %v10601_v38 = vadd.f32 %v10600_v0, %v10599_v55 }
 0x529   :  { %v10708_v11 = vpop.f32.mrb[160].mxu1 }
 0x52a   :  { %v6772_v58 = vadd.f32 %v10601_v38, %v16858_v59  ;;  %v10709_v28 = vpop.f32.mrb[161].mxu1 }
 0x52b   :  { %v10710_v41 = vadd.f32 %v10709_v28, %v10708_v11  ;;  %v10711_v5 = vpop.f32.mrb[162].mxu1 }
 0x52c   :  { %v10602_v48 = vpop.f32.mrb[164].mxu0  ;;  %v10712_v47 = vpop.f32.mrb[163].mxu1 }
 0x52d   :  { %v17093_v31 = vadd.f32 %v10710_v41, %v6769_v17  ;;  %v10713_v62 = vadd.f32 %v10712_v47, %v10711_v5  ;;  %v10603_v20 = vpop.f32.mrb[165].mxu0 }
 0x52e   :  { %v10604_v46 = vadd.f32 %v10603_v20, %v10602_v48  ;;  %v10605_v37 = vpop.f32.mrb[166].mxu0 }
 0x52f   :  { %v17095_v36 = vadd.f32 %v10713_v62, %v6772_v58  ;;  %v10606_v18 = vpop.f32.mrb[167].mxu0 }
 0x530   :  { %v6777_v45 = vadd.f32 %v10604_v46, %v16871_v12  ;;  %v10607_v60 = vadd.f32 %v10606_v18, %v10605_v37 }
 0x531   :  { %v10714_v24 = vpop.f32.mrb[164].mxu1 }
 0x532   :  { %v6780_v59 = vadd.f32 %v10607_v60, %v16876_v10  ;;  %v10715_v54 = vpop.f32.mrb[165].mxu1 }
 0x533   :  { %v10716_v49 = vadd.f32 %v10715_v54, %v10714_v24  ;;  %v10717_v52 = vpop.f32.mrb[166].mxu1 }
 0x534   :  { %v10608_v42 = vpop.f32.mrb[168].mxu0  ;;  %v10718_v29 = vpop.f32.mrb[167].mxu1 }
 0x535   :  { %v17099_v61 = vadd.f32 %v10716_v49, %v6777_v45  ;;  %v10719_v26 = vadd.f32 %v10718_v29, %v10717_v52  ;;  %v10609_v40 = vpop.f32.mrb[169].mxu0 }
 0x536   :  { %v10610_v13 = vadd.f32 %v10609_v40, %v10608_v42  ;;  %v10611_v16 = vpop.f32.mrb[170].mxu0 }
 0x537   :  { %v17101_v3 = vadd.f32 %v10719_v26, %v6780_v59  ;;  %v10612_v44 = vpop.f32.mrb[171].mxu0 }
 0x538   :  { %v6785_v12 = vadd.f32 %v10610_v13, %v16889_v50  ;;  %v10613_v55 = vadd.f32 %v10612_v44, %v10611_v16 }
 0x539   :  { %v10720_v0 = vpop.f32.mrb[168].mxu1 }
 0x53a   :  { %v6788_v10 = vadd.f32 %v10613_v55, %v16894_v19  ;;  %v10721_v17 = vpop.f32.mrb[169].mxu1 }
 0x53b   :  { %v10722_v38 = vadd.f32 %v10721_v17, %v10720_v0  ;;  %v10723_v11 = vpop.f32.mrb[170].mxu1 }
 0x53c   :  { %v10614_v58 = vpop.f32.mrb[172].mxu0  ;;  %v10724_v28 = vpop.f32.mrb[171].mxu1 }
 0x53d   :  { %v17105_v41 = vadd.f32 %v10722_v38, %v6785_v12  ;;  %v10725_v5 = vadd.f32 %v10724_v28, %v10723_v11  ;;  %v10615_v48 = vpop.f32.mrb[173].mxu0 }
 0x53e   :  { %v10616_v47 = vadd.f32 %v10615_v48, %v10614_v58  ;;  %v10617_v62 = vpop.f32.mrb[174].mxu0 }
 0x53f   :  { %v17107_v20 = vadd.f32 %v10725_v5, %v6788_v10  ;;  %v10618_v46 = vpop.f32.mrb[175].mxu0 }
 0x540   :  { %v6793_v50 = vadd.f32 %v10616_v47, %v16907_v23  ;;  %v10619_v37 = vadd.f32 %v10618_v46, %v10617_v62 }
 0x541   :  { %v10726_v18 = vpop.f32.mrb[172].mxu1 }
 0x542   :  { %v6796_v19 = vadd.f32 %v10619_v37, %v16912_v32  ;;  %v10727_v45 = vpop.f32.mrb[173].mxu1 }
 0x543   :  { %v10728_v60 = vadd.f32 %v10727_v45, %v10726_v18  ;;  %v10729_v24 = vpop.f32.mrb[174].mxu1 }
 0x544   :  { %v10620_v59 = vpop.f32.mrb[176].mxu0  ;;  %v10730_v54 = vpop.f32.mrb[175].mxu1 }
 0x545   :  { %v17111_v49 = vadd.f32 %v10728_v60, %v6793_v50  ;;  %v10731_v52 = vadd.f32 %v10730_v54, %v10729_v24  ;;  %v10621_v42 = vpop.f32.mrb[177].mxu0 }
 0x546   :  { %v10622_v29 = vadd.f32 %v10621_v42, %v10620_v59  ;;  %v10623_v26 = vpop.f32.mrb[178].mxu0 }
 0x547   :  { %v17113_v40 = vadd.f32 %v10731_v52, %v6796_v19  ;;  %v10624_v13 = vpop.f32.mrb[179].mxu0 }
 0x548   :  { %v6801_v23 = vadd.f32 %v10622_v29, %v16925_v9  ;;  %v10625_v16 = vadd.f32 %v10624_v13, %v10623_v26 }
 0x549   :  { %v10732_v44 = vpop.f32.mrb[176].mxu1 }
 0x54a   :  { %v6804_v32 = vadd.f32 %v10625_v16, %v16930_v27  ;;  %v10733_v12 = vpop.f32.mrb[177].mxu1 }
 0x54b   :  { %v10734_v55 = vadd.f32 %v10733_v12, %v10732_v44  ;;  %v10735_v0 = vpop.f32.mrb[178].mxu1 }
 0x54c   :  { %v10626_v10 = vpop.f32.mrb[180].mxu0  ;;  %v10736_v17 = vpop.f32.mrb[179].mxu1 }
 0x54d   :  { %v17117_v38 = vadd.f32 %v10734_v55, %v6801_v23  ;;  %v10737_v11 = vadd.f32 %v10736_v17, %v10735_v0  ;;  %v10627_v58 = vpop.f32.mrb[181].mxu0 }
 0x54e   :  { %v10628_v28 = vadd.f32 %v10627_v58, %v10626_v10  ;;  %v10629_v5 = vpop.f32.mrb[182].mxu0 }
 0x54f   :  { %v17119_v48 = vadd.f32 %v10737_v11, %v6804_v32  ;;  %v10630_v47 = vpop.f32.mrb[183].mxu0 }
 0x550   :  { %v6809_v9 = vadd.f32 %v10628_v28, %v16943_v25  ;;  %v10631_v62 = vadd.f32 %v10630_v47, %v10629_v5 }
 0x551   :  { %v10738_v46 = vpop.f32.mrb[180].mxu1 }
 0x552   :  { %v6812_v27 = vadd.f32 %v10631_v62, %v16948_v2  ;;  %v10739_v50 = vpop.f32.mrb[181].mxu1 }
 0x553   :  { %v10740_v37 = vadd.f32 %v10739_v50, %v10738_v46  ;;  %v10741_v18 = vpop.f32.mrb[182].mxu1 }
 0x554   :  { %v10632_v19 = vpop.f32.mrb[184].mxu0  ;;  %v10742_v45 = vpop.f32.mrb[183].mxu1 }
 0x555   :  { %v17123_v60 = vadd.f32 %v10740_v37, %v6809_v9  ;;  %v10743_v24 = vadd.f32 %v10742_v45, %v10741_v18  ;;  %v10633_v59 = vpop.f32.mrb[185].mxu0 }
 0x556   :  { %v10634_v54 = vadd.f32 %v10633_v59, %v10632_v19  ;;  %v10635_v52 = vpop.f32.mrb[186].mxu0 }
 0x557   :  { %v17125_v42 = vadd.f32 %v10743_v24, %v6812_v27  ;;  %v10636_v29 = vpop.f32.mrb[187].mxu0 }
 0x558   :  { %v6817_v25 = vadd.f32 %v10634_v54, %v16961_v21  ;;  %v10637_v26 = vadd.f32 %v10636_v29, %v10635_v52 }
 0x559   :  { %v10744_v13 = vpop.f32.mrb[184].mxu1 }
 0x55a   :  { %v6820_v2 = vadd.f32 %v10637_v26, %v16966_v6  ;;  %v10745_v23 = vpop.f32.mrb[185].mxu1 }
 0x55b   :  { %v10746_v16 = vadd.f32 %v10745_v23, %v10744_v13  ;;  %v10747_v44 = vpop.f32.mrb[186].mxu1 }
 0x55c   :  { %v10638_v32 = vpop.f32.mrb[188].mxu0  ;;  %v10748_v12 = vpop.f32.mrb[187].mxu1 }
 0x55d   :  { %v17129_v55 = vadd.f32 %v10746_v16, %v6817_v25  ;;  %v10749_v0 = vadd.f32 %v10748_v12, %v10747_v44  ;;  %v10639_v10 = vpop.f32.mrb[189].mxu0 }
 0x55e   :  { %v10640_v17 = vadd.f32 %v10639_v10, %v10638_v32  ;;  %v10641_v11 = vpop.f32.mrb[190].mxu0 }
 0x55f   :  { %v17131_v58 = vadd.f32 %v10749_v0, %v6820_v2  ;;  %v10642_v28 = vpop.f32.mrb[191].mxu0 }
 0x560   :  { %v6825_v21 = vadd.f32 %v10640_v17, %v16979_v43  ;;  %v10643_v5 = vadd.f32 %v10642_v28, %v10641_v11 }
 0x561   :  { %v10750_v47 = vpop.f32.mrb[188].mxu1 }
 0x562   :  { %v6828_v6 = vadd.f32 %v10643_v5, %v16984_v63  ;;  %v10751_v9 = vpop.f32.mrb[189].mxu1 }
 0x563   :  { %v10752_v62 = vadd.f32 %v10751_v9, %v10750_v47  ;;  %v10753_v46 = vpop.f32.mrb[190].mxu1 }
 0x564   :  { %v10754_v27 = vpop.f32.mrb[191].mxu1  ;;  %v10772_v50 = vpop.f32.mrb[192].mxu0 }
 0x565   :  { %v17135_v37 = vadd.f32 %v10752_v62, %v6825_v21  ;;  %v10755_v18 = vadd.f32 %v10754_v27, %v10753_v46  ;;  %v10773_v19 = vpop.f32.mrb[193].mxu0 }
 0x566   :  { %v10774_v45 = vadd.f32 %v10773_v19, %v10772_v50  ;;  %v10775_v24 = vpop.f32.mrb[194].mxu0 }
 0x567   :  { %v17137_v59 = vadd.f32 %v10755_v18, %v6828_v6  ;;  %v10776_v54 = vpop.f32.mrb[195].mxu0 }
 0x568   :  { %v7027_v43 = vadd.f32 %v10774_v45, %v16997_v15  ;;  %v10777_v52 = vadd.f32 %v10776_v54, %v10775_v24 }
 0x569   :  { %v10884_v29 = vpop.f32.mrb[192].mxu1 }
 0x56a   :  { %v7030_v63 = vadd.f32 %v10777_v52, %v17002_v57  ;;  %v10885_v25 = vpop.f32.mrb[193].mxu1 }
 0x56b   :  { %v10886_v26 = vadd.f32 %v10885_v25, %v10884_v29  ;;  %v10887_v13 = vpop.f32.mrb[194].mxu1 }
 0x56c   :  { %v10778_v2 = vpop.f32.mrb[196].mxu0  ;;  %v10888_v23 = vpop.f32.mrb[195].mxu1 }
 0x56d   :  { %v7188_v16 = vadd.f32 %v10886_v26, %v7027_v43  ;;  %v10889_v44 = vadd.f32 %v10888_v23, %v10887_v13  ;;  %v10779_v32 = vpop.f32.mrb[197].mxu0 }
 0x56e   :  { %v10780_v12 = vadd.f32 %v10779_v32, %v10778_v2  ;;  %v10781_v0 = vpop.f32.mrb[198].mxu0 }
 0x56f   :  { %7315 = vst [vmem:[#allocation5 + $0x100] sm:$0xff] %v7188_v16  ;;  %v7191_v10 = vadd.f32 %v10889_v44, %v7030_v63  ;;  %v10782_v17 = vpop.f32.mrb[199].mxu0 }
 0x570   :  { %v7035_v11 = vadd.f32 %v10780_v12, %v17015_v22  ;;  %v10783_v15 = vadd.f32 %v10782_v17, %v10781_v0 }
 0x571   :  { %7316 = vst [vmem:[#allocation5 + $0x108] sm:$0xff] %v7191_v10  ;;  %v10890_v28 = vpop.f32.mrb[196].mxu1 }
 0x572   :  { %v7038_v57 = vadd.f32 %v10783_v15, %v17020_v33  ;;  %v10891_v21 = vpop.f32.mrb[197].mxu1 }
 0x573   :  { %v10892_v5 = vadd.f32 %v10891_v21, %v10890_v28  ;;  %v10893_v47 = vpop.f32.mrb[198].mxu1 }
 0x574   :  { %v10784_v6 = vpop.f32.mrb[200].mxu0  ;;  %v10894_v9 = vpop.f32.mrb[199].mxu1 }
 0x575   :  { %v7196_v62 = vadd.f32 %v10892_v5, %v7035_v11  ;;  %v10895_v46 = vadd.f32 %v10894_v9, %v10893_v47  ;;  %v10785_v27 = vpop.f32.mrb[201].mxu0 }
 0x576   :  { %v10786_v50 = vadd.f32 %v10785_v27, %v10784_v6  ;;  %v10787_v18 = vpop.f32.mrb[202].mxu0 }
 0x577   :  { %7317 = vst [vmem:[#allocation5 + $0x110] sm:$0xff] %v7196_v62  ;;  %v7199_v19 = vadd.f32 %v10895_v46, %v7038_v57  ;;  %v10788_v45 = vpop.f32.mrb[203].mxu0 }
 0x578   :  { %v7043_v22 = vadd.f32 %v10786_v50, %v17033_v14  ;;  %v10789_v24 = vadd.f32 %v10788_v45, %v10787_v18 }
 0x579   :  { %7318 = vst [vmem:[#allocation5 + $0x118] sm:$0xff] %v7199_v19  ;;  %v10896_v54 = vpop.f32.mrb[200].mxu1 }
 0x57a   :  { %v7046_v33 = vadd.f32 %v10789_v24, %v17038_v35  ;;  %v10897_v43 = vpop.f32.mrb[201].mxu1 }
 0x57b   :  { %v10898_v52 = vadd.f32 %v10897_v43, %v10896_v54  ;;  %v10899_v29 = vpop.f32.mrb[202].mxu1 }
 0x57c   :  { %v10790_v63 = vpop.f32.mrb[204].mxu0  ;;  %v10900_v25 = vpop.f32.mrb[203].mxu1 }
 0x57d   :  { %v7204_v26 = vadd.f32 %v10898_v52, %v7043_v22  ;;  %v10901_v13 = vadd.f32 %v10900_v25, %v10899_v29  ;;  %v10791_v2 = vpop.f32.mrb[205].mxu0 }
 0x57e   :  { %v10792_v23 = vadd.f32 %v10791_v2, %v10790_v63  ;;  %v10793_v16 = vpop.f32.mrb[206].mxu0 }
 0x57f   :  { %7319 = vst [vmem:[#allocation5 + $0x120] sm:$0xff] %v7204_v26  ;;  %v7207_v44 = vadd.f32 %v10901_v13, %v7046_v33  ;;  %v10794_v32 = vpop.f32.mrb[207].mxu0 }
 0x580   :  { %v7051_v14 = vadd.f32 %v10792_v23, %v17051_v53  ;;  %v10795_v12 = vadd.f32 %v10794_v32, %v10793_v16 }
 0x581   :  { %7320 = vst [vmem:[#allocation5 + $0x128] sm:$0xff] %v7207_v44  ;;  %v10902_v0 = vpop.f32.mrb[204].mxu1 }
 0x582   :  { %v7054_v35 = vadd.f32 %v10795_v12, %v17056_v7  ;;  %v10903_v10 = vpop.f32.mrb[205].mxu1 }
 0x583   :  { %v10904_v17 = vadd.f32 %v10903_v10, %v10902_v0  ;;  %v10905_v11 = vpop.f32.mrb[206].mxu1 }
 0x584   :  { %v10796_v15 = vpop.f32.mrb[208].mxu0  ;;  %v10906_v28 = vpop.f32.mrb[207].mxu1 }
 0x585   :  { %v7212_v57 = vadd.f32 %v10904_v17, %v7051_v14  ;;  %v10907_v21 = vadd.f32 %v10906_v28, %v10905_v11  ;;  %v10797_v5 = vpop.f32.mrb[209].mxu0 }
 0x586   :  { %v10798_v47 = vadd.f32 %v10797_v5, %v10796_v15  ;;  %v10799_v6 = vpop.f32.mrb[210].mxu0 }
 0x587   :  { %7321 = vst [vmem:[#allocation5 + $0x130] sm:$0xff] %v7212_v57  ;;  %v7215_v9 = vadd.f32 %v10907_v21, %v7054_v35  ;;  %v10800_v62 = vpop.f32.mrb[211].mxu0 }
 0x588   :  { %v7059_v53 = vadd.f32 %v10798_v47, %v17066_v8  ;;  %v10801_v46 = vadd.f32 %v10800_v62, %v10799_v6 }
 0x589   :  { %7322 = vst [vmem:[#allocation5 + $0x138] sm:$0xff] %v7215_v9  ;;  %v10908_v27 = vpop.f32.mrb[208].mxu1 }
 0x58a   :  { %v7062_v7 = vadd.f32 %v10801_v46, %v17071_v56  ;;  %v10909_v50 = vpop.f32.mrb[209].mxu1 }
 0x58b   :  { %v10910_v18 = vadd.f32 %v10909_v50, %v10908_v27  ;;  %v10911_v19 = vpop.f32.mrb[210].mxu1 }
 0x58c   :  { %v10802_v45 = vpop.f32.mrb[212].mxu0  ;;  %v10912_v22 = vpop.f32.mrb[211].mxu1 }
 0x58d   :  { %v7220_v24 = vadd.f32 %v10910_v18, %v7059_v53  ;;  %v10913_v54 = vadd.f32 %v10912_v22, %v10911_v19  ;;  %v10803_v33 = vpop.f32.mrb[213].mxu0 }
 0x58e   :  { %v10804_v43 = vadd.f32 %v10803_v33, %v10802_v45  ;;  %v10805_v52 = vpop.f32.mrb[214].mxu0 }
 0x58f   :  { %7323 = vst [vmem:[#allocation5 + $0x140] sm:$0xff] %v7220_v24  ;;  %v7223_v29 = vadd.f32 %v10913_v54, %v7062_v7  ;;  %v10806_v63 = vpop.f32.mrb[215].mxu0 }
 0x590   :  { %v7067_v8 = vadd.f32 %v10804_v43, %v17075_v1  ;;  %v10807_v25 = vadd.f32 %v10806_v63, %v10805_v52 }
 0x591   :  { %7324 = vst [vmem:[#allocation5 + $0x148] sm:$0xff] %v7223_v29  ;;  %v10914_v26 = vpop.f32.mrb[212].mxu1 }
 0x592   :  { %v7070_v56 = vadd.f32 %v10807_v25, %v17077_v39  ;;  %v10915_v13 = vpop.f32.mrb[213].mxu1 }
 0x593   :  { %v10916_v2 = vadd.f32 %v10915_v13, %v10914_v26  ;;  %v10917_v23 = vpop.f32.mrb[214].mxu1 }
 0x594   :  { %v10808_v16 = vpop.f32.mrb[216].mxu0  ;;  %v10918_v44 = vpop.f32.mrb[215].mxu1 }
 0x595   :  { %v7228_v32 = vadd.f32 %v10916_v2, %v7067_v8  ;;  %v10919_v14 = vadd.f32 %v10918_v44, %v10917_v23  ;;  %v10809_v12 = vpop.f32.mrb[217].mxu0 }
 0x596   :  { %v10810_v0 = vadd.f32 %v10809_v12, %v10808_v16  ;;  %v10811_v35 = vpop.f32.mrb[218].mxu0 }
 0x597   :  { %7325 = vst [vmem:[#allocation5 + $0x150] sm:$0xff] %v7228_v32  ;;  %v7231_v10 = vadd.f32 %v10919_v14, %v7070_v56  ;;  %v10812_v17 = vpop.f32.mrb[219].mxu0 }
 0x598   :  { %v7075_v1 = vadd.f32 %v10810_v0, %v17081_v51  ;;  %v10813_v11 = vadd.f32 %v10812_v17, %v10811_v35 }
 0x599   :  { %7326 = vst [vmem:[#allocation5 + $0x158] sm:$0xff] %v7231_v10  ;;  %v10920_v15 = vpop.f32.mrb[216].mxu1 }
 0x59a   :  { %v7078_v39 = vadd.f32 %v10813_v11, %v17083_v4  ;;  %v10921_v28 = vpop.f32.mrb[217].mxu1 }
 0x59b   :  { %v10922_v57 = vadd.f32 %v10921_v28, %v10920_v15  ;;  %v10923_v21 = vpop.f32.mrb[218].mxu1 }
 0x59c   :  { %v10814_v5 = vpop.f32.mrb[220].mxu0  ;;  %v10924_v47 = vpop.f32.mrb[219].mxu1 }
 0x59d   :  { %v7236_v6 = vadd.f32 %v10922_v57, %v7075_v1  ;;  %v10925_v9 = vadd.f32 %v10924_v47, %v10923_v21  ;;  %v10815_v62 = vpop.f32.mrb[221].mxu0 }
 0x59e   :  { %v10816_v53 = vadd.f32 %v10815_v62, %v10814_v5  ;;  %v10817_v46 = vpop.f32.mrb[222].mxu0 }
 0x59f   :  { %7327 = vst [vmem:[#allocation5 + $0x160] sm:$0xff] %v7236_v6  ;;  %v7239_v27 = vadd.f32 %v10925_v9, %v7078_v39  ;;  %v10818_v7 = vpop.f32.mrb[223].mxu0 }
 0x5a0   :  { %v7083_v51 = vadd.f32 %v10816_v53, %v17087_v30  ;;  %v10819_v50 = vadd.f32 %v10818_v7, %v10817_v46 }
 0x5a1   :  { %7328 = vst [vmem:[#allocation5 + $0x168] sm:$0xff] %v7239_v27  ;;  %v10926_v18 = vpop.f32.mrb[220].mxu1 }
 0x5a2   :  { %v7086_v4 = vadd.f32 %v10819_v50, %v17089_v34  ;;  %v10927_v19 = vpop.f32.mrb[221].mxu1 }
 0x5a3   :  { %v10928_v45 = vadd.f32 %v10927_v19, %v10926_v18  ;;  %v10929_v22 = vpop.f32.mrb[222].mxu1 }
 0x5a4   :  { %v10820_v24 = vpop.f32.mrb[224].mxu0  ;;  %v10930_v54 = vpop.f32.mrb[223].mxu1 }
 0x5a5   :  { %v7244_v33 = vadd.f32 %v10928_v45, %v7083_v51  ;;  %v10931_v43 = vadd.f32 %v10930_v54, %v10929_v22  ;;  %v10821_v52 = vpop.f32.mrb[225].mxu0 }
 0x5a6   :  { %v10822_v29 = vadd.f32 %v10821_v52, %v10820_v24  ;;  %v10823_v63 = vpop.f32.mrb[226].mxu0 }
 0x5a7   :  { %7329 = vst [vmem:[#allocation5 + $0x170] sm:$0xff] %v7244_v33  ;;  %v7247_v8 = vadd.f32 %v10931_v43, %v7086_v4  ;;  %v10824_v25 = vpop.f32.mrb[227].mxu0 }
 0x5a8   :  { %v7091_v30 = vadd.f32 %v10822_v29, %v17093_v31  ;;  %v10825_v26 = vadd.f32 %v10824_v25, %v10823_v63 }
 0x5a9   :  { %7330 = vst [vmem:[#allocation5 + $0x178] sm:$0xff] %v7247_v8  ;;  %v10932_v56 = vpop.f32.mrb[224].mxu1 }
 0x5aa   :  { %v7094_v34 = vadd.f32 %v10825_v26, %v17095_v36  ;;  %v10933_v13 = vpop.f32.mrb[225].mxu1 }
 0x5ab   :  { %v10934_v2 = vadd.f32 %v10933_v13, %v10932_v56  ;;  %v10935_v23 = vpop.f32.mrb[226].mxu1 }
 0x5ac   :  { %v10826_v16 = vpop.f32.mrb[228].mxu0  ;;  %v10936_v44 = vpop.f32.mrb[227].mxu1 }
 0x5ad   :  { %v7252_v32 = vadd.f32 %v10934_v2, %v7091_v30  ;;  %v10937_v14 = vadd.f32 %v10936_v44, %v10935_v23  ;;  %v10827_v12 = vpop.f32.mrb[229].mxu0 }
 0x5ae   :  { %v10828_v0 = vadd.f32 %v10827_v12, %v10826_v16  ;;  %v10829_v35 = vpop.f32.mrb[230].mxu0 }
 0x5af   :  { %7331 = vst [vmem:[#allocation5 + $0x180] sm:$0xff] %v7252_v32  ;;  %v7255_v10 = vadd.f32 %v10937_v14, %v7094_v34  ;;  %v10830_v17 = vpop.f32.mrb[231].mxu0 }
 0x5b0   :  { %v7099_v31 = vadd.f32 %v10828_v0, %v17099_v61  ;;  %v10831_v1 = vadd.f32 %v10830_v17, %v10829_v35 }
 0x5b1   :  { %7332 = vst [vmem:[#allocation5 + $0x188] sm:$0xff] %v7255_v10  ;;  %v10938_v11 = vpop.f32.mrb[228].mxu1 }
 0x5b2   :  { %v7102_v36 = vadd.f32 %v10831_v1, %v17101_v3  ;;  %v10939_v15 = vpop.f32.mrb[229].mxu1 }
 0x5b3   :  { %v10940_v39 = vadd.f32 %v10939_v15, %v10938_v11  ;;  %v10941_v28 = vpop.f32.mrb[230].mxu1 }
 0x5b4   :  { %v10832_v57 = vpop.f32.mrb[232].mxu0  ;;  %v10942_v21 = vpop.f32.mrb[231].mxu1 }
 0x5b5   :  { %v7260_v5 = vadd.f32 %v10940_v39, %v7099_v31  ;;  %v10943_v47 = vadd.f32 %v10942_v21, %v10941_v28  ;;  %v10833_v6 = vpop.f32.mrb[233].mxu0 }
 0x5b6   :  { %v10834_v9 = vadd.f32 %v10833_v6, %v10832_v57  ;;  %v10835_v62 = vpop.f32.mrb[234].mxu0 }
 0x5b7   :  { %7333 = vst [vmem:[#allocation5 + $0x190] sm:$0xff] %v7260_v5  ;;  %v7263_v53 = vadd.f32 %v10943_v47, %v7102_v36  ;;  %v10836_v46 = vpop.f32.mrb[235].mxu0 }
 0x5b8   :  { %v7107_v61 = vadd.f32 %v10834_v9, %v17105_v41  ;;  %v10837_v27 = vadd.f32 %v10836_v46, %v10835_v62 }
 0x5b9   :  { %7334 = vst [vmem:[#allocation5 + $0x198] sm:$0xff] %v7263_v53  ;;  %v10944_v7 = vpop.f32.mrb[232].mxu1 }
 0x5ba   :  { %v7110_v3 = vadd.f32 %v10837_v27, %v17107_v20  ;;  %v10945_v51 = vpop.f32.mrb[233].mxu1 }
 0x5bb   :  { %v10946_v50 = vadd.f32 %v10945_v51, %v10944_v7  ;;  %v10947_v18 = vpop.f32.mrb[234].mxu1 }
 0x5bc   :  { %v10838_v4 = vpop.f32.mrb[236].mxu0  ;;  %v10948_v19 = vpop.f32.mrb[235].mxu1 }
 0x5bd   :  { %v7268_v45 = vadd.f32 %v10946_v50, %v7107_v61  ;;  %v10949_v22 = vadd.f32 %v10948_v19, %v10947_v18  ;;  %v10839_v24 = vpop.f32.mrb[237].mxu0 }
 0x5be   :  { %v10840_v54 = vadd.f32 %v10839_v24, %v10838_v4  ;;  %v10841_v33 = vpop.f32.mrb[238].mxu0 }
 0x5bf   :  { %7335 = vst [vmem:[#allocation5 + $0x1a0] sm:$0xff] %v7268_v45  ;;  %v7271_v43 = vadd.f32 %v10949_v22, %v7110_v3  ;;  %v10842_v52 = vpop.f32.mrb[239].mxu0 }
 0x5c0   :  { %v7115_v41 = vadd.f32 %v10840_v54, %v17111_v49  ;;  %v10843_v29 = vadd.f32 %v10842_v52, %v10841_v33 }
 0x5c1   :  { %7336 = vst [vmem:[#allocation5 + $0x1a8] sm:$0xff] %v7271_v43  ;;  %v10950_v63 = vpop.f32.mrb[236].mxu1 }
 0x5c2   :  { %v7118_v20 = vadd.f32 %v10843_v29, %v17113_v40  ;;  %v10951_v8 = vpop.f32.mrb[237].mxu1 }
 0x5c3   :  { %v10952_v25 = vadd.f32 %v10951_v8, %v10950_v63  ;;  %v10953_v30 = vpop.f32.mrb[238].mxu1 }
 0x5c4   :  { %v10844_v26 = vpop.f32.mrb[240].mxu0  ;;  %v10954_v56 = vpop.f32.mrb[239].mxu1 }
 0x5c5   :  { %v7276_v34 = vadd.f32 %v10952_v25, %v7115_v41  ;;  %v10955_v13 = vadd.f32 %v10954_v56, %v10953_v30  ;;  %v10845_v2 = vpop.f32.mrb[241].mxu0 }
 0x5c6   :  { %v10846_v23 = vadd.f32 %v10845_v2, %v10844_v26  ;;  %v10847_v16 = vpop.f32.mrb[242].mxu0 }
 0x5c7   :  { %7337 = vst [vmem:[#allocation5 + $0x1b0] sm:$0xff] %v7276_v34  ;;  %v7279_v44 = vadd.f32 %v10955_v13, %v7118_v20  ;;  %v10848_v32 = vpop.f32.mrb[243].mxu0 }
 0x5c8   :  { %v7123_v49 = vadd.f32 %v10846_v23, %v17117_v38  ;;  %v10849_v14 = vadd.f32 %v10848_v32, %v10847_v16 }
 0x5c9   :  { %7338 = vst [vmem:[#allocation5 + $0x1b8] sm:$0xff] %v7279_v44  ;;  %v10956_v12 = vpop.f32.mrb[240].mxu1 }
 0x5ca   :  { %v7126_v40 = vadd.f32 %v10849_v14, %v17119_v48  ;;  %v10957_v0 = vpop.f32.mrb[241].mxu1 }
 0x5cb   :  { %v10958_v35 = vadd.f32 %v10957_v0, %v10956_v12  ;;  %v10959_v10 = vpop.f32.mrb[242].mxu1 }
 0x5cc   :  { %v10850_v17 = vpop.f32.mrb[244].mxu0  ;;  %v10960_v31 = vpop.f32.mrb[243].mxu1 }
 0x5cd   :  { %v7284_v1 = vadd.f32 %v10958_v35, %v7123_v49  ;;  %v10961_v11 = vadd.f32 %v10960_v31, %v10959_v10  ;;  %v10851_v36 = vpop.f32.mrb[245].mxu0 }
 0x5ce   :  { %v10852_v15 = vadd.f32 %v10851_v36, %v10850_v17  ;;  %v10853_v39 = vpop.f32.mrb[246].mxu0 }
 0x5cf   :  { %7339 = vst [vmem:[#allocation5 + $0x1c0] sm:$0xff] %v7284_v1  ;;  %v7287_v28 = vadd.f32 %v10961_v11, %v7126_v40  ;;  %v10854_v57 = vpop.f32.mrb[247].mxu0 }
 0x5d0   :  { %v7131_v38 = vadd.f32 %v10852_v15, %v17123_v60  ;;  %v10855_v21 = vadd.f32 %v10854_v57, %v10853_v39 }
 0x5d1   :  { %7340 = vst [vmem:[#allocation5 + $0x1c8] sm:$0xff] %v7287_v28  ;;  %v10962_v5 = vpop.f32.mrb[244].mxu1 }
 0x5d2   :  { %v7134_v48 = vadd.f32 %v10855_v21, %v17125_v42  ;;  %v10963_v47 = vpop.f32.mrb[245].mxu1 }
 0x5d3   :  { %v10964_v6 = vadd.f32 %v10963_v47, %v10962_v5  ;;  %v10965_v9 = vpop.f32.mrb[246].mxu1 }
 0x5d4   :  { %v10856_v62 = vpop.f32.mrb[248].mxu0  ;;  %v10966_v53 = vpop.f32.mrb[247].mxu1 }
 0x5d5   :  { %v7292_v46 = vadd.f32 %v10964_v6, %v7131_v38  ;;  %v10967_v61 = vadd.f32 %v10966_v53, %v10965_v9  ;;  %v10857_v27 = vpop.f32.mrb[249].mxu0 }
 0x5d6   :  { %v10858_v7 = vadd.f32 %v10857_v27, %v10856_v62  ;;  %v10859_v3 = vpop.f32.mrb[250].mxu0 }
 0x5d7   :  { %7341 = vst [vmem:[#allocation5 + $0x1d0] sm:$0xff] %v7292_v46  ;;  %v7295_v51 = vadd.f32 %v10967_v61, %v7134_v48  ;;  %v10860_v50 = vpop.f32.mrb[251].mxu0 }
 0x5d8   :  { %v7139_v60 = vadd.f32 %v10858_v7, %v17129_v55  ;;  %v10861_v18 = vadd.f32 %v10860_v50, %v10859_v3 }
 0x5d9   :  { %7342 = vst [vmem:[#allocation5 + $0x1d8] sm:$0xff] %v7295_v51  ;;  %v10968_v4 = vpop.f32.mrb[248].mxu1 }
 0x5da   :  { %v7142_v42 = vadd.f32 %v10861_v18, %v17131_v58  ;;  %v10969_v19 = vpop.f32.mrb[249].mxu1 }
 0x5db   :  { %v10970_v45 = vadd.f32 %v10969_v19, %v10968_v4  ;;  %v10971_v22 = vpop.f32.mrb[250].mxu1 }
 0x5dc   :  { %v10862_v24 = vpop.f32.mrb[252].mxu0  ;;  %v10972_v54 = vpop.f32.mrb[251].mxu1 }
 0x5dd   :  { %v7300_v33 = vadd.f32 %v10970_v45, %v7139_v60  ;;  %v10973_v43 = vadd.f32 %v10972_v54, %v10971_v22  ;;  %v10863_v52 = vpop.f32.mrb[253].mxu0 }
 0x5de   :  { %v10864_v41 = vadd.f32 %v10863_v52, %v10862_v24  ;;  %v10865_v29 = vpop.f32.mrb[254].mxu0 }
 0x5df   :  { %7343 = vst [vmem:[#allocation5 + $0x1e0] sm:$0xff] %v7300_v33  ;;  %v7303_v63 = vadd.f32 %v10973_v43, %v7142_v42  ;;  %v10866_v20 = vpop.f32.mrb[255].mxu0 }
 0x5e0   :  { %v7147_v55 = vadd.f32 %v10864_v41, %v17135_v37  ;;  %v10867_v8 = vadd.f32 %v10866_v20, %v10865_v29 }
 0x5e1   :  { %7344 = vst [vmem:[#allocation5 + $0x1e8] sm:$0xff] %v7303_v63  ;;  %v10974_v25 = vpop.f32.mrb[252].mxu1 }
 0x5e2   :  { %v7150_v58 = vadd.f32 %v10867_v8, %v17137_v59  ;;  %v10975_v30 = vpop.f32.mrb[253].mxu1 }
 0x5e3   :  { %v10976_v26 = vadd.f32 %v10975_v30, %v10974_v25  ;;  %v10977_v56 = vpop.f32.mrb[254].mxu1 }
 0x5e4   :  { %v10978_v34 = vpop.f32.mrb[255].mxu1 }
 0x5e5   :  { %v7308_v13 = vadd.f32 %v10976_v26, %v7147_v55  ;;  %v10979_v2 = vadd.f32 %v10978_v34, %v10977_v56 }
 0x5e7   :  { %7345 = vst [vmem:[#allocation5 + $0x1f0] sm:$0xff] %v7308_v13  ;;  %v7311_v23 = vadd.f32 %v10979_v2, %v7150_v58 }
 0x5e9   :  { %7346 = vst [vmem:[#allocation5 + $0x1f8] sm:$0xff] %v7311_v23 }
 0x5ea   :  { %11507 = shalt.err (!%p11504_p12)
}
 0x5eb   :  { %s11508_s27 = scalar_lea.hbm %s17186_s3, 8192 }
 0x5ec   :  { %p11509_p13 = scmp.ne.s32.totalorder %s17186_s3, %s11508_s27  ;;  %p11512_p0 = scmp.lt.u32.totalorder %s11508_s27, %s17186_s3 }
 0x5ee   :  { %p11514_p1 = pnand %p11512_p0, %p11509_p13 }
 0x5f0   :  { %11517 = shalt.err (!%p11514_p1)
}
 0x5f1   :  { %s11531_s4 = smov 128   ;;  %s11532_s5 = smov 8  }
 0x5f2   :  { %7358 = dma.vmem_to_hbm [thread:$0]  %s7353_s23, 8192, %s17186_s3, [#allocation4], %s11531_s4, %s11531_s4, %s11532_s5  }
 0x5f3   :  { %11520 = dma.done.wait [#allocation4], 8192  }
 0x5f4   :  { %11521 = vsyncadd [#allocation4], 4294959104 }
 0x5f5   :  { %7362 = vsyncpa [#allocation3], 1 }
 0x5f6   :  { %7363 = vsyncpa [#allocation4], 1 }

</bundles_post_ra>
